<compile_context>
chip_gen: v6e
topology: v6e:2x2x1
jax: 0.10.0
libtpu: 0.0.40
codegen_flags: <defaults>
</compile_context>

<pallas_src>
import functools

import jax
import jax.numpy as jnp
from jax import lax
from jax.experimental import pallas as pl
from jax.experimental.pallas import tpu as pltpu


# ---------------------------------------------------------------------------
# Configuration
# ---------------------------------------------------------------------------

# bf16 MXU inputs (f32 accumulation).  Set to jnp.float32 for bit-closer
# parity with PyTorch fp32 at ~2-3x lower MXU throughput.
MATMUL_INPUT_DTYPE = jnp.bfloat16
# Inter-layer activation storage dtype (halves HBM traffic for the conv chain).
ACT_DTYPE = jnp.bfloat16

_BN_EVAL_SCALE = float((1.0 + 1e-5) ** -0.5)   # BatchNorm2d eval w/ fresh stats
# TODO(synk): for a trained checkpoint fold the real per-channel running
# mean/var (and affine gamma/beta) instead of this constant.


def _round_up(x, m):
    return (x + m - 1) // m * m


def _tpu_vmem_bytes():
    try:
        info = pltpu.get_tpu_info()
        v = getattr(info, "vmem_capacity_bytes", None)
        if v:
            return int(v)
    except Exception:
        pass
    return 64 * 1024 * 1024


# Generation-dependent tiling: v5e/v6e have 128 MiB VMEM -> larger lane tiles
# keep the InstanceNorm epilogue fused at bigger resolutions; v7x has 64 MiB
# per TensorCore -> keep the conservative budget.
_VMEM_PHYS = _tpu_vmem_bytes()
if _VMEM_PHYS >= 96 * 1024 * 1024:            # v5e / v6e
    M_TILE, N_TILE, K_TILE = 256, 2048, 512
    _VMEM_LIMIT = 64 * 1024 * 1024
else:                                          # v7x (64 MiB per TC)
    M_TILE, N_TILE, K_TILE = 256, 512, 512
    _VMEM_LIMIT = 32 * 1024 * 1024

ATTN_Q_TILE = 512     # query-row tile for the fused attention kernel


def _cparams(n_parallel, n_arbitrary=0):
    sem = ("parallel",) * n_parallel + ("arbitrary",) * n_arbitrary
    return pltpu.CompilerParams(dimension_semantics=sem,
                                vmem_limit_bytes=_VMEM_LIMIT)


# ---------------------------------------------------------------------------
# Batch-folded conv matmul:  out = act(W @ col + bias),  col: (K, B*N)
# (used by the down/up streams: relu / tanh / none epilogues, no InstanceNorm)
# ---------------------------------------------------------------------------

def _conv_mm_folded_kernel(w_ref, col_ref, bias_ref, out_ref, acc_ref, *,
                           k_steps, epilogue):
    kk = pl.program_id(2)

    @pl.when(kk == 0)
    def _init():
        acc_ref[...] = jnp.zeros_like(acc_ref)

    acc_ref[...] += jnp.dot(w_ref[...], col_ref[...],
                            preferred_element_type=jnp.float32)

    @pl.when(kk == k_steps - 1)
    def _finalize():
        y = acc_ref[...] + bias_ref[...]
        if epilogue == "relu":
            y = jnp.maximum(y, 0.0)
        elif epilogue == "tanh":
            y = jnp.tanh(y)
        out_ref[...] = y.astype(out_ref.dtype)


def conv_matmul_folded(w2d, col, bias, *, epilogue="none", out_dtype=ACT_DTYPE):
    """w2d: (M, K), col: (K, L=B*N), bias: (M,).  Returns (M, L) out_dtype."""
    M, K = w2d.shape
    L = col.shape[1]

    bm = min(M, M_TILE)
    bk = min(K, K_TILE)
    if L > N_TILE:
        bl = N_TILE
    elif L >= 256:
        # split into (at least) two lane tiles so both v7x TCs get work
        bl = _round_up(pl.cdiv(L, 2), 128)
    else:
        bl = L
    Mp, Kp, Lp = _round_up(M, bm), _round_up(K, bk), _round_up(L, bl)
    gm, gl, gk = Mp // bm, Lp // bl, Kp // bk

    dt = MATMUL_INPUT_DTYPE
    w2d_p = jnp.pad(w2d, ((0, Mp - M), (0, Kp - K))).astype(dt)
    col_p = jnp.pad(col.astype(dt), ((0, Kp - K), (0, Lp - L)))
    bias_p = jnp.pad(bias.astype(jnp.float32), (0, Mp - M)).reshape(Mp, 1)

    kernel = functools.partial(_conv_mm_folded_kernel, k_steps=gk,
                               epilogue=epilogue)
    out = pl.pallas_call(
        kernel,
        out_shape=jax.ShapeDtypeStruct((Mp, Lp), out_dtype),
        grid=(gm, gl, gk),
        in_specs=[pl.BlockSpec((bm, bk), lambda i, l, k: (i, k)),
                  pl.BlockSpec((bk, bl), lambda i, l, k: (k, l)),
                  pl.BlockSpec((bm, 1), lambda i, l, k: (i, 0))],
        out_specs=pl.BlockSpec((bm, bl), lambda i, l, k: (i, l)),
        scratch_shapes=[pltpu.VMEM((bm, bl), jnp.float32)],
        compiler_params=_cparams(2, 1),
    )(w2d_p, col_p, bias_p)
    if Mp != M or Lp != L:
        out = out[:M, :L]
    return out


# ---------------------------------------------------------------------------
# Per-batch conv matmul (InstanceNorm+ReLU epilogue, fused residual)
# ---------------------------------------------------------------------------

def _conv_mm_kernel(w_ref, col_ref, bias_ref, *rest, k_steps, epilogue,
                    has_residual):
    if has_residual:
        res_ref, out_ref, acc_ref = rest
    else:
        res_ref = None
        out_ref, acc_ref = rest
    kk = pl.program_id(3)

    @pl.when(kk == 0)
    def _init():
        acc_ref[...] = jnp.zeros_like(acc_ref)

    acc_ref[...] += jnp.dot(w_ref[...], col_ref[...],
                            preferred_element_type=jnp.float32)

    @pl.when(kk == k_steps - 1)
    def _finalize():
        y = acc_ref[...] + bias_ref[...]
        if epilogue == "relu":
            y = jnp.maximum(y, 0.0)
        elif epilogue == "tanh":
            y = jnp.tanh(y)
        elif epilogue == "inorm_relu":
            # InstanceNorm2d(affine=False): biased per-(b, c) spatial stats.
            mean = jnp.mean(y, axis=-1, keepdims=True)
            var = jnp.mean((y - mean) ** 2, axis=-1, keepdims=True)
            y = jnp.maximum((y - mean) * lax.rsqrt(var + 1e-5), 0.0)
        if has_residual:
            # double_conv skip: added AFTER the final InstanceNorm+ReLU.
            y = y + res_ref[...].astype(jnp.float32)
        out_ref[...] = y.astype(out_ref.dtype)


def conv_matmul(w2d, col, bias, *, epilogue="none", residual=None,
                out_dtype=ACT_DTYPE):
    """w2d: (M, K), col: (B, K, N), bias: (M,), residual: (B, M, N)|None."""
    B, K, N = col.shape
    M = w2d.shape[0]

    bm = min(M, M_TILE)
    bn = N if N <= N_TILE else N_TILE
    bk = min(K, K_TILE)
    Mp, Np, Kp = _round_up(M, bm), _round_up(N, bn), _round_up(K, bk)
    gm, gn, gk = Mp // bm, Np // bn, Kp // bk

    if epilogue == "inorm_relu":
        # the in-kernel spatial reduction needs the whole (unpadded) row
        assert gn == 1 and Np == N, "inorm_relu needs N in a single tile"

    dt = MATMUL_INPUT_DTYPE
    w2d = jnp.pad(w2d, ((0, Mp - M), (0, Kp - K))).astype(dt)
    col = jnp.pad(col.astype(dt), ((0, 0), (0, Kp - K), (0, Np - N)))
    bias = jnp.pad(bias.astype(jnp.float32), (0, Mp - M)).reshape(Mp, 1)

    in_arrays = [w2d, col, bias]
    in_specs = [
        pl.BlockSpec((bm, bk), lambda b, i, j, k: (i, k)),
        pl.BlockSpec((None, bk, bn), lambda b, i, j, k: (b, k, j)),
        pl.BlockSpec((bm, 1), lambda b, i, j, k: (i, 0)),
    ]
    has_residual = residual is not None
    if has_residual:
        res = jnp.pad(residual, ((0, 0), (0, Mp - M), (0, Np - N)))
        in_arrays.append(res)
        in_specs.append(pl.BlockSpec((None, bm, bn),
                                     lambda b, i, j, k: (b, i, j)))

    kernel = functools.partial(_conv_mm_kernel, k_steps=gk, epilogue=epilogue,
                               has_residual=has_residual)
    out = pl.pallas_call(
        kernel,
        out_shape=jax.ShapeDtypeStruct((B, Mp, Np), out_dtype),
        grid=(B, gm, gn, gk),
        in_specs=in_specs,
        out_specs=pl.BlockSpec((None, bm, bn), lambda b, i, j, k: (b, i, j)),
        scratch_shapes=[pltpu.VMEM((bm, bn), jnp.float32)],
        compiler_params=_cparams(3, 1),
    )(*in_arrays)
    if Mp != M or Np != N:
        out = out[:, :M, :N]
    return out


# ---------------------------------------------------------------------------
# Standalone InstanceNorm+ReLU (+fused residual) fallback for very large N
# ---------------------------------------------------------------------------

def _inorm_relu_kernel(x_ref, *rest, has_residual):
    if has_residual:
        res_ref, o_ref = rest
    else:
        res_ref = None
        (o_ref,) = rest
    x = x_ref[...].astype(jnp.float32)
    mean = jnp.mean(x, axis=-1, keepdims=True)
    var = jnp.mean((x - mean) ** 2, axis=-1, keepdims=True)
    y = jnp.maximum((x - mean) * lax.rsqrt(var + 1e-5), 0.0)
    if has_residual:
        y = y + res_ref[...].astype(jnp.float32)
    o_ref[...] = y.astype(o_ref.dtype)


def instance_norm_relu(x, residual=None):
    """x: (B, C, N) -> InstanceNorm2d(affine=False) + ReLU (+residual)."""
    # TODO(synk): for extreme N the single-tile row reduction should become a
    # two-pass tiled reduction with VMEM partial sums.
    B, C, N = x.shape
    rows = B * C
    rt = min(_round_up(rows, 8), 128)
    rows_p = _round_up(rows, rt)
    flat = jnp.pad(x.reshape(rows, N), ((0, rows_p - rows), (0, 0)))
    args = [flat]
    in_specs = [pl.BlockSpec((rt, N), lambda i: (i, 0))]
    if residual is not None:
        rflat = jnp.pad(residual.reshape(rows, N), ((0, rows_p - rows), (0, 0)))
        args.append(rflat)
        in_specs.append(pl.BlockSpec((rt, N), lambda i: (i, 0)))
    out = pl.pallas_call(
        functools.partial(_inorm_relu_kernel, has_residual=residual is not None),
        out_shape=jax.ShapeDtypeStruct((rows_p, N), ACT_DTYPE),
        grid=(rows_p // rt,),
        in_specs=in_specs,
        out_specs=pl.BlockSpec((rt, N), lambda i: (i, 0)),
        compiler_params=_cparams(1),
    )(*args)
    return out[:rows].reshape(B, C, N)


# ---------------------------------------------------------------------------
# Fused attention: q/k/v 1x1 projections + softmax(q^T k) + v attn^T,
# query-row tiled, with the gamma/beta/skip epilogue fused in-kernel.
# ---------------------------------------------------------------------------

def _fused_attn_kernel(xqt_ref, xqf_ref, xvf_ref, xvt_ref,
                       wq_ref, bq_ref, wk_ref, bk_ref, wv_ref, bv_ref,
                       gamma_ref, add_ref, o_ref):
    dt = MATMUL_INPUT_DTYPE
    # Projections (K/V over the full sequence, Q only over this query tile).
    q = jnp.dot(wq_ref[...], xqt_ref[...],
                preferred_element_type=jnp.float32) + bq_ref[...]     # (cq, TQ)
    k = jnp.dot(wk_ref[...], xqf_ref[...],
                preferred_element_type=jnp.float32) + bk_ref[...]     # (cq, N)
    v = jnp.dot(wv_ref[...], xvf_ref[...],
                preferred_element_type=jnp.float32) + bv_ref[...]     # (cv, N)
    # energy[i, j] = sum_c q[c, i] * k[c, j]   (q^T k on the MXU, no copy)
    energy = lax.dot_general(q.astype(dt), k.astype(dt),
                             (((0,), (0,)), ((), ())),
                             preferred_element_type=jnp.float32)      # (TQ, N)
    m = jnp.max(energy, axis=-1, keepdims=True)
    e = jnp.exp(energy - m)
    # NOTE: approx reciprocal (EUP) deviates slightly from exact division.
    attn = e * pl.reciprocal(jnp.sum(e, axis=-1, keepdims=True), approx=True)
    # out[c, i] = sum_j v[c, j] * attn[i, j]   (v @ attn^T without transposing)
    out = lax.dot_general(v.astype(dt), attn.astype(dt),
                          (((1,), (1,)), ((), ())),
                          preferred_element_type=jnp.float32)         # (cv, TQ)
    # Fused epilogue: gamma*attn_out + add_scale*value_input (Self/Guided attn)
    out = gamma_ref[...] * out + add_ref[...] * xvt_ref[...].astype(jnp.float32)
    o_ref[...] = out.astype(o_ref.dtype)


def fused_attention(xq, xv, p, gamma, add_scale):
    """xq: (B, Cq_in, N) features for q/k; xv: (B, Cv, N) features for v.
    Returns gamma * attention(xq, xv) + add_scale * xv, shape (B, Cv, N).
    The (B, N, N) attention map is never materialized in HBM; the live energy
    block is (TQ, N) thanks to query-row tiling."""
    # TODO(synk): true flash-style online softmax (key tiling) would bound
    # VMEM fully for extreme N; query tiling already caps it at TQ*N.
    B, cin_q, N = xq.shape
    cv = xv.shape[1]
    cq = p['wq'].shape[0]

    if N <= ATTN_Q_TILE:
        tq, Np = N, N
    else:
        tq = ATTN_Q_TILE
        Np = _round_up(N, tq)
    gq = Np // tq

    dt = MATMUL_INPUT_DTYPE
    xq = xq.astype(dt)
    xv = xv.astype(dt)
    # Only the query side is padded (padded query rows are sliced away and do
    # not affect real rows); keys/values stay exact so the softmax is correct.
    xq_t = jnp.pad(xq, ((0, 0), (0, 0), (0, Np - N))) if Np != N else xq
    xv_t = jnp.pad(xv, ((0, 0), (0, 0), (0, Np - N))) if Np != N else xv

    wq = p['wq'].reshape(cq, cin_q).astype(dt)
    wk = p['wk'].reshape(cq, cin_q).astype(dt)
    wv = p['wv'].reshape(cv, cv).astype(dt)
    bq = p['bq'].reshape(cq, 1).astype(jnp.float32)
    bk = p['bk'].reshape(cq, 1).astype(jnp.float32)
    bv = p['bv'].reshape(cv, 1).astype(jnp.float32)
    gam = jnp.reshape(gamma, (1, 1)).astype(jnp.float32)
    add = jnp.reshape(add_scale, (1, 1)).astype(jnp.float32)

    out = pl.pallas_call(
        _fused_attn_kernel,
        out_shape=jax.ShapeDtypeStruct((B, cv, Np), ACT_DTYPE),
        grid=(B, gq),
        in_specs=[
            pl.BlockSpec((None, cin_q, tq), lambda b, qi: (b, 0, qi)),
            pl.BlockSpec((None, cin_q, N), lambda b, qi: (b, 0, 0)),
            pl.BlockSpec((None, cv, N), lambda b, qi: (b, 0, 0)),
            pl.BlockSpec((None, cv, tq), lambda b, qi: (b, 0, qi)),
            pl.BlockSpec((cq, cin_q), lambda b, qi: (0, 0)),
            pl.BlockSpec((cq, 1), lambda b, qi: (0, 0)),
            pl.BlockSpec((cq, cin_q), lambda b, qi: (0, 0)),
            pl.BlockSpec((cq, 1), lambda b, qi: (0, 0)),
            pl.BlockSpec((cv, cv), lambda b, qi: (0, 0)),
            pl.BlockSpec((cv, 1), lambda b, qi: (0, 0)),
            pl.BlockSpec((1, 1), lambda b, qi: (0, 0)),
            pl.BlockSpec((1, 1), lambda b, qi: (0, 0)),
        ],
        out_specs=pl.BlockSpec((None, cv, tq), lambda b, qi: (b, 0, qi)),
        compiler_params=_cparams(2),
    )(xq_t, xq, xv, xv_t, wq, bq, wk, bk, wv, bv, gam, add)
    if Np != N:
        out = out[:, :, :N]
    return out


# ---------------------------------------------------------------------------
# Conv helpers (im2col in JAX, matmul + epilogue in Pallas)
# ---------------------------------------------------------------------------
# TODO(synk): the im2col tensor is still materialized in HBM (kh*kw x input
# bytes); folding the (kh, kw) gather into the kernel's K grid axis would cut
# that traffic by up to 9x (3x3) / 49x (7x7).

def conv2d(x, w, b=None, stride=1, padding=0, *, epilogue="none",
           bn_scale=None, residual=None, out_dtype=ACT_DTYPE):
    """Per-batch NCHW conv (used for the double_conv InstanceNorm path)."""
    if padding > 0:
        x = jnp.pad(x, ((0, 0), (0, 0), (padding, padding), (padding, padding)))
    B, C, H, W = x.shape
    Cout, Cin, kh, kw = w.shape
    OH = (H - kh) // stride + 1
    OW = (W - kw) // stride + 1
    N = OH * OW
    cols = []
    for i in range(kh):
        for j in range(kw):
            cols.append(x[:, :, i:i + stride * (OH - 1) + 1:stride,
                             j:j + stride * (OW - 1) + 1:stride])
    col = jnp.stack(cols, axis=2).reshape(B, C * kh * kw, N)
    w2d = w.reshape(Cout, Cin * kh * kw)
    if bn_scale is not None:                   # fold eval-BN scale into W
        w2d = w2d * bn_scale
    bias = b if b is not None else jnp.zeros((Cout,), jnp.float32)
    res = residual.reshape(B, Cout, N) if residual is not None else None

    if epilogue == "inorm_relu" and N > N_TILE:
        # spatial too large for a single-tile reduction: un-fused fallback
        out = conv_matmul(w2d, col, bias, epilogue="none",
                          out_dtype=jnp.float32)
        out = instance_norm_relu(out, residual=res)
    else:
        out = conv_matmul(w2d, col, bias, epilogue=epilogue, residual=res,
                          out_dtype=out_dtype)
    return out.reshape(B, Cout, OH, OW)


def conv2d_cb(x, w, b=None, stride=1, padding=0, *, epilogue="none",
              bn_scale=None, out_dtype=ACT_DTYPE):
    """Batch-folded conv on channel-major activations.
    x: (Cin, B, H, W) -> (Cout, B, OH, OW); the matmul is (Cout, B*N)."""
    if padding > 0:
        x = jnp.pad(x, ((0, 0), (0, 0), (padding, padding), (padding, padding)))
    C, B, H, W = x.shape
    Cout, Cin, kh, kw = w.shape
    OH = (H - kh) // stride + 1
    OW = (W - kw) // stride + 1
    L = B * OH * OW
    cols = []
    for i in range(kh):
        for j in range(kw):
            cols.append(x[:, :, i:i + stride * (OH - 1) + 1:stride,
                             j:j + stride * (OW - 1) + 1:stride])
    col = jnp.stack(cols, axis=1).reshape(C * kh * kw, L)
    w2d = w.reshape(Cout, Cin * kh * kw)
    if bn_scale is not None:
        w2d = w2d * bn_scale
    bias = b if b is not None else jnp.zeros((Cout,), jnp.float32)
    out = conv_matmul_folded(w2d, col, bias, epilogue=epilogue,
                             out_dtype=out_dtype)
    return out.reshape(Cout, B, OH, OW)


def conv_transpose2d_cb(x, w, b=None, stride=2, padding=1, output_padding=1, *,
                        epilogue="none", bn_scale=None):
    """Batch-folded ConvTranspose2d on (Cin, B, H, W).  w: (Cin, Cout, kh, kw)."""
    # TODO(synk): the zero-dilated input still multiplies ~stride^2 zeros on
    # the MXU; the sub-pixel decomposition would cut that work ~4x.
    C, B, H, W = x.shape
    _, Cout, kh, kw = w.shape
    xd = jnp.zeros((C, B, (H - 1) * stride + 1, (W - 1) * stride + 1), x.dtype)
    xd = xd.at[:, :, ::stride, ::stride].set(x)
    ph = kh - 1 - padding
    pw = kw - 1 - padding
    xd = jnp.pad(xd, ((0, 0), (0, 0),
                      (ph, ph + output_padding), (pw, pw + output_padding)))
    wt = jnp.flip(jnp.transpose(w, (1, 0, 2, 3)), axis=(2, 3))
    return conv2d_cb(xd, wt, b, stride=1, padding=0, epilogue=epilogue,
                     bn_scale=bn_scale)


# ---------------------------------------------------------------------------
# Module forward functions
# ---------------------------------------------------------------------------

def double_conv_fwd(x, p, residual):
    # conv -> IN -> ReLU -> Dropout(eval: id) -> conv -> IN -> ReLU (+skip),
    # norm/relu (and the skip) fused into the conv kernel epilogues.
    y = conv2d(x, p['w1'], p['b1'], padding=1, epilogue="inorm_relu")
    y = conv2d(y, p['w2'], p['b2'], padding=1, epilogue="inorm_relu",
               residual=x if residual else None)
    return y


def self_attn_fwd(x, p):
    # Self_Attn is only invoked as att2(x2, x2), so x0 == x and the epilogue
    # collapses to gamma*attn_out + (beta + 1)*x -- fused inside the kernel.
    B, C, H, W = x.shape
    xf = x.reshape(B, C, H * W)
    out = fused_attention(xf, xf, p, p['gamma'], p['beta'] + 1.0)
    return out.reshape(B, C, H, W)


def guided_attn_fwd(x, x2, p):
    x2 = jnp.concatenate([x, x2], axis=1)
    x2 = self_attn_fwd(x2, p['att2'])
    x2 = double_conv_fwd(x2, p['dconv'], True)
    x = double_conv_fwd(x, p['conv'], True)
    x = double_conv_fwd(x, p['conv2'], True)
    x2 = double_conv_fwd(x2, p['dconv2'], False)

    B, C, H, W = x.shape
    # q, k from x2; v from x; epilogue gamma*out + x fused in-kernel.
    out = fused_attention(x2.reshape(B, C, H * W), x.reshape(B, C, H * W),
                          p, p['gamma'], jnp.ones((1,), jnp.float32))
    return out.reshape(B, C, H, W), x2


def stream_down_fwd(x_cb, p):
    # channel-major (C, B, H, W) activations -> batch folded into lanes
    x_cb = jnp.pad(x_cb, ((0, 0), (0, 0), (3, 3), (3, 3)), mode='reflect')
    x_cb = conv2d_cb(x_cb, p['w0'], epilogue="relu", bn_scale=_BN_EVAL_SCALE)
    x_cb = conv2d_cb(x_cb, p['wd0'], stride=2, padding=1, epilogue="relu",
                     bn_scale=_BN_EVAL_SCALE)
    x_cb = conv2d_cb(x_cb, p['wd1'], stride=2, padding=1, epilogue="relu",
                     bn_scale=_BN_EVAL_SCALE)
    return x_cb


def stream_up_fwd(x, p):
    x_cb = jnp.transpose(x, (1, 0, 2, 3))              # (C, B, h, w)
    x_cb = conv_transpose2d_cb(x_cb, p['wt0'], epilogue="relu",
                               bn_scale=_BN_EVAL_SCALE)
    x_cb = conv_transpose2d_cb(x_cb, p['wt1'], epilogue="relu",
                               bn_scale=_BN_EVAL_SCALE)
    x_cb = jnp.pad(x_cb, ((0, 0), (0, 0), (3, 3), (3, 3)), mode='reflect')
    x_cb = conv2d_cb(x_cb, p['wf'], p['bf'], epilogue="tanh",
                     out_dtype=jnp.float32)            # final 7x7 + Tanh
    return jnp.transpose(x_cb, (1, 0, 2, 3))           # back to (B, C, H, W)


def pona_forward(params, x1, x2):
    # Down streams run in channel-major layout (batch folded into lanes).
    x1 = jnp.transpose(x1, (1, 0, 2, 3)).astype(ACT_DTYPE)
    x2 = jnp.transpose(x2, (1, 0, 2, 3)).astype(ACT_DTYPE)
    x1 = stream_down_fwd(x1, params['s1'])
    x2 = stream_down_fwd(x2, params['s2'])
    # Attention blocks need per-batch layout (InstanceNorm / per-batch attn).
    x1 = jnp.transpose(x1, (1, 0, 2, 3))
    x2 = jnp.transpose(x2, (1, 0, 2, 3))
    for bp in params['att']:
        x1, x2 = guided_attn_fwd(x1, x2, bp)
    return stream_up_fwd(x1, params['up'])


# ---------------------------------------------------------------------------
# Deterministic parameter initialization (shapes follow the PyTorch __init__)
# ---------------------------------------------------------------------------

def init_params(key, input_nc, output_nc, ngf, n_blocks=3):
    keys = iter(jax.random.split(key, 4096))

    def w(shape, scale=0.05):
        return jax.random.normal(next(keys), shape, jnp.float32) * scale

    def zeros(shape):
        return jnp.zeros(shape, jnp.float32)

    def dc_params(cin, cout):
        return {'w1': w((cin, cin, 3, 3)), 'b1': zeros((cin,)),
                'w2': w((cout, cin, 3, 3)), 'b2': zeros((cout,))}

    def self_attn_params(c):
        return {'wq': w((c // 8, c, 1, 1)), 'bq': zeros((c // 8,)),
                'wk': w((c // 8, c, 1, 1)), 'bk': zeros((c // 8,)),
                'wv': w((c, c, 1, 1)), 'bv': zeros((c,)),
                'gamma': zeros((1,)), 'beta': zeros((1,))}

    def guided_attn_params(c):
        c2 = 2 * c
        return {'wq': w((c // 8, c, 1, 1)), 'bq': zeros((c // 8,)),
                'wk': w((c // 8, c, 1, 1)), 'bk': zeros((c // 8,)),
                'wv': w((c, c, 1, 1)), 'bv': zeros((c,)),
                'gamma': zeros((1,)),
                'conv': dc_params(c, c),
                'dconv': dc_params(c2, c2),
                'conv2': dc_params(c, c),
                'dconv2': dc_params(c2, c),
                'att2': self_attn_params(c2)}

    def stream_down_params(in_nc):
        return {'w0': w((ngf, in_nc, 7, 7)),          # bias=False (BatchNorm)
                'wd0': w((2 * ngf, ngf, 3, 3)),
                'wd1': w((4 * ngf, 2 * ngf, 3, 3))}

    c_bottleneck = 4 * ngf
    params = {
        's1': stream_down_params(input_nc[0]),
        's2': stream_down_params(input_nc[1]),
        'att': [guided_attn_params(c_bottleneck) for _ in range(n_blocks)],
        'up': {'wt0': w((4 * ngf, 2 * ngf, 3, 3)),    # ConvTranspose (Cin,Cout,k,k)
               'wt1': w((2 * ngf, ngf, 3, 3)),
               'wf': w((output_nc, ngf, 7, 7)), 'bf': zeros((output_nc,))},
    }
    return params


# ---------------------------------------------------------------------------
if __name__ == "__main__":
    key = jax.random.PRNGKey(0)
    kp, kx1, kx2 = jax.random.split(key, 3)

    B, H, W = 2, 16, 16
    input_nc = [3, 3]
    output_nc = 3
    ngf = 8          # bottleneck channels = 4*ngf = 32

    params = init_params(kp, input_nc, output_nc, ngf, n_blocks=3)
    x1 = jax.random.normal(kx1, (B, input_nc[0], H, W), jnp.float32)
    x2 = jax.random.normal(kx2, (B, input_nc[1], H, W), jnp.float32)

    fwd = jax.jit(functools.partial(pona_forward, params))
    out = fwd(x1, x2)
    out = jax.block_until_ready(out)
    assert out.shape == (B, output_nc, H, W), out.shape
    assert bool(jnp.all(jnp.isfinite(out)))
    print("KERNEL_OK")
</pallas_src>

<mosaic_0001>
module attributes {stable_mosaic.version = 11 : i64} {
  func.func @_conv_mm_folded_kernel(%arg0: i32, %arg1: i32, %arg2: i32, %arg3: memref<8x147xbf16, #tpu.memory_space<vmem>>, %arg4: memref<147x256xbf16, #tpu.memory_space<vmem>>, %arg5: memref<8x1xf32, #tpu.memory_space<vmem>>, %arg6: memref<8x256xbf16, #tpu.memory_space<vmem>>, %arg7: memref<8x256xf32, #tpu.memory_space<vmem>>) attributes {dimension_semantics = [#tpu.dimension_semantics<parallel>, #tpu.dimension_semantics<parallel>, #tpu.dimension_semantics<arbitrary>], iteration_bounds = array<i64: 1, 2, 1>, scalar_prefetch = 0 : i64, scratch_operands = 1 : i64, tpu.core_type = #tpu.core_type<tc>, window_params = [{transform_indices = @transform_0, window_bounds = array<i64: 8, 147>}, {transform_indices = @transform_1, window_bounds = array<i64: 147, 256>}, {transform_indices = @transform_2, window_bounds = array<i64: 8, 1>}, {transform_indices = @transform_3, window_bounds = array<i64: 8, 256>}]} {
    %c0_i32 = arith.constant 0 : i32
    %0 = arith.cmpi eq, %arg2, %c0_i32 : i32
    %1 = arith.extui %0 : i1 to i32
    %c0_i32_0 = arith.constant 0 : i32
    %2 = arith.cmpi ne, %1, %c0_i32_0 : i32
    scf.if %2 {
      %cst_10 = arith.constant 0.000000e+00 : f32
      %12 = vector.broadcast %cst_10 : f32 to vector<8x256xf32>
      %c0_11 = arith.constant 0 : index
      %c0_12 = arith.constant 0 : index
      %13 = vector.load %arg7[%c0_11, %c0_12] : memref<8x256xf32, #tpu.memory_space<vmem>>, vector<8x256xf32>
      tpu.vector_store %arg7[%c0_11, %c0_12], %12 {strides = array<i32>} : memref<8x256xf32, #tpu.memory_space<vmem>>, vector<8x256xf32>,
    } else {
    }
    %c0 = arith.constant 0 : index
    %c0_1 = arith.constant 0 : index
    %3 = vector.load %arg7[%c0, %c0_1] : memref<8x256xf32, #tpu.memory_space<vmem>>, vector<8x256xf32>
    %c0_2 = arith.constant 0 : index
    %c0_3 = arith.constant 0 : index
    %4 = vector.load %arg3[%c0_2, %c0_3] : memref<8x147xbf16, #tpu.memory_space<vmem>>, vector<8x147xbf16>
    %c0_4 = arith.constant 0 : index
    %c0_5 = arith.constant 0 : index
    %5 = vector.load %arg4[%c0_4, %c0_5] : memref<147x256xbf16, #tpu.memory_space<vmem>>, vector<147x256xbf16>
    %cst = arith.constant dense<0.000000e+00> : vector<8x256xf32>
    %6 = tpu.matmul %4, %5, %cst {dimension_numbers = #tpu.dot_dimension_numbers<[1], [0], [0], [1], [0, 0, 1, 1], [], []>} : vector<8x147xbf16>, vector<147x256xbf16>, vector<8x256xf32> -> vector<8x256xf32>
    %7 = arith.addf %3, %6 : vector<8x256xf32>
    %c0_6 = arith.constant 0 : index
    %c0_7 = arith.constant 0 : index
    %8 = vector.load %arg7[%c0_6, %c0_7] : memref<8x256xf32, #tpu.memory_space<vmem>>, vector<8x256xf32>
    tpu.vector_store %arg7[%c0_6, %c0_7], %7 {strides = array<i32>} : memref<8x256xf32, #tpu.memory_space<vmem>>, vector<8x256xf32>,
    %c0_i32_8 = arith.constant 0 : i32
    %9 = arith.cmpi eq, %arg2, %c0_i32_8 : i32
    %10 = arith.extui %9 : i1 to i32
    %c0_i32_9 = arith.constant 0 : i32
    %11 = arith.cmpi ne, %10, %c0_i32_9 : i32
    scf.if %11 {
      %c0_10 = arith.constant 0 : index
      %c0_11 = arith.constant 0 : index
      %12 = vector.load %arg7[%c0_10, %c0_11] : memref<8x256xf32, #tpu.memory_space<vmem>>, vector<8x256xf32>
      %c0_12 = arith.constant 0 : index
      %c0_13 = arith.constant 0 : index
      %13 = vector.load %arg5[%c0_12, %c0_13] : memref<8x1xf32, #tpu.memory_space<vmem>>, vector<8x1xf32>
      %14 = vector.broadcast %13 : vector<8x1xf32> to vector<8x256xf32>
      %15 = arith.addf %12, %14 : vector<8x256xf32>
      %cst_14 = arith.constant 0.000000e+00 : f32
      %16 = vector.broadcast %cst_14 : f32 to vector<8x256xf32>
      %17 = arith.maximumf %15, %16 : vector<8x256xf32>
      %18 = arith.truncf %17 : vector<8x256xf32> to vector<8x256xbf16>
      %c0_15 = arith.constant 0 : index
      %c0_16 = arith.constant 0 : index
      %19 = vector.load %arg6[%c0_15, %c0_16] : memref<8x256xbf16, #tpu.memory_space<vmem>>, vector<8x256xbf16>
      tpu.vector_store %arg6[%c0_15, %c0_16], %18 {strides = array<i32>} : memref<8x256xbf16, #tpu.memory_space<vmem>>, vector<8x256xbf16>,
    } else {
    }
    return
  }
  func.func @transform_0(%arg0: i32, %arg1: i32, %arg2: i32) -> (i32, i32) {
    %c0_i32 = arith.constant 0 : i32
    return %arg0, %arg2 : i32, i32
  }
  func.func @transform_1(%arg0: i32, %arg1: i32, %arg2: i32) -> (i32, i32) {
    %c0_i32 = arith.constant 0 : i32
    return %arg2, %arg1 : i32, i32
  }
  func.func @transform_2(%arg0: i32, %arg1: i32, %arg2: i32) -> (i32, i32) {
    %c0_i32 = arith.constant 0 : i32
    %c0_i32_0 = arith.constant 0 : i32
    return %arg0, %c0_i32 : i32, i32
  }
  func.func @transform_3(%arg0: i32, %arg1: i32, %arg2: i32) -> (i32, i32) {
    %c0_i32 = arith.constant 0 : i32
    return %arg0, %arg1 : i32, i32
  }
}

module attributes {stable_mosaic.version = 11 : i64} {
  func.func @_conv_mm_folded_kernel(%arg0: i32, %arg1: i32, %arg2: i32, %arg3: memref<16x72xbf16, #tpu.memory_space<vmem>>, %arg4: memref<72x128xbf16, #tpu.memory_space<vmem>>, %arg5: memref<16x1xf32, #tpu.memory_space<vmem>>, %arg6: memref<16x128xbf16, #tpu.memory_space<vmem>>, %arg7: memref<16x128xf32, #tpu.memory_space<vmem>>) attributes {dimension_semantics = [#tpu.dimension_semantics<parallel>, #tpu.dimension_semantics<parallel>, #tpu.dimension_semantics<arbitrary>], iteration_bounds = array<i64: 1, 1, 1>, scalar_prefetch = 0 : i64, scratch_operands = 1 : i64, tpu.core_type = #tpu.core_type<tc>, window_params = [{transform_indices = @transform_0, window_bounds = array<i64: 16, 72>}, {transform_indices = @transform_1, window_bounds = array<i64: 72, 128>}, {transform_indices = @transform_2, window_bounds = array<i64: 16, 1>}, {transform_indices = @transform_3, window_bounds = array<i64: 16, 128>}]} {
    %c0_i32 = arith.constant 0 : i32
    %0 = arith.cmpi eq, %arg2, %c0_i32 : i32
    %1 = arith.extui %0 : i1 to i32
    %c0_i32_0 = arith.constant 0 : i32
    %2 = arith.cmpi ne, %1, %c0_i32_0 : i32
    scf.if %2 {
      %cst_10 = arith.constant 0.000000e+00 : f32
      %12 = vector.broadcast %cst_10 : f32 to vector<16x128xf32>
      %c0_11 = arith.constant 0 : index
      %c0_12 = arith.constant 0 : index
      %13 = vector.load %arg7[%c0_11, %c0_12] : memref<16x128xf32, #tpu.memory_space<vmem>>, vector<16x128xf32>
      tpu.vector_store %arg7[%c0_11, %c0_12], %12 {strides = array<i32>} : memref<16x128xf32, #tpu.memory_space<vmem>>, vector<16x128xf32>,
    } else {
    }
    %c0 = arith.constant 0 : index
    %c0_1 = arith.constant 0 : index
    %3 = vector.load %arg7[%c0, %c0_1] : memref<16x128xf32, #tpu.memory_space<vmem>>, vector<16x128xf32>
    %c0_2 = arith.constant 0 : index
    %c0_3 = arith.constant 0 : index
    %4 = vector.load %arg3[%c0_2, %c0_3] : memref<16x72xbf16, #tpu.memory_space<vmem>>, vector<16x72xbf16>
    %c0_4 = arith.constant 0 : index
    %c0_5 = arith.constant 0 : index
    %5 = vector.load %arg4[%c0_4, %c0_5] : memref<72x128xbf16, #tpu.memory_space<vmem>>, vector<72x128xbf16>
    %cst = arith.constant dense<0.000000e+00> : vector<16x128xf32>
    %6 = tpu.matmul %4, %5, %cst {dimension_numbers = #tpu.dot_dimension_numbers<[1], [0], [0], [1], [0, 0, 1, 1], [], []>} : vector<16x72xbf16>, vector<72x128xbf16>, vector<16x128xf32> -> vector<16x128xf32>
    %7 = arith.addf %3, %6 : vector<16x128xf32>
    %c0_6 = arith.constant 0 : index
    %c0_7 = arith.constant 0 : index
    %8 = vector.load %arg7[%c0_6, %c0_7] : memref<16x128xf32, #tpu.memory_space<vmem>>, vector<16x128xf32>
    tpu.vector_store %arg7[%c0_6, %c0_7], %7 {strides = array<i32>} : memref<16x128xf32, #tpu.memory_space<vmem>>, vector<16x128xf32>,
    %c0_i32_8 = arith.constant 0 : i32
    %9 = arith.cmpi eq, %arg2, %c0_i32_8 : i32
    %10 = arith.extui %9 : i1 to i32
    %c0_i32_9 = arith.constant 0 : i32
    %11 = arith.cmpi ne, %10, %c0_i32_9 : i32
    scf.if %11 {
      %c0_10 = arith.constant 0 : index
      %c0_11 = arith.constant 0 : index
      %12 = vector.load %arg7[%c0_10, %c0_11] : memref<16x128xf32, #tpu.memory_space<vmem>>, vector<16x128xf32>
      %c0_12 = arith.constant 0 : index
      %c0_13 = arith.constant 0 : index
      %13 = vector.load %arg5[%c0_12, %c0_13] : memref<16x1xf32, #tpu.memory_space<vmem>>, vector<16x1xf32>
      %14 = vector.broadcast %13 : vector<16x1xf32> to vector<16x128xf32>
      %15 = arith.addf %12, %14 : vector<16x128xf32>
      %cst_14 = arith.constant 0.000000e+00 : f32
      %16 = vector.broadcast %cst_14 : f32 to vector<16x128xf32>
      %17 = arith.maximumf %15, %16 : vector<16x128xf32>
      %18 = arith.truncf %17 : vector<16x128xf32> to vector<16x128xbf16>
      %c0_15 = arith.constant 0 : index
      %c0_16 = arith.constant 0 : index
      %19 = vector.load %arg6[%c0_15, %c0_16] : memref<16x128xbf16, #tpu.memory_space<vmem>>, vector<16x128xbf16>
      tpu.vector_store %arg6[%c0_15, %c0_16], %18 {strides = array<i32>} : memref<16x128xbf16, #tpu.memory_space<vmem>>, vector<16x128xbf16>,
    } else {
    }
    return
  }
  func.func @transform_0(%arg0: i32, %arg1: i32, %arg2: i32) -> (i32, i32) {
    %c0_i32 = arith.constant 0 : i32
    return %arg0, %arg2 : i32, i32
  }
  func.func @transform_1(%arg0: i32, %arg1: i32, %arg2: i32) -> (i32, i32) {
    %c0_i32 = arith.constant 0 : i32
    return %arg2, %arg1 : i32, i32
  }
  func.func @transform_2(%arg0: i32, %arg1: i32, %arg2: i32) -> (i32, i32) {
    %c0_i32 = arith.constant 0 : i32
    %c0_i32_0 = arith.constant 0 : i32
    return %arg0, %c0_i32 : i32, i32
  }
  func.func @transform_3(%arg0: i32, %arg1: i32, %arg2: i32) -> (i32, i32) {
    %c0_i32 = arith.constant 0 : i32
    return %arg0, %arg1 : i32, i32
  }
}

module attributes {stable_mosaic.version = 11 : i64} {
  func.func @_conv_mm_folded_kernel(%arg0: i32, %arg1: i32, %arg2: i32, %arg3: memref<32x144xbf16, #tpu.memory_space<vmem>>, %arg4: memref<144x32xbf16, #tpu.memory_space<vmem>>, %arg5: memref<32x1xf32, #tpu.memory_space<vmem>>, %arg6: memref<32x32xbf16, #tpu.memory_space<vmem>>, %arg7: memref<32x32xf32, #tpu.memory_space<vmem>>) attributes {dimension_semantics = [#tpu.dimension_semantics<parallel>, #tpu.dimension_semantics<parallel>, #tpu.dimension_semantics<arbitrary>], iteration_bounds = array<i64: 1, 1, 1>, scalar_prefetch = 0 : i64, scratch_operands = 1 : i64, tpu.core_type = #tpu.core_type<tc>, window_params = [{transform_indices = @transform_0, window_bounds = array<i64: 32, 144>}, {transform_indices = @transform_1, window_bounds = array<i64: 144, 32>}, {transform_indices = @transform_2, window_bounds = array<i64: 32, 1>}, {transform_indices = @transform_3, window_bounds = array<i64: 32, 32>}]} {
    %c0_i32 = arith.constant 0 : i32
    %0 = arith.cmpi eq, %arg2, %c0_i32 : i32
    %1 = arith.extui %0 : i1 to i32
    %c0_i32_0 = arith.constant 0 : i32
    %2 = arith.cmpi ne, %1, %c0_i32_0 : i32
    scf.if %2 {
      %cst_10 = arith.constant 0.000000e+00 : f32
      %12 = vector.broadcast %cst_10 : f32 to vector<32x32xf32>
      %c0_11 = arith.constant 0 : index
      %c0_12 = arith.constant 0 : index
      %13 = vector.load %arg7[%c0_11, %c0_12] : memref<32x32xf32, #tpu.memory_space<vmem>>, vector<32x32xf32>
      tpu.vector_store %arg7[%c0_11, %c0_12], %12 {strides = array<i32>} : memref<32x32xf32, #tpu.memory_space<vmem>>, vector<32x32xf32>,
    } else {
    }
    %c0 = arith.constant 0 : index
    %c0_1 = arith.constant 0 : index
    %3 = vector.load %arg7[%c0, %c0_1] : memref<32x32xf32, #tpu.memory_space<vmem>>, vector<32x32xf32>
    %c0_2 = arith.constant 0 : index
    %c0_3 = arith.constant 0 : index
    %4 = vector.load %arg3[%c0_2, %c0_3] : memref<32x144xbf16, #tpu.memory_space<vmem>>, vector<32x144xbf16>
    %c0_4 = arith.constant 0 : index
    %c0_5 = arith.constant 0 : index
    %5 = vector.load %arg4[%c0_4, %c0_5] : memref<144x32xbf16, #tpu.memory_space<vmem>>, vector<144x32xbf16>
    %cst = arith.constant dense<0.000000e+00> : vector<32x32xf32>
    %6 = tpu.matmul %4, %5, %cst {dimension_numbers = #tpu.dot_dimension_numbers<[1], [0], [0], [1], [0, 0, 1, 1], [], []>} : vector<32x144xbf16>, vector<144x32xbf16>, vector<32x32xf32> -> vector<32x32xf32>
    %7 = arith.addf %3, %6 : vector<32x32xf32>
    %c0_6 = arith.constant 0 : index
    %c0_7 = arith.constant 0 : index
    %8 = vector.load %arg7[%c0_6, %c0_7] : memref<32x32xf32, #tpu.memory_space<vmem>>, vector<32x32xf32>
    tpu.vector_store %arg7[%c0_6, %c0_7], %7 {strides = array<i32>} : memref<32x32xf32, #tpu.memory_space<vmem>>, vector<32x32xf32>,
    %c0_i32_8 = arith.constant 0 : i32
    %9 = arith.cmpi eq, %arg2, %c0_i32_8 : i32
    %10 = arith.extui %9 : i1 to i32
    %c0_i32_9 = arith.constant 0 : i32
    %11 = arith.cmpi ne, %10, %c0_i32_9 : i32
    scf.if %11 {
      %c0_10 = arith.constant 0 : index
      %c0_11 = arith.constant 0 : index
      %12 = vector.load %arg7[%c0_10, %c0_11] : memref<32x32xf32, #tpu.memory_space<vmem>>, vector<32x32xf32>
      %c0_12 = arith.constant 0 : index
      %c0_13 = arith.constant 0 : index
      %13 = vector.load %arg5[%c0_12, %c0_13] : memref<32x1xf32, #tpu.memory_space<vmem>>, vector<32x1xf32>
      %14 = vector.broadcast %13 : vector<32x1xf32> to vector<32x32xf32>
      %15 = arith.addf %12, %14 : vector<32x32xf32>
      %cst_14 = arith.constant 0.000000e+00 : f32
      %16 = vector.broadcast %cst_14 : f32 to vector<32x32xf32>
      %17 = arith.maximumf %15, %16 : vector<32x32xf32>
      %18 = arith.truncf %17 : vector<32x32xf32> to vector<32x32xbf16>
      %c0_15 = arith.constant 0 : index
      %c0_16 = arith.constant 0 : index
      %19 = vector.load %arg6[%c0_15, %c0_16] : memref<32x32xbf16, #tpu.memory_space<vmem>>, vector<32x32xbf16>
      tpu.vector_store %arg6[%c0_15, %c0_16], %18 {strides = array<i32>} : memref<32x32xbf16, #tpu.memory_space<vmem>>, vector<32x32xbf16>,
    } else {
    }
    return
  }
  func.func @transform_0(%arg0: i32, %arg1: i32, %arg2: i32) -> (i32, i32) {
    %c0_i32 = arith.constant 0 : i32
    return %arg0, %arg2 : i32, i32
  }
  func.func @transform_1(%arg0: i32, %arg1: i32, %arg2: i32) -> (i32, i32) {
    %c0_i32 = arith.constant 0 : i32
    return %arg2, %arg1 : i32, i32
  }
  func.func @transform_2(%arg0: i32, %arg1: i32, %arg2: i32) -> (i32, i32) {
    %c0_i32 = arith.constant 0 : i32
    %c0_i32_0 = arith.constant 0 : i32
    return %arg0, %c0_i32 : i32, i32
  }
  func.func @transform_3(%arg0: i32, %arg1: i32, %arg2: i32) -> (i32, i32) {
    %c0_i32 = arith.constant 0 : i32
    return %arg0, %arg1 : i32, i32
  }
}

module attributes {stable_mosaic.version = 11 : i64} {
  func.func @_conv_mm_kernel(%arg0: i32, %arg1: i32, %arg2: i32, %arg3: i32, %arg4: memref<32x288xbf16, #tpu.memory_space<vmem>>, %arg5: memref<1x288x16xbf16, #tpu.memory_space<vmem>>, %arg6: memref<32x1xf32, #tpu.memory_space<vmem>>, %arg7: memref<1x32x16xbf16, #tpu.memory_space<vmem>>, %arg8: memref<32x16xf32, #tpu.memory_space<vmem>>) attributes {dimension_semantics = [#tpu.dimension_semantics<parallel>, #tpu.dimension_semantics<parallel>, #tpu.dimension_semantics<parallel>, #tpu.dimension_semantics<arbitrary>], iteration_bounds = array<i64: 2, 1, 1, 1>, scalar_prefetch = 0 : i64, scratch_operands = 1 : i64, tpu.core_type = #tpu.core_type<tc>, window_params = [{transform_indices = @transform_0, window_bounds = array<i64: 32, 288>}, {transform_indices = @transform_1, window_bounds = array<i64: 1, 288, 16>}, {transform_indices = @transform_2, window_bounds = array<i64: 32, 1>}, {transform_indices = @transform_3, window_bounds = array<i64: 1, 32, 16>}]} {
    %c0_i32 = arith.constant 0 : i32
    %0 = arith.cmpi eq, %arg3, %c0_i32 : i32
    %1 = arith.extui %0 : i1 to i32
    %c0_i32_0 = arith.constant 0 : i32
    %2 = arith.cmpi ne, %1, %c0_i32_0 : i32
    scf.if %2 {
      %cst_11 = arith.constant 0.000000e+00 : f32
      %13 = vector.broadcast %cst_11 : f32 to vector<32x16xf32>
      %c0_12 = arith.constant 0 : index
      %c0_13 = arith.constant 0 : index
      %14 = vector.load %arg8[%c0_12, %c0_13] : memref<32x16xf32, #tpu.memory_space<vmem>>, vector<32x16xf32>
      tpu.vector_store %arg8[%c0_12, %c0_13], %13 {strides = array<i32>} : memref<32x16xf32, #tpu.memory_space<vmem>>, vector<32x16xf32>,
    } else {
    }
    %c0 = arith.constant 0 : index
    %c0_1 = arith.constant 0 : index
    %3 = vector.load %arg8[%c0, %c0_1] : memref<32x16xf32, #tpu.memory_space<vmem>>, vector<32x16xf32>
    %c0_2 = arith.constant 0 : index
    %c0_3 = arith.constant 0 : index
    %4 = vector.load %arg4[%c0_2, %c0_3] : memref<32x288xbf16, #tpu.memory_space<vmem>>, vector<32x288xbf16>
    %c0_4 = arith.constant 0 : index
    %c0_5 = arith.constant 0 : index
    %c0_6 = arith.constant 0 : index
    %5 = vector.load %arg5[%c0_4, %c0_5, %c0_6] : memref<1x288x16xbf16, #tpu.memory_space<vmem>>, vector<1x288x16xbf16>
    %6 = vector.shape_cast %5 : vector<1x288x16xbf16> to vector<288x16xbf16>
    %cst = arith.constant dense<0.000000e+00> : vector<32x16xf32>
    %7 = tpu.matmul %4, %6, %cst {dimension_numbers = #tpu.dot_dimension_numbers<[1], [0], [0], [1], [0, 0, 1, 1], [], []>} : vector<32x288xbf16>, vector<288x16xbf16>, vector<32x16xf32> -> vector<32x16xf32>
    %8 = arith.addf %3, %7 : vector<32x16xf32>
    %c0_7 = arith.constant 0 : index
    %c0_8 = arith.constant 0 : index
    %9 = vector.load %arg8[%c0_7, %c0_8] : memref<32x16xf32, #tpu.memory_space<vmem>>, vector<32x16xf32>
    tpu.vector_store %arg8[%c0_7, %c0_8], %8 {strides = array<i32>} : memref<32x16xf32, #tpu.memory_space<vmem>>, vector<32x16xf32>,
    %c0_i32_9 = arith.constant 0 : i32
    %10 = arith.cmpi eq, %arg3, %c0_i32_9 : i32
    %11 = arith.extui %10 : i1 to i32
    %c0_i32_10 = arith.constant 0 : i32
    %12 = arith.cmpi ne, %11, %c0_i32_10 : i32
    scf.if %12 {
      %c0_11 = arith.constant 0 : index
      %c0_12 = arith.constant 0 : index
      %13 = vector.load %arg8[%c0_11, %c0_12] : memref<32x16xf32, #tpu.memory_space<vmem>>, vector<32x16xf32>
      %c0_13 = arith.constant 0 : index
      %c0_14 = arith.constant 0 : index
      %14 = vector.load %arg6[%c0_13, %c0_14] : memref<32x1xf32, #tpu.memory_space<vmem>>, vector<32x1xf32>
      %15 = vector.broadcast %14 : vector<32x1xf32> to vector<32x16xf32>
      %16 = arith.addf %13, %15 : vector<32x16xf32>
      %cst_15 = arith.constant dense<0.000000e+00> : vector<32xf32>
      %17 = vector.multi_reduction <add>, %16, %cst_15 [1] : vector<32x16xf32> to vector<32xf32>
      %18 = vector.shape_cast %17 : vector<32xf32> to vector<32x1xf32>
      %cst_16 = arith.constant 1.600000e+01 : f32
      %19 = vector.broadcast %cst_16 : f32 to vector<32x1xf32>
      %20 = arith.divf %18, %19 : vector<32x1xf32>
      %21 = vector.broadcast %20 : vector<32x1xf32> to vector<32x16xf32>
      %22 = arith.subf %16, %21 : vector<32x16xf32>
      %23 = arith.mulf %22, %22 : vector<32x16xf32>
      %cst_17 = arith.constant dense<0.000000e+00> : vector<32xf32>
      %24 = vector.multi_reduction <add>, %23, %cst_17 [1] : vector<32x16xf32> to vector<32xf32>
      %25 = vector.shape_cast %24 : vector<32xf32> to vector<32x1xf32>
      %cst_18 = arith.constant 1.600000e+01 : f32
      %26 = vector.broadcast %cst_18 : f32 to vector<32x1xf32>
      %27 = arith.divf %25, %26 : vector<32x1xf32>
      %28 = vector.broadcast %20 : vector<32x1xf32> to vector<32x16xf32>
      %29 = arith.subf %16, %28 : vector<32x16xf32>
      %cst_19 = arith.constant 9.99999974E-6 : f32
      %30 = vector.broadcast %cst_19 : f32 to vector<32x1xf32>
      %31 = arith.addf %27, %30 : vector<32x1xf32>
      %32 = math.rsqrt %31 : vector<32x1xf32>
      %33 = vector.broadcast %32 : vector<32x1xf32> to vector<32x16xf32>
      %34 = arith.mulf %29, %33 : vector<32x16xf32>
      %cst_20 = arith.constant 0.000000e+00 : f32
      %35 = vector.broadcast %cst_20 : f32 to vector<32x16xf32>
      %36 = arith.maximumf %34, %35 : vector<32x16xf32>
      %37 = arith.truncf %36 : vector<32x16xf32> to vector<32x16xbf16>
      %c0_21 = arith.constant 0 : index
      %c0_22 = arith.constant 0 : index
      %c0_23 = arith.constant 0 : index
      %38 = vector.load %arg7[%c0_21, %c0_22, %c0_23] : memref<1x32x16xbf16, #tpu.memory_space<vmem>>, vector<1x32x16xbf16>
      %39 = vector.shape_cast %38 : vector<1x32x16xbf16> to vector<32x16xbf16>
      %40 = vector.shape_cast %37 : vector<32x16xbf16> to vector<1x32x16xbf16>
      tpu.vector_store %arg7[%c0_21, %c0_22, %c0_23], %40 {strides = array<i32>} : memref<1x32x16xbf16, #tpu.memory_space<vmem>>, vector<1x32x16xbf16>,
    } else {
    }
    return
  }
  func.func @transform_0(%arg0: i32, %arg1: i32, %arg2: i32, %arg3: i32) -> (i32, i32) {
    %c0_i32 = arith.constant 0 : i32
    return %arg1, %arg3 : i32, i32
  }
  func.func @transform_1(%arg0: i32, %arg1: i32, %arg2: i32, %arg3: i32) -> (i32, i32, i32) {
    %c0_i32 = arith.constant 0 : i32
    return %arg0, %arg3, %arg2 : i32, i32, i32
  }
  func.func @transform_2(%arg0: i32, %arg1: i32, %arg2: i32, %arg3: i32) -> (i32, i32) {
    %c0_i32 = arith.constant 0 : i32
    %c0_i32_0 = arith.constant 0 : i32
    return %arg1, %c0_i32 : i32, i32
  }
  func.func @transform_3(%arg0: i32, %arg1: i32, %arg2: i32, %arg3: i32) -> (i32, i32, i32) {
    %c0_i32 = arith.constant 0 : i32
    return %arg0, %arg1, %arg2 : i32, i32, i32
  }
}

module attributes {stable_mosaic.version = 11 : i64} {
  func.func @_conv_mm_kernel(%arg0: i32, %arg1: i32, %arg2: i32, %arg3: i32, %arg4: memref<32x288xbf16, #tpu.memory_space<vmem>>, %arg5: memref<1x288x16xbf16, #tpu.memory_space<vmem>>, %arg6: memref<32x1xf32, #tpu.memory_space<vmem>>, %arg7: memref<1x32x16xbf16, #tpu.memory_space<vmem>>, %arg8: memref<1x32x16xbf16, #tpu.memory_space<vmem>>, %arg9: memref<32x16xf32, #tpu.memory_space<vmem>>) attributes {dimension_semantics = [#tpu.dimension_semantics<parallel>, #tpu.dimension_semantics<parallel>, #tpu.dimension_semantics<parallel>, #tpu.dimension_semantics<arbitrary>], iteration_bounds = array<i64: 2, 1, 1, 1>, scalar_prefetch = 0 : i64, scratch_operands = 1 : i64, tpu.core_type = #tpu.core_type<tc>, window_params = [{transform_indices = @transform_0, window_bounds = array<i64: 32, 288>}, {transform_indices = @transform_1, window_bounds = array<i64: 1, 288, 16>}, {transform_indices = @transform_2, window_bounds = array<i64: 32, 1>}, {transform_indices = @transform_3, window_bounds = array<i64: 1, 32, 16>}, {transform_indices = @transform_4, window_bounds = array<i64: 1, 32, 16>}]} {
    %c0_i32 = arith.constant 0 : i32
    %0 = arith.cmpi eq, %arg3, %c0_i32 : i32
    %1 = arith.extui %0 : i1 to i32
    %c0_i32_0 = arith.constant 0 : i32
    %2 = arith.cmpi ne, %1, %c0_i32_0 : i32
    scf.if %2 {
      %cst_11 = arith.constant 0.000000e+00 : f32
      %13 = vector.broadcast %cst_11 : f32 to vector<32x16xf32>
      %c0_12 = arith.constant 0 : index
      %c0_13 = arith.constant 0 : index
      %14 = vector.load %arg9[%c0_12, %c0_13] : memref<32x16xf32, #tpu.memory_space<vmem>>, vector<32x16xf32>
      tpu.vector_store %arg9[%c0_12, %c0_13], %13 {strides = array<i32>} : memref<32x16xf32, #tpu.memory_space<vmem>>, vector<32x16xf32>,
    } else {
    }
    %c0 = arith.constant 0 : index
    %c0_1 = arith.constant 0 : index
    %3 = vector.load %arg9[%c0, %c0_1] : memref<32x16xf32, #tpu.memory_space<vmem>>, vector<32x16xf32>
    %c0_2 = arith.constant 0 : index
    %c0_3 = arith.constant 0 : index
    %4 = vector.load %arg4[%c0_2, %c0_3] : memref<32x288xbf16, #tpu.memory_space<vmem>>, vector<32x288xbf16>
    %c0_4 = arith.constant 0 : index
    %c0_5 = arith.constant 0 : index
    %c0_6 = arith.constant 0 : index
    %5 = vector.load %arg5[%c0_4, %c0_5, %c0_6] : memref<1x288x16xbf16, #tpu.memory_space<vmem>>, vector<1x288x16xbf16>
    %6 = vector.shape_cast %5 : vector<1x288x16xbf16> to vector<288x16xbf16>
    %cst = arith.constant dense<0.000000e+00> : vector<32x16xf32>
    %7 = tpu.matmul %4, %6, %cst {dimension_numbers = #tpu.dot_dimension_numbers<[1], [0], [0], [1], [0, 0, 1, 1], [], []>} : vector<32x288xbf16>, vector<288x16xbf16>, vector<32x16xf32> -> vector<32x16xf32>
    %8 = arith.addf %3, %7 : vector<32x16xf32>
    %c0_7 = arith.constant 0 : index
    %c0_8 = arith.constant 0 : index
    %9 = vector.load %arg9[%c0_7, %c0_8] : memref<32x16xf32, #tpu.memory_space<vmem>>, vector<32x16xf32>
    tpu.vector_store %arg9[%c0_7, %c0_8], %8 {strides = array<i32>} : memref<32x16xf32, #tpu.memory_space<vmem>>, vector<32x16xf32>,
    %c0_i32_9 = arith.constant 0 : i32
    %10 = arith.cmpi eq, %arg3, %c0_i32_9 : i32
    %11 = arith.extui %10 : i1 to i32
    %c0_i32_10 = arith.constant 0 : i32
    %12 = arith.cmpi ne, %11, %c0_i32_10 : i32
    scf.if %12 {
      %c0_11 = arith.constant 0 : index
      %c0_12 = arith.constant 0 : index
      %13 = vector.load %arg9[%c0_11, %c0_12] : memref<32x16xf32, #tpu.memory_space<vmem>>, vector<32x16xf32>
      %c0_13 = arith.constant 0 : index
      %c0_14 = arith.constant 0 : index
      %14 = vector.load %arg6[%c0_13, %c0_14] : memref<32x1xf32, #tpu.memory_space<vmem>>, vector<32x1xf32>
      %15 = vector.broadcast %14 : vector<32x1xf32> to vector<32x16xf32>
      %16 = arith.addf %13, %15 : vector<32x16xf32>
      %cst_15 = arith.constant dense<0.000000e+00> : vector<32xf32>
      %17 = vector.multi_reduction <add>, %16, %cst_15 [1] : vector<32x16xf32> to vector<32xf32>
      %18 = vector.shape_cast %17 : vector<32xf32> to vector<32x1xf32>
      %cst_16 = arith.constant 1.600000e+01 : f32
      %19 = vector.broadcast %cst_16 : f32 to vector<32x1xf32>
      %20 = arith.divf %18, %19 : vector<32x1xf32>
      %21 = vector.broadcast %20 : vector<32x1xf32> to vector<32x16xf32>
      %22 = arith.subf %16, %21 : vector<32x16xf32>
      %23 = arith.mulf %22, %22 : vector<32x16xf32>
      %cst_17 = arith.constant dense<0.000000e+00> : vector<32xf32>
      %24 = vector.multi_reduction <add>, %23, %cst_17 [1] : vector<32x16xf32> to vector<32xf32>
      %25 = vector.shape_cast %24 : vector<32xf32> to vector<32x1xf32>
      %cst_18 = arith.constant 1.600000e+01 : f32
      %26 = vector.broadcast %cst_18 : f32 to vector<32x1xf32>
      %27 = arith.divf %25, %26 : vector<32x1xf32>
      %28 = vector.broadcast %20 : vector<32x1xf32> to vector<32x16xf32>
      %29 = arith.subf %16, %28 : vector<32x16xf32>
      %cst_19 = arith.constant 9.99999974E-6 : f32
      %30 = vector.broadcast %cst_19 : f32 to vector<32x1xf32>
      %31 = arith.addf %27, %30 : vector<32x1xf32>
      %32 = math.rsqrt %31 : vector<32x1xf32>
      %33 = vector.broadcast %32 : vector<32x1xf32> to vector<32x16xf32>
      %34 = arith.mulf %29, %33 : vector<32x16xf32>
      %cst_20 = arith.constant 0.000000e+00 : f32
      %35 = vector.broadcast %cst_20 : f32 to vector<32x16xf32>
      %36 = arith.maximumf %34, %35 : vector<32x16xf32>
      %c0_21 = arith.constant 0 : index
      %c0_22 = arith.constant 0 : index
      %c0_23 = arith.constant 0 : index
      %37 = vector.load %arg7[%c0_21, %c0_22, %c0_23] : memref<1x32x16xbf16, #tpu.memory_space<vmem>>, vector<1x32x16xbf16>
      %38 = vector.shape_cast %37 : vector<1x32x16xbf16> to vector<32x16xbf16>
      %39 = arith.extf %38 : vector<32x16xbf16> to vector<32x16xf32>
      %40 = arith.addf %36, %39 : vector<32x16xf32>
      %41 = arith.truncf %40 : vector<32x16xf32> to vector<32x16xbf16>
      %c0_24 = arith.constant 0 : index
      %c0_25 = arith.constant 0 : index
      %c0_26 = arith.constant 0 : index
      %42 = vector.load %arg8[%c0_24, %c0_25, %c0_26] : memref<1x32x16xbf16, #tpu.memory_space<vmem>>, vector<1x32x16xbf16>
      %43 = vector.shape_cast %42 : vector<1x32x16xbf16> to vector<32x16xbf16>
      %44 = vector.shape_cast %41 : vector<32x16xbf16> to vector<1x32x16xbf16>
      tpu.vector_store %arg8[%c0_24, %c0_25, %c0_26], %44 {strides = array<i32>} : memref<1x32x16xbf16, #tpu.memory_space<vmem>>, vector<1x32x16xbf16>,
    } else {
    }
    return
  }
  func.func @transform_0(%arg0: i32, %arg1: i32, %arg2: i32, %arg3: i32) -> (i32, i32) {
    %c0_i32 = arith.constant 0 : i32
    return %arg1, %arg3 : i32, i32
  }
  func.func @transform_1(%arg0: i32, %arg1: i32, %arg2: i32, %arg3: i32) -> (i32, i32, i32) {
    %c0_i32 = arith.constant 0 : i32
    return %arg0, %arg3, %arg2 : i32, i32, i32
  }
  func.func @transform_2(%arg0: i32, %arg1: i32, %arg2: i32, %arg3: i32) -> (i32, i32) {
    %c0_i32 = arith.constant 0 : i32
    %c0_i32_0 = arith.constant 0 : i32
    return %arg1, %c0_i32 : i32, i32
  }
  func.func @transform_3(%arg0: i32, %arg1: i32, %arg2: i32, %arg3: i32) -> (i32, i32, i32) {
    %c0_i32 = arith.constant 0 : i32
    return %arg0, %arg1, %arg2 : i32, i32, i32
  }
  func.func @transform_4(%arg0: i32, %arg1: i32, %arg2: i32, %arg3: i32) -> (i32, i32, i32) {
    %c0_i32 = arith.constant 0 : i32
    return %arg0, %arg1, %arg2 : i32, i32, i32
  }
}

module attributes {stable_mosaic.version = 11 : i64} {
  func.func @_fused_attn_kernel(%arg0: i32, %arg1: i32, %arg2: memref<1x64x16xbf16, #tpu.memory_space<vmem>>, %arg3: memref<1x64x16xbf16, #tpu.memory_space<vmem>>, %arg4: memref<1x64x16xbf16, #tpu.memory_space<vmem>>, %arg5: memref<1x64x16xbf16, #tpu.memory_space<vmem>>, %arg6: memref<8x64xbf16, #tpu.memory_space<vmem>>, %arg7: memref<8x1xf32, #tpu.memory_space<vmem>>, %arg8: memref<8x64xbf16, #tpu.memory_space<vmem>>, %arg9: memref<8x1xf32, #tpu.memory_space<vmem>>, %arg10: memref<64x64xbf16, #tpu.memory_space<vmem>>, %arg11: memref<64x1xf32, #tpu.memory_space<vmem>>, %arg12: memref<1x1xf32, #tpu.memory_space<vmem>>, %arg13: memref<1x1xf32, #tpu.memory_space<vmem>>, %arg14: memref<1x64x16xbf16, #tpu.memory_space<vmem>>) attributes {dimension_semantics = [#tpu.dimension_semantics<parallel>, #tpu.dimension_semantics<parallel>], iteration_bounds = array<i64: 2, 1>, scalar_prefetch = 0 : i64, scratch_operands = 0 : i64, tpu.core_type = #tpu.core_type<tc>, window_params = [{transform_indices = @transform_0, window_bounds = array<i64: 1, 64, 16>}, {transform_indices = @transform_1, window_bounds = array<i64: 1, 64, 16>}, {transform_indices = @transform_2, window_bounds = array<i64: 1, 64, 16>}, {transform_indices = @transform_3, window_bounds = array<i64: 1, 64, 16>}, {pipeline_mode = #tpu.pipeline_mode<synchronous>, transform_indices = @transform_4, window_bounds = array<i64: 8, 64>}, {pipeline_mode = #tpu.pipeline_mode<synchronous>, transform_indices = @transform_5, window_bounds = array<i64: 8, 1>}, {pipeline_mode = #tpu.pipeline_mode<synchronous>, transform_indices = @transform_6, window_bounds = array<i64: 8, 64>}, {pipeline_mode = #tpu.pipeline_mode<synchronous>, transform_indices = @transform_7, window_bounds = array<i64: 8, 1>}, {pipeline_mode = #tpu.pipeline_mode<synchronous>, transform_indices = @transform_8, window_bounds = array<i64: 64, 64>}, {pipeline_mode = #tpu.pipeline_mode<synchronous>, transform_indices = @transform_9, window_bounds = array<i64: 64, 1>}, {pipeline_mode = #tpu.pipeline_mode<synchronous>, transform_indices = @transform_10, window_bounds = array<i64: 1, 1>}, {pipeline_mode = #tpu.pipeline_mode<synchronous>, transform_indices = @transform_11, window_bounds = array<i64: 1, 1>}, {transform_indices = @transform_12, window_bounds = array<i64: 1, 64, 16>}]} {
    %c0 = arith.constant 0 : index
    %c0_0 = arith.constant 0 : index
    %0 = vector.load %arg6[%c0, %c0_0] : memref<8x64xbf16, #tpu.memory_space<vmem>>, vector<8x64xbf16>
    %c0_1 = arith.constant 0 : index
    %c0_2 = arith.constant 0 : index
    %c0_3 = arith.constant 0 : index
    %1 = vector.load %arg2[%c0_1, %c0_2, %c0_3] : memref<1x64x16xbf16, #tpu.memory_space<vmem>>, vector<1x64x16xbf16>
    %2 = vector.shape_cast %1 : vector<1x64x16xbf16> to vector<64x16xbf16>
    %cst = arith.constant dense<0.000000e+00> : vector<8x16xf32>
    %3 = tpu.matmul %0, %2, %cst {dimension_numbers = #tpu.dot_dimension_numbers<[1], [0], [0], [1], [0, 0, 1, 1], [], []>} : vector<8x64xbf16>, vector<64x16xbf16>, vector<8x16xf32> -> vector<8x16xf32>
    %c0_4 = arith.constant 0 : index
    %c0_5 = arith.constant 0 : index
    %4 = vector.load %arg7[%c0_4, %c0_5] : memref<8x1xf32, #tpu.memory_space<vmem>>, vector<8x1xf32>
    %5 = vector.broadcast %4 : vector<8x1xf32> to vector<8x16xf32>
    %6 = arith.addf %3, %5 : vector<8x16xf32>
    %c0_6 = arith.constant 0 : index
    %c0_7 = arith.constant 0 : index
    %7 = vector.load %arg8[%c0_6, %c0_7] : memref<8x64xbf16, #tpu.memory_space<vmem>>, vector<8x64xbf16>
    %c0_8 = arith.constant 0 : index
    %c0_9 = arith.constant 0 : index
    %c0_10 = arith.constant 0 : index
    %8 = vector.load %arg3[%c0_8, %c0_9, %c0_10] : memref<1x64x16xbf16, #tpu.memory_space<vmem>>, vector<1x64x16xbf16>
    %9 = vector.shape_cast %8 : vector<1x64x16xbf16> to vector<64x16xbf16>
    %cst_11 = arith.constant dense<0.000000e+00> : vector<8x16xf32>
    %10 = tpu.matmul %7, %9, %cst_11 {dimension_numbers = #tpu.dot_dimension_numbers<[1], [0], [0], [1], [0, 0, 1, 1], [], []>} : vector<8x64xbf16>, vector<64x16xbf16>, vector<8x16xf32> -> vector<8x16xf32>
    %c0_12 = arith.constant 0 : index
    %c0_13 = arith.constant 0 : index
    %11 = vector.load %arg9[%c0_12, %c0_13] : memref<8x1xf32, #tpu.memory_space<vmem>>, vector<8x1xf32>
    %12 = vector.broadcast %11 : vector<8x1xf32> to vector<8x16xf32>
    %13 = arith.addf %10, %12 : vector<8x16xf32>
    %c0_14 = arith.constant 0 : index
    %c0_15 = arith.constant 0 : index
    %14 = vector.load %arg10[%c0_14, %c0_15] : memref<64x64xbf16, #tpu.memory_space<vmem>>, vector<64x64xbf16>
    %c0_16 = arith.constant 0 : index
    %c0_17 = arith.constant 0 : index
    %c0_18 = arith.constant 0 : index
    %15 = vector.load %arg4[%c0_16, %c0_17, %c0_18] : memref<1x64x16xbf16, #tpu.memory_space<vmem>>, vector<1x64x16xbf16>
    %16 = vector.shape_cast %15 : vector<1x64x16xbf16> to vector<64x16xbf16>
    %cst_19 = arith.constant dense<0.000000e+00> : vector<64x16xf32>
    %17 = tpu.matmul %14, %16, %cst_19 {dimension_numbers = #tpu.dot_dimension_numbers<[1], [0], [0], [1], [0, 0, 1, 1], [], []>} : vector<64x64xbf16>, vector<64x16xbf16>, vector<64x16xf32> -> vector<64x16xf32>
    %c0_20 = arith.constant 0 : index
    %c0_21 = arith.constant 0 : index
    %18 = vector.load %arg11[%c0_20, %c0_21] : memref<64x1xf32, #tpu.memory_space<vmem>>, vector<64x1xf32>
    %19 = vector.broadcast %18 : vector<64x1xf32> to vector<64x16xf32>
    %20 = arith.addf %17, %19 : vector<64x16xf32>
    %21 = arith.truncf %6 : vector<8x16xf32> to vector<8x16xbf16>
    %22 = arith.truncf %13 : vector<8x16xf32> to vector<8x16xbf16>
    %cst_22 = arith.constant dense<0.000000e+00> : vector<16x16xf32>
    %23 = tpu.matmul %21, %22, %cst_22 {dimension_numbers = #tpu.dot_dimension_numbers<[0], [0], [1], [1], [0, 1, 1, 1], [], []>} : vector<8x16xbf16>, vector<8x16xbf16>, vector<16x16xf32> -> vector<16x16xf32>
    %cst_23 = arith.constant dense<0xFF800000> : vector<16xf32>
    %24 = vector.multi_reduction <maximumf>, %23, %cst_23 [1] : vector<16x16xf32> to vector<16xf32>
    %25 = vector.shape_cast %24 : vector<16xf32> to vector<16x1xf32>
    %26 = vector.broadcast %25 : vector<16x1xf32> to vector<16x16xf32>
    %27 = arith.subf %23, %26 : vector<16x16xf32>
    %28 = math.exp %27 : vector<16x16xf32>
    %cst_24 = arith.constant dense<0.000000e+00> : vector<16xf32>
    %29 = vector.multi_reduction <add>, %28, %cst_24 [1] : vector<16x16xf32> to vector<16xf32>
    %30 = vector.shape_cast %29 : vector<16xf32> to vector<16x1xf32>
    %31 = tpu.reciprocal %30 {approx = true} : vector<16x1xf32> -> vector<16x1xf32>
    %32 = vector.broadcast %31 : vector<16x1xf32> to vector<16x16xf32>
    %33 = arith.mulf %28, %32 : vector<16x16xf32>
    %34 = arith.truncf %20 : vector<64x16xf32> to vector<64x16xbf16>
    %35 = arith.truncf %33 : vector<16x16xf32> to vector<16x16xbf16>
    %cst_25 = arith.constant dense<0.000000e+00> : vector<64x16xf32>
    %36 = tpu.matmul %34, %35, %cst_25 {dimension_numbers = #tpu.dot_dimension_numbers<[1], [1], [0], [0], [0, 0, 1, 0], [], []>} : vector<64x16xbf16>, vector<16x16xbf16>, vector<64x16xf32> -> vector<64x16xf32>
    %c0_26 = arith.constant 0 : index
    %c0_27 = arith.constant 0 : index
    %37 = vector.load %arg12[%c0_26, %c0_27] : memref<1x1xf32, #tpu.memory_space<vmem>>, vector<1x1xf32>
    %38 = vector.broadcast %37 : vector<1x1xf32> to vector<64x16xf32>
    %39 = arith.mulf %38, %36 : vector<64x16xf32>
    %c0_28 = arith.constant 0 : index
    %c0_29 = arith.constant 0 : index
    %40 = vector.load %arg13[%c0_28, %c0_29] : memref<1x1xf32, #tpu.memory_space<vmem>>, vector<1x1xf32>
    %c0_30 = arith.constant 0 : index
    %c0_31 = arith.constant 0 : index
    %c0_32 = arith.constant 0 : index
    %41 = vector.load %arg5[%c0_30, %c0_31, %c0_32] : memref<1x64x16xbf16, #tpu.memory_space<vmem>>, vector<1x64x16xbf16>
    %42 = vector.shape_cast %41 : vector<1x64x16xbf16> to vector<64x16xbf16>
    %43 = arith.extf %42 : vector<64x16xbf16> to vector<64x16xf32>
    %44 = vector.broadcast %40 : vector<1x1xf32> to vector<64x16xf32>
    %45 = arith.mulf %44, %43 : vector<64x16xf32>
    %46 = arith.addf %39, %45 : vector<64x16xf32>
    %47 = arith.truncf %46 : vector<64x16xf32> to vector<64x16xbf16>
    %c0_33 = arith.constant 0 : index
    %c0_34 = arith.constant 0 : index
    %c0_35 = arith.constant 0 : index
    %48 = vector.load %arg14[%c0_33, %c0_34, %c0_35] : memref<1x64x16xbf16, #tpu.memory_space<vmem>>, vector<1x64x16xbf16>
    %49 = vector.shape_cast %48 : vector<1x64x16xbf16> to vector<64x16xbf16>
    %50 = vector.shape_cast %47 : vector<64x16xbf16> to vector<1x64x16xbf16>
    tpu.vector_store %arg14[%c0_33, %c0_34, %c0_35], %50 {strides = array<i32>} : memref<1x64x16xbf16, #tpu.memory_space<vmem>>, vector<1x64x16xbf16>,
    return
  }
  func.func @transform_0(%arg0: i32, %arg1: i32) -> (i32, i32, i32) {
    %c0_i32 = arith.constant 0 : i32
    %c0_i32_0 = arith.constant 0 : i32
    return %arg0, %c0_i32, %arg1 : i32, i32, i32
  }
  func.func @transform_1(%arg0: i32, %arg1: i32) -> (i32, i32, i32) {
    %c0_i32 = arith.constant 0 : i32
    %c0_i32_0 = arith.constant 0 : i32
    %c0_i32_1 = arith.constant 0 : i32
    return %arg0, %c0_i32, %c0_i32_0 : i32, i32, i32
  }
  func.func @transform_2(%arg0: i32, %arg1: i32) -> (i32, i32, i32) {
    %c0_i32 = arith.constant 0 : i32
    %c0_i32_0 = arith.constant 0 : i32
    %c0_i32_1 = arith.constant 0 : i32
    return %arg0, %c0_i32, %c0_i32_0 : i32, i32, i32
  }
  func.func @transform_3(%arg0: i32, %arg1: i32) -> (i32, i32, i32) {
    %c0_i32 = arith.constant 0 : i32
    %c0_i32_0 = arith.constant 0 : i32
    return %arg0, %c0_i32, %arg1 : i32, i32, i32
  }
  func.func @transform_4(%arg0: i32, %arg1: i32) -> (i32, i32) {
    %c0_i32 = arith.constant 0 : i32
    %c0_i32_0 = arith.constant 0 : i32
    %c0_i32_1 = arith.constant 0 : i32
    return %c0_i32, %c0_i32_0 : i32, i32
  }
  func.func @transform_5(%arg0: i32, %arg1: i32) -> (i32, i32) {
    %c0_i32 = arith.constant 0 : i32
    %c0_i32_0 = arith.constant 0 : i32
    %c0_i32_1 = arith.constant 0 : i32
    return %c0_i32, %c0_i32_0 : i32, i32
  }
  func.func @transform_6(%arg0: i32, %arg1: i32) -> (i32, i32) {
    %c0_i32 = arith.constant 0 : i32
    %c0_i32_0 = arith.constant 0 : i32
    %c0_i32_1 = arith.constant 0 : i32
    return %c0_i32, %c0_i32_0 : i32, i32
  }
  func.func @transform_7(%arg0: i32, %arg1: i32) -> (i32, i32) {
    %c0_i32 = arith.constant 0 : i32
    %c0_i32_0 = arith.constant 0 : i32
    %c0_i32_1 = arith.constant 0 : i32
    return %c0_i32, %c0_i32_0 : i32, i32
  }
  func.func @transform_8(%arg0: i32, %arg1: i32) -> (i32, i32) {
    %c0_i32 = arith.constant 0 : i32
    %c0_i32_0 = arith.constant 0 : i32
    %c0_i32_1 = arith.constant 0 : i32
    return %c0_i32, %c0_i32_0 : i32, i32
  }
  func.func @transform_9(%arg0: i32, %arg1: i32) -> (i32, i32) {
    %c0_i32 = arith.constant 0 : i32
    %c0_i32_0 = arith.constant 0 : i32
    %c0_i32_1 = arith.constant 0 : i32
    return %c0_i32, %c0_i32_0 : i32, i32
  }
  func.func @transform_10(%arg0: i32, %arg1: i32) -> (i32, i32) {
    %c0_i32 = arith.constant 0 : i32
    %c0_i32_0 = arith.constant 0 : i32
    %c0_i32_1 = arith.constant 0 : i32
    return %c0_i32, %c0_i32_0 : i32, i32
  }
  func.func @transform_11(%arg0: i32, %arg1: i32) -> (i32, i32) {
    %c0_i32 = arith.constant 0 : i32
    %c0_i32_0 = arith.constant 0 : i32
    %c0_i32_1 = arith.constant 0 : i32
    return %c0_i32, %c0_i32_0 : i32, i32
  }
  func.func @transform_12(%arg0: i32, %arg1: i32) -> (i32, i32, i32) {
    %c0_i32 = arith.constant 0 : i32
    %c0_i32_0 = arith.constant 0 : i32
    return %arg0, %c0_i32, %arg1 : i32, i32, i32
  }
}

module attributes {stable_mosaic.version = 11 : i64} {
  func.func @_conv_mm_kernel(%arg0: i32, %arg1: i32, %arg2: i32, %arg3: i32, %arg4: memref<64x512xbf16, #tpu.memory_space<vmem>>, %arg5: memref<1x512x16xbf16, #tpu.memory_space<vmem>>, %arg6: memref<64x1xf32, #tpu.memory_space<vmem>>, %arg7: memref<1x64x16xbf16, #tpu.memory_space<vmem>>, %arg8: memref<64x16xf32, #tpu.memory_space<vmem>>) attributes {dimension_semantics = [#tpu.dimension_semantics<parallel>, #tpu.dimension_semantics<parallel>, #tpu.dimension_semantics<parallel>, #tpu.dimension_semantics<arbitrary>], iteration_bounds = array<i64: 2, 1, 1, 2>, scalar_prefetch = 0 : i64, scratch_operands = 1 : i64, tpu.core_type = #tpu.core_type<tc>, window_params = [{transform_indices = @transform_0, window_bounds = array<i64: 64, 512>}, {transform_indices = @transform_1, window_bounds = array<i64: 1, 512, 16>}, {transform_indices = @transform_2, window_bounds = array<i64: 64, 1>}, {transform_indices = @transform_3, window_bounds = array<i64: 1, 64, 16>}]} {
    %c0_i32 = arith.constant 0 : i32
    %0 = arith.cmpi eq, %arg3, %c0_i32 : i32
    %1 = arith.extui %0 : i1 to i32
    %c0_i32_0 = arith.constant 0 : i32
    %2 = arith.cmpi ne, %1, %c0_i32_0 : i32
    scf.if %2 {
      %cst_10 = arith.constant 0.000000e+00 : f32
      %13 = vector.broadcast %cst_10 : f32 to vector<64x16xf32>
      %c0_11 = arith.constant 0 : index
      %c0_12 = arith.constant 0 : index
      %14 = vector.load %arg8[%c0_11, %c0_12] : memref<64x16xf32, #tpu.memory_space<vmem>>, vector<64x16xf32>
      tpu.vector_store %arg8[%c0_11, %c0_12], %13 {strides = array<i32>} : memref<64x16xf32, #tpu.memory_space<vmem>>, vector<64x16xf32>,
    } else {
    }
    %c0 = arith.constant 0 : index
    %c0_1 = arith.constant 0 : index
    %3 = vector.load %arg8[%c0, %c0_1] : memref<64x16xf32, #tpu.memory_space<vmem>>, vector<64x16xf32>
    %c0_2 = arith.constant 0 : index
    %c0_3 = arith.constant 0 : index
    %4 = vector.load %arg4[%c0_2, %c0_3] : memref<64x512xbf16, #tpu.memory_space<vmem>>, vector<64x512xbf16>
    %c0_4 = arith.constant 0 : index
    %c0_5 = arith.constant 0 : index
    %c0_6 = arith.constant 0 : index
    %5 = vector.load %arg5[%c0_4, %c0_5, %c0_6] : memref<1x512x16xbf16, #tpu.memory_space<vmem>>, vector<1x512x16xbf16>
    %6 = vector.shape_cast %5 : vector<1x512x16xbf16> to vector<512x16xbf16>
    %cst = arith.constant dense<0.000000e+00> : vector<64x16xf32>
    %7 = tpu.matmul %4, %6, %cst {dimension_numbers = #tpu.dot_dimension_numbers<[1], [0], [0], [1], [0, 0, 1, 1], [], []>} : vector<64x512xbf16>, vector<512x16xbf16>, vector<64x16xf32> -> vector<64x16xf32>
    %8 = arith.addf %3, %7 : vector<64x16xf32>
    %c0_7 = arith.constant 0 : index
    %c0_8 = arith.constant 0 : index
    %9 = vector.load %arg8[%c0_7, %c0_8] : memref<64x16xf32, #tpu.memory_space<vmem>>, vector<64x16xf32>
    tpu.vector_store %arg8[%c0_7, %c0_8], %8 {strides = array<i32>} : memref<64x16xf32, #tpu.memory_space<vmem>>, vector<64x16xf32>,
    %c1_i32 = arith.constant 1 : i32
    %10 = arith.cmpi eq, %arg3, %c1_i32 : i32
    %11 = arith.extui %10 : i1 to i32
    %c0_i32_9 = arith.constant 0 : i32
    %12 = arith.cmpi ne, %11, %c0_i32_9 : i32
    scf.if %12 {
      %c0_10 = arith.constant 0 : index
      %c0_11 = arith.constant 0 : index
      %13 = vector.load %arg8[%c0_10, %c0_11] : memref<64x16xf32, #tpu.memory_space<vmem>>, vector<64x16xf32>
      %c0_12 = arith.constant 0 : index
      %c0_13 = arith.constant 0 : index
      %14 = vector.load %arg6[%c0_12, %c0_13] : memref<64x1xf32, #tpu.memory_space<vmem>>, vector<64x1xf32>
      %15 = vector.broadcast %14 : vector<64x1xf32> to vector<64x16xf32>
      %16 = arith.addf %13, %15 : vector<64x16xf32>
      %cst_14 = arith.constant dense<0.000000e+00> : vector<64xf32>
      %17 = vector.multi_reduction <add>, %16, %cst_14 [1] : vector<64x16xf32> to vector<64xf32>
      %18 = vector.shape_cast %17 : vector<64xf32> to vector<64x1xf32>
      %cst_15 = arith.constant 1.600000e+01 : f32
      %19 = vector.broadcast %cst_15 : f32 to vector<64x1xf32>
      %20 = arith.divf %18, %19 : vector<64x1xf32>
      %21 = vector.broadcast %20 : vector<64x1xf32> to vector<64x16xf32>
      %22 = arith.subf %16, %21 : vector<64x16xf32>
      %23 = arith.mulf %22, %22 : vector<64x16xf32>
      %cst_16 = arith.constant dense<0.000000e+00> : vector<64xf32>
      %24 = vector.multi_reduction <add>, %23, %cst_16 [1] : vector<64x16xf32> to vector<64xf32>
      %25 = vector.shape_cast %24 : vector<64xf32> to vector<64x1xf32>
      %cst_17 = arith.constant 1.600000e+01 : f32
      %26 = vector.broadcast %cst_17 : f32 to vector<64x1xf32>
      %27 = arith.divf %25, %26 : vector<64x1xf32>
      %28 = vector.broadcast %20 : vector<64x1xf32> to vector<64x16xf32>
      %29 = arith.subf %16, %28 : vector<64x16xf32>
      %cst_18 = arith.constant 9.99999974E-6 : f32
      %30 = vector.broadcast %cst_18 : f32 to vector<64x1xf32>
      %31 = arith.addf %27, %30 : vector<64x1xf32>
      %32 = math.rsqrt %31 : vector<64x1xf32>
      %33 = vector.broadcast %32 : vector<64x1xf32> to vector<64x16xf32>
      %34 = arith.mulf %29, %33 : vector<64x16xf32>
      %cst_19 = arith.constant 0.000000e+00 : f32
      %35 = vector.broadcast %cst_19 : f32 to vector<64x16xf32>
      %36 = arith.maximumf %34, %35 : vector<64x16xf32>
      %37 = arith.truncf %36 : vector<64x16xf32> to vector<64x16xbf16>
      %c0_20 = arith.constant 0 : index
      %c0_21 = arith.constant 0 : index
      %c0_22 = arith.constant 0 : index
      %38 = vector.load %arg7[%c0_20, %c0_21, %c0_22] : memref<1x64x16xbf16, #tpu.memory_space<vmem>>, vector<1x64x16xbf16>
      %39 = vector.shape_cast %38 : vector<1x64x16xbf16> to vector<64x16xbf16>
      %40 = vector.shape_cast %37 : vector<64x16xbf16> to vector<1x64x16xbf16>
      tpu.vector_store %arg7[%c0_20, %c0_21, %c0_22], %40 {strides = array<i32>} : memref<1x64x16xbf16, #tpu.memory_space<vmem>>, vector<1x64x16xbf16>,
    } else {
    }
    return
  }
  func.func @transform_0(%arg0: i32, %arg1: i32, %arg2: i32, %arg3: i32) -> (i32, i32) {
    %c0_i32 = arith.constant 0 : i32
    return %arg1, %arg3 : i32, i32
  }
  func.func @transform_1(%arg0: i32, %arg1: i32, %arg2: i32, %arg3: i32) -> (i32, i32, i32) {
    %c0_i32 = arith.constant 0 : i32
    return %arg0, %arg3, %arg2 : i32, i32, i32
  }
  func.func @transform_2(%arg0: i32, %arg1: i32, %arg2: i32, %arg3: i32) -> (i32, i32) {
    %c0_i32 = arith.constant 0 : i32
    %c0_i32_0 = arith.constant 0 : i32
    return %arg1, %c0_i32 : i32, i32
  }
  func.func @transform_3(%arg0: i32, %arg1: i32, %arg2: i32, %arg3: i32) -> (i32, i32, i32) {
    %c0_i32 = arith.constant 0 : i32
    return %arg0, %arg1, %arg2 : i32, i32, i32
  }
}

module attributes {stable_mosaic.version = 11 : i64} {
  func.func @_conv_mm_kernel(%arg0: i32, %arg1: i32, %arg2: i32, %arg3: i32, %arg4: memref<64x512xbf16, #tpu.memory_space<vmem>>, %arg5: memref<1x512x16xbf16, #tpu.memory_space<vmem>>, %arg6: memref<64x1xf32, #tpu.memory_space<vmem>>, %arg7: memref<1x64x16xbf16, #tpu.memory_space<vmem>>, %arg8: memref<1x64x16xbf16, #tpu.memory_space<vmem>>, %arg9: memref<64x16xf32, #tpu.memory_space<vmem>>) attributes {dimension_semantics = [#tpu.dimension_semantics<parallel>, #tpu.dimension_semantics<parallel>, #tpu.dimension_semantics<parallel>, #tpu.dimension_semantics<arbitrary>], iteration_bounds = array<i64: 2, 1, 1, 2>, scalar_prefetch = 0 : i64, scratch_operands = 1 : i64, tpu.core_type = #tpu.core_type<tc>, window_params = [{transform_indices = @transform_0, window_bounds = array<i64: 64, 512>}, {transform_indices = @transform_1, window_bounds = array<i64: 1, 512, 16>}, {transform_indices = @transform_2, window_bounds = array<i64: 64, 1>}, {transform_indices = @transform_3, window_bounds = array<i64: 1, 64, 16>}, {transform_indices = @transform_4, window_bounds = array<i64: 1, 64, 16>}]} {
    %c0_i32 = arith.constant 0 : i32
    %0 = arith.cmpi eq, %arg3, %c0_i32 : i32
    %1 = arith.extui %0 : i1 to i32
    %c0_i32_0 = arith.constant 0 : i32
    %2 = arith.cmpi ne, %1, %c0_i32_0 : i32
    scf.if %2 {
      %cst_10 = arith.constant 0.000000e+00 : f32
      %13 = vector.broadcast %cst_10 : f32 to vector<64x16xf32>
      %c0_11 = arith.constant 0 : index
      %c0_12 = arith.constant 0 : index
      %14 = vector.load %arg9[%c0_11, %c0_12] : memref<64x16xf32, #tpu.memory_space<vmem>>, vector<64x16xf32>
      tpu.vector_store %arg9[%c0_11, %c0_12], %13 {strides = array<i32>} : memref<64x16xf32, #tpu.memory_space<vmem>>, vector<64x16xf32>,
    } else {
    }
    %c0 = arith.constant 0 : index
    %c0_1 = arith.constant 0 : index
    %3 = vector.load %arg9[%c0, %c0_1] : memref<64x16xf32, #tpu.memory_space<vmem>>, vector<64x16xf32>
    %c0_2 = arith.constant 0 : index
    %c0_3 = arith.constant 0 : index
    %4 = vector.load %arg4[%c0_2, %c0_3] : memref<64x512xbf16, #tpu.memory_space<vmem>>, vector<64x512xbf16>
    %c0_4 = arith.constant 0 : index
    %c0_5 = arith.constant 0 : index
    %c0_6 = arith.constant 0 : index
    %5 = vector.load %arg5[%c0_4, %c0_5, %c0_6] : memref<1x512x16xbf16, #tpu.memory_space<vmem>>, vector<1x512x16xbf16>
    %6 = vector.shape_cast %5 : vector<1x512x16xbf16> to vector<512x16xbf16>
    %cst = arith.constant dense<0.000000e+00> : vector<64x16xf32>
    %7 = tpu.matmul %4, %6, %cst {dimension_numbers = #tpu.dot_dimension_numbers<[1], [0], [0], [1], [0, 0, 1, 1], [], []>} : vector<64x512xbf16>, vector<512x16xbf16>, vector<64x16xf32> -> vector<64x16xf32>
    %8 = arith.addf %3, %7 : vector<64x16xf32>
    %c0_7 = arith.constant 0 : index
    %c0_8 = arith.constant 0 : index
    %9 = vector.load %arg9[%c0_7, %c0_8] : memref<64x16xf32, #tpu.memory_space<vmem>>, vector<64x16xf32>
    tpu.vector_store %arg9[%c0_7, %c0_8], %8 {strides = array<i32>} : memref<64x16xf32, #tpu.memory_space<vmem>>, vector<64x16xf32>,
    %c1_i32 = arith.constant 1 : i32
    %10 = arith.cmpi eq, %arg3, %c1_i32 : i32
    %11 = arith.extui %10 : i1 to i32
    %c0_i32_9 = arith.constant 0 : i32
    %12 = arith.cmpi ne, %11, %c0_i32_9 : i32
    scf.if %12 {
      %c0_10 = arith.constant 0 : index
      %c0_11 = arith.constant 0 : index
      %13 = vector.load %arg9[%c0_10, %c0_11] : memref<64x16xf32, #tpu.memory_space<vmem>>, vector<64x16xf32>
      %c0_12 = arith.constant 0 : index
      %c0_13 = arith.constant 0 : index
      %14 = vector.load %arg6[%c0_12, %c0_13] : memref<64x1xf32, #tpu.memory_space<vmem>>, vector<64x1xf32>
      %15 = vector.broadcast %14 : vector<64x1xf32> to vector<64x16xf32>
      %16 = arith.addf %13, %15 : vector<64x16xf32>
      %cst_14 = arith.constant dense<0.000000e+00> : vector<64xf32>
      %17 = vector.multi_reduction <add>, %16, %cst_14 [1] : vector<64x16xf32> to vector<64xf32>
      %18 = vector.shape_cast %17 : vector<64xf32> to vector<64x1xf32>
      %cst_15 = arith.constant 1.600000e+01 : f32
      %19 = vector.broadcast %cst_15 : f32 to vector<64x1xf32>
      %20 = arith.divf %18, %19 : vector<64x1xf32>
      %21 = vector.broadcast %20 : vector<64x1xf32> to vector<64x16xf32>
      %22 = arith.subf %16, %21 : vector<64x16xf32>
      %23 = arith.mulf %22, %22 : vector<64x16xf32>
      %cst_16 = arith.constant dense<0.000000e+00> : vector<64xf32>
      %24 = vector.multi_reduction <add>, %23, %cst_16 [1] : vector<64x16xf32> to vector<64xf32>
      %25 = vector.shape_cast %24 : vector<64xf32> to vector<64x1xf32>
      %cst_17 = arith.constant 1.600000e+01 : f32
      %26 = vector.broadcast %cst_17 : f32 to vector<64x1xf32>
      %27 = arith.divf %25, %26 : vector<64x1xf32>
      %28 = vector.broadcast %20 : vector<64x1xf32> to vector<64x16xf32>
      %29 = arith.subf %16, %28 : vector<64x16xf32>
      %cst_18 = arith.constant 9.99999974E-6 : f32
      %30 = vector.broadcast %cst_18 : f32 to vector<64x1xf32>
      %31 = arith.addf %27, %30 : vector<64x1xf32>
      %32 = math.rsqrt %31 : vector<64x1xf32>
      %33 = vector.broadcast %32 : vector<64x1xf32> to vector<64x16xf32>
      %34 = arith.mulf %29, %33 : vector<64x16xf32>
      %cst_19 = arith.constant 0.000000e+00 : f32
      %35 = vector.broadcast %cst_19 : f32 to vector<64x16xf32>
      %36 = arith.maximumf %34, %35 : vector<64x16xf32>
      %c0_20 = arith.constant 0 : index
      %c0_21 = arith.constant 0 : index
      %c0_22 = arith.constant 0 : index
      %37 = vector.load %arg7[%c0_20, %c0_21, %c0_22] : memref<1x64x16xbf16, #tpu.memory_space<vmem>>, vector<1x64x16xbf16>
      %38 = vector.shape_cast %37 : vector<1x64x16xbf16> to vector<64x16xbf16>
      %39 = arith.extf %38 : vector<64x16xbf16> to vector<64x16xf32>
      %40 = arith.addf %36, %39 : vector<64x16xf32>
      %41 = arith.truncf %40 : vector<64x16xf32> to vector<64x16xbf16>
      %c0_23 = arith.constant 0 : index
      %c0_24 = arith.constant 0 : index
      %c0_25 = arith.constant 0 : index
      %42 = vector.load %arg8[%c0_23, %c0_24, %c0_25] : memref<1x64x16xbf16, #tpu.memory_space<vmem>>, vector<1x64x16xbf16>
      %43 = vector.shape_cast %42 : vector<1x64x16xbf16> to vector<64x16xbf16>
      %44 = vector.shape_cast %41 : vector<64x16xbf16> to vector<1x64x16xbf16>
      tpu.vector_store %arg8[%c0_23, %c0_24, %c0_25], %44 {strides = array<i32>} : memref<1x64x16xbf16, #tpu.memory_space<vmem>>, vector<1x64x16xbf16>,
    } else {
    }
    return
  }
  func.func @transform_0(%arg0: i32, %arg1: i32, %arg2: i32, %arg3: i32) -> (i32, i32) {
    %c0_i32 = arith.constant 0 : i32
    return %arg1, %arg3 : i32, i32
  }
  func.func @transform_1(%arg0: i32, %arg1: i32, %arg2: i32, %arg3: i32) -> (i32, i32, i32) {
    %c0_i32 = arith.constant 0 : i32
    return %arg0, %arg3, %arg2 : i32, i32, i32
  }
  func.func @transform_2(%arg0: i32, %arg1: i32, %arg2: i32, %arg3: i32) -> (i32, i32) {
    %c0_i32 = arith.constant 0 : i32
    %c0_i32_0 = arith.constant 0 : i32
    return %arg1, %c0_i32 : i32, i32
  }
  func.func @transform_3(%arg0: i32, %arg1: i32, %arg2: i32, %arg3: i32) -> (i32, i32, i32) {
    %c0_i32 = arith.constant 0 : i32
    return %arg0, %arg1, %arg2 : i32, i32, i32
  }
  func.func @transform_4(%arg0: i32, %arg1: i32, %arg2: i32, %arg3: i32) -> (i32, i32, i32) {
    %c0_i32 = arith.constant 0 : i32
    return %arg0, %arg1, %arg2 : i32, i32, i32
  }
}

module attributes {stable_mosaic.version = 11 : i64} {
  func.func @_conv_mm_kernel(%arg0: i32, %arg1: i32, %arg2: i32, %arg3: i32, %arg4: memref<32x512xbf16, #tpu.memory_space<vmem>>, %arg5: memref<1x512x16xbf16, #tpu.memory_space<vmem>>, %arg6: memref<32x1xf32, #tpu.memory_space<vmem>>, %arg7: memref<1x32x16xbf16, #tpu.memory_space<vmem>>, %arg8: memref<32x16xf32, #tpu.memory_space<vmem>>) attributes {dimension_semantics = [#tpu.dimension_semantics<parallel>, #tpu.dimension_semantics<parallel>, #tpu.dimension_semantics<parallel>, #tpu.dimension_semantics<arbitrary>], iteration_bounds = array<i64: 2, 1, 1, 2>, scalar_prefetch = 0 : i64, scratch_operands = 1 : i64, tpu.core_type = #tpu.core_type<tc>, window_params = [{transform_indices = @transform_0, window_bounds = array<i64: 32, 512>}, {transform_indices = @transform_1, window_bounds = array<i64: 1, 512, 16>}, {transform_indices = @transform_2, window_bounds = array<i64: 32, 1>}, {transform_indices = @transform_3, window_bounds = array<i64: 1, 32, 16>}]} {
    %c0_i32 = arith.constant 0 : i32
    %0 = arith.cmpi eq, %arg3, %c0_i32 : i32
    %1 = arith.extui %0 : i1 to i32
    %c0_i32_0 = arith.constant 0 : i32
    %2 = arith.cmpi ne, %1, %c0_i32_0 : i32
    scf.if %2 {
      %cst_10 = arith.constant 0.000000e+00 : f32
      %13 = vector.broadcast %cst_10 : f32 to vector<32x16xf32>
      %c0_11 = arith.constant 0 : index
      %c0_12 = arith.constant 0 : index
      %14 = vector.load %arg8[%c0_11, %c0_12] : memref<32x16xf32, #tpu.memory_space<vmem>>, vector<32x16xf32>
      tpu.vector_store %arg8[%c0_11, %c0_12], %13 {strides = array<i32>} : memref<32x16xf32, #tpu.memory_space<vmem>>, vector<32x16xf32>,
    } else {
    }
    %c0 = arith.constant 0 : index
    %c0_1 = arith.constant 0 : index
    %3 = vector.load %arg8[%c0, %c0_1] : memref<32x16xf32, #tpu.memory_space<vmem>>, vector<32x16xf32>
    %c0_2 = arith.constant 0 : index
    %c0_3 = arith.constant 0 : index
    %4 = vector.load %arg4[%c0_2, %c0_3] : memref<32x512xbf16, #tpu.memory_space<vmem>>, vector<32x512xbf16>
    %c0_4 = arith.constant 0 : index
    %c0_5 = arith.constant 0 : index
    %c0_6 = arith.constant 0 : index
    %5 = vector.load %arg5[%c0_4, %c0_5, %c0_6] : memref<1x512x16xbf16, #tpu.memory_space<vmem>>, vector<1x512x16xbf16>
    %6 = vector.shape_cast %5 : vector<1x512x16xbf16> to vector<512x16xbf16>
    %cst = arith.constant dense<0.000000e+00> : vector<32x16xf32>
    %7 = tpu.matmul %4, %6, %cst {dimension_numbers = #tpu.dot_dimension_numbers<[1], [0], [0], [1], [0, 0, 1, 1], [], []>} : vector<32x512xbf16>, vector<512x16xbf16>, vector<32x16xf32> -> vector<32x16xf32>
    %8 = arith.addf %3, %7 : vector<32x16xf32>
    %c0_7 = arith.constant 0 : index
    %c0_8 = arith.constant 0 : index
    %9 = vector.load %arg8[%c0_7, %c0_8] : memref<32x16xf32, #tpu.memory_space<vmem>>, vector<32x16xf32>
    tpu.vector_store %arg8[%c0_7, %c0_8], %8 {strides = array<i32>} : memref<32x16xf32, #tpu.memory_space<vmem>>, vector<32x16xf32>,
    %c1_i32 = arith.constant 1 : i32
    %10 = arith.cmpi eq, %arg3, %c1_i32 : i32
    %11 = arith.extui %10 : i1 to i32
    %c0_i32_9 = arith.constant 0 : i32
    %12 = arith.cmpi ne, %11, %c0_i32_9 : i32
    scf.if %12 {
      %c0_10 = arith.constant 0 : index
      %c0_11 = arith.constant 0 : index
      %13 = vector.load %arg8[%c0_10, %c0_11] : memref<32x16xf32, #tpu.memory_space<vmem>>, vector<32x16xf32>
      %c0_12 = arith.constant 0 : index
      %c0_13 = arith.constant 0 : index
      %14 = vector.load %arg6[%c0_12, %c0_13] : memref<32x1xf32, #tpu.memory_space<vmem>>, vector<32x1xf32>
      %15 = vector.broadcast %14 : vector<32x1xf32> to vector<32x16xf32>
      %16 = arith.addf %13, %15 : vector<32x16xf32>
      %cst_14 = arith.constant dense<0.000000e+00> : vector<32xf32>
      %17 = vector.multi_reduction <add>, %16, %cst_14 [1] : vector<32x16xf32> to vector<32xf32>
      %18 = vector.shape_cast %17 : vector<32xf32> to vector<32x1xf32>
      %cst_15 = arith.constant 1.600000e+01 : f32
      %19 = vector.broadcast %cst_15 : f32 to vector<32x1xf32>
      %20 = arith.divf %18, %19 : vector<32x1xf32>
      %21 = vector.broadcast %20 : vector<32x1xf32> to vector<32x16xf32>
      %22 = arith.subf %16, %21 : vector<32x16xf32>
      %23 = arith.mulf %22, %22 : vector<32x16xf32>
      %cst_16 = arith.constant dense<0.000000e+00> : vector<32xf32>
      %24 = vector.multi_reduction <add>, %23, %cst_16 [1] : vector<32x16xf32> to vector<32xf32>
      %25 = vector.shape_cast %24 : vector<32xf32> to vector<32x1xf32>
      %cst_17 = arith.constant 1.600000e+01 : f32
      %26 = vector.broadcast %cst_17 : f32 to vector<32x1xf32>
      %27 = arith.divf %25, %26 : vector<32x1xf32>
      %28 = vector.broadcast %20 : vector<32x1xf32> to vector<32x16xf32>
      %29 = arith.subf %16, %28 : vector<32x16xf32>
      %cst_18 = arith.constant 9.99999974E-6 : f32
      %30 = vector.broadcast %cst_18 : f32 to vector<32x1xf32>
      %31 = arith.addf %27, %30 : vector<32x1xf32>
      %32 = math.rsqrt %31 : vector<32x1xf32>
      %33 = vector.broadcast %32 : vector<32x1xf32> to vector<32x16xf32>
      %34 = arith.mulf %29, %33 : vector<32x16xf32>
      %cst_19 = arith.constant 0.000000e+00 : f32
      %35 = vector.broadcast %cst_19 : f32 to vector<32x16xf32>
      %36 = arith.maximumf %34, %35 : vector<32x16xf32>
      %37 = arith.truncf %36 : vector<32x16xf32> to vector<32x16xbf16>
      %c0_20 = arith.constant 0 : index
      %c0_21 = arith.constant 0 : index
      %c0_22 = arith.constant 0 : index
      %38 = vector.load %arg7[%c0_20, %c0_21, %c0_22] : memref<1x32x16xbf16, #tpu.memory_space<vmem>>, vector<1x32x16xbf16>
      %39 = vector.shape_cast %38 : vector<1x32x16xbf16> to vector<32x16xbf16>
      %40 = vector.shape_cast %37 : vector<32x16xbf16> to vector<1x32x16xbf16>
      tpu.vector_store %arg7[%c0_20, %c0_21, %c0_22], %40 {strides = array<i32>} : memref<1x32x16xbf16, #tpu.memory_space<vmem>>, vector<1x32x16xbf16>,
    } else {
    }
    return
  }
  func.func @transform_0(%arg0: i32, %arg1: i32, %arg2: i32, %arg3: i32) -> (i32, i32) {
    %c0_i32 = arith.constant 0 : i32
    return %arg1, %arg3 : i32, i32
  }
  func.func @transform_1(%arg0: i32, %arg1: i32, %arg2: i32, %arg3: i32) -> (i32, i32, i32) {
    %c0_i32 = arith.constant 0 : i32
    return %arg0, %arg3, %arg2 : i32, i32, i32
  }
  func.func @transform_2(%arg0: i32, %arg1: i32, %arg2: i32, %arg3: i32) -> (i32, i32) {
    %c0_i32 = arith.constant 0 : i32
    %c0_i32_0 = arith.constant 0 : i32
    return %arg1, %c0_i32 : i32, i32
  }
  func.func @transform_3(%arg0: i32, %arg1: i32, %arg2: i32, %arg3: i32) -> (i32, i32, i32) {
    %c0_i32 = arith.constant 0 : i32
    return %arg0, %arg1, %arg2 : i32, i32, i32
  }
}

module attributes {stable_mosaic.version = 11 : i64} {
  func.func @_fused_attn_kernel(%arg0: i32, %arg1: i32, %arg2: memref<1x32x16xbf16, #tpu.memory_space<vmem>>, %arg3: memref<1x32x16xbf16, #tpu.memory_space<vmem>>, %arg4: memref<1x32x16xbf16, #tpu.memory_space<vmem>>, %arg5: memref<1x32x16xbf16, #tpu.memory_space<vmem>>, %arg6: memref<4x32xbf16, #tpu.memory_space<vmem>>, %arg7: memref<4x1xf32, #tpu.memory_space<vmem>>, %arg8: memref<4x32xbf16, #tpu.memory_space<vmem>>, %arg9: memref<4x1xf32, #tpu.memory_space<vmem>>, %arg10: memref<32x32xbf16, #tpu.memory_space<vmem>>, %arg11: memref<32x1xf32, #tpu.memory_space<vmem>>, %arg12: memref<1x1xf32, #tpu.memory_space<vmem>>, %arg13: memref<1x1xf32, #tpu.memory_space<vmem>>, %arg14: memref<1x32x16xbf16, #tpu.memory_space<vmem>>) attributes {dimension_semantics = [#tpu.dimension_semantics<parallel>, #tpu.dimension_semantics<parallel>], iteration_bounds = array<i64: 2, 1>, scalar_prefetch = 0 : i64, scratch_operands = 0 : i64, tpu.core_type = #tpu.core_type<tc>, window_params = [{transform_indices = @transform_0, window_bounds = array<i64: 1, 32, 16>}, {transform_indices = @transform_1, window_bounds = array<i64: 1, 32, 16>}, {transform_indices = @transform_2, window_bounds = array<i64: 1, 32, 16>}, {transform_indices = @transform_3, window_bounds = array<i64: 1, 32, 16>}, {pipeline_mode = #tpu.pipeline_mode<synchronous>, transform_indices = @transform_4, window_bounds = array<i64: 4, 32>}, {pipeline_mode = #tpu.pipeline_mode<synchronous>, transform_indices = @transform_5, window_bounds = array<i64: 4, 1>}, {pipeline_mode = #tpu.pipeline_mode<synchronous>, transform_indices = @transform_6, window_bounds = array<i64: 4, 32>}, {pipeline_mode = #tpu.pipeline_mode<synchronous>, transform_indices = @transform_7, window_bounds = array<i64: 4, 1>}, {pipeline_mode = #tpu.pipeline_mode<synchronous>, transform_indices = @transform_8, window_bounds = array<i64: 32, 32>}, {pipeline_mode = #tpu.pipeline_mode<synchronous>, transform_indices = @transform_9, window_bounds = array<i64: 32, 1>}, {pipeline_mode = #tpu.pipeline_mode<synchronous>, transform_indices = @transform_10, window_bounds = array<i64: 1, 1>}, {pipeline_mode = #tpu.pipeline_mode<synchronous>, transform_indices = @transform_11, window_bounds = array<i64: 1, 1>}, {transform_indices = @transform_12, window_bounds = array<i64: 1, 32, 16>}]} {
    %c0 = arith.constant 0 : index
    %c0_0 = arith.constant 0 : index
    %0 = vector.load %arg6[%c0, %c0_0] : memref<4x32xbf16, #tpu.memory_space<vmem>>, vector<4x32xbf16>
    %c0_1 = arith.constant 0 : index
    %c0_2 = arith.constant 0 : index
    %c0_3 = arith.constant 0 : index
    %1 = vector.load %arg2[%c0_1, %c0_2, %c0_3] : memref<1x32x16xbf16, #tpu.memory_space<vmem>>, vector<1x32x16xbf16>
    %2 = vector.shape_cast %1 : vector<1x32x16xbf16> to vector<32x16xbf16>
    %cst = arith.constant dense<0.000000e+00> : vector<4x16xf32>
    %3 = tpu.matmul %0, %2, %cst {dimension_numbers = #tpu.dot_dimension_numbers<[1], [0], [0], [1], [0, 0, 1, 1], [], []>} : vector<4x32xbf16>, vector<32x16xbf16>, vector<4x16xf32> -> vector<4x16xf32>
    %c0_4 = arith.constant 0 : index
    %c0_5 = arith.constant 0 : index
    %4 = vector.load %arg7[%c0_4, %c0_5] : memref<4x1xf32, #tpu.memory_space<vmem>>, vector<4x1xf32>
    %5 = vector.broadcast %4 : vector<4x1xf32> to vector<4x16xf32>
    %6 = arith.addf %3, %5 : vector<4x16xf32>
    %c0_6 = arith.constant 0 : index
    %c0_7 = arith.constant 0 : index
    %7 = vector.load %arg8[%c0_6, %c0_7] : memref<4x32xbf16, #tpu.memory_space<vmem>>, vector<4x32xbf16>
    %c0_8 = arith.constant 0 : index
    %c0_9 = arith.constant 0 : index
    %c0_10 = arith.constant 0 : index
    %8 = vector.load %arg3[%c0_8, %c0_9, %c0_10] : memref<1x32x16xbf16, #tpu.memory_space<vmem>>, vector<1x32x16xbf16>
    %9 = vector.shape_cast %8 : vector<1x32x16xbf16> to vector<32x16xbf16>
    %cst_11 = arith.constant dense<0.000000e+00> : vector<4x16xf32>
    %10 = tpu.matmul %7, %9, %cst_11 {dimension_numbers = #tpu.dot_dimension_numbers<[1], [0], [0], [1], [0, 0, 1, 1], [], []>} : vector<4x32xbf16>, vector<32x16xbf16>, vector<4x16xf32> -> vector<4x16xf32>
    %c0_12 = arith.constant 0 : index
    %c0_13 = arith.constant 0 : index
    %11 = vector.load %arg9[%c0_12, %c0_13] : memref<4x1xf32, #tpu.memory_space<vmem>>, vector<4x1xf32>
    %12 = vector.broadcast %11 : vector<4x1xf32> to vector<4x16xf32>
    %13 = arith.addf %10, %12 : vector<4x16xf32>
    %c0_14 = arith.constant 0 : index
    %c0_15 = arith.constant 0 : index
    %14 = vector.load %arg10[%c0_14, %c0_15] : memref<32x32xbf16, #tpu.memory_space<vmem>>, vector<32x32xbf16>
    %c0_16 = arith.constant 0 : index
    %c0_17 = arith.constant 0 : index
    %c0_18 = arith.constant 0 : index
    %15 = vector.load %arg4[%c0_16, %c0_17, %c0_18] : memref<1x32x16xbf16, #tpu.memory_space<vmem>>, vector<1x32x16xbf16>
    %16 = vector.shape_cast %15 : vector<1x32x16xbf16> to vector<32x16xbf16>
    %cst_19 = arith.constant dense<0.000000e+00> : vector<32x16xf32>
    %17 = tpu.matmul %14, %16, %cst_19 {dimension_numbers = #tpu.dot_dimension_numbers<[1], [0], [0], [1], [0, 0, 1, 1], [], []>} : vector<32x32xbf16>, vector<32x16xbf16>, vector<32x16xf32> -> vector<32x16xf32>
    %c0_20 = arith.constant 0 : index
    %c0_21 = arith.constant 0 : index
    %18 = vector.load %arg11[%c0_20, %c0_21] : memref<32x1xf32, #tpu.memory_space<vmem>>, vector<32x1xf32>
    %19 = vector.broadcast %18 : vector<32x1xf32> to vector<32x16xf32>
    %20 = arith.addf %17, %19 : vector<32x16xf32>
    %21 = arith.truncf %6 : vector<4x16xf32> to vector<4x16xbf16>
    %22 = arith.truncf %13 : vector<4x16xf32> to vector<4x16xbf16>
    %cst_22 = arith.constant dense<0.000000e+00> : vector<16x16xf32>
    %23 = tpu.matmul %21, %22, %cst_22 {dimension_numbers = #tpu.dot_dimension_numbers<[0], [0], [1], [1], [0, 1, 1, 1], [], []>} : vector<4x16xbf16>, vector<4x16xbf16>, vector<16x16xf32> -> vector<16x16xf32>
    %cst_23 = arith.constant dense<0xFF800000> : vector<16xf32>
    %24 = vector.multi_reduction <maximumf>, %23, %cst_23 [1] : vector<16x16xf32> to vector<16xf32>
    %25 = vector.shape_cast %24 : vector<16xf32> to vector<16x1xf32>
    %26 = vector.broadcast %25 : vector<16x1xf32> to vector<16x16xf32>
    %27 = arith.subf %23, %26 : vector<16x16xf32>
    %28 = math.exp %27 : vector<16x16xf32>
    %cst_24 = arith.constant dense<0.000000e+00> : vector<16xf32>
    %29 = vector.multi_reduction <add>, %28, %cst_24 [1] : vector<16x16xf32> to vector<16xf32>
    %30 = vector.shape_cast %29 : vector<16xf32> to vector<16x1xf32>
    %31 = tpu.reciprocal %30 {approx = true} : vector<16x1xf32> -> vector<16x1xf32>
    %32 = vector.broadcast %31 : vector<16x1xf32> to vector<16x16xf32>
    %33 = arith.mulf %28, %32 : vector<16x16xf32>
    %34 = arith.truncf %20 : vector<32x16xf32> to vector<32x16xbf16>
    %35 = arith.truncf %33 : vector<16x16xf32> to vector<16x16xbf16>
    %cst_25 = arith.constant dense<0.000000e+00> : vector<32x16xf32>
    %36 = tpu.matmul %34, %35, %cst_25 {dimension_numbers = #tpu.dot_dimension_numbers<[1], [1], [0], [0], [0, 0, 1, 0], [], []>} : vector<32x16xbf16>, vector<16x16xbf16>, vector<32x16xf32> -> vector<32x16xf32>
    %c0_26 = arith.constant 0 : index
    %c0_27 = arith.constant 0 : index
    %37 = vector.load %arg12[%c0_26, %c0_27] : memref<1x1xf32, #tpu.memory_space<vmem>>, vector<1x1xf32>
    %38 = vector.broadcast %37 : vector<1x1xf32> to vector<32x16xf32>
    %39 = arith.mulf %38, %36 : vector<32x16xf32>
    %c0_28 = arith.constant 0 : index
    %c0_29 = arith.constant 0 : index
    %40 = vector.load %arg13[%c0_28, %c0_29] : memref<1x1xf32, #tpu.memory_space<vmem>>, vector<1x1xf32>
    %c0_30 = arith.constant 0 : index
    %c0_31 = arith.constant 0 : index
    %c0_32 = arith.constant 0 : index
    %41 = vector.load %arg5[%c0_30, %c0_31, %c0_32] : memref<1x32x16xbf16, #tpu.memory_space<vmem>>, vector<1x32x16xbf16>
    %42 = vector.shape_cast %41 : vector<1x32x16xbf16> to vector<32x16xbf16>
    %43 = arith.extf %42 : vector<32x16xbf16> to vector<32x16xf32>
    %44 = vector.broadcast %40 : vector<1x1xf32> to vector<32x16xf32>
    %45 = arith.mulf %44, %43 : vector<32x16xf32>
    %46 = arith.addf %39, %45 : vector<32x16xf32>
    %47 = arith.truncf %46 : vector<32x16xf32> to vector<32x16xbf16>
    %c0_33 = arith.constant 0 : index
    %c0_34 = arith.constant 0 : index
    %c0_35 = arith.constant 0 : index
    %48 = vector.load %arg14[%c0_33, %c0_34, %c0_35] : memref<1x32x16xbf16, #tpu.memory_space<vmem>>, vector<1x32x16xbf16>
    %49 = vector.shape_cast %48 : vector<1x32x16xbf16> to vector<32x16xbf16>
    %50 = vector.shape_cast %47 : vector<32x16xbf16> to vector<1x32x16xbf16>
    tpu.vector_store %arg14[%c0_33, %c0_34, %c0_35], %50 {strides = array<i32>} : memref<1x32x16xbf16, #tpu.memory_space<vmem>>, vector<1x32x16xbf16>,
    return
  }
  func.func @transform_0(%arg0: i32, %arg1: i32) -> (i32, i32, i32) {
    %c0_i32 = arith.constant 0 : i32
    %c0_i32_0 = arith.constant 0 : i32
    return %arg0, %c0_i32, %arg1 : i32, i32, i32
  }
  func.func @transform_1(%arg0: i32, %arg1: i32) -> (i32, i32, i32) {
    %c0_i32 = arith.constant 0 : i32
    %c0_i32_0 = arith.constant 0 : i32
    %c0_i32_1 = arith.constant 0 : i32
    return %arg0, %c0_i32, %c0_i32_0 : i32, i32, i32
  }
  func.func @transform_2(%arg0: i32, %arg1: i32) -> (i32, i32, i32) {
    %c0_i32 = arith.constant 0 : i32
    %c0_i32_0 = arith.constant 0 : i32
    %c0_i32_1 = arith.constant 0 : i32
    return %arg0, %c0_i32, %c0_i32_0 : i32, i32, i32
  }
  func.func @transform_3(%arg0: i32, %arg1: i32) -> (i32, i32, i32) {
    %c0_i32 = arith.constant 0 : i32
    %c0_i32_0 = arith.constant 0 : i32
    return %arg0, %c0_i32, %arg1 : i32, i32, i32
  }
  func.func @transform_4(%arg0: i32, %arg1: i32) -> (i32, i32) {
    %c0_i32 = arith.constant 0 : i32
    %c0_i32_0 = arith.constant 0 : i32
    %c0_i32_1 = arith.constant 0 : i32
    return %c0_i32, %c0_i32_0 : i32, i32
  }
  func.func @transform_5(%arg0: i32, %arg1: i32) -> (i32, i32) {
    %c0_i32 = arith.constant 0 : i32
    %c0_i32_0 = arith.constant 0 : i32
    %c0_i32_1 = arith.constant 0 : i32
    return %c0_i32, %c0_i32_0 : i32, i32
  }
  func.func @transform_6(%arg0: i32, %arg1: i32) -> (i32, i32) {
    %c0_i32 = arith.constant 0 : i32
    %c0_i32_0 = arith.constant 0 : i32
    %c0_i32_1 = arith.constant 0 : i32
    return %c0_i32, %c0_i32_0 : i32, i32
  }
  func.func @transform_7(%arg0: i32, %arg1: i32) -> (i32, i32) {
    %c0_i32 = arith.constant 0 : i32
    %c0_i32_0 = arith.constant 0 : i32
    %c0_i32_1 = arith.constant 0 : i32
    return %c0_i32, %c0_i32_0 : i32, i32
  }
  func.func @transform_8(%arg0: i32, %arg1: i32) -> (i32, i32) {
    %c0_i32 = arith.constant 0 : i32
    %c0_i32_0 = arith.constant 0 : i32
    %c0_i32_1 = arith.constant 0 : i32
    return %c0_i32, %c0_i32_0 : i32, i32
  }
  func.func @transform_9(%arg0: i32, %arg1: i32) -> (i32, i32) {
    %c0_i32 = arith.constant 0 : i32
    %c0_i32_0 = arith.constant 0 : i32
    %c0_i32_1 = arith.constant 0 : i32
    return %c0_i32, %c0_i32_0 : i32, i32
  }
  func.func @transform_10(%arg0: i32, %arg1: i32) -> (i32, i32) {
    %c0_i32 = arith.constant 0 : i32
    %c0_i32_0 = arith.constant 0 : i32
    %c0_i32_1 = arith.constant 0 : i32
    return %c0_i32, %c0_i32_0 : i32, i32
  }
  func.func @transform_11(%arg0: i32, %arg1: i32) -> (i32, i32) {
    %c0_i32 = arith.constant 0 : i32
    %c0_i32_0 = arith.constant 0 : i32
    %c0_i32_1 = arith.constant 0 : i32
    return %c0_i32, %c0_i32_0 : i32, i32
  }
  func.func @transform_12(%arg0: i32, %arg1: i32) -> (i32, i32, i32) {
    %c0_i32 = arith.constant 0 : i32
    %c0_i32_0 = arith.constant 0 : i32
    return %arg0, %c0_i32, %arg1 : i32, i32, i32
  }
}

module attributes {stable_mosaic.version = 11 : i64} {
  func.func @_conv_mm_folded_kernel(%arg0: i32, %arg1: i32, %arg2: i32, %arg3: memref<16x288xbf16, #tpu.memory_space<vmem>>, %arg4: memref<288x128xbf16, #tpu.memory_space<vmem>>, %arg5: memref<16x1xf32, #tpu.memory_space<vmem>>, %arg6: memref<16x128xbf16, #tpu.memory_space<vmem>>, %arg7: memref<16x128xf32, #tpu.memory_space<vmem>>) attributes {dimension_semantics = [#tpu.dimension_semantics<parallel>, #tpu.dimension_semantics<parallel>, #tpu.dimension_semantics<arbitrary>], iteration_bounds = array<i64: 1, 1, 1>, scalar_prefetch = 0 : i64, scratch_operands = 1 : i64, tpu.core_type = #tpu.core_type<tc>, window_params = [{transform_indices = @transform_0, window_bounds = array<i64: 16, 288>}, {transform_indices = @transform_1, window_bounds = array<i64: 288, 128>}, {transform_indices = @transform_2, window_bounds = array<i64: 16, 1>}, {transform_indices = @transform_3, window_bounds = array<i64: 16, 128>}]} {
    %c0_i32 = arith.constant 0 : i32
    %0 = arith.cmpi eq, %arg2, %c0_i32 : i32
    %1 = arith.extui %0 : i1 to i32
    %c0_i32_0 = arith.constant 0 : i32
    %2 = arith.cmpi ne, %1, %c0_i32_0 : i32
    scf.if %2 {
      %cst_10 = arith.constant 0.000000e+00 : f32
      %12 = vector.broadcast %cst_10 : f32 to vector<16x128xf32>
      %c0_11 = arith.constant 0 : index
      %c0_12 = arith.constant 0 : index
      %13 = vector.load %arg7[%c0_11, %c0_12] : memref<16x128xf32, #tpu.memory_space<vmem>>, vector<16x128xf32>
      tpu.vector_store %arg7[%c0_11, %c0_12], %12 {strides = array<i32>} : memref<16x128xf32, #tpu.memory_space<vmem>>, vector<16x128xf32>,
    } else {
    }
    %c0 = arith.constant 0 : index
    %c0_1 = arith.constant 0 : index
    %3 = vector.load %arg7[%c0, %c0_1] : memref<16x128xf32, #tpu.memory_space<vmem>>, vector<16x128xf32>
    %c0_2 = arith.constant 0 : index
    %c0_3 = arith.constant 0 : index
    %4 = vector.load %arg3[%c0_2, %c0_3] : memref<16x288xbf16, #tpu.memory_space<vmem>>, vector<16x288xbf16>
    %c0_4 = arith.constant 0 : index
    %c0_5 = arith.constant 0 : index
    %5 = vector.load %arg4[%c0_4, %c0_5] : memref<288x128xbf16, #tpu.memory_space<vmem>>, vector<288x128xbf16>
    %cst = arith.constant dense<0.000000e+00> : vector<16x128xf32>
    %6 = tpu.matmul %4, %5, %cst {dimension_numbers = #tpu.dot_dimension_numbers<[1], [0], [0], [1], [0, 0, 1, 1], [], []>} : vector<16x288xbf16>, vector<288x128xbf16>, vector<16x128xf32> -> vector<16x128xf32>
    %7 = arith.addf %3, %6 : vector<16x128xf32>
    %c0_6 = arith.constant 0 : index
    %c0_7 = arith.constant 0 : index
    %8 = vector.load %arg7[%c0_6, %c0_7] : memref<16x128xf32, #tpu.memory_space<vmem>>, vector<16x128xf32>
    tpu.vector_store %arg7[%c0_6, %c0_7], %7 {strides = array<i32>} : memref<16x128xf32, #tpu.memory_space<vmem>>, vector<16x128xf32>,
    %c0_i32_8 = arith.constant 0 : i32
    %9 = arith.cmpi eq, %arg2, %c0_i32_8 : i32
    %10 = arith.extui %9 : i1 to i32
    %c0_i32_9 = arith.constant 0 : i32
    %11 = arith.cmpi ne, %10, %c0_i32_9 : i32
    scf.if %11 {
      %c0_10 = arith.constant 0 : index
      %c0_11 = arith.constant 0 : index
      %12 = vector.load %arg7[%c0_10, %c0_11] : memref<16x128xf32, #tpu.memory_space<vmem>>, vector<16x128xf32>
      %c0_12 = arith.constant 0 : index
      %c0_13 = arith.constant 0 : index
      %13 = vector.load %arg5[%c0_12, %c0_13] : memref<16x1xf32, #tpu.memory_space<vmem>>, vector<16x1xf32>
      %14 = vector.broadcast %13 : vector<16x1xf32> to vector<16x128xf32>
      %15 = arith.addf %12, %14 : vector<16x128xf32>
      %cst_14 = arith.constant 0.000000e+00 : f32
      %16 = vector.broadcast %cst_14 : f32 to vector<16x128xf32>
      %17 = arith.maximumf %15, %16 : vector<16x128xf32>
      %18 = arith.truncf %17 : vector<16x128xf32> to vector<16x128xbf16>
      %c0_15 = arith.constant 0 : index
      %c0_16 = arith.constant 0 : index
      %19 = vector.load %arg6[%c0_15, %c0_16] : memref<16x128xbf16, #tpu.memory_space<vmem>>, vector<16x128xbf16>
      tpu.vector_store %arg6[%c0_15, %c0_16], %18 {strides = array<i32>} : memref<16x128xbf16, #tpu.memory_space<vmem>>, vector<16x128xbf16>,
    } else {
    }
    return
  }
  func.func @transform_0(%arg0: i32, %arg1: i32, %arg2: i32) -> (i32, i32) {
    %c0_i32 = arith.constant 0 : i32
    return %arg0, %arg2 : i32, i32
  }
  func.func @transform_1(%arg0: i32, %arg1: i32, %arg2: i32) -> (i32, i32) {
    %c0_i32 = arith.constant 0 : i32
    return %arg2, %arg1 : i32, i32
  }
  func.func @transform_2(%arg0: i32, %arg1: i32, %arg2: i32) -> (i32, i32) {
    %c0_i32 = arith.constant 0 : i32
    %c0_i32_0 = arith.constant 0 : i32
    return %arg0, %c0_i32 : i32, i32
  }
  func.func @transform_3(%arg0: i32, %arg1: i32, %arg2: i32) -> (i32, i32) {
    %c0_i32 = arith.constant 0 : i32
    return %arg0, %arg1 : i32, i32
  }
}

module attributes {stable_mosaic.version = 11 : i64} {
  func.func @_conv_mm_folded_kernel(%arg0: i32, %arg1: i32, %arg2: i32, %arg3: memref<8x144xbf16, #tpu.memory_space<vmem>>, %arg4: memref<144x256xbf16, #tpu.memory_space<vmem>>, %arg5: memref<8x1xf32, #tpu.memory_space<vmem>>, %arg6: memref<8x256xbf16, #tpu.memory_space<vmem>>, %arg7: memref<8x256xf32, #tpu.memory_space<vmem>>) attributes {dimension_semantics = [#tpu.dimension_semantics<parallel>, #tpu.dimension_semantics<parallel>, #tpu.dimension_semantics<arbitrary>], iteration_bounds = array<i64: 1, 2, 1>, scalar_prefetch = 0 : i64, scratch_operands = 1 : i64, tpu.core_type = #tpu.core_type<tc>, window_params = [{transform_indices = @transform_0, window_bounds = array<i64: 8, 144>}, {transform_indices = @transform_1, window_bounds = array<i64: 144, 256>}, {transform_indices = @transform_2, window_bounds = array<i64: 8, 1>}, {transform_indices = @transform_3, window_bounds = array<i64: 8, 256>}]} {
    %c0_i32 = arith.constant 0 : i32
    %0 = arith.cmpi eq, %arg2, %c0_i32 : i32
    %1 = arith.extui %0 : i1 to i32
    %c0_i32_0 = arith.constant 0 : i32
    %2 = arith.cmpi ne, %1, %c0_i32_0 : i32
    scf.if %2 {
      %cst_10 = arith.constant 0.000000e+00 : f32
      %12 = vector.broadcast %cst_10 : f32 to vector<8x256xf32>
      %c0_11 = arith.constant 0 : index
      %c0_12 = arith.constant 0 : index
      %13 = vector.load %arg7[%c0_11, %c0_12] : memref<8x256xf32, #tpu.memory_space<vmem>>, vector<8x256xf32>
      tpu.vector_store %arg7[%c0_11, %c0_12], %12 {strides = array<i32>} : memref<8x256xf32, #tpu.memory_space<vmem>>, vector<8x256xf32>,
    } else {
    }
    %c0 = arith.constant 0 : index
    %c0_1 = arith.constant 0 : index
    %3 = vector.load %arg7[%c0, %c0_1] : memref<8x256xf32, #tpu.memory_space<vmem>>, vector<8x256xf32>
    %c0_2 = arith.constant 0 : index
    %c0_3 = arith.constant 0 : index
    %4 = vector.load %arg3[%c0_2, %c0_3] : memref<8x144xbf16, #tpu.memory_space<vmem>>, vector<8x144xbf16>
    %c0_4 = arith.constant 0 : index
    %c0_5 = arith.constant 0 : index
    %5 = vector.load %arg4[%c0_4, %c0_5] : memref<144x256xbf16, #tpu.memory_space<vmem>>, vector<144x256xbf16>
    %cst = arith.constant dense<0.000000e+00> : vector<8x256xf32>
    %6 = tpu.matmul %4, %5, %cst {dimension_numbers = #tpu.dot_dimension_numbers<[1], [0], [0], [1], [0, 0, 1, 1], [], []>} : vector<8x144xbf16>, vector<144x256xbf16>, vector<8x256xf32> -> vector<8x256xf32>
    %7 = arith.addf %3, %6 : vector<8x256xf32>
    %c0_6 = arith.constant 0 : index
    %c0_7 = arith.constant 0 : index
    %8 = vector.load %arg7[%c0_6, %c0_7] : memref<8x256xf32, #tpu.memory_space<vmem>>, vector<8x256xf32>
    tpu.vector_store %arg7[%c0_6, %c0_7], %7 {strides = array<i32>} : memref<8x256xf32, #tpu.memory_space<vmem>>, vector<8x256xf32>,
    %c0_i32_8 = arith.constant 0 : i32
    %9 = arith.cmpi eq, %arg2, %c0_i32_8 : i32
    %10 = arith.extui %9 : i1 to i32
    %c0_i32_9 = arith.constant 0 : i32
    %11 = arith.cmpi ne, %10, %c0_i32_9 : i32
    scf.if %11 {
      %c0_10 = arith.constant 0 : index
      %c0_11 = arith.constant 0 : index
      %12 = vector.load %arg7[%c0_10, %c0_11] : memref<8x256xf32, #tpu.memory_space<vmem>>, vector<8x256xf32>
      %c0_12 = arith.constant 0 : index
      %c0_13 = arith.constant 0 : index
      %13 = vector.load %arg5[%c0_12, %c0_13] : memref<8x1xf32, #tpu.memory_space<vmem>>, vector<8x1xf32>
      %14 = vector.broadcast %13 : vector<8x1xf32> to vector<8x256xf32>
      %15 = arith.addf %12, %14 : vector<8x256xf32>
      %cst_14 = arith.constant 0.000000e+00 : f32
      %16 = vector.broadcast %cst_14 : f32 to vector<8x256xf32>
      %17 = arith.maximumf %15, %16 : vector<8x256xf32>
      %18 = arith.truncf %17 : vector<8x256xf32> to vector<8x256xbf16>
      %c0_15 = arith.constant 0 : index
      %c0_16 = arith.constant 0 : index
      %19 = vector.load %arg6[%c0_15, %c0_16] : memref<8x256xbf16, #tpu.memory_space<vmem>>, vector<8x256xbf16>
      tpu.vector_store %arg6[%c0_15, %c0_16], %18 {strides = array<i32>} : memref<8x256xbf16, #tpu.memory_space<vmem>>, vector<8x256xbf16>,
    } else {
    }
    return
  }
  func.func @transform_0(%arg0: i32, %arg1: i32, %arg2: i32) -> (i32, i32) {
    %c0_i32 = arith.constant 0 : i32
    return %arg0, %arg2 : i32, i32
  }
  func.func @transform_1(%arg0: i32, %arg1: i32, %arg2: i32) -> (i32, i32) {
    %c0_i32 = arith.constant 0 : i32
    return %arg2, %arg1 : i32, i32
  }
  func.func @transform_2(%arg0: i32, %arg1: i32, %arg2: i32) -> (i32, i32) {
    %c0_i32 = arith.constant 0 : i32
    %c0_i32_0 = arith.constant 0 : i32
    return %arg0, %c0_i32 : i32, i32
  }
  func.func @transform_3(%arg0: i32, %arg1: i32, %arg2: i32) -> (i32, i32) {
    %c0_i32 = arith.constant 0 : i32
    return %arg0, %arg1 : i32, i32
  }
}

module attributes {stable_mosaic.version = 11 : i64} {
  func.func @_conv_mm_folded_kernel(%arg0: i32, %arg1: i32, %arg2: i32, %arg3: memref<3x392xbf16, #tpu.memory_space<vmem>>, %arg4: memref<392x256xbf16, #tpu.memory_space<vmem>>, %arg5: memref<3x1xf32, #tpu.memory_space<vmem>>, %arg6: memref<3x256xf32, #tpu.memory_space<vmem>>, %arg7: memref<3x256xf32, #tpu.memory_space<vmem>>) attributes {dimension_semantics = [#tpu.dimension_semantics<parallel>, #tpu.dimension_semantics<parallel>, #tpu.dimension_semantics<arbitrary>], iteration_bounds = array<i64: 1, 2, 1>, scalar_prefetch = 0 : i64, scratch_operands = 1 : i64, tpu.core_type = #tpu.core_type<tc>, window_params = [{transform_indices = @transform_0, window_bounds = array<i64: 3, 392>}, {transform_indices = @transform_1, window_bounds = array<i64: 392, 256>}, {transform_indices = @transform_2, window_bounds = array<i64: 3, 1>}, {transform_indices = @transform_3, window_bounds = array<i64: 3, 256>}]} {
    %c0_i32 = arith.constant 0 : i32
    %0 = arith.cmpi eq, %arg2, %c0_i32 : i32
    %1 = arith.extui %0 : i1 to i32
    %c0_i32_0 = arith.constant 0 : i32
    %2 = arith.cmpi ne, %1, %c0_i32_0 : i32
    scf.if %2 {
      %cst_10 = arith.constant 0.000000e+00 : f32
      %12 = vector.broadcast %cst_10 : f32 to vector<3x256xf32>
      %c0_11 = arith.constant 0 : index
      %c0_12 = arith.constant 0 : index
      %13 = vector.load %arg7[%c0_11, %c0_12] : memref<3x256xf32, #tpu.memory_space<vmem>>, vector<3x256xf32>
      tpu.vector_store %arg7[%c0_11, %c0_12], %12 {strides = array<i32>} : memref<3x256xf32, #tpu.memory_space<vmem>>, vector<3x256xf32>,
    } else {
    }
    %c0 = arith.constant 0 : index
    %c0_1 = arith.constant 0 : index
    %3 = vector.load %arg7[%c0, %c0_1] : memref<3x256xf32, #tpu.memory_space<vmem>>, vector<3x256xf32>
    %c0_2 = arith.constant 0 : index
    %c0_3 = arith.constant 0 : index
    %4 = vector.load %arg3[%c0_2, %c0_3] : memref<3x392xbf16, #tpu.memory_space<vmem>>, vector<3x392xbf16>
    %c0_4 = arith.constant 0 : index
    %c0_5 = arith.constant 0 : index
    %5 = vector.load %arg4[%c0_4, %c0_5] : memref<392x256xbf16, #tpu.memory_space<vmem>>, vector<392x256xbf16>
    %cst = arith.constant dense<0.000000e+00> : vector<3x256xf32>
    %6 = tpu.matmul %4, %5, %cst {dimension_numbers = #tpu.dot_dimension_numbers<[1], [0], [0], [1], [0, 0, 1, 1], [], []>} : vector<3x392xbf16>, vector<392x256xbf16>, vector<3x256xf32> -> vector<3x256xf32>
    %7 = arith.addf %3, %6 : vector<3x256xf32>
    %c0_6 = arith.constant 0 : index
    %c0_7 = arith.constant 0 : index
    %8 = vector.load %arg7[%c0_6, %c0_7] : memref<3x256xf32, #tpu.memory_space<vmem>>, vector<3x256xf32>
    tpu.vector_store %arg7[%c0_6, %c0_7], %7 {strides = array<i32>} : memref<3x256xf32, #tpu.memory_space<vmem>>, vector<3x256xf32>,
    %c0_i32_8 = arith.constant 0 : i32
    %9 = arith.cmpi eq, %arg2, %c0_i32_8 : i32
    %10 = arith.extui %9 : i1 to i32
    %c0_i32_9 = arith.constant 0 : i32
    %11 = arith.cmpi ne, %10, %c0_i32_9 : i32
    scf.if %11 {
      %c0_10 = arith.constant 0 : index
      %c0_11 = arith.constant 0 : index
      %12 = vector.load %arg7[%c0_10, %c0_11] : memref<3x256xf32, #tpu.memory_space<vmem>>, vector<3x256xf32>
      %c0_12 = arith.constant 0 : index
      %c0_13 = arith.constant 0 : index
      %13 = vector.load %arg5[%c0_12, %c0_13] : memref<3x1xf32, #tpu.memory_space<vmem>>, vector<3x1xf32>
      %14 = vector.broadcast %13 : vector<3x1xf32> to vector<3x256xf32>
      %15 = arith.addf %12, %14 : vector<3x256xf32>
      %16 = math.tanh %15 : vector<3x256xf32>
      %c0_14 = arith.constant 0 : index
      %c0_15 = arith.constant 0 : index
      %17 = vector.load %arg6[%c0_14, %c0_15] : memref<3x256xf32, #tpu.memory_space<vmem>>, vector<3x256xf32>
      tpu.vector_store %arg6[%c0_14, %c0_15], %16 {strides = array<i32>} : memref<3x256xf32, #tpu.memory_space<vmem>>, vector<3x256xf32>,
    } else {
    }
    return
  }
  func.func @transform_0(%arg0: i32, %arg1: i32, %arg2: i32) -> (i32, i32) {
    %c0_i32 = arith.constant 0 : i32
    return %arg0, %arg2 : i32, i32
  }
  func.func @transform_1(%arg0: i32, %arg1: i32, %arg2: i32) -> (i32, i32) {
    %c0_i32 = arith.constant 0 : i32
    return %arg2, %arg1 : i32, i32
  }
  func.func @transform_2(%arg0: i32, %arg1: i32, %arg2: i32) -> (i32, i32) {
    %c0_i32 = arith.constant 0 : i32
    %c0_i32_0 = arith.constant 0 : i32
    return %arg0, %c0_i32 : i32, i32
  }
  func.func @transform_3(%arg0: i32, %arg1: i32, %arg2: i32) -> (i32, i32) {
    %c0_i32 = arith.constant 0 : i32
    return %arg0, %arg1 : i32, i32
  }
}

</mosaic_0001>

<bundles_post_ra>
// kernel: pona_forward.39
= control target key start
LH: loop header
LB: loop body
LE: loop exit
PB: predicated region body
PF: predicated region fallthrough
CT: control target
= control target key end

     0   :  { %s888_s12 = smov 0   ;;  %s890_s13 = smov 0   ;;  %s1022_s0 = inlined_call_operand.vmem [shape: bf16[8,147], index: 0, kind: input, shape index: {}]   ;;  %s1023_s1 = inlined_call_operand.vmem [shape: bf16[147,512], index: 1, kind: input, shape index: {}]   ;;  %s1024_s2 = inlined_call_operand.vmem [shape: f32[8,1], index: 2, kind: input, shape index: {}]   ;;  %s1025_s3 = inlined_call_operand.vmem [shape: bf16[8,512], index: 3, kind: output, shape index: {}]  }
   0x1   :  { %s892_s14 = smov 0   ;;  %s894_s15 = smov 0  }
   0x2   :  { %s896_s16 = smov 0  }
   0x3 LB: > { %s28_s17 = sadd.s32 1, %s860_s15  ;;  %p76_p1 = scmp.ne.s32.totalorder %s852_s13, %s848_s12  ;;  %s864_s16 = sphi %s896_s16, %s13_s16   ;;  %s860_s15 = sphi %s894_s15, %s1029_s15   ;;  %s856_s14 = sphi %s892_s14, %s1028_s14   ;;  %s852_s13 = sphi %s890_s13, %s1027_s13   ;;  %s848_s12 = sphi %s888_s12, %s1026_s12  }
   0x4   : > { %p30_p0 = scmp.ge.s32.totalorder %s28_s17, 2  ;;  %p77_p2 = scmp.eq.s32.totalorder %s864_s16, 0 }
   0x5   : > { %s69_s19 = sadd.s32 1, %s852_s13  ;;  %p716_p5 = scmp.ge.s32.totalorder %s864_s16, 2 }
   0x6   : > { %s1031_s17 = smov (%p30_p0, %s28_s17), 0  ;;  %p78_p3 = por %p77_p2, %p76_p1 }
   0x7   : > { %s65_s18 = ssub.s32 %s860_s15, %s1031_s17  ;;  %176 = sbr.rel (%p716_p5) target bundleno = 26 (0x1a), region = 24 }
   0x8   : > { %p67_p4 = scmp.eq.s32.totalorder %s65_s18, 0 }
   0xa   : > { %s923_s20 = scalar_select %p67_p4, %s852_s13, %s69_s19  }
   0xc   : > { %179 = sbr.rel (!%p78_p3) target bundleno = 26 (0x1a), region = 28  ;;  %s181_s21 = sand.u32 (%p78_p3), 1, %s852_s13  }
   0xd   : > { %s748_s22 = sshll.u32 (%p78_p3), %s860_s15, 3  ;;  %s750_s23 = smul.u32 (%p78_p3), 152, %s181_s21 }
   0xe   : > { %s931_s26 = scalar_lea.vmem (%p78_p3), %s1023_s1, %s748_s22 }
   0xf   : > { %v254_v0 = vld [vmem:[%s931_s26] sm:$0xff] (%p78_p3)  ;;  %v256_v1 = vld [vmem:[%s931_s26 + $0x10] sm:$0xff] (%p78_p3)  ;;  %s939_s27 = scalar_lea.vmem (%p78_p3), [#allocation3], %s750_s23 }
  0x10   : > { %v258_v2 = vld [vmem:[%s931_s26 + $0x20] sm:$0xff] (%p78_p3)  ;;  %v260_v3 = vld [vmem:[%s931_s26 + $0x30] sm:$0xff] (%p78_p3)  ;;  %255 = vst [vmem:[%s939_s27] sm:$0xff] (%p78_p3), %v254_v0  ;;  %257 = vst [vmem:[%s939_s27 + $0x8] sm:$0xff] (%p78_p3), %v256_v1 }
  0x11   : > { %v262_v4 = vld [vmem:[%s931_s26 + $0x40] sm:$0xff]  ;;  %v264_v5 = vld [vmem:[%s931_s26 + $0x50] sm:$0xff]  ;;  %259 = vst [vmem:[%s939_s27 + $0x10] sm:$0xff] %v258_v2  ;;  %261 = vst [vmem:[%s939_s27 + $0x18] sm:$0xff] %v260_v3 }
  0x12   : > { %263 = vst [vmem:[%s939_s27 + $0x20] sm:$0xff] %v262_v4  ;;  %265 = vst [vmem:[%s939_s27 + $0x28] sm:$0xff] %v264_v5  ;;  %v266_v6 = vld [vmem:[%s931_s26 + $0x60] sm:$0xff]  ;;  %v268_v7 = vld [vmem:[%s931_s26 + $0x70] sm:$0xff] }
  0x13   : > { %v270_v8 = vld [vmem:[%s931_s26 + $0x80] sm:$0xff]  ;;  %267 = vst [vmem:[%s939_s27 + $0x30] sm:$0xff] %v266_v6  ;;  %269 = vst [vmem:[%s939_s27 + $0x38] sm:$0xff] %v268_v7  ;;  %v272_v9 = vld [vmem:[%s931_s26 + $0x90] sm:$0xff] }
  0x14   : > { %271 = vst [vmem:[%s939_s27 + $0x40] sm:$0xff] %v270_v8  ;;  %v274_v10 = vld [vmem:[%s931_s26 + $0xa0] sm:$0xff]  ;;  %v276_v11 = vld [vmem:[%s931_s26 + $0xb0] sm:$0xff]  ;;  %273 = vst [vmem:[%s939_s27 + $0x48] sm:$0xff] %v272_v9 }
  0x15   : > { %275 = vst [vmem:[%s939_s27 + $0x50] sm:$0xff] %v274_v10  ;;  %277 = vst [vmem:[%s939_s27 + $0x58] sm:$0xff] %v276_v11  ;;  %v278_v12 = vld [vmem:[%s931_s26 + $0xc0] sm:$0xff]  ;;  %v280_v13 = vld [vmem:[%s931_s26 + $0xd0] sm:$0xff] }
  0x16   : > { %v282_v14 = vld [vmem:[%s931_s26 + $0xe0] sm:$0xff]  ;;  %279 = vst [vmem:[%s939_s27 + $0x60] sm:$0xff] %v278_v12  ;;  %281 = vst [vmem:[%s939_s27 + $0x68] sm:$0xff] %v280_v13  ;;  %v284_v15 = vld [vmem:[%s931_s26 + $0xf0] sm:$0xff] }
  0x17   : > { %283 = vst [vmem:[%s939_s27 + $0x70] sm:$0xff] %v282_v14  ;;  %v286_v16 = vld [vmem:[%s931_s26 + $0x100] sm:$0xff]  ;;  %v288_v17 = vld [vmem:[%s931_s26 + $0x110] sm:$0xff]  ;;  %285 = vst [vmem:[%s939_s27 + $0x78] sm:$0xff] %v284_v15 }
  0x18   : > { %287 = vst [vmem:[%s939_s27 + $0x80] sm:$0xff] %v286_v16  ;;  %289 = vst [vmem:[%s939_s27 + $0x88] sm:$0xff] %v288_v17  ;;  %v290_v18 = vld [vmem:[%s931_s26 + $0x120] sm:$0xff] }
  0x19   : > { %291 = vst [vmem:[%s939_s27 + $0x90] sm:$0xff] %v290_v18 }
  0x1a PF: > { %p719_p6 = scmp.ge.s32.totalorder %s864_s16, 1  ;;  %p296_p7 = scmp.lt.s32.totalorder %s864_s16, 3 }
  0x1c   : > { %p297_p8 = pnand %p719_p6, %p296_p7 }
  0x1d   : > { %s303_s28 = sand.u32 (!%p297_p8), 1, %s848_s12   ;;  %s720_s8 = sshll.u32 (!%p297_p8), %s856_s14, 1 }
  0x1e   : > { %300 = sbr.rel (%p297_p8) target bundleno = 278 (0x116), region = 66  ;;  %p362_p9 = scmp.lt.s32.totalorder (!%p297_p8), %s720_s8, 3 }
  0x1f   : > { %s751_s4 = smul.u32 (!%p297_p8), 152, %s303_s28 }
  0x21   : > { %s982_s7 = scalar_lea.vmem (!%p297_p8), [#allocation3], %s751_s4 }
  0x23   : > { %v378_v19 = vld [vmem:[%s1022_s0] sm:$0xff]  ;;  %vm499_vm0 = vcmask 154624   ;;  %v866_v22 = vmov 0   ;;  %v795_v23 = vld [vmem:[%s982_s7 + $0x74] ss:$8 sps:$4 sm:$0xff]   ;;  %vm503_vm1 = vcmask 1040384  }
  0x24   : > { %v723_v20 = vcombine.high %v378_v19, %v378_v19  ;;  %v563_v21 = vld [vmem:[%s1024_s2] sm:$0xff]  ;;  %794 = vset.pattern.permute.xlu0 %v866_v22  ;;  %v797_v24 = vld [vmem:[%s982_s7 + $0x70] ss:$8 sps:$4 sm:$0xff]   ;;  %513 = vmatprep.subr.bf16.mxu0 %v795_v23  ;;  %v801_v27 = vld [vmem:[%s982_s7 + $0x54] ss:$8 sps:$4 sm:$0xff]   ;;  %vm504_vm2 = vcmask 1041408   ;;  %v722_v49 = vcombine.low %v378_v19, %v378_v19 }
  0x25   : > { %566 = vperm.xlu0 %794, %v563_v21   ;;  %v798_v25 = vld [vmem:[%s982_s7 + $0x64] ss:$8 sps:$4 sm:$0xff]   ;;  %514 = vmatpush1.bf16.msra.mxu0 %v797_v24  ;;  %v800_v26 = vld [vmem:[%s982_s7 + $0x60] ss:$8 sps:$4 sm:$0xff]   ;;  %v803_v28 = vld [vmem:[%s982_s7 + $0x50] ss:$8 sps:$4 sm:$0xff]  }
  0x26   : > { %744 = vmatprep.mubr.msk.bf16.mxu0 %vm499_vm0, %v723_v20  ;;  %515 = vmatprep.subr.bf16.mxu0 %v798_v25  ;;  %v804_v29 = vld [vmem:[%s982_s7 + $0x44] ss:$8 sps:$4 sm:$0xff]   ;;  %v806_v30 = vld [vmem:[%s982_s7 + $0x40] ss:$8 sps:$4 sm:$0xff]   ;;  %v807_v31 = vld [vmem:[%s982_s7 + $0x34] ss:$8 sps:$4 sm:$0xff]  }
  0x27   : > { %v809_v32 = vld [vmem:[%s982_s7 + $0x30] ss:$8 sps:$4 sm:$0xff]   ;;  %v810_v33 = vld [vmem:[%s982_s7 + $0x24] ss:$8 sps:$4 sm:$0xff]   ;;  %v812_v34 = vld [vmem:[%s982_s7 + $0x20] ss:$8 sps:$4 sm:$0xff]  }
  0x28   : > { %v813_v35 = vld [vmem:[%s982_s7 + $0x14] ss:$8 sps:$4 sm:$0xff]   ;;  %v867_v37 = vmov 65535   ;;  %v815_v39 = vld [vmem:[%s982_s7 + $0x10] ss:$8 sps:$4 sm:$0xff]   ;;  %s1033_s8 = smov (!%p362_p9, %s720_s8), 3 }
  0x29   : > { %516 = vmatpush1.bf16.msra.mxu0 %v800_v26  ;;  %v397_v36 = vld [vmem:[%s982_s7 + $0x90] sm:$0x33]  ;;  %v505_v38 = vsel %vm503_vm1, 4294967295, %v867_v37  ;;  %v816_v40 = vld [vmem:[%s982_s7 + $0x4] ss:$8 sps:$4 sm:$0xff]   ;;  %s721_s9 = sshll.u32 %s1033_s8, 2 }
  0x2a   : > { %517 = vmatprep.subr.bf16.mxu0 %v801_v27  ;;  %v743_v41 = vcombine.high %v397_v36, %v397_v36  ;;  %v506_v42 = vsel %vm504_vm2, %v505_v38, 0  ;;  %v818_v43 = vld [vmem:[%s982_s7] ss:$8 sps:$4 sm:$0xff]   ;;  %v742_v44 = vcombine.low %v397_v36, %v397_v36  ;;  %v821_v47 = vld [vmem:[%s982_s7 + $0x84] ss:$8 sps:$4 sm:$0xff]   ;;  %s367_s12 = scalar_lea.vmem %s1025_s3, %s721_s9 }
  0x2b   : > { %v823_v48 = vld [vmem:[%s982_s7 + $0x80] ss:$8 sps:$4 sm:$0xff]  }
  0x2c   : > { %v511_v45 = vand.u32 %v743_v41, %v506_v42  ;;  %v508_v46 = vand.u32 %v742_v44, %v506_v42 }
  0x2d   : > { %518 = vmatpush1.bf16.msra.mxu0 %v803_v28 }
  0x2e   : > { %519 = vmatprep.subr.bf16.mxu0 %v804_v29 }
  0x31   : > { %520 = vmatpush1.bf16.msra.mxu0 %v806_v30 }
  0x32   : > { %521 = vmatprep.subr.bf16.mxu0 %v807_v31 }
  0x35   : > { %522 = vmatpush1.bf16.msra.mxu0 %v809_v32 }
  0x36   : > { %523 = vmatprep.subr.bf16.mxu0 %v810_v33 }
  0x39   : > { %524 = vmatpush1.bf16.msra.mxu0 %v812_v34 }
  0x3a   : > { %525 = vmatprep.subr.bf16.mxu0 %v813_v35 }
  0x3d   : > { %526 = vmatpush1.bf16.msra.mxu0 %v815_v39 }
  0x3e   : > { %527 = vmatprep.subr.bf16.mxu0 %v816_v40 }
  0x41   : > { %528 = vmatpush1.bf16.msra.mxu0 %v818_v43 }
  0x42   : > { %541 = vmatprep.subr.bf16.mxu0 %v511_v45 }
  0x45   : > { %542 = vmatpush2.bf16.msra.mxu0 %v508_v46 }
  0x46   : > { %543 = vmatprep.subr.bf16.mxu0 %v821_v47 }
  0x49   : > { %544 = vmatpush2.bf16.msra.mxu0 %v823_v48 }
  0x4c   : > { %546 = vmatmul.mubr.bf16.vlgmr.msra.gmra.mxu0 %v722_v49 }
  0xa0   : > { %v567_v50 = vpop.permute.xlu0 %566 }
 0x10c   : > { %v547_v51 = vpop.f32.mrf.mxu0 }
 0x10d   : > { %v569_v52 = vadd.f32 %v567_v50, %v547_v51 }
 0x10e   : > { %v549_v53 = vpop.f32.mrf.mxu0 }
 0x10f   : > { %v570_v54 = vadd.f32 %v567_v50, %v549_v53  ;;  %v571_v56 = vmax.f32 %v569_v52, 0.0 }
 0x110   : > { %v551_v55 = vpop.f32.mrf.mxu0 }
 0x111   : > { %v572_v57 = vmax.f32 %v570_v54, 0.0 }
 0x112   : > { %v552_v58 = vpop.f32.mrf.mxu0 }
 0x113   : > { %v749_v59 = vpack.c.bf16 %v572_v57, %v571_v56 }
 0x115   : > { %581 = vst [vmem:[%s367_s12] sm:$0xff] %v749_v59 }
 0x116 PF: > { %s13_s16 = sadd.s32 1, %s864_s16   ;;  %s1026_s12 = smov %s852_s13 }
 0x117   : > { %p10_p10 = scmp.ge.s32.totalorder %s13_s16, 4   ;;  %s1027_s13 = smov %s923_s20 }
 0x118   : > { %s1028_s14 = smov %s860_s15  ;;  %s1029_s15 = smov %s1031_s17 }
 0x119   :  { %12 = sbr.rel (!%p10_p10) target bundleno = 3 (0x3), region = 119 }

// kernel: pona_forward.40
= control target key start
LH: loop header
LB: loop body
LE: loop exit
PB: predicated region body
PF: predicated region fallthrough
CT: control target
= control target key end

     0   :  { %vm70_vm0 = vcmask 1043456   ;;  %v200_v0 = vmov 0.0   ;;  %vm201_vm1 = vmmov 0   ;;  %v202_v3 = vmov 0   ;;  %s250_s1 = inlined_call_operand.vmem [shape: bf16[72,128], index: 1, kind: input, shape index: {}]   ;;  %s251_s2 = inlined_call_operand.vmem [shape: f32[16,1], index: 2, kind: input, shape index: {}]   ;;  %s252_s0 = inlined_call_operand.vmem [shape: bf16[16,72], index: 0, kind: input, shape index: {}]   ;;  %s253_s3 = inlined_call_operand.vmem [shape: bf16[16,128], index: 3, kind: output, shape index: {}]  }
   0x1   :  { %176 = vmatprep.subr.bf16.mxu0 %v200_v0  ;;  %v194_v1 = vld [vmem:[%s250_s1 + $0x20] ss:$0 sps:$4 sm:$0xff]   ;;  %186 = vmatprep.mubr.msk.bf16.mxu0 %vm201_vm1, %v200_v0  ;;  %v195_v4 = vld [vmem:[%s250_s1 + $0x18] sm:$0xff]   ;;  %v196_v6 = vld [vmem:[%s250_s1 + $0x10] sm:$0xff]   ;;  %vm66_vm2 = vcmask 588800  }
   0x2   :  { %v72_v2 = vsel %vm70_vm0, %v194_v1, 0  ;;  %193 = vset.pattern.permute.xlu0 %v202_v3  ;;  %v124_v5 = vld [vmem:[%s251_s2] sm:$0xff]  ;;  %v125_v7 = vld [vmem:[%s251_s2 + $0x8] sm:$0xff] }
   0x3   :  { %177 = vmatpush3.bf16.msra.mxu0 %v72_v2  ;;  %128 = vperm.xlu0 %193, %v124_v5   ;;  %v197_v8 = vld [vmem:[%s250_s1 + $0x8] sm:$0xff]   ;;  %v198_v9 = vld [vmem:[%s250_s1] sm:$0xff]  }
   0x4   :  { %178 = vmatprep.subr.bf16.mxu0 %v200_v0  ;;  %v199_v10 = vld [vmem:[%s252_s0] sm:$0xff]  }
   0x7   :  { %179 = vmatpush3.bf16.msra.mxu0 %v195_v4  ;;  %133 = vperm.xlu0 %193, %v125_v7  }
   0x8   :  { %180 = vmatprep.subr.bf16.mxu0 %v200_v0 }
   0xb   :  { %181 = vmatpush3.bf16.msra.mxu0 %v196_v6 }
   0xc   :  { %182 = vmatprep.subr.bf16.mxu0 %v200_v0 }
   0xf   :  { %183 = vmatpush3.bf16.msra.mxu0 %v197_v8 }
  0x10   :  { %184 = vmatprep.subr.bf16.mxu0 %v200_v0 }
  0x13   :  { %185 = vmatpush3.bf16.msra.mxu0 %v198_v9 }
  0x16   :  { %187 = vmatmul.mubr.msk.bf16.vlgmr.msra.gmra.mxu0 %vm66_vm2, %v199_v10 }
  0x7e   :  { %v129_v11 = vpop.permute.xlu0 %128 }
  0x82   :  { %v134_v15 = vpop.permute.xlu0 %133 }
  0xd6   :  { %v108_v12 = vpop.f32.mrf.mxu0 }
  0xd7   :  { %v136_v14 = vadd.f32 %v129_v11, %v108_v12 }
  0xd8   :  { %v188_v13 = vpop.f32.mrf.mxu0 }
  0xd9   :  { %v138_v19 = vmax.f32 %v136_v14, 0.0 }
  0xda   :  { %v111_v16 = vpop.f32.mrf.mxu0 }
  0xdb   :  { %v137_v17 = vadd.f32 %v134_v15, %v111_v16 }
  0xdc   :  { %v189_v18 = vpop.f32.mrf.mxu0 }
  0xdd   :  { %v139_v20 = vmax.f32 %v137_v17, 0.0 }
  0xdf   :  { %v168_v21 = vpack.c.bf16 %v139_v20, %v138_v19 }
  0xe1   :  { %169 = vst [vmem:[%s253_s3] sm:$0xff] %v168_v21  }

// kernel: pona_forward.41
= control target key start
LH: loop header
LB: loop body
LE: loop exit
PB: predicated region body
PF: predicated region fallthrough
CT: control target
= control target key end

     0   :  { %vm19_vm0 = vcmask 261120   ;;  %v311_v0 = vmov 0   ;;  %v312_v2 = vmov 0.0   ;;  %vm122_vm1 = vcmask 130048   ;;  %s428_s1 = inlined_call_operand.vmem [shape: bf16[144,32], index: 1, kind: input, shape index: {}]   ;;  %s429_s0 = inlined_call_operand.vmem [shape: bf16[32,144], index: 0, kind: input, shape index: {}]   ;;  %s430_s2 = inlined_call_operand.vmem [shape: f32[32,1], index: 2, kind: input, shape index: {}]   ;;  %s431_s3 = inlined_call_operand.vmem [shape: bf16[32,32], index: 3, kind: output, shape index: {}]  }
   0x1   :  { %129 = vmatprep.subr.bf16.mxu0 %v311_v0  ;;  %274 = vmatprep.subr.bf16.mxu1 %v311_v0  ;;  %v296_v1 = vld [vmem:[%s428_s1 + $0x38] sm:$0xff]   ;;  %20 = vst.msk [vmem:[#allocation2] sm:$0xff] %vm19_vm0, %v312_v2  ;;  %21 = vst.msk [vmem:[#allocation2 + $0x8] sm:$0xff] %vm19_vm0, %v312_v2  ;;  %v297_v3 = vld [vmem:[%s428_s1 + $0x30] sm:$0xff]   ;;  %vm242_vm2 = vcmask 257024  }
   0x2   :  { %22 = vst.msk [vmem:[#allocation2 + $0x10] sm:$0xff] %vm19_vm0, %v312_v2  ;;  %23 = vst.msk [vmem:[#allocation2 + $0x18] sm:$0xff] %vm19_vm0, %v312_v2  ;;  %295 = vset.pattern.permute.xlu1 %v311_v0  ;;  %294 = vset.pattern.permute.xlu0 %v311_v0  ;;  %v298_v4 = vld [vmem:[%s428_s1 + $0x28] sm:$0xff]   ;;  %v299_v5 = vld [vmem:[%s428_s1 + $0x20] sm:$0xff]  }
   0x3   :  { %130 = vmatpush1.bf16.msra.mxu0 %v296_v1  ;;  %283 = vmatpush1.bf16.msra.mxu1 %v296_v1  ;;  %v307_v6 = vld [vmem:[%s429_s0 + $0x4] ss:$8 sps:$4 sm:$0xff]   ;;  %v310_v7 = vld [vmem:[%s429_s0 + $0x14] ss:$8 sps:$4 sm:$0xff]   ;;  %v305_v17 = vld [vmem:[%s429_s0] ss:$8 sps:$4 sm:$0xff]  }
   0x4   :  { %131 = vmatprep.subr.bf16.mxu0 %v311_v0  ;;  %275 = vmatprep.subr.bf16.mxu1 %v311_v0  ;;  %v196_v8 = vld [vmem:[%s430_s2 + $0x10] sm:$0xff]  ;;  %v194_v9 = vld [vmem:[%s430_s2] sm:$0xff]  ;;  %v197_v10 = vld [vmem:[%s430_s2 + $0x18] sm:$0xff] }
   0x5   :  { %264 = vmatprep.mubr.msk.bf16.mxu0 %vm122_vm1, %v307_v6  ;;  %210 = vperm.xlu1 %295, %v196_v8   ;;  %v300_v11 = vld [vmem:[%s428_s1 + $0x18] sm:$0xff]   ;;  %v195_v12 = vld [vmem:[%s430_s2 + $0x8] sm:$0xff]  ;;  %v301_v13 = vld [vmem:[%s428_s1 + $0x10] sm:$0xff]  }
   0x6   :  { %265 = vmatprep.mubr.msk.bf16.mxu1 %vm122_vm1, %v310_v7  ;;  %200 = vperm.xlu0 %294, %v194_v9   ;;  %v302_v14 = vld [vmem:[%s428_s1 + $0x8] sm:$0xff]   ;;  %v303_v15 = vld [vmem:[%s428_s1] sm:$0xff]   ;;  %v308_v18 = vld [vmem:[%s429_s0 + $0x10] ss:$8 sps:$4 sm:$0xff]  }
   0x7   :  { %132 = vmatpush1.bf16.msra.mxu0 %v297_v3  ;;  %284 = vmatpush1.bf16.msra.mxu1 %v297_v3  ;;  %v304_v16 = vld [vmem:[%s428_s1 + $0x40] sm:$0xff]  }
   0x8   :  { %133 = vmatprep.subr.bf16.mxu0 %v311_v0  ;;  %276 = vmatprep.subr.bf16.mxu1 %v311_v0  ;;  %v24_v19 = vld [vmem:[#allocation2] sm:$0xff]  ;;  %v25_v27 = vld [vmem:[#allocation2 + $0x8] sm:$0xff] }
   0x9   :  { %215 = vperm.xlu1 %295, %v197_v10   ;;  %v26_v20 = vld [vmem:[#allocation2 + $0x10] sm:$0xff]  ;;  %v27_v28 = vld [vmem:[#allocation2 + $0x18] sm:$0xff] }
   0xa   :  { %205 = vperm.xlu0 %294, %v195_v12  }
   0xb   :  { %134 = vmatpush1.bf16.msra.mxu0 %v298_v4  ;;  %285 = vmatpush1.bf16.msra.mxu1 %v298_v4 }
   0xc   :  { %135 = vmatprep.subr.bf16.mxu0 %v311_v0  ;;  %277 = vmatprep.subr.bf16.mxu1 %v311_v0 }
   0xf   :  { %136 = vmatpush1.bf16.msra.mxu0 %v299_v5  ;;  %286 = vmatpush1.bf16.msra.mxu1 %v299_v5 }
  0x10   :  { %137 = vmatprep.subr.bf16.mxu0 %v311_v0  ;;  %278 = vmatprep.subr.bf16.mxu1 %v311_v0 }
  0x13   :  { %138 = vmatpush1.bf16.msra.mxu0 %v300_v11  ;;  %287 = vmatpush1.bf16.msra.mxu1 %v300_v11 }
  0x14   :  { %139 = vmatprep.subr.bf16.mxu0 %v311_v0  ;;  %279 = vmatprep.subr.bf16.mxu1 %v311_v0 }
  0x17   :  { %140 = vmatpush1.bf16.msra.mxu0 %v301_v13  ;;  %288 = vmatpush1.bf16.msra.mxu1 %v301_v13 }
  0x18   :  { %141 = vmatprep.subr.bf16.mxu0 %v311_v0  ;;  %280 = vmatprep.subr.bf16.mxu1 %v311_v0 }
  0x1b   :  { %142 = vmatpush1.bf16.msra.mxu0 %v302_v14  ;;  %289 = vmatpush1.bf16.msra.mxu1 %v302_v14 }
  0x1c   :  { %143 = vmatprep.subr.bf16.mxu0 %v311_v0  ;;  %281 = vmatprep.subr.bf16.mxu1 %v311_v0 }
  0x1f   :  { %144 = vmatpush1.bf16.msra.mxu0 %v303_v15  ;;  %290 = vmatpush1.bf16.msra.mxu1 %v303_v15 }
  0x20   :  { %159 = vmatprep.subr.bf16.mxu0 %v311_v0  ;;  %282 = vmatprep.subr.bf16.mxu1 %v311_v0 }
  0x23   :  { %160 = vmatpush2.bf16.msra.mxu0 %v304_v16  ;;  %291 = vmatpush2.bf16.msra.mxu1 %v304_v16 }
  0x26   :  { %162 = vmatmul.mubr.bf16.vlgmr.msra.gmra.mxu0 %v305_v17  ;;  %170 = vmatmul.mubr.bf16.vlgmr.msra.gmra.mxu1 %v308_v18 }
  0x80   :  { %v211_v35 = vpop.permute.xlu1 %210 }
  0x81   :  { %v201_v36 = vpop.permute.xlu0 %200 }
  0x84   :  { %v216_v43 = vpop.permute.xlu1 %215 }
  0x85   :  { %v206_v45 = vpop.permute.xlu0 %205 }
  0xe6   :  { %v163_v21 = vpop.f32.mrf.mxu0  ;;  %v171_v22 = vpop.f32.mrf.mxu1 }
  0xe7   :  { %v178_v23 = vadd.f32 %v163_v21, %v24_v19  ;;  %v180_v24 = vadd.f32 %v171_v22, %v26_v20 }
  0xe8   :  { %v165_v25 = vpop.f32.mrf.mxu0  ;;  %v173_v26 = vpop.f32.mrf.mxu1 }
  0xe9   :  { %183 = vst.msk [vmem:[#allocation2] sm:$0xff] %vm19_vm0, %v178_v23  ;;  %185 = vst.msk [vmem:[#allocation2 + $0x10] sm:$0xff] %vm19_vm0, %v180_v24 }
  0xea   :  { %v166_v29 = vpop.f32.mrf.mxu0  ;;  %v174_v30 = vpop.f32.mrf.mxu1 }
  0xeb   :  { %v179_v31 = vadd.f32 %v166_v29, %v25_v27  ;;  %v181_v32 = vadd.f32 %v174_v30, %v27_v28 }
  0xec   :  { %v168_v33 = vpop.f32.mrf.mxu0  ;;  %v176_v34 = vpop.f32.mrf.mxu1 }
  0xed   :  { %184 = vst.msk [vmem:[#allocation2 + $0x8] sm:$0xff] %vm19_vm0, %v179_v31  ;;  %186 = vst.msk [vmem:[#allocation2 + $0x18] sm:$0xff] %vm19_vm0, %v181_v32 }
  0xf0   :  { %v192_v37 = vld [vmem:[#allocation2 + $0x10] sm:$0xff]  ;;  %v190_v38 = vld [vmem:[#allocation2] sm:$0xff] }
  0xf1   :  { %v220_v39 = vadd.f32 %v211_v35, %v192_v37  ;;  %v218_v40 = vadd.f32 %v201_v36, %v190_v38 }
  0xf3   :  { %v224_v41 = vmax.f32 %v220_v39, 0.0  ;;  %v222_v42 = vmax.f32 %v218_v40, 0.0 }
  0xf4   :  { %v193_v44 = vld [vmem:[#allocation2 + $0x18] sm:$0xff]  ;;  %v191_v46 = vld [vmem:[#allocation2 + $0x8] sm:$0xff] }
  0xf5   :  { %v272_v47 = vpack.c.bf16 %v224_v41, %v224_v41  ;;  %v270_v48 = vpack.c.bf16 %v222_v42, %v222_v42  ;;  %v221_v49 = vadd.f32 %v216_v43, %v193_v44  ;;  %v219_v50 = vadd.f32 %v206_v45, %v191_v46 }
  0xf7   :  { %245 = vst.msk [vmem:[%s431_s3 + $0x8] sm:$0xf] %vm242_vm2, %v272_v47  ;;  %243 = vst.msk [vmem:[%s431_s3] sm:$0xf] %vm242_vm2, %v270_v48  ;;  %v225_v51 = vmax.f32 %v221_v49, 0.0  ;;  %v223_v52 = vmax.f32 %v219_v50, 0.0 }
  0xf9   :  { %v273_v53 = vpack.c.bf16 %v225_v51, %v225_v51  ;;  %v271_v54 = vpack.c.bf16 %v223_v52, %v223_v52 }
  0xfb   :  { %246 = vst.msk [vmem:[%s431_s3 + $0xc] sm:$0xf] %vm242_vm2, %v273_v53  ;;  %244 = vst.msk [vmem:[%s431_s3 + $0x4] sm:$0xf] %vm242_vm2, %v271_v54 }

// kernel: pona_forward.48
= control target key start
LH: loop header
LB: loop body
LE: loop exit
PB: predicated region body
PF: predicated region fallthrough
CT: control target
= control target key end

     0   :  { %s1067_s12 = smov 0   ;;  %s1069_s13 = smov 0   ;;  %s1176_s0 = inlined_call_operand.vmem [shape: bf16[32,288], index: 0, kind: input, shape index: {}]   ;;  %s1177_s1 = inlined_call_operand.vmem [shape: bf16[2,288,16], index: 1, kind: input, shape index: {}]   ;;  %s1178_s2 = inlined_call_operand.vmem [shape: f32[32,1], index: 2, kind: input, shape index: {}]   ;;  %s1179_s3 = inlined_call_operand.vmem [shape: bf16[2,32,16], index: 3, kind: output, shape index: {}]  }
   0x1   :  { %s1071_s14 = smov 0  }
   0x2 LB: > { %s39_s15 = sadd.s32 1, %s1039_s13  ;;  %p877_p0 = scmp.ge.s32.totalorder %s1043_s14, 1  ;;  %s1043_s14 = sphi %s1071_s14, %s13_s14   ;;  %s1039_s13 = sphi %s1069_s13, %s1181_s13   ;;  %s1035_s12 = sphi %s1067_s12, %s1180_s12  }
   0x3   : > { %p41_p1 = scmp.ge.s32.totalorder %s39_s15, 2  ;;  %p209_p2 = scmp.lt.s32.totalorder %s1043_s14, 3 }
   0x5   : > { %s1183_s15 = smov (%p41_p1, %s39_s15), 0  ;;  %p210_p3 = pnand %p877_p0, %p209_p2 }
   0x6   : > { %p275_p4 = scmp.lt.s32.totalorder (!%p210_p3), %s1035_s12, 1 }
   0x7   : > { %213 = sbr.rel (%p210_p3) target bundleno = 581 (0x245), region = 32 }
   0xc   : > { %vm502_vm0 = vcmask 261120   ;;  %v1007_v0 = vld [vmem:[%s1176_s0 + $0x4] ss:$12 sps:$4 sm:$0xff]   ;;  %s1185_s12 = smov (!%p275_p4, %s1035_s12), 1  ;;  %v1008_v1 = vld [vmem:[%s1176_s0 + $0x8] ss:$12 sps:$4 sm:$0xff]  }
   0xd   : > { %541 = vmatprep.mubr.bf16.mxu0 %v1007_v0  ;;  %s958_s20 = smul.u32 144, %s1185_s12  ;;  %954 = vmatprep.mubr.msk.bf16.mxu1 %vm502_vm0, %v1008_v1  ;;  %v1045_v2 = vmov 0   ;;  %v623_v3 = vld [vmem:[%s1178_s2] sm:$0xff]  ;;  %v625_v4 = vld [vmem:[%s1178_s2 + $0x10] sm:$0xff]  ;;  %v624_v5 = vld [vmem:[%s1178_s2 + $0x8] sm:$0xff]  ;;  %vm311_vm1 = vcmask 130048  }
   0xe   : > { %985 = vset.pattern.permute.xlu0 %v1045_v2  ;;  %986 = vset.pattern.permute.xlu1 %v1045_v2  ;;  %v626_v6 = vld [vmem:[%s1178_s2 + $0x18] sm:$0xff]  ;;  %v1009_v21 = vld [vmem:[%s1176_s0 + $0x20] ss:$12 sps:$4 sm:$0xff]   ;;  %v1046_v29 = vmov 0.0   ;;  %s913_s17 = sshll.u32 %s1185_s12, 4  ;;  %vm724_vm2 = vcmask 125952  }
   0xf   : > { %629 = vperm.xlu0 %985, %v623_v3   ;;  %s1104_s27 = scalar_lea.vmem %s1177_s1, %s958_s20  ;;  %639 = vperm.xlu1 %986, %v625_v4   ;;  %v1005_v26 = vld [vmem:[%s1176_s0] ss:$12 sps:$4 sm:$0xff]   ;;  %v1010_v27 = vld [vmem:[%s1176_s0 + $0x1c] ss:$12 sps:$4 sm:$0xff]   ;;  %v1012_v28 = vld [vmem:[%s1176_s0 + $0x18] ss:$12 sps:$4 sm:$0xff]   ;;  %s304_s20 = scalar_lea.vmem %s1179_s3, %s913_s17 }
  0x10   : > { %v987_v7 = vld [vmem:[%s1104_s27 + $0x78] sm:$0xff]   ;;  %v989_v9 = vld [vmem:[%s1104_s27 + $0x70] sm:$0xff]   ;;  %v991_v11 = vld [vmem:[%s1104_s27 + $0x68] sm:$0xff]   ;;  %312 = vst.msk [vmem:[#allocation2] sm:$0xff] %vm311_vm1, %v1046_v29 }
  0x11   : > { %v988_v8 = vld [vmem:[%s1104_s27 + $0x38] sm:$0xff]   ;;  %918 = vmatprep.subr.bf16.mxu0 %v987_v7  ;;  %v990_v10 = vld [vmem:[%s1104_s27 + $0x30] sm:$0xff]   ;;  %v992_v12 = vld [vmem:[%s1104_s27 + $0x28] sm:$0xff]   ;;  %313 = vst.msk [vmem:[#allocation2 + $0x8] sm:$0xff] %vm311_vm1, %v1046_v29 }
  0x12   : > { %919 = vmatpush3.bf16.msra.mxu0 %v988_v8  ;;  %v993_v13 = vld [vmem:[%s1104_s27 + $0x60] sm:$0xff]   ;;  %v995_v15 = vld [vmem:[%s1104_s27 + $0x58] sm:$0xff]   ;;  %v1000_v16 = vld [vmem:[%s1104_s27 + $0x88] sm:$0xff]   ;;  %314 = vst.msk [vmem:[#allocation2 + $0x10] sm:$0xff] %vm311_vm1, %v1046_v29 }
  0x13   : > { %634 = vperm.xlu0 %985, %v624_v5   ;;  %644 = vperm.xlu1 %986, %v626_v6   ;;  %v994_v14 = vld [vmem:[%s1104_s27 + $0x20] sm:$0xff]   ;;  %v996_v17 = vld [vmem:[%s1104_s27 + $0x18] sm:$0xff]   ;;  %v997_v18 = vld [vmem:[%s1104_s27 + $0x50] sm:$0xff]   ;;  %315 = vst.msk [vmem:[#allocation2 + $0x18] sm:$0xff] %vm311_vm1, %v1046_v29 }
  0x14   : > { %920 = vmatprep.subr.bf16.mxu0 %v989_v9  ;;  %950 = vmatprep.subr.bf16.mxu1 %v1000_v16  ;;  %v1003_v19 = vld [vmem:[%s1104_s27 + $0x80] sm:$0xff]   ;;  %v998_v20 = vld [vmem:[%s1104_s27 + $0x10] sm:$0xff]   ;;  %v999_v22 = vld [vmem:[%s1104_s27 + $0x48] sm:$0xff]  }
  0x15   : > { %951 = vmatpush3.bf16.msra.mxu1 %v1000_v16  ;;  %v1001_v23 = vld [vmem:[%s1104_s27 + $0x8] sm:$0xff]   ;;  %v1002_v24 = vld [vmem:[%s1104_s27 + $0x40] sm:$0xff]  }
  0x16   : > { %921 = vmatpush3.bf16.msra.mxu0 %v990_v10  ;;  %952 = vmatprep.subr.bf16.mxu1 %v1003_v19  ;;  %v1004_v25 = vld [vmem:[%s1104_s27] sm:$0xff]  }
  0x17   : > { %922 = vmatprep.subr.bf16.mxu0 %v991_v11  ;;  %v316_v35 = vld [vmem:[#allocation2] sm:$0xff] }
  0x18   : > { %v317_v42 = vld [vmem:[#allocation2 + $0x8] sm:$0xff] }
  0x19   : > { %953 = vmatpush3.bf16.msra.mxu1 %v1003_v19  ;;  %v318_v49 = vld [vmem:[#allocation2 + $0x10] sm:$0xff] }
  0x1a   : > { %923 = vmatpush3.bf16.msra.mxu0 %v992_v12  ;;  %v319_v56 = vld [vmem:[#allocation2 + $0x18] sm:$0xff] }
  0x1b   : > { %924 = vmatprep.subr.bf16.mxu0 %v993_v13 }
  0x1c   : > { %955 = vmatmul.mubr.msk.bf16.vlgmr.msra.gmra.mxu1 %vm502_vm0, %v1009_v21 }
  0x1e   : > { %925 = vmatpush3.bf16.msra.mxu0 %v994_v14 }
  0x1f   : > { %926 = vmatprep.subr.bf16.mxu0 %v995_v15 }
  0x22   : > { %927 = vmatpush3.bf16.msra.mxu0 %v996_v17 }
  0x23   : > { %928 = vmatprep.subr.bf16.mxu0 %v997_v18 }
  0x26   : > { %929 = vmatpush3.bf16.msra.mxu0 %v998_v20 }
  0x27   : > { %930 = vmatprep.subr.bf16.mxu0 %v999_v22 }
  0x2a   : > { %931 = vmatpush3.bf16.msra.mxu0 %v1001_v23 }
  0x2b   : > { %932 = vmatprep.subr.bf16.mxu0 %v1002_v24 }
  0x2e   : > { %933 = vmatpush3.bf16.msra.mxu0 %v1004_v25 }
  0x31   : > { %542 = vmatmul.mubr.bf16.vlgmr.msra.gmra.mxu0 %v1005_v26 }
  0x32   : > { %549 = vmatprep.mubr.bf16.mxu0 %v1010_v27 }
  0x39   : > { %550 = vmatmul.mubr.bf16.gmra.mxu0 %v1012_v28 }
  0x8a   : > { %v630_v51 = vpop.permute.xlu0 %629  ;;  %v640_v1 = vpop.permute.xlu1 %639 }
  0x8e   : > { %v635_v60 = vpop.permute.xlu0 %634  ;;  %v645_v6 = vpop.permute.xlu1 %644 }
  0xdc   : > { %v956_v30 = vpop.f32.mrf.mxu1 }
  0xde   : > { %v592_v32 = vpop.f32.mrf.mxu1 }
  0xe0   : > { %v957_v37 = vpop.f32.mrf.mxu1 }
  0xe2   : > { %v595_v43 = vpop.f32.mrf.mxu1 }
  0xf1   : > { %v934_v31 = vpop.f32.mrf.mxu0 }
  0xf3   : > { %v935_v33 = vpop.f32.mrf.mxu0 }
  0xf4   : > { %v936_v34 = vadd.f32 %v935_v33, %v934_v31 }
  0xf5   : > { %v937_v36 = vpop.f32.mrf.mxu0 }
  0xf6   : > { %v593_v38 = vadd.f32 %v936_v34, %v592_v32 }
  0xf7   : > { %v938_v39 = vpop.f32.mrf.mxu0 }
  0xf8   : > { %v607_v40 = vadd.f32 %v593_v38, %v316_v35  ;;  %v939_v41 = vadd.f32 %v938_v39, %v937_v36 }
  0xf9   : > { %v940_v44 = vpop.f32.mrf.mxu0 }
  0xfa   : > { %612 = vst.msk [vmem:[#allocation2] sm:$0xff] %vm311_vm1, %v607_v40  ;;  %v596_v45 = vadd.f32 %v939_v41, %v595_v43 }
  0xfb   : > { %v941_v46 = vpop.f32.mrf.mxu0 }
  0xfc   : > { %v608_v47 = vadd.f32 %v596_v45, %v317_v42  ;;  %v942_v48 = vadd.f32 %v941_v46, %v940_v44 }
  0xfd   : > { %v943_v50 = vpop.f32.mrf.mxu0 }
  0xfe   : > { %613 = vst.msk [vmem:[#allocation2 + $0x8] sm:$0xff] %vm311_vm1, %v608_v47  ;;  %v601_v52 = vadd.f32 %v956_v30, %v942_v48 }
  0xff   : > { %v944_v53 = vpop.f32.mrf.mxu0 }
 0x100   : > { %v609_v54 = vadd.f32 %v601_v52, %v318_v49  ;;  %v945_v55 = vadd.f32 %v944_v53, %v943_v50 }
 0x101   : > { %v619_v57 = vld [vmem:[#allocation2] sm:$0xff] }
 0x102   : > { %614 = vst.msk [vmem:[#allocation2 + $0x10] sm:$0xff] %vm311_vm1, %v609_v54  ;;  %v604_v58 = vadd.f32 %v957_v37, %v945_v55  ;;  %v647_v59 = vadd.f32 %v630_v51, %v619_v57 }
 0x104   : > { %v610_v61 = vadd.f32 %v604_v58, %v319_v56  ;;  %v651_v62 = vsel %vm311_vm1, %v647_v59, 0.0 }
 0x105   : > { %v620_v63 = vld [vmem:[#allocation2 + $0x8] sm:$0xff]  ;;  %652 = vadd.xlane.f32.xlu0 %v651_v62 }
 0x106   : > { %615 = vst.msk [vmem:[#allocation2 + $0x18] sm:$0xff] %vm311_vm1, %v610_v61  ;;  %v648_v0 = vadd.f32 %v635_v60, %v620_v63 }
 0x108   : > { %v654_v2 = vsel %vm311_vm1, %v648_v0, 0.0 }
 0x109   : > { %v621_v3 = vld [vmem:[#allocation2 + $0x10] sm:$0xff]  ;;  %655 = vadd.xlane.f32.xlu1 %v654_v2 }
 0x10a   : > { %v649_v4 = vadd.f32 %v640_v1, %v621_v3 }
 0x10c   : > { %v657_v5 = vsel %vm311_vm1, %v649_v4, 0.0 }
 0x10d   : > { %v622_v7 = vld [vmem:[#allocation2 + $0x18] sm:$0xff]  ;;  %658 = vadd.xlane.f32.xlu0 %v657_v5 }
 0x10e   : > { %v650_v8 = vadd.f32 %v645_v6, %v622_v7 }
 0x110   : > { %v660_v9 = vsel %vm311_vm1, %v650_v8, 0.0 }
 0x111   : > { %661 = vadd.xlane.f32.xlu0 %v660_v9 }
 0x18e   : > { %v653_v10 = vpop.xlane.xlu0 %652 }
 0x18f   : > { %v664_v11 = vmul.f32 0.0625, %v653_v10 }
 0x191   : > { %v668_v12 = vsub.f32 %v647_v59, %v664_v11 }
 0x192   : > { %v656_v13 = vpop.xlane.xlu1 %655 }
 0x193   : > { %v665_v14 = vmul.f32 0.0625, %v656_v13  ;;  %v672_v15 = vmul.f32 %v668_v12, %v668_v12 }
 0x195   : > { %v669_v16 = vsub.f32 %v648_v0, %v665_v14  ;;  %v676_v17 = vsel %vm311_vm1, %v672_v15, 0.0 }
 0x196   : > { %677 = vadd.xlane.f32.xlu1 %v676_v17  ;;  %v659_v18 = vpop.xlane.xlu0 %658 }
 0x197   : > { %v666_v19 = vmul.f32 0.0625, %v659_v18  ;;  %v673_v20 = vmul.f32 %v669_v16, %v669_v16 }
 0x199   : > { %v670_v21 = vsub.f32 %v649_v4, %v666_v19  ;;  %v679_v22 = vsel %vm311_vm1, %v673_v20, 0.0 }
 0x19a   : > { %680 = vadd.xlane.f32.xlu0 %v679_v22  ;;  %v662_v23 = vpop.xlane.xlu0 %661 }
 0x19b   : > { %v667_v24 = vmul.f32 0.0625, %v662_v23  ;;  %v674_v25 = vmul.f32 %v670_v21, %v670_v21 }
 0x19d   : > { %v671_v26 = vsub.f32 %v650_v8, %v667_v24  ;;  %v682_v27 = vsel %vm311_vm1, %v674_v25, 0.0 }
 0x19e   : > { %683 = vadd.xlane.f32.xlu1 %v682_v27 }
 0x19f   : > { %v675_v28 = vmul.f32 %v671_v26, %v671_v26 }
 0x1a1   : > { %v685_v29 = vsel %vm311_vm1, %v675_v28, 0.0 }
 0x1a2   : > { %686 = vadd.xlane.f32.xlu0 %v685_v29 }
 0x21f   : > { %v678_v30 = vpop.xlane.xlu1 %677 }
 0x220   : > { %v688_v31 = vmul.f32 0.0625, %v678_v30 }
 0x222   : > { %v692_v32 = vadd.f32 1e-05, %v688_v31 }
 0x223   : > { %v681_v33 = vpop.xlane.xlu0 %680 }
 0x224   : > { %1013 = vrsqrt.f32 %v692_v32  ;;  %v689_v34 = vmul.f32 0.0625, %v681_v33 }
 0x226   : > { %v693_v35 = vadd.f32 1e-05, %v689_v34 }
 0x227   : > { %v684_v36 = vpop.xlane.xlu1 %683 }
 0x228   : > { %1015 = vrsqrt.f32 %v693_v35  ;;  %v690_v37 = vmul.f32 0.0625, %v684_v36 }
 0x22a   : > { %v694_v38 = vadd.f32 1e-05, %v690_v37 }
 0x22b   : > { %v687_v39 = vpop.xlane.xlu0 %686 }
 0x22c   : > { %1017 = vrsqrt.f32 %v694_v38  ;;  %v691_v40 = vmul.f32 0.0625, %v687_v39 }
 0x22e   : > { %v695_v41 = vadd.f32 1e-05, %v691_v40 }
 0x230   : > { %1019 = vrsqrt.f32 %v695_v41 }
 0x231   : > { %v1014_v42 = vpop.eup %1013 }
 0x232   : > { %v700_v43 = vmul.f32 %v1014_v42, %v668_v12 }
 0x234   : > { %v704_v44 = vmax.f32 %v700_v43, 0.0 }
 0x235   : > { %v1016_v45 = vpop.eup %1015 }
 0x236   : > { %v914_v46 = vpack.c.bf16 %v704_v44, %v704_v44  ;;  %v701_v47 = vmul.f32 %v1016_v45, %v669_v16 }
 0x238   : > { %725 = vst.msk [vmem:[%s304_s20] sm:$0xf] %vm724_vm2, %v914_v46  ;;  %v705_v48 = vmax.f32 %v701_v47, 0.0 }
 0x239   : > { %v1018_v49 = vpop.eup %1017 }
 0x23a   : > { %v915_v50 = vpack.c.bf16 %v705_v48, %v705_v48  ;;  %v702_v51 = vmul.f32 %v1018_v49, %v670_v21 }
 0x23c   : > { %726 = vst.msk [vmem:[%s304_s20 + $0x4] sm:$0xf] %vm724_vm2, %v915_v50  ;;  %v706_v52 = vmax.f32 %v702_v51, 0.0 }
 0x23d   : > { %v1020_v53 = vpop.eup %1019 }
 0x23e   : > { %v916_v54 = vpack.c.bf16 %v706_v52, %v706_v52  ;;  %v703_v55 = vmul.f32 %v1020_v53, %v671_v26 }
 0x240   : > { %727 = vst.msk [vmem:[%s304_s20 + $0x8] sm:$0xf] %vm724_vm2, %v916_v54  ;;  %v707_v56 = vmax.f32 %v703_v55, 0.0 }
 0x242   : > { %v917_v57 = vpack.c.bf16 %v707_v56, %v707_v56 }
 0x244   : > { %728 = vst.msk [vmem:[%s304_s20 + $0xc] sm:$0xf] %vm724_vm2, %v917_v57 }
 0x245 PF: > { %s13_s14 = sadd.s32 1, %s1043_s14   ;;  %s1180_s12 = smov %s1039_s13 }
 0x246   : > { %p10_p5 = scmp.ge.s32.totalorder %s13_s14, 4   ;;  %s1181_s13 = smov %s1183_s15 }
 0x248   :  { %12 = sbr.rel (!%p10_p5) target bundleno = 2 (0x2), region = 76 }

// kernel: pona_forward.49
= control target key start
LH: loop header
LB: loop body
LE: loop exit
PB: predicated region body
PF: predicated region fallthrough
CT: control target
= control target key end

     0   :  { %s1191_s15 = smov 0   ;;  %s1193_s16 = smov 0   ;;  %s1303_s0 = inlined_call_operand.vmem [shape: bf16[32,288], index: 0, kind: input, shape index: {}]   ;;  %s1304_s1 = inlined_call_operand.vmem [shape: bf16[2,288,16], index: 1, kind: input, shape index: {}]   ;;  %s1305_s2 = inlined_call_operand.vmem [shape: f32[32,1], index: 2, kind: input, shape index: {}]   ;;  %s1306_s3 = inlined_call_operand.vmem [shape: bf16[2,32,16], index: 3, kind: input, shape index: {}]   ;;  %s1307_s4 = inlined_call_operand.vmem [shape: bf16[2,32,16], index: 4, kind: output, shape index: {}]  }
   0x1   :  { %s1195_s17 = smov 0  }
   0x2 LB: > { %s40_s18 = sadd.s32 1, %s1158_s16  ;;  %p984_p0 = scmp.ge.s32.totalorder %s1162_s17, 1  ;;  %s1162_s17 = sphi %s1195_s17, %s14_s17   ;;  %s1158_s16 = sphi %s1193_s16, %s1309_s16   ;;  %s1154_s15 = sphi %s1191_s15, %s1308_s15  }
   0x3   : > { %p42_p1 = scmp.ge.s32.totalorder %s40_s18, 2  ;;  %p256_p2 = scmp.lt.s32.totalorder %s1162_s17, 3 }
   0x5   : > { %s1311_s18 = smov (%p42_p1, %s40_s18), 0  ;;  %p257_p3 = pnand %p984_p0, %p256_p2 }
   0x6   : > { %p336_p4 = scmp.lt.s32.totalorder (!%p257_p3), %s1154_s15, 1 }
   0x7   : > { %260 = sbr.rel (%p257_p3) target bundleno = 583 (0x247), region = 36 }
   0xc   : > { %vm576_vm0 = vcmask 261120   ;;  %v1126_v0 = vld [vmem:[%s1303_s0 + $0x4] ss:$12 sps:$4 sm:$0xff]   ;;  %s1313_s15 = smov (!%p336_p4, %s1154_s15), 1  ;;  %v1127_v1 = vld [vmem:[%s1303_s0 + $0x8] ss:$12 sps:$4 sm:$0xff]  }
   0xd   : > { %615 = vmatprep.mubr.bf16.mxu0 %v1126_v0  ;;  %s1077_s23 = smul.u32 144, %s1313_s15  ;;  %1073 = vmatprep.mubr.msk.bf16.mxu1 %vm576_vm0, %v1127_v1  ;;  %v1164_v2 = vmov 0   ;;  %v697_v3 = vld [vmem:[%s1305_s2] sm:$0xff]  ;;  %v699_v4 = vld [vmem:[%s1305_s2 + $0x10] sm:$0xff]  ;;  %v698_v5 = vld [vmem:[%s1305_s2 + $0x8] sm:$0xff]  ;;  %vm385_vm1 = vcmask 130048  }
   0xe   : > { %1104 = vset.pattern.permute.xlu0 %v1164_v2  ;;  %1105 = vset.pattern.permute.xlu1 %v1164_v2  ;;  %v700_v6 = vld [vmem:[%s1305_s2 + $0x18] sm:$0xff]  ;;  %v1128_v21 = vld [vmem:[%s1303_s0 + $0x20] ss:$12 sps:$4 sm:$0xff]   ;;  %v1165_v29 = vmov 0.0   ;;  %s1022_s21 = sshll.u32 %s1313_s15, 4  ;;  %vm810_vm2 = vcmask 125952  }
   0xf   : > { %703 = vperm.xlu0 %1104, %v697_v3   ;;  %s1228_s30 = scalar_lea.vmem %s1304_s1, %s1077_s23  ;;  %713 = vperm.xlu1 %1105, %v699_v4   ;;  %v1124_v26 = vld [vmem:[%s1303_s0] ss:$12 sps:$4 sm:$0xff]   ;;  %v1129_v27 = vld [vmem:[%s1303_s0 + $0x1c] ss:$12 sps:$4 sm:$0xff]   ;;  %v1131_v28 = vld [vmem:[%s1303_s0 + $0x18] ss:$12 sps:$4 sm:$0xff]   ;;  %s365_s24 = scalar_lea.vmem %s1306_s3, %s1022_s21 }
  0x10   : > { %v1106_v7 = vld [vmem:[%s1228_s30 + $0x78] sm:$0xff]   ;;  %v1108_v9 = vld [vmem:[%s1228_s30 + $0x70] sm:$0xff]   ;;  %v1110_v11 = vld [vmem:[%s1228_s30 + $0x68] sm:$0xff]   ;;  %386 = vst.msk [vmem:[#allocation2] sm:$0xff] %vm385_vm1, %v1165_v29  ;;  %s378_s26 = scalar_lea.vmem %s1307_s4, %s1022_s21 }
  0x11   : > { %v1107_v8 = vld [vmem:[%s1228_s30 + $0x38] sm:$0xff]   ;;  %1037 = vmatprep.subr.bf16.mxu0 %v1106_v7  ;;  %v1109_v10 = vld [vmem:[%s1228_s30 + $0x30] sm:$0xff]   ;;  %v1111_v12 = vld [vmem:[%s1228_s30 + $0x28] sm:$0xff]   ;;  %387 = vst.msk [vmem:[#allocation2 + $0x8] sm:$0xff] %vm385_vm1, %v1165_v29 }
  0x12   : > { %1038 = vmatpush3.bf16.msra.mxu0 %v1107_v8  ;;  %v1112_v13 = vld [vmem:[%s1228_s30 + $0x60] sm:$0xff]   ;;  %v1114_v15 = vld [vmem:[%s1228_s30 + $0x58] sm:$0xff]   ;;  %v1119_v16 = vld [vmem:[%s1228_s30 + $0x88] sm:$0xff]   ;;  %388 = vst.msk [vmem:[#allocation2 + $0x10] sm:$0xff] %vm385_vm1, %v1165_v29 }
  0x13   : > { %708 = vperm.xlu0 %1104, %v698_v5   ;;  %718 = vperm.xlu1 %1105, %v700_v6   ;;  %v1113_v14 = vld [vmem:[%s1228_s30 + $0x20] sm:$0xff]   ;;  %v1115_v17 = vld [vmem:[%s1228_s30 + $0x18] sm:$0xff]   ;;  %v1116_v18 = vld [vmem:[%s1228_s30 + $0x50] sm:$0xff]   ;;  %389 = vst.msk [vmem:[#allocation2 + $0x18] sm:$0xff] %vm385_vm1, %v1165_v29 }
  0x14   : > { %1039 = vmatprep.subr.bf16.mxu0 %v1108_v9  ;;  %1069 = vmatprep.subr.bf16.mxu1 %v1119_v16  ;;  %v1122_v19 = vld [vmem:[%s1228_s30 + $0x80] sm:$0xff]   ;;  %v1117_v20 = vld [vmem:[%s1228_s30 + $0x10] sm:$0xff]   ;;  %v1118_v22 = vld [vmem:[%s1228_s30 + $0x48] sm:$0xff]  }
  0x15   : > { %1070 = vmatpush3.bf16.msra.mxu1 %v1119_v16  ;;  %v1120_v23 = vld [vmem:[%s1228_s30 + $0x8] sm:$0xff]   ;;  %v1121_v24 = vld [vmem:[%s1228_s30 + $0x40] sm:$0xff]  }
  0x16   : > { %1040 = vmatpush3.bf16.msra.mxu0 %v1109_v10  ;;  %1071 = vmatprep.subr.bf16.mxu1 %v1122_v19  ;;  %v1123_v25 = vld [vmem:[%s1228_s30] sm:$0xff]  }
  0x17   : > { %1041 = vmatprep.subr.bf16.mxu0 %v1110_v11  ;;  %v390_v35 = vld [vmem:[#allocation2] sm:$0xff] }
  0x18   : > { %v391_v42 = vld [vmem:[#allocation2 + $0x8] sm:$0xff] }
  0x19   : > { %1072 = vmatpush3.bf16.msra.mxu1 %v1122_v19  ;;  %v392_v49 = vld [vmem:[#allocation2 + $0x10] sm:$0xff] }
  0x1a   : > { %1042 = vmatpush3.bf16.msra.mxu0 %v1111_v12  ;;  %v393_v56 = vld [vmem:[#allocation2 + $0x18] sm:$0xff] }
  0x1b   : > { %1043 = vmatprep.subr.bf16.mxu0 %v1112_v13 }
  0x1c   : > { %1074 = vmatmul.mubr.msk.bf16.vlgmr.msra.gmra.mxu1 %vm576_vm0, %v1128_v21 }
  0x1e   : > { %1044 = vmatpush3.bf16.msra.mxu0 %v1113_v14 }
  0x1f   : > { %1045 = vmatprep.subr.bf16.mxu0 %v1114_v15 }
  0x22   : > { %1046 = vmatpush3.bf16.msra.mxu0 %v1115_v17 }
  0x23   : > { %1047 = vmatprep.subr.bf16.mxu0 %v1116_v18 }
  0x26   : > { %1048 = vmatpush3.bf16.msra.mxu0 %v1117_v20 }
  0x27   : > { %1049 = vmatprep.subr.bf16.mxu0 %v1118_v22 }
  0x2a   : > { %1050 = vmatpush3.bf16.msra.mxu0 %v1120_v23 }
  0x2b   : > { %1051 = vmatprep.subr.bf16.mxu0 %v1121_v24 }
  0x2e   : > { %1052 = vmatpush3.bf16.msra.mxu0 %v1123_v25 }
  0x31   : > { %616 = vmatmul.mubr.bf16.vlgmr.msra.gmra.mxu0 %v1124_v26 }
  0x32   : > { %623 = vmatprep.mubr.bf16.mxu0 %v1129_v27 }
  0x39   : > { %624 = vmatmul.mubr.bf16.gmra.mxu0 %v1131_v28 }
  0x8a   : > { %v704_v51 = vpop.permute.xlu0 %703  ;;  %v714_v1 = vpop.permute.xlu1 %713 }
  0x8e   : > { %v709_v60 = vpop.permute.xlu0 %708  ;;  %v719_v6 = vpop.permute.xlu1 %718 }
  0xdc   : > { %v1075_v30 = vpop.f32.mrf.mxu1 }
  0xde   : > { %v666_v32 = vpop.f32.mrf.mxu1 }
  0xe0   : > { %v1076_v37 = vpop.f32.mrf.mxu1 }
  0xe2   : > { %v669_v43 = vpop.f32.mrf.mxu1 }
  0xf1   : > { %v1053_v31 = vpop.f32.mrf.mxu0 }
  0xf3   : > { %v1054_v33 = vpop.f32.mrf.mxu0 }
  0xf4   : > { %v1055_v34 = vadd.f32 %v1054_v33, %v1053_v31 }
  0xf5   : > { %v1056_v36 = vpop.f32.mrf.mxu0 }
  0xf6   : > { %v667_v38 = vadd.f32 %v1055_v34, %v666_v32 }
  0xf7   : > { %v1057_v39 = vpop.f32.mrf.mxu0 }
  0xf8   : > { %v681_v40 = vadd.f32 %v667_v38, %v390_v35  ;;  %v1058_v41 = vadd.f32 %v1057_v39, %v1056_v36 }
  0xf9   : > { %v1059_v44 = vpop.f32.mrf.mxu0 }
  0xfa   : > { %686 = vst.msk [vmem:[#allocation2] sm:$0xff] %vm385_vm1, %v681_v40  ;;  %v670_v45 = vadd.f32 %v1058_v41, %v669_v43 }
  0xfb   : > { %v1060_v46 = vpop.f32.mrf.mxu0 }
  0xfc   : > { %v682_v47 = vadd.f32 %v670_v45, %v391_v42  ;;  %v1061_v48 = vadd.f32 %v1060_v46, %v1059_v44  ;;  %v1029_v42 = vld [vmem:[%s365_s24] sm:$0xff]  }
  0xfd   : > { %v1062_v50 = vpop.f32.mrf.mxu0  ;;  %v1030_v44 = vunpack.c.l.bf16 %v1029_v42 }
  0xfe   : > { %687 = vst.msk [vmem:[#allocation2 + $0x8] sm:$0xff] %vm385_vm1, %v682_v47  ;;  %v675_v52 = vadd.f32 %v1075_v30, %v1061_v48 }
  0xff   : > { %v1063_v53 = vpop.f32.mrf.mxu0 }
 0x100   : > { %v683_v54 = vadd.f32 %v675_v52, %v392_v49  ;;  %v1064_v55 = vadd.f32 %v1063_v53, %v1062_v50  ;;  %v1031_v49 = vunpack.c.h.bf16 %v1029_v42 }
 0x101   : > { %v693_v57 = vld [vmem:[#allocation2] sm:$0xff] }
 0x102   : > { %688 = vst.msk [vmem:[#allocation2 + $0x10] sm:$0xff] %vm385_vm1, %v683_v54  ;;  %v678_v58 = vadd.f32 %v1076_v37, %v1064_v55  ;;  %v721_v59 = vadd.f32 %v704_v51, %v693_v57  ;;  %v1036_v51 = vld [vmem:[%s365_s24 + $0x8] sm:$0xff]  }
 0x104   : > { %v684_v61 = vadd.f32 %v678_v58, %v393_v56  ;;  %v725_v62 = vsel %vm385_vm1, %v721_v59, 0.0  ;;  %v1034_v56 = vunpack.c.l.bf16 %v1036_v51 }
 0x105   : > { %v694_v63 = vld [vmem:[#allocation2 + $0x8] sm:$0xff]  ;;  %726 = vadd.xlane.f32.xlu0 %v725_v62  ;;  %v1035_v62 = vunpack.c.h.bf16 %v1036_v51 }
 0x106   : > { %689 = vst.msk [vmem:[#allocation2 + $0x18] sm:$0xff] %vm385_vm1, %v684_v61  ;;  %v722_v0 = vadd.f32 %v709_v60, %v694_v63 }
 0x108   : > { %v728_v2 = vsel %vm385_vm1, %v722_v0, 0.0 }
 0x109   : > { %v695_v3 = vld [vmem:[#allocation2 + $0x10] sm:$0xff]  ;;  %729 = vadd.xlane.f32.xlu1 %v728_v2 }
 0x10a   : > { %v723_v4 = vadd.f32 %v714_v1, %v695_v3 }
 0x10c   : > { %v731_v5 = vsel %vm385_vm1, %v723_v4, 0.0 }
 0x10d   : > { %v696_v7 = vld [vmem:[#allocation2 + $0x18] sm:$0xff]  ;;  %732 = vadd.xlane.f32.xlu0 %v731_v5 }
 0x10e   : > { %v724_v8 = vadd.f32 %v719_v6, %v696_v7 }
 0x110   : > { %v734_v9 = vsel %vm385_vm1, %v724_v8, 0.0 }
 0x111   : > { %735 = vadd.xlane.f32.xlu0 %v734_v9 }
 0x18e   : > { %v727_v10 = vpop.xlane.xlu0 %726 }
 0x18f   : > { %v738_v11 = vmul.f32 0.0625, %v727_v10 }
 0x191   : > { %v742_v12 = vsub.f32 %v721_v59, %v738_v11 }
 0x192   : > { %v730_v13 = vpop.xlane.xlu1 %729 }
 0x193   : > { %v739_v14 = vmul.f32 0.0625, %v730_v13  ;;  %v746_v15 = vmul.f32 %v742_v12, %v742_v12 }
 0x195   : > { %v743_v16 = vsub.f32 %v722_v0, %v739_v14  ;;  %v750_v17 = vsel %vm385_vm1, %v746_v15, 0.0 }
 0x196   : > { %751 = vadd.xlane.f32.xlu1 %v750_v17  ;;  %v733_v18 = vpop.xlane.xlu0 %732 }
 0x197   : > { %v740_v19 = vmul.f32 0.0625, %v733_v18  ;;  %v747_v20 = vmul.f32 %v743_v16, %v743_v16 }
 0x199   : > { %v744_v21 = vsub.f32 %v723_v4, %v740_v19  ;;  %v753_v22 = vsel %vm385_vm1, %v747_v20, 0.0 }
 0x19a   : > { %754 = vadd.xlane.f32.xlu0 %v753_v22  ;;  %v736_v23 = vpop.xlane.xlu0 %735 }
 0x19b   : > { %v741_v24 = vmul.f32 0.0625, %v736_v23  ;;  %v748_v25 = vmul.f32 %v744_v21, %v744_v21 }
 0x19d   : > { %v745_v26 = vsub.f32 %v724_v8, %v741_v24  ;;  %v756_v27 = vsel %vm385_vm1, %v748_v25, 0.0 }
 0x19e   : > { %757 = vadd.xlane.f32.xlu1 %v756_v27 }
 0x19f   : > { %v749_v28 = vmul.f32 %v745_v26, %v745_v26 }
 0x1a1   : > { %v759_v29 = vsel %vm385_vm1, %v749_v28, 0.0 }
 0x1a2   : > { %760 = vadd.xlane.f32.xlu0 %v759_v29 }
 0x21f   : > { %v752_v30 = vpop.xlane.xlu1 %751 }
 0x220   : > { %v762_v31 = vmul.f32 0.0625, %v752_v30 }
 0x222   : > { %v766_v32 = vadd.f32 1e-05, %v762_v31 }
 0x223   : > { %v755_v33 = vpop.xlane.xlu0 %754 }
 0x224   : > { %1132 = vrsqrt.f32 %v766_v32  ;;  %v763_v34 = vmul.f32 0.0625, %v755_v33 }
 0x226   : > { %v767_v35 = vadd.f32 1e-05, %v763_v34 }
 0x227   : > { %v758_v36 = vpop.xlane.xlu1 %757 }
 0x228   : > { %1134 = vrsqrt.f32 %v767_v35  ;;  %v764_v37 = vmul.f32 0.0625, %v758_v36 }
 0x22a   : > { %v768_v38 = vadd.f32 1e-05, %v764_v37 }
 0x22b   : > { %v761_v39 = vpop.xlane.xlu0 %760 }
 0x22c   : > { %1136 = vrsqrt.f32 %v768_v38  ;;  %v765_v40 = vmul.f32 0.0625, %v761_v39 }
 0x22e   : > { %v769_v41 = vadd.f32 1e-05, %v765_v40 }
 0x230   : > { %1138 = vrsqrt.f32 %v769_v41 }
 0x231   : > { %v1133_v43 = vpop.eup %1132 }
 0x232   : > { %v774_v45 = vmul.f32 %v1133_v43, %v742_v12 }
 0x234   : > { %v778_v46 = vmax.f32 %v774_v45, 0.0 }
 0x235   : > { %v1135_v47 = vpop.eup %1134 }
 0x236   : > { %v790_v48 = vadd.f32 %v1030_v44, %v778_v46  ;;  %v775_v50 = vmul.f32 %v1135_v47, %v743_v16 }
 0x238   : > { %v1024_v52 = vpack.c.bf16 %v790_v48, %v790_v48  ;;  %v779_v53 = vmax.f32 %v775_v50, 0.0 }
 0x239   : > { %v1137_v54 = vpop.eup %1136 }
 0x23a   : > { %811 = vst.msk [vmem:[%s378_s26] sm:$0xf] %vm810_vm2, %v1024_v52  ;;  %v791_v55 = vadd.f32 %v1031_v49, %v779_v53  ;;  %v776_v57 = vmul.f32 %v1137_v54, %v744_v21 }
 0x23c   : > { %v1025_v58 = vpack.c.bf16 %v791_v55, %v791_v55  ;;  %v780_v59 = vmax.f32 %v776_v57, 0.0 }
 0x23d   : > { %v1139_v60 = vpop.eup %1138 }
 0x23e   : > { %812 = vst.msk [vmem:[%s378_s26 + $0x4] sm:$0xf] %vm810_vm2, %v1025_v58  ;;  %v792_v61 = vadd.f32 %v1034_v56, %v780_v59  ;;  %v777_v63 = vmul.f32 %v1139_v60, %v745_v26 }
 0x240   : > { %v1026_v0 = vpack.c.bf16 %v792_v61, %v792_v61  ;;  %v781_v1 = vmax.f32 %v777_v63, 0.0 }
 0x242   : > { %813 = vst.msk [vmem:[%s378_s26 + $0x8] sm:$0xf] %vm810_vm2, %v1026_v0  ;;  %v793_v2 = vadd.f32 %v1035_v62, %v781_v1 }
 0x244   : > { %v1027_v3 = vpack.c.bf16 %v793_v2, %v793_v2 }
 0x246   : > { %814 = vst.msk [vmem:[%s378_s26 + $0xc] sm:$0xf] %vm810_vm2, %v1027_v3 }
 0x247 PF: > { %s14_s17 = sadd.s32 1, %s1162_s17   ;;  %s1308_s15 = smov %s1158_s16 }
 0x248   : > { %p11_p5 = scmp.ge.s32.totalorder %s14_s17, 4   ;;  %s1309_s16 = smov %s1311_s18 }
 0x24a   :  { %13 = sbr.rel (!%p11_p5) target bundleno = 2 (0x2), region = 83 }

// kernel: pona_forward.45
= control target key start
LH: loop header
LB: loop body
LE: loop exit
PB: predicated region body
PF: predicated region fallthrough
CT: control target
= control target key end

     0   :  { %s1591_s25 = smov 0   ;;  %s1593_s26 = smov 0   ;;  %s1727_s0 = inlined_call_operand.vmem [shape: bf16[2,64,16], index: 0, kind: input, shape index: {}, may-alias: {0,1,2,3}]   ;;  %s1728_s1 = inlined_call_operand.vmem [shape: bf16[2,64,16], index: 1, kind: input, shape index: {}, may-alias: {0,1,2,3}]   ;;  %s1729_s2 = inlined_call_operand.vmem [shape: bf16[2,64,16], index: 2, kind: input, shape index: {}, may-alias: {0,1,2,3}]   ;;  %s1730_s3 = inlined_call_operand.vmem [shape: bf16[2,64,16], index: 3, kind: input, shape index: {}, may-alias: {0,1,2,3}]   ;;  %s1731_s4 = inlined_call_operand.vmem [shape: bf16[8,64], index: 4, kind: input, shape index: {}]   ;;  %s1732_s5 = inlined_call_operand.vmem [shape: f32[8,1], index: 5, kind: input, shape index: {}, may-alias: {5,7}]   ;;  %s1733_s6 = inlined_call_operand.vmem [shape: bf16[8,64], index: 6, kind: input, shape index: {}]   ;;  %s1734_s7 = inlined_call_operand.vmem [shape: f32[8,1], index: 7, kind: input, shape index: {}, may-alias: {5,7}]   ;;  %s1735_s8 = inlined_call_operand.vmem [shape: bf16[64,64], index: 8, kind: input, shape index: {}]   ;;  %s1736_s9 = inlined_call_operand.vmem [shape: f32[64,1], index: 9, kind: input, shape index: {}]   ;;  %s1737_s10 = inlined_call_operand.<no memory space> [shape: f32[1,1], index: 10, kind: input, shape index: {}]   ;;  %s1738_s12 = inlined_call_operand.vmem [shape: bf16[2,64,16], index: 12, kind: output, shape index: {}]   ;;  %s1739_s11 = inlined_call_operand.<no memory space> [shape: f32[1,1], index: 11, kind: input, shape index: {}]  }
   0x1   :  { %v17_v0 = vstv %s1737_s10  ;;  %v19_v1 = vstv %s1739_s11  ;;  %s1595_s27 = smov 0  }
   0x2   :  { %18 = vst [vmem:[#allocation2] sm:$0x1] %v17_v0  ;;  %20 = vst [vmem:[#allocation3] sm:$0x1] %v19_v1 }
   0x3 LB: > { %s38_s10 = sadd.s32 1, %s1511_s26  ;;  %p1276_p0 = scmp.ge.s32.totalorder %s1515_s27, 1  ;;  %s1515_s27 = sphi %s1595_s27, %s26_s27   ;;  %s1511_s26 = sphi %s1593_s26, %s1741_s26   ;;  %s1507_s25 = sphi %s1591_s25, %s1740_s25  }
   0x4   : > { %p40_p1 = scmp.ge.s32.totalorder %s38_s10, 2  ;;  %p420_p2 = scmp.lt.s32.totalorder %s1515_s27, 3 }
   0x6   : > { %s1743_s10 = smov (%p40_p1, %s38_s10), 0  ;;  %p421_p3 = pnand %p1276_p0, %p420_p2 }
   0x7   : > { %p486_p4 = scmp.lt.s32.totalorder (!%p421_p3), %s1507_s25, 1 }
   0x8   : > { %424 = sbr.rel (%p421_p3) target bundleno = 1061 (0x425), region = 68 }
   0xd   : > { %v1517_v2 = vmov 0.0   ;;  %v530_v3 = vld [vmem:[%s1732_s5] sm:$0xff]  ;;  %s1745_s25 = smov (!%p486_p4, %s1507_s25), 1  ;;  %vm1518_vm0 = vmmov 0   ;;  %v1519_v4 = vmov 0   ;;  %vm560_vm1 = vcmask 523264  }
   0xe   : > { %1383 = vmatprep.subr.bf16.mxu0 %v1517_v2  ;;  %1395 = vmatprep.subr.bf16.mxu1 %v1517_v2  ;;  %s1615_s29 = sshll.u32 %s1745_s25, 5  ;;  %v613_v5 = vld [vmem:[%s1734_s7] sm:$0xff]  ;;  %v1482_v21 = vld [vmem:[%s1735_s8 + $0x8] sm:$0xff]   ;;  %v1483_v22 = vld [vmem:[%s1735_s8 + $0x10] sm:$0xff]   ;;  %vm893_vm2 = vcmask 1043456   ;;  %vm889_vm3 = vcmask 64512  }
   0xf   : > { %1391 = vmatprep.mubr.msk.bf16.mxu0 %vm1518_vm0, %v1517_v2  ;;  %1403 = vmatprep.mubr.msk.bf16.mxu1 %vm1518_vm0, %v1517_v2  ;;  %s493_s14 = scalar_lea.vmem %s1727_s0, %s1615_s29  ;;  %s498_s17 = scalar_lea.vmem %s1728_s1, %s1615_s29  ;;  %v521_v14 = vld [vmem:[%s1731_s4] sm:$0xf]  ;;  %v1484_v25 = vld [vmem:[%s1735_s8 + $0x18] sm:$0xff]   ;;  %vm938_vm4 = vcmask 130048   ;;  %v704_v47 = vld [vmem:[%s1736_s9 + $0x10] sm:$0xff]  ;;  %vm1138_vm5 = vcmask 125952  }
  0x10   : > { %1467 = vset.pattern.permute.xlu0 %v1519_v4  ;;  %v1469_v6 = vld [vmem:[%s493_s14 + $0x18] sm:$0xff]   ;;  %v1471_v8 = vld [vmem:[%s493_s14 + $0x10] sm:$0xff]   ;;  %v1473_v10 = vld [vmem:[%s493_s14 + $0x8] sm:$0xff]   ;;  %s503_s11 = scalar_lea.vmem %s1729_s2, %s1615_s29  ;;  %s511_s21 = scalar_lea.vmem %s1730_s3, %s1615_s29 }
  0x11   : > { %533 = vperm.xlu0 %1467, %v530_v3   ;;  %v1470_v7 = vld [vmem:[%s498_s17 + $0x18] sm:$0xff]   ;;  %1384 = vmatpush3.bf16.msra.mxu0 %v1469_v6  ;;  %v1472_v9 = vld [vmem:[%s498_s17 + $0x10] sm:$0xff]   ;;  %v1474_v11 = vld [vmem:[%s498_s17 + $0x8] sm:$0xff]   ;;  %s1700_s24 = scalar_lea.vmem %s1738_s12, %s1615_s29 }
  0x12   : > { %1396 = vmatpush3.bf16.msra.mxu1 %v1470_v7  ;;  %1385 = vmatprep.subr.bf16.mxu0 %v1517_v2  ;;  %v1475_v12 = vld [vmem:[%s493_s14] sm:$0xff]   ;;  %v1477_v17 = vld [vmem:[%s503_s11 + $0x18] sm:$0xff]   ;;  %v1478_v18 = vld [vmem:[%s503_s11 + $0x10] sm:$0xff]  }
  0x13   : > { %1397 = vmatprep.subr.bf16.mxu1 %v1517_v2  ;;  %v1476_v13 = vld [vmem:[%s498_s17] sm:$0xff]   ;;  %v1479_v19 = vld [vmem:[%s503_s11 + $0x8] sm:$0xff]   ;;  %v705_v48 = vld [vmem:[%s1736_s9 + $0x18] sm:$0xff] }
  0x14   : > { %v604_v15 = vld [vmem:[%s1733_s6] sm:$0xf]  ;;  %v703_v49 = vld [vmem:[%s1736_s9 + $0x8] sm:$0xff]  ;;  %v709_v51 = vld [vmem:[%s1736_s9 + $0x38] sm:$0xff] }
  0x15   : > { %616 = vperm.xlu0 %1467, %v613_v5   ;;  %1386 = vmatpush3.bf16.msra.mxu0 %v1471_v8  ;;  %v1481_v16 = vld [vmem:[%s1735_s8] sm:$0xff]   ;;  %v707_v8 = vld [vmem:[%s1736_s9 + $0x28] sm:$0xff] }
  0x16   : > { %1398 = vmatpush3.bf16.msra.mxu1 %v1472_v9  ;;  %1387 = vmatprep.subr.bf16.mxu0 %v1517_v2  ;;  %v1480_v20 = vld [vmem:[%s503_s11] sm:$0xff]   ;;  %v708_v9 = vld [vmem:[%s1736_s9 + $0x30] sm:$0xff] }
  0x17   : > { %1399 = vmatprep.subr.bf16.mxu1 %v1517_v2  ;;  %v702_v46 = vld [vmem:[%s1736_s9] sm:$0xff] }
  0x18   : > { %v706_v50 = vld [vmem:[%s1736_s9 + $0x20] sm:$0xff] }
  0x19   : > { %1388 = vmatpush3.bf16.msra.mxu0 %v1473_v10  ;;  %v1315_v52 = vld [vmem:[#allocation3] ss:$0 sm:$0xff]  ;;  %v1314_v10 = vld [vmem:[#allocation2] ss:$0 sm:$0xff] }
  0x1a   : > { %1400 = vmatpush3.bf16.msra.mxu1 %v1474_v11  ;;  %1389 = vmatprep.subr.bf16.mxu0 %v1517_v2 }
  0x1b   : > { %1401 = vmatprep.subr.bf16.mxu1 %v1517_v2 }
  0x1d   : > { %1390 = vmatpush3.bf16.msra.mxu0 %v1475_v12 }
  0x1e   : > { %1402 = vmatpush3.bf16.msra.mxu1 %v1476_v13  ;;  %1407 = vmatprep.subr.bf16.mxu0 %v1477_v17 }
  0x1f   : > { %1423 = vmatprep.subr.bf16.mxu1 %v1517_v2 }
  0x20   : > { %1392 = vmatmul.mubr.msk.bf16.vlgmr.msra.gmra.mxu0 %vm560_vm1, %v521_v14 }
  0x21   : > { %1404 = vmatmul.mubr.msk.bf16.vlgmr.msra.gmra.mxu1 %vm560_vm1, %v604_v15  ;;  %1415 = vmatprep.mubr.msk.bf16.mxu0 %vm560_vm1, %v1481_v16 }
  0x22   : > { %1425 = vmatprep.mubr.msk.bf16.mxu1 %vm1518_vm0, %v1517_v2  ;;  %1408 = vmatpush3.bf16.msra.mxu0 %v1477_v17 }
  0x23   : > { %1409 = vmatprep.subr.bf16.mxu0 %v1478_v18 }
  0x26   : > { %1410 = vmatpush3.bf16.msra.mxu0 %v1478_v18 }
  0x27   : > { %1411 = vmatprep.subr.bf16.mxu0 %v1479_v19 }
  0x2a   : > { %1412 = vmatpush3.bf16.msra.mxu0 %v1479_v19 }
  0x2b   : > { %1413 = vmatprep.subr.bf16.mxu0 %v1480_v20 }
  0x2e   : > { %1414 = vmatpush3.bf16.msra.mxu0 %v1480_v20 }
  0x31   : > { %1416 = vmatmul.mubr.msk.bf16.vlgmr.msra.gmra.mxu0 %vm560_vm1, %v1482_v21 }
  0x32   : > { %1419 = vmatprep.mubr.msk.bf16.mxu0 %vm560_vm1, %v1483_v22 }
  0x39   : > { %1420 = vmatmul.mubr.msk.bf16.gmra.mxu0 %vm560_vm1, %v1484_v25 }
  0x8c   : > { %v534_v23 = vpop.permute.xlu0 %533 }
  0x90   : > { %v617_v24 = vpop.permute.xlu0 %616 }
  0xe0   : > { %v598_v26 = vpop.f32.mrf.mxu0 }
  0xe1   : > { %v680_v27 = vpop.f32.mrf.mxu1  ;;  %v599_v28 = vadd.f32 %v598_v26, %v534_v23 }
  0xe2   : > { %v681_v29 = vadd.f32 %v680_v27, %v617_v24  ;;  %v1393_v30 = vpop.f32.mrf.mxu0 }
  0xe3   : > { %v871_v31 = vpack.c.bf16 %v599_v28, %v599_v28  ;;  %v1405_v32 = vpop.f32.mrf.mxu1 }
  0xe4   : > { %v872_v33 = vpack.c.bf16 %v681_v29, %v681_v29  ;;  %v601_v34 = vpop.f32.mrf.mxu0 }
  0xe5   : > { %873 = vxpose.xlu1.c.b16.start.end [1/1] (short) (narrow) %v871_v31, 16  ;;  %v683_v35 = vpop.f32.mrf.mxu1 }
  0xe6   : > { %v895_v36 = vsel %vm893_vm2, %v872_v33, 0  ;;  %v1394_v37 = vpop.f32.mrf.mxu0 }
  0xe7   : > { %1424 = vmatpush3.bf16.msra.mxu1 %v895_v36  ;;  %v1406_v38 = vpop.f32.mrf.mxu1 }
  0xe8   : > { %v1355_v38 = vld [vmem:[%s511_s21 + $0x8] sm:$0xff]  }
  0xe9   : > { %1468 = vset.pattern.permute.xlu1 %v1519_v4 }
  0xf1   : > { %v1417_v54 = vpop.f32.mrf.mxu0 }
  0xf3   : > { %v840_v58 = vpop.f32.mrf.mxu0 }
  0xf5   : > { %v1418_v61 = vpop.f32.mrf.mxu0 }
  0xf7   : > { %v843_v0 = vpop.f32.mrf.mxu0 }
  0xf9   : > { %v1421_v16 = vpop.f32.mrf.mxu0 }
  0xfb   : > { %v856_v18 = vpop.f32.mrf.mxu0 }
  0xfd   : > { %v1422_v22 = vpop.f32.mrf.mxu0 }
  0xff   : > { %v859_v25 = vpop.f32.mrf.mxu0 }
 0x147   : > { %v881_v39 = vpop.trf.xlu1 }
 0x148   : > { %1426 = vmatmul.mubr.msk.bf16.vlgmr.msra.gmra.mxu1 %vm889_vm3, %v881_v39  ;;  %v1340_v39 = vld [vmem:[%s511_s21] sm:$0xff]  }
 0x208   : > { %v931_v40 = vpop.f32.mrf.mxu1 }
 0x209   : > { %v939_v41 = vsel %vm938_vm4, %v931_v40, -inf }
 0x20a   : > { %940 = vmax.xlane.f32.xlu1 %v939_v41  ;;  %v1427_v42 = vpop.f32.mrf.mxu1 }
 0x20b   : > { %v1341_v42 = vunpack.c.l.bf16 %v1340_v39 }
 0x20c   : > { %v934_v43 = vpop.f32.mrf.mxu1 }
 0x20d   : > { %v942_v44 = vsel %vm938_vm4, %v934_v43, -inf }
 0x20e   : > { %943 = vmax.xlane.f32.xlu0 %v942_v44  ;;  %v1428_v45 = vpop.f32.mrf.mxu1 }
 0x21b   : > { %712 = vperm.xlu1 %1468, %v702_v46  }
 0x21f   : > { %722 = vperm.xlu1 %1468, %v704_v47   ;;  %v1346_v47 = vunpack.c.h.bf16 %v1355_v38 }
 0x223   : > { %727 = vperm.xlu1 %1468, %v705_v48   ;;  %v1357_v48 = vld [vmem:[%s511_s21 + $0x18] sm:$0xff]  }
 0x224   : > { %717 = vperm.xlu0 %1467, %v703_v49  }
 0x227   : > { %732 = vperm.xlu1 %1468, %v706_v50  }
 0x228   : > { %747 = vperm.xlu0 %1467, %v709_v51  }
 0x22c   : > { %1087 = vperm.xlu0 %1467, %v1315_v52  }
 0x293   : > { %v941_v53 = vpop.xlane.xlu1 %940 }
 0x294   : > { %v945_v55 = vsub.f32 %v931_v40, %v941_v53  ;;  %v1345_v40 = vunpack.c.l.bf16 %v1355_v38  ;;  %v1342_v53 = vunpack.c.h.bf16 %v1340_v39 }
 0x296   : > { %v947_v56 = vmul.f32 1.442695, %v945_v55 }
 0x297   : > { %v944_v57 = vpop.xlane.xlu0 %943  ;;  %v713_v62 = vpop.permute.xlu1 %712 }
 0x298   : > { %1485 = vpow2.f32 %v947_v56  ;;  %v946_v59 = vsub.f32 %v934_v43, %v944_v57  ;;  %v841_v63 = vadd.f32 %v840_v58, %v713_v62  ;;  %v1353_v56 = vunpack.c.l.bf16 %v1357_v48 }
 0x29a   : > { %v949_v60 = vmul.f32 1.442695, %v946_v59 }
 0x29b   : > { %v723_v11 = vpop.permute.xlu1 %722 }
 0x29c   : > { %1487 = vpow2.f32 %v949_v60  ;;  %v849_v27 = vadd.f32 %v1417_v54, %v723_v11  ;;  %v1356_v54 = vld [vmem:[%s511_s21 + $0x10] sm:$0xff]  }
 0x29d   : > { %v1349_v62 = vunpack.c.l.bf16 %v1356_v54 }
 0x29f   : > { %v718_v1 = vpop.permute.xlu0 %717  ;;  %v728_v12 = vpop.permute.xlu1 %727 }
 0x2a0   : > { %v844_v2 = vadd.f32 %v843_v0, %v718_v1  ;;  %v852_v28 = vadd.f32 %v1418_v61, %v728_v12 }
 0x2a2   : > { %v961_v3 = vpack.c.bf16 %v844_v2, %v841_v63  ;;  %v962_v31 = vpack.c.bf16 %v852_v28, %v849_v27 }
 0x2a3   : > { %v733_v13 = vpop.permute.xlu1 %732  ;;  %v748_v34 = vpop.permute.xlu0 %747 }
 0x2a4   : > { %1431 = vmatprep.mubr.msk.bf16.mxu1 %vm938_vm4, %v961_v3  ;;  %v857_v30 = vadd.f32 %v856_v18, %v733_v13  ;;  %v868_v36 = vadd.f32 %v1422_v22, %v748_v34 }
 0x2a5   : > { %v1486_v4 = vpop.eup %1485 }
 0x2a6   : > { %v951_v5 = vsel %vm938_vm4, %v1486_v4, 0.0 }
 0x2a7   : > { %952 = vadd.xlane.f32.xlu1 %v951_v5  ;;  %v1088_v41 = vpop.permute.xlu0 %1087 }
 0x2a8   : > { %v1092_v46 = vmul.f32 %v1345_v40, %v1088_v41  ;;  %v1090_v52 = vmul.f32 %v1341_v42, %v1088_v41  ;;  %v1093_v60 = vmul.f32 %v1346_v47, %v1088_v41  ;;  %v1091_v2 = vmul.f32 %v1342_v53, %v1088_v41 }
 0x2a9   : > { %v1488_v6 = vpop.eup %1487 }
 0x2aa   : > { %v954_v7 = vsel %vm938_vm4, %v1488_v6, 0.0 }
 0x2ab   : > { %955 = vadd.xlane.f32.xlu1 %v954_v7 }
 0x2bc   : > { %737 = vperm.xlu1 %1468, %v707_v8   ;;  %v1096_v8 = vmul.f32 %v1353_v56, %v1088_v41 }
 0x2c0   : > { %742 = vperm.xlu1 %1468, %v708_v9  }
 0x2c4   : > { %1053 = vperm.xlu1 %1468, %v1314_v10   ;;  %v1350_v10 = vunpack.c.h.bf16 %v1356_v54 }
 0x330   : > { %v953_v14 = vpop.xlane.xlu1 %952 }
 0x331   : > { %1489 = vrcp.f32 %v953_v14  ;;  %v1094_v14 = vmul.f32 %v1349_v62, %v1088_v41 }
 0x334   : > { %v956_v15 = vpop.xlane.xlu1 %955 }
 0x335   : > { %1491 = vrcp.f32 %v956_v15 }
 0x338   : > { %v738_v24 = vpop.permute.xlu1 %737 }
 0x339   : > { %v860_v29 = vadd.f32 %v859_v25, %v738_v24  ;;  %v1095_v24 = vmul.f32 %v1350_v10, %v1088_v41 }
 0x33b   : > { %v963_v32 = vpack.c.bf16 %v860_v29, %v857_v30 }
 0x33c   : > { %v743_v33 = vpop.permute.xlu1 %742 }
 0x33d   : > { %v865_v35 = vadd.f32 %v1421_v16, %v743_v33 }
 0x33e   : > { %v1490_v17 = vpop.eup %1489 }
 0x33f   : > { %v959_v20 = vmul.f32 %v1490_v17, %v1486_v4  ;;  %v964_v37 = vpack.c.bf16 %v868_v36, %v865_v35  ;;  %v1354_v4 = vunpack.c.h.bf16 %v1357_v48 }
 0x340   : > { %v1054_v43 = vpop.permute.xlu1 %1053 }
 0x342   : > { %v1492_v19 = vpop.eup %1491 }
 0x343   : > { %v960_v21 = vmul.f32 %v1492_v19, %v1488_v6  ;;  %v1097_v19 = vmul.f32 %v1354_v4, %v1088_v41 }
 0x345   : > { %v965_v23 = vpack.c.bf16 %v960_v21, %v959_v20 }
 0x347   : > { %1439 = vmatprep.subr.msk.bf16.mxu1 %vm938_vm4, %v965_v23  ;;  %v979_v26 = vsel %vm938_vm4, %v965_v23, 0 }
 0x348   : > { %1430 = vmatpush3.bf16.xpose.msra.mxu1 %v979_v26 }
 0x34f   : > { %1432 = vmatmul.mubr.msk.bf16.vlgmr.msra.gmra.mxu1 %vm938_vm4, %v962_v31 }
 0x350   : > { %1435 = vmatprep.mubr.msk.bf16.mxu1 %vm938_vm4, %v963_v32 }
 0x357   : > { %1436 = vmatmul.mubr.msk.bf16.gmra.mxu1 %vm938_vm4, %v964_v37 }
 0x40f   : > { %v1433_v44 = vpop.f32.mrf.mxu1 }
 0x410   : > { %v1058_v45 = vmul.f32 %v1433_v44, %v1054_v43 }
 0x411   : > { %v1015_v49 = vpop.f32.mrf.mxu1 }
 0x412   : > { %v1100_v50 = vadd.f32 %v1092_v46, %v1058_v45  ;;  %v1056_v51 = vmul.f32 %v1054_v43, %v1015_v49 }
 0x413   : > { %v1434_v55 = vpop.f32.mrf.mxu1 }
 0x414   : > { %v1333_v57 = vpack.c.bf16 %v1100_v50, %v1100_v50  ;;  %v1098_v58 = vadd.f32 %v1090_v52, %v1056_v51  ;;  %v1059_v59 = vmul.f32 %v1434_v55, %v1054_v43 }
 0x415   : > { %v1018_v61 = vpop.f32.mrf.mxu1 }
 0x416   : > { %1141 = vst.msk [vmem:[%s1700_s24 + $0x8] sm:$0xf] %vm1138_vm5, %v1333_v57  ;;  %v1331_v63 = vpack.c.bf16 %v1098_v58, %v1098_v58  ;;  %v1101_v0 = vadd.f32 %v1093_v60, %v1059_v59  ;;  %v1057_v1 = vmul.f32 %v1054_v43, %v1018_v61 }
 0x417   : > { %v1437_v3 = vpop.f32.mrf.mxu1 }
 0x418   : > { %1139 = vst.msk [vmem:[%s1700_s24] sm:$0xf] %vm1138_vm5, %v1331_v63  ;;  %v1334_v5 = vpack.c.bf16 %v1101_v0, %v1101_v0  ;;  %v1099_v6 = vadd.f32 %v1091_v2, %v1057_v1  ;;  %v1062_v7 = vmul.f32 %v1437_v3, %v1054_v43 }
 0x419   : > { %v1031_v9 = vpop.f32.mrf.mxu1 }
 0x41a   : > { %1142 = vst.msk [vmem:[%s1700_s24 + $0xc] sm:$0xf] %vm1138_vm5, %v1334_v5  ;;  %v1332_v11 = vpack.c.bf16 %v1099_v6, %v1099_v6  ;;  %v1104_v12 = vadd.f32 %v1096_v8, %v1062_v7  ;;  %v1060_v13 = vmul.f32 %v1054_v43, %v1031_v9 }
 0x41b   : > { %v1438_v15 = vpop.f32.mrf.mxu1 }
 0x41c   : > { %1140 = vst.msk [vmem:[%s1700_s24 + $0x4] sm:$0xf] %vm1138_vm5, %v1332_v11  ;;  %v1337_v16 = vpack.c.bf16 %v1104_v12, %v1104_v12  ;;  %v1102_v17 = vadd.f32 %v1094_v14, %v1060_v13  ;;  %v1063_v18 = vmul.f32 %v1438_v15, %v1054_v43 }
 0x41d   : > { %v1034_v20 = vpop.f32.mrf.mxu1 }
 0x41e   : > { %1145 = vst.msk [vmem:[%s1700_s24 + $0x18] sm:$0xf] %vm1138_vm5, %v1337_v16  ;;  %v1335_v21 = vpack.c.bf16 %v1102_v17, %v1102_v17  ;;  %v1105_v22 = vadd.f32 %v1097_v19, %v1063_v18  ;;  %v1061_v23 = vmul.f32 %v1054_v43, %v1034_v20 }
 0x420   : > { %1143 = vst.msk [vmem:[%s1700_s24 + $0x10] sm:$0xf] %vm1138_vm5, %v1335_v21  ;;  %v1338_v25 = vpack.c.bf16 %v1105_v22, %v1105_v22  ;;  %v1103_v26 = vadd.f32 %v1095_v24, %v1061_v23 }
 0x422   : > { %1146 = vst.msk [vmem:[%s1700_s24 + $0x1c] sm:$0xf] %vm1138_vm5, %v1338_v25  ;;  %v1336_v27 = vpack.c.bf16 %v1103_v26, %v1103_v26 }
 0x424   : > { %1144 = vst.msk [vmem:[%s1700_s24 + $0x14] sm:$0xf] %vm1138_vm5, %v1336_v27 }
 0x425 PF: > { %s26_s27 = sadd.s32 1, %s1515_s27   ;;  %s1740_s25 = smov %s1511_s26 }
 0x426   : > { %p23_p5 = scmp.ge.s32.totalorder %s26_s27, 4   ;;  %s1741_s26 = smov %s1743_s10 }
 0x428   :  { %25 = sbr.rel (!%p23_p5) target bundleno = 3 (0x3), region = 107 }

// kernel: pona_forward.46
= control target key start
LH: loop header
LB: loop body
LE: loop exit
PB: predicated region body
PF: predicated region fallthrough
CT: control target
= control target key end

     0   :  { %s1605_s12 = smov 0   ;;  %s1607_s13 = smov 0   ;;  %s1873_s0 = inlined_call_operand.vmem [shape: bf16[64,1024], index: 0, kind: input, shape index: {}]   ;;  %s1874_s1 = inlined_call_operand.vmem [shape: bf16[2,1024,16], index: 1, kind: input, shape index: {}]   ;;  %s1875_s2 = inlined_call_operand.vmem [shape: f32[64,1], index: 2, kind: input, shape index: {}]   ;;  %s1876_s3 = inlined_call_operand.vmem [shape: bf16[2,64,16], index: 3, kind: output, shape index: {}]  }
   0x1   :  { %s1609_s14 = smov 0   ;;  %s1611_s15 = smov 0  }
   0x2   :  { %s1613_s16 = smov 0   ;;  %s1615_s17 = smov 0  }
   0x3   :  { %s1617_s18 = smov 0  }
   0x4 LB: > { %s28_s19 = sadd.s32 1, %s1573_s16  ;;  %s39_s20 = sadd.s32 1, %s1577_s17  ;;  %s1581_s18 = sphi %s1617_s18, %s13_s18   ;;  %s1577_s17 = sphi %s1615_s17, %s1882_s17   ;;  %s1573_s16 = sphi %s1613_s16, %s1881_s16   ;;  %s1569_s15 = sphi %s1611_s15, %s1880_s15   ;;  %s1565_s14 = sphi %s1609_s14, %s1879_s14   ;;  %s1561_s13 = sphi %s1607_s13, %s1878_s13   ;;  %s1557_s12 = sphi %s1605_s12, %s1877_s12  }
   0x5   : > { %p29_p0 = scmp.ge.s32.totalorder %s28_s19, 2  ;;  %s48_s21 = sadd.s32 1, %s1561_s13 }
   0x6   : > { %p55_p1 = scmp.ne.s32.totalorder %s1561_s13, %s1557_s12  ;;  %p56_p2 = scmp.eq.s32.totalorder %s1581_s18, 0 }
   0x7   : > { %s1884_s19 = smov (%p29_p0, %s28_s19), 0  ;;  %s1886_s20 = smov (!%p29_p0, %s39_s20), %s1577_s17 }
   0x8   : > { %s44_s22 = ssub.s32 %s1573_s16, %s1884_s19  ;;  %p57_p3 = por %p56_p2, %p55_p1 }
   0x9   : > { %p41_p4 = scmp.ge.s32.totalorder %s1886_s20, 2  ;;  %p46_p5 = scmp.eq.s32.totalorder %s44_s22, 0 }
   0xa   : > { %p1234_p6 = scmp.ge.s32.totalorder %s1581_s18, 4 }
   0xb   : > { %s1888_s20 = smov (%p41_p4, %s1886_s20), 0 }
   0xc   : > { %s1654_s23 = scalar_select %p46_p5, %s1561_s13, %s48_s21  }
   0xd   : > { %176 = sbr.rel (%p1234_p6) target bundleno = 30 (0x1e), region = 20 }
  0x12   : > { %179 = sbr.rel (!%p57_p3) target bundleno = 30 (0x1e), region = 24  ;;  %s181_s24 = sand.u32 (%p57_p3), 1, %s1561_s13  }
  0x13   : > { %s1305_s25 = sshll.u32 (%p57_p3), %s1573_s16, 4  ;;  %s1235_s26 = sshll.u32 (%p57_p3), %s181_s24, 7 }
  0x14   : > { %s1662_s29 = scalar_lea.vmem (%p57_p3), %s1873_s0, %s1305_s25  ;;  %s183_s30 = scalar_lea.vmem (%p57_p3), [#allocation3], %s1235_s26 }
  0x15   : > { %v202_v0 = vld [vmem:[%s1662_s29] sm:$0xff] (%p57_p3)  ;;  %v204_v1 = vld [vmem:[%s1662_s29 + $0x8] sm:$0xff] (%p57_p3) }
  0x16   : > { %v206_v2 = vld [vmem:[%s1662_s29 + $0x20] sm:$0xff] (%p57_p3)  ;;  %203 = vst [vmem:[%s183_s30] sm:$0xff] (%p57_p3), %v202_v0  ;;  %205 = vst [vmem:[%s183_s30 + $0x8] sm:$0xff] (%p57_p3), %v204_v1  ;;  %v208_v3 = vld [vmem:[%s1662_s29 + $0x28] sm:$0xff] (%p57_p3) }
  0x17   : > { %207 = vst [vmem:[%s183_s30 + $0x10] sm:$0xff] %v206_v2  ;;  %v210_v4 = vld [vmem:[%s1662_s29 + $0x40] sm:$0xff]  ;;  %v212_v5 = vld [vmem:[%s1662_s29 + $0x48] sm:$0xff]  ;;  %209 = vst [vmem:[%s183_s30 + $0x18] sm:$0xff] %v208_v3 }
  0x18   : > { %211 = vst [vmem:[%s183_s30 + $0x20] sm:$0xff] %v210_v4  ;;  %213 = vst [vmem:[%s183_s30 + $0x28] sm:$0xff] %v212_v5  ;;  %v214_v6 = vld [vmem:[%s1662_s29 + $0x60] sm:$0xff]  ;;  %v216_v7 = vld [vmem:[%s1662_s29 + $0x68] sm:$0xff] }
  0x19   : > { %v218_v8 = vld [vmem:[%s1662_s29 + $0x80] sm:$0xff]  ;;  %215 = vst [vmem:[%s183_s30 + $0x30] sm:$0xff] %v214_v6  ;;  %217 = vst [vmem:[%s183_s30 + $0x38] sm:$0xff] %v216_v7  ;;  %v220_v9 = vld [vmem:[%s1662_s29 + $0x88] sm:$0xff] }
  0x1a   : > { %219 = vst [vmem:[%s183_s30 + $0x40] sm:$0xff] %v218_v8  ;;  %v222_v10 = vld [vmem:[%s1662_s29 + $0xa0] sm:$0xff]  ;;  %v224_v11 = vld [vmem:[%s1662_s29 + $0xa8] sm:$0xff]  ;;  %221 = vst [vmem:[%s183_s30 + $0x48] sm:$0xff] %v220_v9 }
  0x1b   : > { %223 = vst [vmem:[%s183_s30 + $0x50] sm:$0xff] %v222_v10  ;;  %225 = vst [vmem:[%s183_s30 + $0x58] sm:$0xff] %v224_v11  ;;  %v226_v12 = vld [vmem:[%s1662_s29 + $0xc0] sm:$0xff]  ;;  %v228_v13 = vld [vmem:[%s1662_s29 + $0xc8] sm:$0xff] }
  0x1c   : > { %v230_v14 = vld [vmem:[%s1662_s29 + $0xe0] sm:$0xff]  ;;  %227 = vst [vmem:[%s183_s30 + $0x60] sm:$0xff] %v226_v12  ;;  %229 = vst [vmem:[%s183_s30 + $0x68] sm:$0xff] %v228_v13  ;;  %v232_v15 = vld [vmem:[%s1662_s29 + $0xe8] sm:$0xff] }
  0x1d   : > { %231 = vst [vmem:[%s183_s30 + $0x70] sm:$0xff] %v230_v14  ;;  %233 = vst [vmem:[%s183_s30 + $0x78] sm:$0xff] %v232_v15 }
  0x1e PF: > { %p1238_p7 = scmp.ge.s32.totalorder %s1581_s18, 1  ;;  %p254_p8 = scmp.lt.s32.totalorder %s1581_s18, 5 }
  0x20   : > { %p255_p9 = pnand %p1238_p7, %p254_p8 }
  0x21   : > { %s261_s4 = sand.u32 (!%p255_p9), 1, %s1557_s12   ;;  %s1240_s5 = sshll.u32 (!%p255_p9), %s1565_s14, 6 }
  0x22   : > { %258 = sbr.rel (%p255_p9) target bundleno = 770 (0x302), region = 51  ;;  %s1239_s6 = sshll.u32 (!%p255_p9), %s261_s4, 7 }
  0x23   : > { %p311_p10 = scmp.lt.s32.totalorder (!%p255_p9), %s1569_s15, 1  ;;  %p313_p11 = scmp.lt.s32.totalorder (!%p255_p9), %s1240_s5, 127 }
  0x24   : > { %s1696_s12 = scalar_lea.vmem (!%p255_p9), [#allocation3], %s1239_s6  ;;  %p1245_p12 = scmp.ne.s32.totalorder (!%p255_p9), %s1565_s14, 0 }
  0x27   : > { %s1890_s15 = smov (!%p311_p10, %s1569_s15), 1  ;;  %s1892_s5 = smov (!%p313_p11, %s1240_s5), 127 }
  0x28   : > { %s1241_s7 = sshll.u32 %s1890_s15, 7  ;;  %s1306_s8 = sshll.u32 %s1890_s15, 5 }
  0x29   : > { %s319_s9 = sadd.s32 %s1241_s7, %s1892_s5  ;;  %s1689_s21 = scalar_lea.vmem %s1876_s3, %s1306_s8 }
  0x2a   : > { %s1242_s22 = sshll.u32 %s319_s9, 2  ;;  %346 = sbr.rel (%p1245_p12) target bundleno = 52 (0x34), region = 59 }
  0x2b   : > { %s1694_s26 = scalar_lea.vmem %s1874_s1, %s1242_s22 }
  0x2f   : > { %vm347_vm0 = vcmask 130048   ;;  %v1583_v16 = vmov 0.0  }
  0x30   : > { %348 = vst.msk [vmem:[#allocation2] sm:$0xff] %vm347_vm0, %v1583_v16  ;;  %349 = vst.msk [vmem:[#allocation2 + $0x8] sm:$0xff] %vm347_vm0, %v1583_v16 }
  0x31   : > { %350 = vst.msk [vmem:[#allocation2 + $0x10] sm:$0xff] %vm347_vm0, %v1583_v16  ;;  %351 = vst.msk [vmem:[#allocation2 + $0x18] sm:$0xff] %vm347_vm0, %v1583_v16 }
  0x32   : > { %352 = vst.msk [vmem:[#allocation2 + $0x20] sm:$0xff] %vm347_vm0, %v1583_v16  ;;  %353 = vst.msk [vmem:[#allocation2 + $0x28] sm:$0xff] %vm347_vm0, %v1583_v16 }
  0x33   : > { %354 = vst.msk [vmem:[#allocation2 + $0x30] sm:$0xff] %vm347_vm0, %v1583_v16  ;;  %355 = vst.msk [vmem:[#allocation2 + $0x38] sm:$0xff] %vm347_vm0, %v1583_v16 }
  0x34 PF: > { %v1453_v17 = vld [vmem:[%s1694_s26 + $0x78] sm:$0xff]   ;;  %v1457_v21 = vld [vmem:[%s1694_s26 + $0x70] sm:$0xff]   ;;  %v1461_v25 = vld [vmem:[%s1694_s26 + $0x68] sm:$0xff]   ;;  %vm854_vm1 = vcmask 130048   ;;  %p1294_p13 = scmp.ne.s32.totalorder %s1565_s14, 1 }
  0x35   : > { %v1454_v18 = vld [vmem:[%s1694_s26 + $0xf8] sm:$0xff]   ;;  %1315 = vmatprep.subr.bf16.mxu0 %v1453_v17  ;;  %v1458_v22 = vld [vmem:[%s1694_s26 + $0xf0] sm:$0xff]   ;;  %v1462_v26 = vld [vmem:[%s1694_s26 + $0xe8] sm:$0xff]  }
  0x36   : > { %v1455_v19 = vld [vmem:[%s1694_s26 + $0x38] sm:$0xff]   ;;  %1355 = vmatprep.subr.bf16.mxu1 %v1454_v18  ;;  %v1459_v23 = vld [vmem:[%s1694_s26 + $0x30] sm:$0xff]   ;;  %v1463_v27 = vld [vmem:[%s1694_s26 + $0x28] sm:$0xff]  }
  0x37   : > { %v1456_v20 = vld [vmem:[%s1694_s26 + $0xb8] sm:$0xff]   ;;  %1316 = vmatpush3.bf16.msra.mxu0 %v1455_v19  ;;  %v1460_v24 = vld [vmem:[%s1694_s26 + $0xb0] sm:$0xff]   ;;  %v1464_v28 = vld [vmem:[%s1694_s26 + $0xa8] sm:$0xff]  }
  0x38   : > { %1356 = vmatpush3.bf16.msra.mxu1 %v1456_v20  ;;  %1317 = vmatprep.subr.bf16.mxu0 %v1457_v21  ;;  %v1465_v29 = vld [vmem:[%s1694_s26 + $0x60] sm:$0xff]   ;;  %v1469_v33 = vld [vmem:[%s1694_s26 + $0x58] sm:$0xff]   ;;  %v1473_v37 = vld [vmem:[%s1694_s26 + $0x50] sm:$0xff]  }
  0x39   : > { %1357 = vmatprep.subr.bf16.mxu1 %v1458_v22  ;;  %v1466_v30 = vld [vmem:[%s1694_s26 + $0xe0] sm:$0xff]   ;;  %v1470_v34 = vld [vmem:[%s1694_s26 + $0xd8] sm:$0xff]   ;;  %v1474_v38 = vld [vmem:[%s1694_s26 + $0xd0] sm:$0xff]  }
  0x3a   : > { %v1467_v31 = vld [vmem:[%s1694_s26 + $0x20] sm:$0xff]   ;;  %v1471_v35 = vld [vmem:[%s1694_s26 + $0x18] sm:$0xff]   ;;  %v1475_v39 = vld [vmem:[%s1694_s26 + $0x10] sm:$0xff]  }
  0x3b   : > { %1318 = vmatpush3.bf16.msra.mxu0 %v1459_v23  ;;  %v1468_v32 = vld [vmem:[%s1694_s26 + $0xa0] sm:$0xff]   ;;  %v1472_v36 = vld [vmem:[%s1694_s26 + $0x98] sm:$0xff]   ;;  %v1476_v40 = vld [vmem:[%s1694_s26 + $0x90] sm:$0xff]  }
  0x3c   : > { %1358 = vmatpush3.bf16.msra.mxu1 %v1460_v24  ;;  %1319 = vmatprep.subr.bf16.mxu0 %v1461_v25  ;;  %v1477_v41 = vld [vmem:[%s1694_s26 + $0x48] sm:$0xff]   ;;  %v1481_v45 = vld [vmem:[%s1694_s26 + $0x40] sm:$0xff]  }
  0x3d   : > { %1359 = vmatprep.subr.bf16.mxu1 %v1462_v26  ;;  %v1478_v42 = vld [vmem:[%s1694_s26 + $0xc8] sm:$0xff]   ;;  %v1482_v46 = vld [vmem:[%s1694_s26 + $0xc0] sm:$0xff]   ;;  %v358_v26 = vld [vmem:[#allocation2 + $0x10] sm:$0xff] }
  0x3e   : > { %v1479_v43 = vld [vmem:[%s1694_s26 + $0x8] sm:$0xff]   ;;  %v1483_v47 = vld [vmem:[%s1694_s26] sm:$0xff]  }
  0x3f   : > { %1320 = vmatpush3.bf16.msra.mxu0 %v1463_v27  ;;  %v1480_v44 = vld [vmem:[%s1694_s26 + $0x88] sm:$0xff]   ;;  %v1484_v48 = vld [vmem:[%s1694_s26 + $0x80] sm:$0xff]  }
  0x40   : > { %1360 = vmatpush3.bf16.msra.mxu1 %v1464_v28  ;;  %1321 = vmatprep.subr.bf16.mxu0 %v1465_v29  ;;  %v1485_v49 = vld [vmem:[%s1696_s12] ss:$16 sps:$4 sm:$0xff]   ;;  %v1487_v50 = vld [vmem:[%s1696_s12 + $0x4] ss:$16 sps:$4 sm:$0xff]   ;;  %v1488_v51 = vld [vmem:[%s1696_s12 + $0x8] ss:$16 sps:$4 sm:$0xff]  }
  0x41   : > { %1361 = vmatprep.subr.bf16.mxu1 %v1466_v30  ;;  %v1490_v52 = vld [vmem:[%s1696_s12 + $0xc] ss:$16 sps:$4 sm:$0xff]   ;;  %748 = vmatprep.mubr.bf16.mxu0 %v1487_v50  ;;  %v1491_v53 = vld [vmem:[%s1696_s12 + $0x24] ss:$16 sps:$4 sm:$0xff]   ;;  %v1495_v55 = vld [vmem:[%s1696_s12 + $0x20] ss:$16 sps:$4 sm:$0xff]  }
  0x42   : > { %813 = vmatprep.mubr.bf16.mxu1 %v1490_v52  ;;  %v1493_v54 = vld [vmem:[%s1696_s12 + $0x2c] ss:$16 sps:$4 sm:$0xff]   ;;  %v1496_v56 = vld [vmem:[%s1696_s12 + $0x28] ss:$16 sps:$4 sm:$0xff]   ;;  %v1497_v57 = vld [vmem:[%s1696_s12 + $0x44] ss:$16 sps:$4 sm:$0xff]  }
  0x43   : > { %1322 = vmatpush3.bf16.msra.mxu0 %v1467_v31  ;;  %v1499_v58 = vld [vmem:[%s1696_s12 + $0x4c] ss:$16 sps:$4 sm:$0xff]   ;;  %v1501_v59 = vld [vmem:[%s1696_s12 + $0x40] ss:$16 sps:$4 sm:$0xff]   ;;  %v1502_v60 = vld [vmem:[%s1696_s12 + $0x48] ss:$16 sps:$4 sm:$0xff]  }
  0x44   : > { %1362 = vmatpush3.bf16.msra.mxu1 %v1468_v32  ;;  %1323 = vmatprep.subr.bf16.mxu0 %v1469_v33  ;;  %v1503_v61 = vld [vmem:[%s1696_s12 + $0x64] ss:$16 sps:$4 sm:$0xff]   ;;  %v1505_v62 = vld [vmem:[%s1696_s12 + $0x6c] ss:$16 sps:$4 sm:$0xff]   ;;  %v1507_v63 = vld [vmem:[%s1696_s12 + $0x60] ss:$16 sps:$4 sm:$0xff]  }
  0x45   : > { %1363 = vmatprep.subr.bf16.mxu1 %v1470_v34  ;;  %v1508_v0 = vld [vmem:[%s1696_s12 + $0x68] ss:$16 sps:$4 sm:$0xff]   ;;  %v356_v8 = vld [vmem:[#allocation2] sm:$0xff] }
  0x46   : > { %v357_v17 = vld [vmem:[#allocation2 + $0x8] sm:$0xff] }
  0x47   : > { %1324 = vmatpush3.bf16.msra.mxu0 %v1471_v35  ;;  %v359_v35 = vld [vmem:[#allocation2 + $0x18] sm:$0xff] }
  0x48   : > { %1364 = vmatpush3.bf16.msra.mxu1 %v1472_v36  ;;  %1325 = vmatprep.subr.bf16.mxu0 %v1473_v37 }
  0x49   : > { %1365 = vmatprep.subr.bf16.mxu1 %v1474_v38 }
  0x4b   : > { %1326 = vmatpush3.bf16.msra.mxu0 %v1475_v39 }
  0x4c   : > { %1366 = vmatpush3.bf16.msra.mxu1 %v1476_v40  ;;  %1327 = vmatprep.subr.bf16.mxu0 %v1477_v41 }
  0x4d   : > { %1367 = vmatprep.subr.bf16.mxu1 %v1478_v42 }
  0x4f   : > { %1328 = vmatpush3.bf16.msra.mxu0 %v1479_v43 }
  0x50   : > { %1368 = vmatpush3.bf16.msra.mxu1 %v1480_v44  ;;  %1329 = vmatprep.subr.bf16.mxu0 %v1481_v45  ;;  %v360_v44 = vld [vmem:[#allocation2 + $0x20] sm:$0xff] }
  0x51   : > { %1369 = vmatprep.subr.bf16.mxu1 %v1482_v46 }
  0x53   : > { %1330 = vmatpush3.bf16.msra.mxu0 %v1483_v47 }
  0x54   : > { %1370 = vmatpush3.bf16.msra.mxu1 %v1484_v48 }
  0x56   : > { %749 = vmatmul.mubr.bf16.vlgmr.msra.gmra.mxu0 %v1485_v49 }
  0x57   : > { %814 = vmatmul.mubr.bf16.vlgmr.msra.gmra.mxu1 %v1488_v51  ;;  %756 = vmatprep.mubr.bf16.mxu0 %v1491_v53  ;;  %v361_v53 = vld [vmem:[#allocation2 + $0x28] sm:$0xff] }
  0x58   : > { %821 = vmatprep.mubr.bf16.mxu1 %v1493_v54 }
  0x5e   : > { %757 = vmatmul.mubr.bf16.gmra.mxu0 %v1495_v55 }
  0x5f   : > { %822 = vmatmul.mubr.bf16.gmra.mxu1 %v1496_v56  ;;  %764 = vmatprep.mubr.bf16.mxu0 %v1497_v57 }
  0x60   : > { %829 = vmatprep.mubr.bf16.mxu1 %v1499_v58 }
  0x66   : > { %765 = vmatmul.mubr.bf16.gmra.mxu0 %v1501_v59 }
  0x67   : > { %830 = vmatmul.mubr.bf16.gmra.mxu1 %v1502_v60  ;;  %772 = vmatprep.mubr.bf16.mxu0 %v1503_v61 }
  0x68   : > { %837 = vmatprep.mubr.bf16.mxu1 %v1505_v62  ;;  %v362_v62 = vld [vmem:[#allocation2 + $0x30] sm:$0xff] }
  0x6e   : > { %773 = vmatmul.mubr.bf16.gmra.mxu0 %v1507_v63 }
  0x6f   : > { %838 = vmatmul.mubr.bf16.gmra.mxu1 %v1508_v0 }
 0x116   : > { %v1331_v1 = vpop.f32.mrf.mxu0 }
 0x117   : > { %v1371_v2 = vpop.f32.mrf.mxu1 }
 0x118   : > { %v1332_v3 = vpop.f32.mrf.mxu0 }
 0x119   : > { %v1333_v4 = vadd.f32 %v1332_v3, %v1331_v1  ;;  %v1372_v5 = vpop.f32.mrf.mxu1 }
 0x11a   : > { %v1373_v6 = vadd.f32 %v1372_v5, %v1371_v2  ;;  %v1334_v7 = vpop.f32.mrf.mxu0 }
 0x11b   : > { %v1374_v9 = vpop.f32.mrf.mxu1 }
 0x11c   : > { %v816_v10 = vadd.f32 %v1373_v6, %v1333_v4  ;;  %v1335_v11 = vpop.f32.mrf.mxu0  ;;  %v363_v6 = vld [vmem:[#allocation2 + $0x38] sm:$0xff] }
 0x11d   : > { %v1336_v12 = vadd.f32 %v1335_v11, %v1334_v7  ;;  %v1375_v13 = vpop.f32.mrf.mxu1 }
 0x11e   : > { %v846_v14 = vadd.f32 %v816_v10, %v356_v8  ;;  %v1376_v15 = vadd.f32 %v1375_v13, %v1374_v9  ;;  %v1337_v16 = vpop.f32.mrf.mxu0 }
 0x11f   : > { %v1377_v18 = vpop.f32.mrf.mxu1 }
 0x120   : > { %855 = vst.msk [vmem:[#allocation2] sm:$0xff] %vm854_vm1, %v846_v14  ;;  %v819_v19 = vadd.f32 %v1376_v15, %v1336_v12  ;;  %v1338_v20 = vpop.f32.mrf.mxu0 }
 0x121   : > { %v1339_v21 = vadd.f32 %v1338_v20, %v1337_v16  ;;  %v1378_v22 = vpop.f32.mrf.mxu1 }
 0x122   : > { %v847_v23 = vadd.f32 %v819_v19, %v357_v17  ;;  %v1379_v24 = vadd.f32 %v1378_v22, %v1377_v18  ;;  %v1340_v25 = vpop.f32.mrf.mxu0 }
 0x123   : > { %v1380_v27 = vpop.f32.mrf.mxu1 }
 0x124   : > { %856 = vst.msk [vmem:[#allocation2 + $0x8] sm:$0xff] %vm854_vm1, %v847_v23  ;;  %v824_v28 = vadd.f32 %v1379_v24, %v1339_v21  ;;  %v1341_v29 = vpop.f32.mrf.mxu0 }
 0x125   : > { %v1342_v30 = vadd.f32 %v1341_v29, %v1340_v25  ;;  %v1381_v31 = vpop.f32.mrf.mxu1 }
 0x126   : > { %v848_v32 = vadd.f32 %v824_v28, %v358_v26  ;;  %v1382_v33 = vadd.f32 %v1381_v31, %v1380_v27  ;;  %v1343_v34 = vpop.f32.mrf.mxu0 }
 0x127   : > { %v1383_v36 = vpop.f32.mrf.mxu1 }
 0x128   : > { %857 = vst.msk [vmem:[#allocation2 + $0x10] sm:$0xff] %vm854_vm1, %v848_v32  ;;  %v827_v37 = vadd.f32 %v1382_v33, %v1342_v30  ;;  %v1344_v38 = vpop.f32.mrf.mxu0 }
 0x129   : > { %v1345_v39 = vadd.f32 %v1344_v38, %v1343_v34  ;;  %v1384_v40 = vpop.f32.mrf.mxu1 }
 0x12a   : > { %v849_v41 = vadd.f32 %v827_v37, %v359_v35  ;;  %v1385_v42 = vadd.f32 %v1384_v40, %v1383_v36  ;;  %v1346_v43 = vpop.f32.mrf.mxu0 }
 0x12b   : > { %v1386_v45 = vpop.f32.mrf.mxu1 }
 0x12c   : > { %858 = vst.msk [vmem:[#allocation2 + $0x18] sm:$0xff] %vm854_vm1, %v849_v41  ;;  %v832_v46 = vadd.f32 %v1385_v42, %v1345_v39  ;;  %v1347_v47 = vpop.f32.mrf.mxu0 }
 0x12d   : > { %v1348_v48 = vadd.f32 %v1347_v47, %v1346_v43  ;;  %v1387_v49 = vpop.f32.mrf.mxu1 }
 0x12e   : > { %v850_v50 = vadd.f32 %v832_v46, %v360_v44  ;;  %v1388_v51 = vadd.f32 %v1387_v49, %v1386_v45  ;;  %v1349_v52 = vpop.f32.mrf.mxu0 }
 0x12f   : > { %v1389_v54 = vpop.f32.mrf.mxu1 }
 0x130   : > { %859 = vst.msk [vmem:[#allocation2 + $0x20] sm:$0xff] %vm854_vm1, %v850_v50  ;;  %v835_v55 = vadd.f32 %v1388_v51, %v1348_v48  ;;  %v1350_v56 = vpop.f32.mrf.mxu0 }
 0x131   : > { %v1351_v57 = vadd.f32 %v1350_v56, %v1349_v52  ;;  %v1390_v58 = vpop.f32.mrf.mxu1 }
 0x132   : > { %v851_v59 = vadd.f32 %v835_v55, %v361_v53  ;;  %v1391_v60 = vadd.f32 %v1390_v58, %v1389_v54  ;;  %v1352_v61 = vpop.f32.mrf.mxu0 }
 0x133   : > { %v1392_v63 = vpop.f32.mrf.mxu1 }
 0x134   : > { %860 = vst.msk [vmem:[#allocation2 + $0x28] sm:$0xff] %vm854_vm1, %v851_v59  ;;  %v840_v0 = vadd.f32 %v1391_v60, %v1351_v57  ;;  %v1353_v1 = vpop.f32.mrf.mxu0 }
 0x135   : > { %v1354_v2 = vadd.f32 %v1353_v1, %v1352_v61  ;;  %v1393_v3 = vpop.f32.mrf.mxu1 }
 0x136   : > { %v852_v4 = vadd.f32 %v840_v0, %v362_v62  ;;  %v1394_v5 = vadd.f32 %v1393_v3, %v1392_v63 }
 0x138   : > { %861 = vst.msk [vmem:[#allocation2 + $0x30] sm:$0xff] %vm854_vm1, %v852_v4  ;;  %v843_v7 = vadd.f32 %v1394_v5, %v1354_v2  ;;  %866 = sbr.rel (%p1294_p13) target bundleno = 770 (0x302), region = 63 }
 0x13a   : > { %v853_v8 = vadd.f32 %v843_v7, %v363_v6 }
 0x13c   : > { %862 = vst.msk [vmem:[#allocation2 + $0x38] sm:$0xff] %vm854_vm1, %v853_v8 }
 0x13d   : > { %v877_v9 = vld [vmem:[%s1875_s2 + $0x10] sm:$0xff]  ;;  %v875_v10 = vld [vmem:[%s1875_s2] sm:$0xff]  ;;  %v1584_v11 = vmov 0   ;;  %v878_v12 = vld [vmem:[%s1875_s2 + $0x18] sm:$0xff]  ;;  %vm1076_vm2 = vcmask 125952  }
 0x13e   : > { %1510 = vset.pattern.permute.xlu1 %v1584_v11  ;;  %1509 = vset.pattern.permute.xlu0 %v1584_v11  ;;  %v876_v13 = vld [vmem:[%s1875_s2 + $0x8] sm:$0xff]  ;;  %v879_v15 = vld [vmem:[%s1875_s2 + $0x20] sm:$0xff]  ;;  %v882_v16 = vld [vmem:[%s1875_s2 + $0x38] sm:$0xff] }
 0x13f   : > { %895 = vperm.xlu1 %1510, %v877_v9   ;;  %885 = vperm.xlu0 %1509, %v875_v10   ;;  %v880_v14 = vld [vmem:[%s1875_s2 + $0x28] sm:$0xff]  ;;  %v881_v17 = vld [vmem:[%s1875_s2 + $0x30] sm:$0xff]  ;;  %v867_v19 = vld [vmem:[#allocation2] sm:$0xff] }
 0x140   : > { %v869_v18 = vld [vmem:[#allocation2 + $0x10] sm:$0xff]  ;;  %v868_v24 = vld [vmem:[#allocation2 + $0x8] sm:$0xff]  ;;  %v870_v27 = vld [vmem:[#allocation2 + $0x18] sm:$0xff] }
 0x141   : > { %v871_v31 = vld [vmem:[#allocation2 + $0x20] sm:$0xff]  ;;  %v872_v35 = vld [vmem:[#allocation2 + $0x28] sm:$0xff]  ;;  %v873_v38 = vld [vmem:[#allocation2 + $0x30] sm:$0xff] }
 0x143   : > { %900 = vperm.xlu1 %1510, %v878_v12   ;;  %890 = vperm.xlu0 %1509, %v876_v13   ;;  %v874_v43 = vld [vmem:[#allocation2 + $0x38] sm:$0xff] }
 0x147   : > { %910 = vperm.xlu1 %1510, %v880_v14   ;;  %905 = vperm.xlu0 %1509, %v879_v15  }
 0x14b   : > { %920 = vperm.xlu1 %1510, %v882_v16   ;;  %915 = vperm.xlu0 %1509, %v881_v17  }
 0x1ba   : > { %v896_v20 = vpop.permute.xlu1 %895  ;;  %v886_v21 = vpop.permute.xlu0 %885 }
 0x1bb   : > { %v925_v22 = vadd.f32 %v896_v20, %v869_v18  ;;  %v923_v23 = vadd.f32 %v886_v21, %v867_v19 }
 0x1bd   : > { %v931_v25 = vsel %vm854_vm1, %v923_v23, 0.0  ;;  %v937_v30 = vsel %vm854_vm1, %v925_v22, 0.0 }
 0x1be   : > { %v901_v26 = vpop.permute.xlu1 %900  ;;  %v891_v28 = vpop.permute.xlu0 %890  ;;  %932 = vadd.xlane.f32.xlu0 %v931_v25 }
 0x1bf   : > { %v924_v29 = vadd.f32 %v891_v28, %v868_v24  ;;  %v926_v32 = vadd.f32 %v901_v26, %v870_v27 }
 0x1c1   : > { %v934_v33 = vsel %vm854_vm1, %v924_v29, 0.0  ;;  %v940_v41 = vsel %vm854_vm1, %v926_v32, 0.0 }
 0x1c2   : > { %v911_v34 = vpop.permute.xlu1 %910  ;;  %v906_v36 = vpop.permute.xlu0 %905  ;;  %935 = vadd.xlane.f32.xlu1 %v934_v33  ;;  %938 = vadd.xlane.f32.xlu0 %v937_v30 }
 0x1c3   : > { %v927_v37 = vadd.f32 %v906_v36, %v871_v31  ;;  %v928_v39 = vadd.f32 %v911_v34, %v872_v35 }
 0x1c5   : > { %v943_v40 = vsel %vm854_vm1, %v927_v37, 0.0  ;;  %v946_v48 = vsel %vm854_vm1, %v928_v39, 0.0 }
 0x1c6   : > { %v921_v42 = vpop.permute.xlu1 %920  ;;  %v916_v44 = vpop.permute.xlu0 %915  ;;  %944 = vadd.xlane.f32.xlu1 %v943_v40  ;;  %941 = vadd.xlane.f32.xlu0 %v940_v41 }
 0x1c7   : > { %v929_v45 = vadd.f32 %v916_v44, %v873_v38  ;;  %v930_v46 = vadd.f32 %v921_v42, %v874_v43 }
 0x1c9   : > { %v949_v47 = vsel %vm854_vm1, %v929_v45, 0.0  ;;  %v952_v49 = vsel %vm854_vm1, %v930_v46, 0.0 }
 0x1ca   : > { %950 = vadd.xlane.f32.xlu1 %v949_v47  ;;  %947 = vadd.xlane.f32.xlu0 %v946_v48 }
 0x1ce   : > { %953 = vadd.xlane.f32.xlu0 %v952_v49 }
 0x247   : > { %v933_v50 = vpop.xlane.xlu0 %932 }
 0x248   : > { %v956_v51 = vmul.f32 0.0625, %v933_v50 }
 0x24a   : > { %v1788_v52 = vsub.f32 %v923_v23, %v956_v51 }
 0x24b   : > { %v936_v53 = vpop.xlane.xlu1 %935  ;;  %v939_v54 = vpop.xlane.xlu0 %938 }
 0x24c   : > { %v957_v55 = vmul.f32 0.0625, %v936_v53  ;;  %v958_v56 = vmul.f32 0.0625, %v939_v54  ;;  %v972_v57 = vmul.f32 %v1788_v52, %v1788_v52 }
 0x24e   : > { %v1792_v58 = vsub.f32 %v924_v29, %v957_v55  ;;  %v1794_v59 = vsub.f32 %v925_v22, %v958_v56  ;;  %v980_v60 = vsel %vm854_vm1, %v972_v57, 0.0 }
 0x24f   : > { %v945_v61 = vpop.xlane.xlu1 %944  ;;  %981 = vadd.xlane.f32.xlu1 %v980_v60  ;;  %v942_v62 = vpop.xlane.xlu0 %941 }
 0x250   : > { %v960_v63 = vmul.f32 0.0625, %v945_v61  ;;  %v959_v0 = vmul.f32 0.0625, %v942_v62  ;;  %v973_v1 = vmul.f32 %v1792_v58, %v1792_v58  ;;  %v974_v2 = vmul.f32 %v1794_v59, %v1794_v59 }
 0x252   : > { %v1801_v3 = vsub.f32 %v927_v37, %v960_v63  ;;  %v1803_v4 = vsub.f32 %v926_v32, %v959_v0  ;;  %v983_v5 = vsel %vm854_vm1, %v973_v1, 0.0  ;;  %v986_v6 = vsel %vm854_vm1, %v974_v2, 0.0 }
 0x253   : > { %v951_v7 = vpop.xlane.xlu1 %950  ;;  %984 = vadd.xlane.f32.xlu0 %v983_v5  ;;  %987 = vadd.xlane.f32.xlu1 %v986_v6  ;;  %v948_v8 = vpop.xlane.xlu0 %947 }
 0x254   : > { %v962_v9 = vmul.f32 0.0625, %v951_v7  ;;  %v961_v10 = vmul.f32 0.0625, %v948_v8  ;;  %v976_v11 = vmul.f32 %v1801_v3, %v1801_v3  ;;  %v975_v12 = vmul.f32 %v1803_v4, %v1803_v4 }
 0x256   : > { %v1811_v13 = vsub.f32 %v929_v45, %v962_v9  ;;  %v1813_v14 = vsub.f32 %v928_v39, %v961_v10  ;;  %v992_v15 = vsel %vm854_vm1, %v976_v11, 0.0  ;;  %v989_v16 = vsel %vm854_vm1, %v975_v12, 0.0 }
 0x257   : > { %993 = vadd.xlane.f32.xlu1 %v992_v15  ;;  %990 = vadd.xlane.f32.xlu0 %v989_v16  ;;  %v954_v17 = vpop.xlane.xlu0 %953 }
 0x258   : > { %v963_v18 = vmul.f32 0.0625, %v954_v17  ;;  %v978_v19 = vmul.f32 %v1811_v13, %v1811_v13  ;;  %v977_v20 = vmul.f32 %v1813_v14, %v1813_v14 }
 0x25a   : > { %v1821_v21 = vsub.f32 %v930_v46, %v963_v18  ;;  %v998_v22 = vsel %vm854_vm1, %v978_v19, 0.0  ;;  %v995_v23 = vsel %vm854_vm1, %v977_v20, 0.0 }
 0x25b   : > { %999 = vadd.xlane.f32.xlu1 %v998_v22  ;;  %996 = vadd.xlane.f32.xlu0 %v995_v23 }
 0x25c   : > { %v979_v24 = vmul.f32 %v1821_v21, %v1821_v21 }
 0x25e   : > { %v1001_v25 = vsel %vm854_vm1, %v979_v24, 0.0 }
 0x25f   : > { %1002 = vadd.xlane.f32.xlu0 %v1001_v25 }
 0x2d8   : > { %v982_v26 = vpop.xlane.xlu1 %981 }
 0x2d9   : > { %v1004_v27 = vmul.f32 0.0625, %v982_v26 }
 0x2db   : > { %v1012_v28 = vadd.f32 1e-05, %v1004_v27 }
 0x2dc   : > { %v988_v29 = vpop.xlane.xlu1 %987  ;;  %v985_v30 = vpop.xlane.xlu0 %984 }
 0x2dd   : > { %1511 = vrsqrt.f32 %v1012_v28  ;;  %v1006_v31 = vmul.f32 0.0625, %v988_v29  ;;  %v1005_v32 = vmul.f32 0.0625, %v985_v30 }
 0x2df   : > { %v1014_v33 = vadd.f32 1e-05, %v1006_v31  ;;  %v1013_v34 = vadd.f32 1e-05, %v1005_v32 }
 0x2e0   : > { %v994_v35 = vpop.xlane.xlu1 %993  ;;  %v991_v36 = vpop.xlane.xlu0 %990 }
 0x2e1   : > { %1513 = vrsqrt.f32 %v1014_v33  ;;  %v1008_v37 = vmul.f32 0.0625, %v994_v35  ;;  %v1007_v38 = vmul.f32 0.0625, %v991_v36 }
 0x2e2   : > { %1515 = vrsqrt.f32 %v1013_v34 }
 0x2e3   : > { %v1016_v39 = vadd.f32 1e-05, %v1008_v37  ;;  %v1015_v40 = vadd.f32 1e-05, %v1007_v38 }
 0x2e4   : > { %v1000_v41 = vpop.xlane.xlu1 %999  ;;  %v997_v42 = vpop.xlane.xlu0 %996 }
 0x2e5   : > { %1517 = vrsqrt.f32 %v1016_v39  ;;  %v1010_v43 = vmul.f32 0.0625, %v1000_v41  ;;  %v1009_v44 = vmul.f32 0.0625, %v997_v42 }
 0x2e6   : > { %1519 = vrsqrt.f32 %v1015_v40 }
 0x2e7   : > { %v1018_v45 = vadd.f32 1e-05, %v1010_v43  ;;  %v1017_v46 = vadd.f32 1e-05, %v1009_v44 }
 0x2e8   : > { %v1003_v47 = vpop.xlane.xlu0 %1002 }
 0x2e9   : > { %1521 = vrsqrt.f32 %v1018_v45  ;;  %v1011_v48 = vmul.f32 0.0625, %v1003_v47 }
 0x2ea   : > { %v1512_v49 = vpop.eup %1511  ;;  %1523 = vrsqrt.f32 %v1017_v46 }
 0x2eb   : > { %v1028_v50 = vmul.f32 %v1512_v49, %v1788_v52  ;;  %v1019_v51 = vadd.f32 1e-05, %v1011_v48 }
 0x2ed   : > { %v1036_v53 = vmax.f32 %v1028_v50, 0.0  ;;  %1525 = vrsqrt.f32 %v1019_v51 }
 0x2ee   : > { %v1514_v54 = vpop.eup %1513 }
 0x2ef   : > { %v1516_v55 = vpop.eup %1515  ;;  %v1307_v56 = vpack.c.bf16 %v1036_v53, %v1036_v53  ;;  %v1030_v57 = vmul.f32 %v1514_v54, %v1794_v59 }
 0x2f0   : > { %v1029_v60 = vmul.f32 %v1516_v55, %v1792_v58 }
 0x2f1   : > { %1077 = vst.msk [vmem:[%s1689_s21] sm:$0xf] %vm1076_vm2, %v1307_v56  ;;  %v1038_v61 = vmax.f32 %v1030_v57, 0.0 }
 0x2f2   : > { %v1518_v62 = vpop.eup %1517  ;;  %v1037_v63 = vmax.f32 %v1029_v60, 0.0 }
 0x2f3   : > { %v1520_v52 = vpop.eup %1519  ;;  %v1309_v0 = vpack.c.bf16 %v1038_v61, %v1038_v61  ;;  %v1032_v1 = vmul.f32 %v1518_v62, %v1801_v3 }
 0x2f4   : > { %v1308_v2 = vpack.c.bf16 %v1037_v63, %v1037_v63  ;;  %v1031_v5 = vmul.f32 %v1520_v52, %v1803_v4 }
 0x2f5   : > { %1079 = vst.msk [vmem:[%s1689_s21 + $0x8] sm:$0xf] %vm1076_vm2, %v1309_v0  ;;  %v1040_v6 = vmax.f32 %v1032_v1, 0.0 }
 0x2f6   : > { %v1522_v59 = vpop.eup %1521  ;;  %1078 = vst.msk [vmem:[%s1689_s21 + $0x4] sm:$0xf] %vm1076_vm2, %v1308_v2  ;;  %v1039_v58 = vmax.f32 %v1031_v5, 0.0 }
 0x2f7   : > { %v1524_v7 = vpop.eup %1523  ;;  %v1311_v8 = vpack.c.bf16 %v1040_v6, %v1040_v6  ;;  %v1034_v9 = vmul.f32 %v1522_v59, %v1811_v13 }
 0x2f8   : > { %v1310_v10 = vpack.c.bf16 %v1039_v58, %v1039_v58  ;;  %v1033_v3 = vmul.f32 %v1524_v7, %v1813_v14 }
 0x2f9   : > { %1081 = vst.msk [vmem:[%s1689_s21 + $0x10] sm:$0xf] %vm1076_vm2, %v1311_v8  ;;  %v1042_v4 = vmax.f32 %v1034_v9, 0.0 }
 0x2fa   : > { %v1526_v11 = vpop.eup %1525  ;;  %1080 = vst.msk [vmem:[%s1689_s21 + $0xc] sm:$0xf] %vm1076_vm2, %v1310_v10  ;;  %v1041_v12 = vmax.f32 %v1033_v3, 0.0 }
 0x2fb   : > { %v1313_v15 = vpack.c.bf16 %v1042_v4, %v1042_v4  ;;  %v1035_v16 = vmul.f32 %v1526_v11, %v1821_v21 }
 0x2fc   : > { %v1312_v17 = vpack.c.bf16 %v1041_v12, %v1041_v12 }
 0x2fd   : > { %1083 = vst.msk [vmem:[%s1689_s21 + $0x18] sm:$0xf] %vm1076_vm2, %v1313_v15  ;;  %v1043_v18 = vmax.f32 %v1035_v16, 0.0 }
 0x2fe   : > { %1082 = vst.msk [vmem:[%s1689_s21 + $0x14] sm:$0xf] %vm1076_vm2, %v1312_v17 }
 0x2ff   : > { %v1314_v13 = vpack.c.bf16 %v1043_v18, %v1043_v18 }
 0x301   : > { %1084 = vst.msk [vmem:[%s1689_s21 + $0x1c] sm:$0xf] %vm1076_vm2, %v1314_v13 }
 0x302 PF: > { %s13_s18 = sadd.s32 1, %s1581_s18   ;;  %s1877_s12 = smov %s1561_s13 }
 0x303   : > { %p10_p0 = scmp.ge.s32.totalorder %s13_s18, 6   ;;  %s1878_s13 = smov %s1654_s23 }
 0x304   : > { %s1879_s14 = smov %s1573_s16  ;;  %s1880_s15 = smov %s1577_s17 }
 0x305   : > { %s1881_s16 = smov %s1884_s19  ;;  %s1882_s17 = smov %s1888_s20 }
 0x306   :  { %12 = sbr.rel (!%p10_p0) target bundleno = 4 (0x4), region = 104 }

// kernel: pona_forward.47
= control target key start
LH: loop header
LB: loop body
LE: loop exit
PB: predicated region body
PF: predicated region fallthrough
CT: control target
= control target key end

     0   :  { %s1751_s15 = smov 0   ;;  %s1753_s16 = smov 0   ;;  %s2028_s0 = inlined_call_operand.vmem [shape: bf16[64,1024], index: 0, kind: input, shape index: {}]   ;;  %s2029_s1 = inlined_call_operand.vmem [shape: bf16[2,1024,16], index: 1, kind: input, shape index: {}]   ;;  %s2030_s2 = inlined_call_operand.vmem [shape: f32[64,1], index: 2, kind: input, shape index: {}]   ;;  %s2031_s3 = inlined_call_operand.vmem [shape: bf16[2,64,16], index: 3, kind: input, shape index: {}]   ;;  %s2032_s4 = inlined_call_operand.vmem [shape: bf16[2,64,16], index: 4, kind: output, shape index: {}]  }
   0x1   :  { %s1755_s17 = smov 0   ;;  %s1757_s18 = smov 0  }
   0x2   :  { %s1759_s19 = smov 0   ;;  %s1761_s20 = smov 0  }
   0x3   :  { %s1763_s21 = smov 0  }
   0x4 LB: > { %s29_s22 = sadd.s32 1, %s1714_s19  ;;  %s40_s23 = sadd.s32 1, %s1718_s20  ;;  %s1722_s21 = sphi %s1763_s21, %s14_s21   ;;  %s1718_s20 = sphi %s1761_s20, %s2038_s20   ;;  %s1714_s19 = sphi %s1759_s19, %s2037_s19   ;;  %s1710_s18 = sphi %s1757_s18, %s2036_s18   ;;  %s1706_s17 = sphi %s1755_s17, %s2035_s17   ;;  %s1702_s16 = sphi %s1753_s16, %s2034_s16   ;;  %s1698_s15 = sphi %s1751_s15, %s2033_s15  }
   0x5   : > { %p30_p0 = scmp.ge.s32.totalorder %s29_s22, 2  ;;  %s49_s24 = sadd.s32 1, %s1702_s16 }
   0x6   : > { %p56_p1 = scmp.ne.s32.totalorder %s1702_s16, %s1698_s15  ;;  %p57_p2 = scmp.eq.s32.totalorder %s1722_s21, 0 }
   0x7   : > { %s2040_s22 = smov (%p30_p0, %s29_s22), 0  ;;  %s2042_s23 = smov (!%p30_p0, %s40_s23), %s1718_s20 }
   0x8   : > { %s45_s25 = ssub.s32 %s1714_s19, %s2040_s22  ;;  %p58_p3 = por %p57_p2, %p56_p1 }
   0x9   : > { %p42_p4 = scmp.ge.s32.totalorder %s2042_s23, 2  ;;  %p47_p5 = scmp.eq.s32.totalorder %s45_s25, 0 }
   0xa   : > { %p1353_p6 = scmp.ge.s32.totalorder %s1722_s21, 4 }
   0xb   : > { %s2044_s23 = smov (%p42_p4, %s2042_s23), 0 }
   0xc   : > { %s1800_s26 = scalar_select %p47_p5, %s1702_s16, %s49_s24  }
   0xd   : > { %207 = sbr.rel (%p1353_p6) target bundleno = 30 (0x1e), region = 20 }
  0x12   : > { %210 = sbr.rel (!%p58_p3) target bundleno = 30 (0x1e), region = 24  ;;  %s212_s27 = sand.u32 (%p58_p3), 1, %s1702_s16  }
  0x13   : > { %s1426_s28 = sshll.u32 (%p58_p3), %s1714_s19, 4  ;;  %s1354_s29 = sshll.u32 (%p58_p3), %s212_s27, 7 }
  0x14   : > { %s1808_s6 = scalar_lea.vmem (%p58_p3), %s2028_s0, %s1426_s28  ;;  %s214_s7 = scalar_lea.vmem (%p58_p3), [#allocation3], %s1354_s29 }
  0x15   : > { %v233_v0 = vld [vmem:[%s1808_s6] sm:$0xff] (%p58_p3)  ;;  %v235_v1 = vld [vmem:[%s1808_s6 + $0x8] sm:$0xff] (%p58_p3) }
  0x16   : > { %v237_v2 = vld [vmem:[%s1808_s6 + $0x20] sm:$0xff] (%p58_p3)  ;;  %234 = vst [vmem:[%s214_s7] sm:$0xff] (%p58_p3), %v233_v0  ;;  %236 = vst [vmem:[%s214_s7 + $0x8] sm:$0xff] (%p58_p3), %v235_v1  ;;  %v239_v3 = vld [vmem:[%s1808_s6 + $0x28] sm:$0xff] (%p58_p3) }
  0x17   : > { %238 = vst [vmem:[%s214_s7 + $0x10] sm:$0xff] %v237_v2  ;;  %v241_v4 = vld [vmem:[%s1808_s6 + $0x40] sm:$0xff]  ;;  %v243_v5 = vld [vmem:[%s1808_s6 + $0x48] sm:$0xff]  ;;  %240 = vst [vmem:[%s214_s7 + $0x18] sm:$0xff] %v239_v3 }
  0x18   : > { %242 = vst [vmem:[%s214_s7 + $0x20] sm:$0xff] %v241_v4  ;;  %244 = vst [vmem:[%s214_s7 + $0x28] sm:$0xff] %v243_v5  ;;  %v245_v6 = vld [vmem:[%s1808_s6 + $0x60] sm:$0xff]  ;;  %v247_v7 = vld [vmem:[%s1808_s6 + $0x68] sm:$0xff] }
  0x19   : > { %v249_v8 = vld [vmem:[%s1808_s6 + $0x80] sm:$0xff]  ;;  %246 = vst [vmem:[%s214_s7 + $0x30] sm:$0xff] %v245_v6  ;;  %248 = vst [vmem:[%s214_s7 + $0x38] sm:$0xff] %v247_v7  ;;  %v251_v9 = vld [vmem:[%s1808_s6 + $0x88] sm:$0xff] }
  0x1a   : > { %250 = vst [vmem:[%s214_s7 + $0x40] sm:$0xff] %v249_v8  ;;  %v253_v10 = vld [vmem:[%s1808_s6 + $0xa0] sm:$0xff]  ;;  %v255_v11 = vld [vmem:[%s1808_s6 + $0xa8] sm:$0xff]  ;;  %252 = vst [vmem:[%s214_s7 + $0x48] sm:$0xff] %v251_v9 }
  0x1b   : > { %254 = vst [vmem:[%s214_s7 + $0x50] sm:$0xff] %v253_v10  ;;  %256 = vst [vmem:[%s214_s7 + $0x58] sm:$0xff] %v255_v11  ;;  %v257_v12 = vld [vmem:[%s1808_s6 + $0xc0] sm:$0xff]  ;;  %v259_v13 = vld [vmem:[%s1808_s6 + $0xc8] sm:$0xff] }
  0x1c   : > { %v261_v14 = vld [vmem:[%s1808_s6 + $0xe0] sm:$0xff]  ;;  %258 = vst [vmem:[%s214_s7 + $0x60] sm:$0xff] %v257_v12  ;;  %260 = vst [vmem:[%s214_s7 + $0x68] sm:$0xff] %v259_v13  ;;  %v263_v15 = vld [vmem:[%s1808_s6 + $0xe8] sm:$0xff] }
  0x1d   : > { %262 = vst [vmem:[%s214_s7 + $0x70] sm:$0xff] %v261_v14  ;;  %264 = vst [vmem:[%s214_s7 + $0x78] sm:$0xff] %v263_v15 }
  0x1e PF: > { %p1357_p7 = scmp.ge.s32.totalorder %s1722_s21, 1  ;;  %p301_p8 = scmp.lt.s32.totalorder %s1722_s21, 5 }
  0x20   : > { %p302_p9 = pnand %p1357_p7, %p301_p8 }
  0x21   : > { %s308_s8 = sand.u32 (!%p302_p9), 1, %s1698_s15   ;;  %s1359_s9 = sshll.u32 (!%p302_p9), %s1706_s17, 6 }
  0x22   : > { %305 = sbr.rel (%p302_p9) target bundleno = 773 (0x305), region = 55  ;;  %s1358_s10 = sshll.u32 (!%p302_p9), %s308_s8, 7 }
  0x23   : > { %p372_p10 = scmp.lt.s32.totalorder (!%p302_p9), %s1710_s18, 1  ;;  %p374_p11 = scmp.lt.s32.totalorder (!%p302_p9), %s1359_s9, 127 }
  0x24   : > { %s1847_s7 = scalar_lea.vmem (!%p302_p9), [#allocation3], %s1358_s10  ;;  %p1366_p12 = scmp.ne.s32.totalorder (!%p302_p9), %s1706_s17, 0 }
  0x27   : > { %s2046_s18 = smov (!%p372_p10, %s1710_s18), 1  ;;  %s2048_s9 = smov (!%p374_p11, %s1359_s9), 127 }
  0x28   : > { %s1360_s11 = sshll.u32 %s2046_s18, 7  ;;  %s1427_s12 = sshll.u32 %s2046_s18, 5 }
  0x29   : > { %s380_s13 = sadd.s32 %s1360_s11, %s2048_s9  ;;  %s1835_s25 = scalar_lea.vmem %s2031_s3, %s1427_s12 }
  0x2a   : > { %s1361_s27 = sshll.u32 %s380_s13, 2  ;;  %s1840_s30 = scalar_lea.vmem %s2032_s4, %s1427_s12 }
  0x2b   : > { %s1845_s6 = scalar_lea.vmem %s2029_s1, %s1361_s27  ;;  %420 = sbr.rel (%p1366_p12) target bundleno = 53 (0x35), region = 63 }
  0x30   : > { %vm421_vm0 = vcmask 130048   ;;  %v1724_v16 = vmov 0.0  }
  0x31   : > { %422 = vst.msk [vmem:[#allocation2] sm:$0xff] %vm421_vm0, %v1724_v16  ;;  %423 = vst.msk [vmem:[#allocation2 + $0x8] sm:$0xff] %vm421_vm0, %v1724_v16 }
  0x32   : > { %424 = vst.msk [vmem:[#allocation2 + $0x10] sm:$0xff] %vm421_vm0, %v1724_v16  ;;  %425 = vst.msk [vmem:[#allocation2 + $0x18] sm:$0xff] %vm421_vm0, %v1724_v16 }
  0x33   : > { %426 = vst.msk [vmem:[#allocation2 + $0x20] sm:$0xff] %vm421_vm0, %v1724_v16  ;;  %427 = vst.msk [vmem:[#allocation2 + $0x28] sm:$0xff] %vm421_vm0, %v1724_v16 }
  0x34   : > { %428 = vst.msk [vmem:[#allocation2 + $0x30] sm:$0xff] %vm421_vm0, %v1724_v16  ;;  %429 = vst.msk [vmem:[#allocation2 + $0x38] sm:$0xff] %vm421_vm0, %v1724_v16 }
  0x35 PF: > { %v1594_v17 = vld [vmem:[%s1845_s6 + $0x78] sm:$0xff]   ;;  %v1598_v21 = vld [vmem:[%s1845_s6 + $0x70] sm:$0xff]   ;;  %v1602_v25 = vld [vmem:[%s1845_s6 + $0x68] sm:$0xff]   ;;  %vm928_vm1 = vcmask 130048   ;;  %p1415_p13 = scmp.ne.s32.totalorder %s1706_s17, 1 }
  0x36   : > { %v1595_v18 = vld [vmem:[%s1845_s6 + $0xf8] sm:$0xff]   ;;  %1456 = vmatprep.subr.bf16.mxu0 %v1594_v17  ;;  %v1599_v22 = vld [vmem:[%s1845_s6 + $0xf0] sm:$0xff]   ;;  %v1603_v26 = vld [vmem:[%s1845_s6 + $0xe8] sm:$0xff]  }
  0x37   : > { %v1596_v19 = vld [vmem:[%s1845_s6 + $0x38] sm:$0xff]   ;;  %1496 = vmatprep.subr.bf16.mxu1 %v1595_v18  ;;  %v1600_v23 = vld [vmem:[%s1845_s6 + $0x30] sm:$0xff]   ;;  %v1604_v27 = vld [vmem:[%s1845_s6 + $0x28] sm:$0xff]  }
  0x38   : > { %v1597_v20 = vld [vmem:[%s1845_s6 + $0xb8] sm:$0xff]   ;;  %1457 = vmatpush3.bf16.msra.mxu0 %v1596_v19  ;;  %v1601_v24 = vld [vmem:[%s1845_s6 + $0xb0] sm:$0xff]   ;;  %v1605_v28 = vld [vmem:[%s1845_s6 + $0xa8] sm:$0xff]  }
  0x39   : > { %1497 = vmatpush3.bf16.msra.mxu1 %v1597_v20  ;;  %1458 = vmatprep.subr.bf16.mxu0 %v1598_v21  ;;  %v1606_v29 = vld [vmem:[%s1845_s6 + $0x60] sm:$0xff]   ;;  %v1610_v33 = vld [vmem:[%s1845_s6 + $0x58] sm:$0xff]   ;;  %v1614_v37 = vld [vmem:[%s1845_s6 + $0x50] sm:$0xff]  }
  0x3a   : > { %1498 = vmatprep.subr.bf16.mxu1 %v1599_v22  ;;  %v1607_v30 = vld [vmem:[%s1845_s6 + $0xe0] sm:$0xff]   ;;  %v1611_v34 = vld [vmem:[%s1845_s6 + $0xd8] sm:$0xff]   ;;  %v1615_v38 = vld [vmem:[%s1845_s6 + $0xd0] sm:$0xff]  }
  0x3b   : > { %v1608_v31 = vld [vmem:[%s1845_s6 + $0x20] sm:$0xff]   ;;  %v1612_v35 = vld [vmem:[%s1845_s6 + $0x18] sm:$0xff]   ;;  %v1616_v39 = vld [vmem:[%s1845_s6 + $0x10] sm:$0xff]  }
  0x3c   : > { %1459 = vmatpush3.bf16.msra.mxu0 %v1600_v23  ;;  %v1609_v32 = vld [vmem:[%s1845_s6 + $0xa0] sm:$0xff]   ;;  %v1613_v36 = vld [vmem:[%s1845_s6 + $0x98] sm:$0xff]   ;;  %v1617_v40 = vld [vmem:[%s1845_s6 + $0x90] sm:$0xff]  }
  0x3d   : > { %1499 = vmatpush3.bf16.msra.mxu1 %v1601_v24  ;;  %1460 = vmatprep.subr.bf16.mxu0 %v1602_v25  ;;  %v1618_v41 = vld [vmem:[%s1845_s6 + $0x48] sm:$0xff]   ;;  %v1622_v45 = vld [vmem:[%s1845_s6 + $0x40] sm:$0xff]  }
  0x3e   : > { %1500 = vmatprep.subr.bf16.mxu1 %v1603_v26  ;;  %v1619_v42 = vld [vmem:[%s1845_s6 + $0xc8] sm:$0xff]   ;;  %v1623_v46 = vld [vmem:[%s1845_s6 + $0xc0] sm:$0xff]   ;;  %v432_v26 = vld [vmem:[#allocation2 + $0x10] sm:$0xff] }
  0x3f   : > { %v1620_v43 = vld [vmem:[%s1845_s6 + $0x8] sm:$0xff]   ;;  %v1624_v47 = vld [vmem:[%s1845_s6] sm:$0xff]  }
  0x40   : > { %1461 = vmatpush3.bf16.msra.mxu0 %v1604_v27  ;;  %v1621_v44 = vld [vmem:[%s1845_s6 + $0x88] sm:$0xff]   ;;  %v1625_v48 = vld [vmem:[%s1845_s6 + $0x80] sm:$0xff]  }
  0x41   : > { %1501 = vmatpush3.bf16.msra.mxu1 %v1605_v28  ;;  %1462 = vmatprep.subr.bf16.mxu0 %v1606_v29  ;;  %v1626_v49 = vld [vmem:[%s1847_s7] ss:$16 sps:$4 sm:$0xff]   ;;  %v1628_v50 = vld [vmem:[%s1847_s7 + $0x4] ss:$16 sps:$4 sm:$0xff]   ;;  %v1629_v51 = vld [vmem:[%s1847_s7 + $0x8] ss:$16 sps:$4 sm:$0xff]  }
  0x42   : > { %1502 = vmatprep.subr.bf16.mxu1 %v1607_v30  ;;  %v1631_v52 = vld [vmem:[%s1847_s7 + $0xc] ss:$16 sps:$4 sm:$0xff]   ;;  %822 = vmatprep.mubr.bf16.mxu0 %v1628_v50  ;;  %v1632_v53 = vld [vmem:[%s1847_s7 + $0x24] ss:$16 sps:$4 sm:$0xff]   ;;  %v1636_v55 = vld [vmem:[%s1847_s7 + $0x20] ss:$16 sps:$4 sm:$0xff]  }
  0x43   : > { %887 = vmatprep.mubr.bf16.mxu1 %v1631_v52  ;;  %v1634_v54 = vld [vmem:[%s1847_s7 + $0x2c] ss:$16 sps:$4 sm:$0xff]   ;;  %v1637_v56 = vld [vmem:[%s1847_s7 + $0x28] ss:$16 sps:$4 sm:$0xff]   ;;  %v1638_v57 = vld [vmem:[%s1847_s7 + $0x44] ss:$16 sps:$4 sm:$0xff]  }
  0x44   : > { %1463 = vmatpush3.bf16.msra.mxu0 %v1608_v31  ;;  %v1640_v58 = vld [vmem:[%s1847_s7 + $0x4c] ss:$16 sps:$4 sm:$0xff]   ;;  %v1642_v59 = vld [vmem:[%s1847_s7 + $0x40] ss:$16 sps:$4 sm:$0xff]   ;;  %v1643_v60 = vld [vmem:[%s1847_s7 + $0x48] ss:$16 sps:$4 sm:$0xff]  }
  0x45   : > { %1503 = vmatpush3.bf16.msra.mxu1 %v1609_v32  ;;  %1464 = vmatprep.subr.bf16.mxu0 %v1610_v33  ;;  %v1644_v61 = vld [vmem:[%s1847_s7 + $0x64] ss:$16 sps:$4 sm:$0xff]   ;;  %v1646_v62 = vld [vmem:[%s1847_s7 + $0x6c] ss:$16 sps:$4 sm:$0xff]   ;;  %v1648_v63 = vld [vmem:[%s1847_s7 + $0x60] ss:$16 sps:$4 sm:$0xff]  }
  0x46   : > { %1504 = vmatprep.subr.bf16.mxu1 %v1611_v34  ;;  %v1649_v0 = vld [vmem:[%s1847_s7 + $0x68] ss:$16 sps:$4 sm:$0xff]   ;;  %v430_v8 = vld [vmem:[#allocation2] sm:$0xff] }
  0x47   : > { %v431_v17 = vld [vmem:[#allocation2 + $0x8] sm:$0xff] }
  0x48   : > { %1465 = vmatpush3.bf16.msra.mxu0 %v1612_v35  ;;  %v433_v35 = vld [vmem:[#allocation2 + $0x18] sm:$0xff] }
  0x49   : > { %1505 = vmatpush3.bf16.msra.mxu1 %v1613_v36  ;;  %1466 = vmatprep.subr.bf16.mxu0 %v1614_v37 }
  0x4a   : > { %1506 = vmatprep.subr.bf16.mxu1 %v1615_v38 }
  0x4c   : > { %1467 = vmatpush3.bf16.msra.mxu0 %v1616_v39 }
  0x4d   : > { %1507 = vmatpush3.bf16.msra.mxu1 %v1617_v40  ;;  %1468 = vmatprep.subr.bf16.mxu0 %v1618_v41 }
  0x4e   : > { %1508 = vmatprep.subr.bf16.mxu1 %v1619_v42 }
  0x50   : > { %1469 = vmatpush3.bf16.msra.mxu0 %v1620_v43 }
  0x51   : > { %1509 = vmatpush3.bf16.msra.mxu1 %v1621_v44  ;;  %1470 = vmatprep.subr.bf16.mxu0 %v1622_v45  ;;  %v434_v44 = vld [vmem:[#allocation2 + $0x20] sm:$0xff] }
  0x52   : > { %1510 = vmatprep.subr.bf16.mxu1 %v1623_v46 }
  0x54   : > { %1471 = vmatpush3.bf16.msra.mxu0 %v1624_v47 }
  0x55   : > { %1511 = vmatpush3.bf16.msra.mxu1 %v1625_v48 }
  0x57   : > { %823 = vmatmul.mubr.bf16.vlgmr.msra.gmra.mxu0 %v1626_v49 }
  0x58   : > { %888 = vmatmul.mubr.bf16.vlgmr.msra.gmra.mxu1 %v1629_v51  ;;  %830 = vmatprep.mubr.bf16.mxu0 %v1632_v53  ;;  %v435_v53 = vld [vmem:[#allocation2 + $0x28] sm:$0xff] }
  0x59   : > { %895 = vmatprep.mubr.bf16.mxu1 %v1634_v54 }
  0x5f   : > { %831 = vmatmul.mubr.bf16.gmra.mxu0 %v1636_v55 }
  0x60   : > { %896 = vmatmul.mubr.bf16.gmra.mxu1 %v1637_v56  ;;  %838 = vmatprep.mubr.bf16.mxu0 %v1638_v57 }
  0x61   : > { %903 = vmatprep.mubr.bf16.mxu1 %v1640_v58 }
  0x67   : > { %839 = vmatmul.mubr.bf16.gmra.mxu0 %v1642_v59 }
  0x68   : > { %904 = vmatmul.mubr.bf16.gmra.mxu1 %v1643_v60  ;;  %846 = vmatprep.mubr.bf16.mxu0 %v1644_v61 }
  0x69   : > { %911 = vmatprep.mubr.bf16.mxu1 %v1646_v62  ;;  %v436_v62 = vld [vmem:[#allocation2 + $0x30] sm:$0xff] }
  0x6f   : > { %847 = vmatmul.mubr.bf16.gmra.mxu0 %v1648_v63 }
  0x70   : > { %912 = vmatmul.mubr.bf16.gmra.mxu1 %v1649_v0 }
 0x117   : > { %v1472_v1 = vpop.f32.mrf.mxu0 }
 0x118   : > { %v1512_v2 = vpop.f32.mrf.mxu1 }
 0x119   : > { %v1473_v3 = vpop.f32.mrf.mxu0 }
 0x11a   : > { %v1474_v4 = vadd.f32 %v1473_v3, %v1472_v1  ;;  %v1513_v5 = vpop.f32.mrf.mxu1 }
 0x11b   : > { %v1514_v6 = vadd.f32 %v1513_v5, %v1512_v2  ;;  %v1475_v7 = vpop.f32.mrf.mxu0 }
 0x11c   : > { %v1515_v9 = vpop.f32.mrf.mxu1 }
 0x11d   : > { %v890_v10 = vadd.f32 %v1514_v6, %v1474_v4  ;;  %v1476_v11 = vpop.f32.mrf.mxu0  ;;  %v437_v6 = vld [vmem:[#allocation2 + $0x38] sm:$0xff] }
 0x11e   : > { %v1477_v12 = vadd.f32 %v1476_v11, %v1475_v7  ;;  %v1516_v13 = vpop.f32.mrf.mxu1 }
 0x11f   : > { %v920_v14 = vadd.f32 %v890_v10, %v430_v8  ;;  %v1517_v15 = vadd.f32 %v1516_v13, %v1515_v9  ;;  %v1478_v16 = vpop.f32.mrf.mxu0 }
 0x120   : > { %v1518_v18 = vpop.f32.mrf.mxu1 }
 0x121   : > { %929 = vst.msk [vmem:[#allocation2] sm:$0xff] %vm928_vm1, %v920_v14  ;;  %v893_v19 = vadd.f32 %v1517_v15, %v1477_v12  ;;  %v1479_v20 = vpop.f32.mrf.mxu0 }
 0x122   : > { %v1480_v21 = vadd.f32 %v1479_v20, %v1478_v16  ;;  %v1519_v22 = vpop.f32.mrf.mxu1 }
 0x123   : > { %v921_v23 = vadd.f32 %v893_v19, %v431_v17  ;;  %v1520_v24 = vadd.f32 %v1519_v22, %v1518_v18  ;;  %v1481_v25 = vpop.f32.mrf.mxu0 }
 0x124   : > { %v1521_v27 = vpop.f32.mrf.mxu1 }
 0x125   : > { %930 = vst.msk [vmem:[#allocation2 + $0x8] sm:$0xff] %vm928_vm1, %v921_v23  ;;  %v898_v28 = vadd.f32 %v1520_v24, %v1480_v21  ;;  %v1482_v29 = vpop.f32.mrf.mxu0 }
 0x126   : > { %v1483_v30 = vadd.f32 %v1482_v29, %v1481_v25  ;;  %v1522_v31 = vpop.f32.mrf.mxu1 }
 0x127   : > { %v922_v32 = vadd.f32 %v898_v28, %v432_v26  ;;  %v1523_v33 = vadd.f32 %v1522_v31, %v1521_v27  ;;  %v1484_v34 = vpop.f32.mrf.mxu0 }
 0x128   : > { %v1524_v36 = vpop.f32.mrf.mxu1 }
 0x129   : > { %931 = vst.msk [vmem:[#allocation2 + $0x10] sm:$0xff] %vm928_vm1, %v922_v32  ;;  %v901_v37 = vadd.f32 %v1523_v33, %v1483_v30  ;;  %v1485_v38 = vpop.f32.mrf.mxu0 }
 0x12a   : > { %v1486_v39 = vadd.f32 %v1485_v38, %v1484_v34  ;;  %v1525_v40 = vpop.f32.mrf.mxu1 }
 0x12b   : > { %v923_v41 = vadd.f32 %v901_v37, %v433_v35  ;;  %v1526_v42 = vadd.f32 %v1525_v40, %v1524_v36  ;;  %v1487_v43 = vpop.f32.mrf.mxu0 }
 0x12c   : > { %v1527_v45 = vpop.f32.mrf.mxu1 }
 0x12d   : > { %932 = vst.msk [vmem:[#allocation2 + $0x18] sm:$0xff] %vm928_vm1, %v923_v41  ;;  %v906_v46 = vadd.f32 %v1526_v42, %v1486_v39  ;;  %v1488_v47 = vpop.f32.mrf.mxu0 }
 0x12e   : > { %v1489_v48 = vadd.f32 %v1488_v47, %v1487_v43  ;;  %v1528_v49 = vpop.f32.mrf.mxu1 }
 0x12f   : > { %v924_v50 = vadd.f32 %v906_v46, %v434_v44  ;;  %v1529_v51 = vadd.f32 %v1528_v49, %v1527_v45  ;;  %v1490_v52 = vpop.f32.mrf.mxu0 }
 0x130   : > { %v1530_v54 = vpop.f32.mrf.mxu1 }
 0x131   : > { %933 = vst.msk [vmem:[#allocation2 + $0x20] sm:$0xff] %vm928_vm1, %v924_v50  ;;  %v909_v55 = vadd.f32 %v1529_v51, %v1489_v48  ;;  %v1491_v56 = vpop.f32.mrf.mxu0 }
 0x132   : > { %v1492_v57 = vadd.f32 %v1491_v56, %v1490_v52  ;;  %v1531_v58 = vpop.f32.mrf.mxu1 }
 0x133   : > { %v925_v59 = vadd.f32 %v909_v55, %v435_v53  ;;  %v1532_v60 = vadd.f32 %v1531_v58, %v1530_v54  ;;  %v1493_v61 = vpop.f32.mrf.mxu0 }
 0x134   : > { %v1533_v63 = vpop.f32.mrf.mxu1 }
 0x135   : > { %934 = vst.msk [vmem:[#allocation2 + $0x28] sm:$0xff] %vm928_vm1, %v925_v59  ;;  %v914_v0 = vadd.f32 %v1532_v60, %v1492_v57  ;;  %v1494_v1 = vpop.f32.mrf.mxu0 }
 0x136   : > { %v1495_v2 = vadd.f32 %v1494_v1, %v1493_v61  ;;  %v1534_v3 = vpop.f32.mrf.mxu1 }
 0x137   : > { %v926_v4 = vadd.f32 %v914_v0, %v436_v62  ;;  %v1535_v5 = vadd.f32 %v1534_v3, %v1533_v63 }
 0x139   : > { %935 = vst.msk [vmem:[#allocation2 + $0x30] sm:$0xff] %vm928_vm1, %v926_v4  ;;  %v917_v7 = vadd.f32 %v1535_v5, %v1495_v2  ;;  %940 = sbr.rel (%p1415_p13) target bundleno = 773 (0x305), region = 67 }
 0x13b   : > { %v927_v8 = vadd.f32 %v917_v7, %v437_v6 }
 0x13d   : > { %936 = vst.msk [vmem:[#allocation2 + $0x38] sm:$0xff] %vm928_vm1, %v927_v8 }
 0x13e   : > { %v951_v9 = vld [vmem:[%s2030_s2 + $0x10] sm:$0xff]  ;;  %v949_v10 = vld [vmem:[%s2030_s2] sm:$0xff]  ;;  %v1725_v11 = vmov 0   ;;  %v952_v12 = vld [vmem:[%s2030_s2 + $0x18] sm:$0xff]  ;;  %vm1174_vm2 = vcmask 125952  }
 0x13f   : > { %1651 = vset.pattern.permute.xlu1 %v1725_v11  ;;  %1650 = vset.pattern.permute.xlu0 %v1725_v11  ;;  %v950_v13 = vld [vmem:[%s2030_s2 + $0x8] sm:$0xff]  ;;  %v953_v15 = vld [vmem:[%s2030_s2 + $0x20] sm:$0xff]  ;;  %v956_v16 = vld [vmem:[%s2030_s2 + $0x38] sm:$0xff] }
 0x140   : > { %969 = vperm.xlu1 %1651, %v951_v9   ;;  %959 = vperm.xlu0 %1650, %v949_v10   ;;  %v954_v14 = vld [vmem:[%s2030_s2 + $0x28] sm:$0xff]  ;;  %v955_v17 = vld [vmem:[%s2030_s2 + $0x30] sm:$0xff]  ;;  %v941_v19 = vld [vmem:[#allocation2] sm:$0xff] }
 0x141   : > { %v943_v18 = vld [vmem:[#allocation2 + $0x10] sm:$0xff]  ;;  %v942_v24 = vld [vmem:[#allocation2 + $0x8] sm:$0xff]  ;;  %v944_v27 = vld [vmem:[#allocation2 + $0x18] sm:$0xff] }
 0x142   : > { %v945_v31 = vld [vmem:[#allocation2 + $0x20] sm:$0xff]  ;;  %v946_v35 = vld [vmem:[#allocation2 + $0x28] sm:$0xff]  ;;  %v947_v38 = vld [vmem:[#allocation2 + $0x30] sm:$0xff] }
 0x144   : > { %974 = vperm.xlu1 %1651, %v952_v12   ;;  %964 = vperm.xlu0 %1650, %v950_v13   ;;  %v948_v43 = vld [vmem:[#allocation2 + $0x38] sm:$0xff] }
 0x148   : > { %984 = vperm.xlu1 %1651, %v954_v14   ;;  %979 = vperm.xlu0 %1650, %v953_v15  }
 0x14c   : > { %994 = vperm.xlu1 %1651, %v956_v16   ;;  %989 = vperm.xlu0 %1650, %v955_v17  }
 0x1bb   : > { %v970_v20 = vpop.permute.xlu1 %969  ;;  %v960_v21 = vpop.permute.xlu0 %959 }
 0x1bc   : > { %v999_v22 = vadd.f32 %v970_v20, %v943_v18  ;;  %v997_v23 = vadd.f32 %v960_v21, %v941_v19 }
 0x1be   : > { %v1005_v25 = vsel %vm928_vm1, %v997_v23, 0.0  ;;  %v1011_v30 = vsel %vm928_vm1, %v999_v22, 0.0 }
 0x1bf   : > { %v975_v26 = vpop.permute.xlu1 %974  ;;  %v965_v28 = vpop.permute.xlu0 %964  ;;  %1006 = vadd.xlane.f32.xlu0 %v1005_v25 }
 0x1c0   : > { %v998_v29 = vadd.f32 %v965_v28, %v942_v24  ;;  %v1000_v32 = vadd.f32 %v975_v26, %v944_v27 }
 0x1c2   : > { %v1008_v33 = vsel %vm928_vm1, %v998_v29, 0.0  ;;  %v1014_v41 = vsel %vm928_vm1, %v1000_v32, 0.0 }
 0x1c3   : > { %v985_v34 = vpop.permute.xlu1 %984  ;;  %v980_v36 = vpop.permute.xlu0 %979  ;;  %1009 = vadd.xlane.f32.xlu1 %v1008_v33  ;;  %1012 = vadd.xlane.f32.xlu0 %v1011_v30 }
 0x1c4   : > { %v1001_v37 = vadd.f32 %v980_v36, %v945_v31  ;;  %v1002_v39 = vadd.f32 %v985_v34, %v946_v35 }
 0x1c6   : > { %v1017_v40 = vsel %vm928_vm1, %v1001_v37, 0.0  ;;  %v1020_v48 = vsel %vm928_vm1, %v1002_v39, 0.0 }
 0x1c7   : > { %v995_v42 = vpop.permute.xlu1 %994  ;;  %v990_v44 = vpop.permute.xlu0 %989  ;;  %1018 = vadd.xlane.f32.xlu1 %v1017_v40  ;;  %1015 = vadd.xlane.f32.xlu0 %v1014_v41 }
 0x1c8   : > { %v1003_v45 = vadd.f32 %v990_v44, %v947_v38  ;;  %v1004_v46 = vadd.f32 %v995_v42, %v948_v43 }
 0x1ca   : > { %v1023_v47 = vsel %vm928_vm1, %v1003_v45, 0.0  ;;  %v1026_v49 = vsel %vm928_vm1, %v1004_v46, 0.0 }
 0x1cb   : > { %1024 = vadd.xlane.f32.xlu1 %v1023_v47  ;;  %1021 = vadd.xlane.f32.xlu0 %v1020_v48  ;;  %v1438_v47 = vld [vmem:[%s1835_s25] sm:$0xff]  }
 0x1cf   : > { %1027 = vadd.xlane.f32.xlu0 %v1026_v49 }
 0x248   : > { %v1007_v50 = vpop.xlane.xlu0 %1006 }
 0x249   : > { %v1030_v51 = vmul.f32 0.0625, %v1007_v50 }
 0x24b   : > { %v1939_v52 = vsub.f32 %v997_v23, %v1030_v51  ;;  %v1439_v51 = vunpack.c.l.bf16 %v1438_v47 }
 0x24c   : > { %v1010_v53 = vpop.xlane.xlu1 %1009  ;;  %v1013_v54 = vpop.xlane.xlu0 %1012 }
 0x24d   : > { %v1031_v55 = vmul.f32 0.0625, %v1010_v53  ;;  %v1032_v56 = vmul.f32 0.0625, %v1013_v54  ;;  %v1046_v57 = vmul.f32 %v1939_v52, %v1939_v52 }
 0x24f   : > { %v1943_v58 = vsub.f32 %v998_v29, %v1031_v55  ;;  %v1945_v59 = vsub.f32 %v999_v22, %v1032_v56  ;;  %v1054_v60 = vsel %vm928_vm1, %v1046_v57, 0.0  ;;  %v1453_v55 = vld [vmem:[%s1835_s25 + $0x8] sm:$0xff]  }
 0x250   : > { %v1019_v61 = vpop.xlane.xlu1 %1018  ;;  %1055 = vadd.xlane.f32.xlu1 %v1054_v60  ;;  %v1016_v62 = vpop.xlane.xlu0 %1015 }
 0x251   : > { %v1034_v63 = vmul.f32 0.0625, %v1019_v61  ;;  %v1033_v0 = vmul.f32 0.0625, %v1016_v62  ;;  %v1047_v1 = vmul.f32 %v1943_v58, %v1943_v58  ;;  %v1048_v2 = vmul.f32 %v1945_v59, %v1945_v59 }
 0x252   : > { %v1443_v62 = vunpack.c.l.bf16 %v1453_v55 }
 0x253   : > { %v1952_v3 = vsub.f32 %v1001_v37, %v1034_v63  ;;  %v1954_v4 = vsub.f32 %v1000_v32, %v1033_v0  ;;  %v1057_v5 = vsel %vm928_vm1, %v1047_v1, 0.0  ;;  %v1060_v6 = vsel %vm928_vm1, %v1048_v2, 0.0  ;;  %v1454_v2 = vld [vmem:[%s1835_s25 + $0x10] sm:$0xff]  }
 0x254   : > { %v1025_v7 = vpop.xlane.xlu1 %1024  ;;  %1058 = vadd.xlane.f32.xlu0 %v1057_v5  ;;  %1061 = vadd.xlane.f32.xlu1 %v1060_v6  ;;  %v1022_v8 = vpop.xlane.xlu0 %1021  ;;  %v1440_v0 = vunpack.c.h.bf16 %v1438_v47 }
 0x255   : > { %v1036_v9 = vmul.f32 0.0625, %v1025_v7  ;;  %v1035_v10 = vmul.f32 0.0625, %v1022_v8  ;;  %v1050_v11 = vmul.f32 %v1952_v3, %v1952_v3  ;;  %v1049_v12 = vmul.f32 %v1954_v4, %v1954_v4 }
 0x257   : > { %v1962_v13 = vsub.f32 %v1003_v45, %v1036_v9  ;;  %v1964_v14 = vsub.f32 %v1002_v39, %v1035_v10  ;;  %v1066_v15 = vsel %vm928_vm1, %v1050_v11, 0.0  ;;  %v1063_v16 = vsel %vm928_vm1, %v1049_v12, 0.0 }
 0x258   : > { %1067 = vadd.xlane.f32.xlu1 %v1066_v15  ;;  %1064 = vadd.xlane.f32.xlu0 %v1063_v16  ;;  %v1028_v17 = vpop.xlane.xlu0 %1027  ;;  %v1447_v10 = vunpack.c.l.bf16 %v1454_v2  ;;  %v1444_v12 = vunpack.c.h.bf16 %v1453_v55  ;;  %v1455_v16 = vld [vmem:[%s1835_s25 + $0x18] sm:$0xff]  }
 0x259   : > { %v1037_v18 = vmul.f32 0.0625, %v1028_v17  ;;  %v1052_v19 = vmul.f32 %v1962_v13, %v1962_v13  ;;  %v1051_v20 = vmul.f32 %v1964_v14, %v1964_v14 }
 0x25b   : > { %v1972_v21 = vsub.f32 %v1004_v46, %v1037_v18  ;;  %v1072_v22 = vsel %vm928_vm1, %v1052_v19, 0.0  ;;  %v1069_v23 = vsel %vm928_vm1, %v1051_v20, 0.0 }
 0x25c   : > { %1073 = vadd.xlane.f32.xlu1 %v1072_v22  ;;  %1070 = vadd.xlane.f32.xlu0 %v1069_v23 }
 0x25d   : > { %v1053_v24 = vmul.f32 %v1972_v21, %v1972_v21 }
 0x25f   : > { %v1075_v25 = vsel %vm928_vm1, %v1053_v24, 0.0  ;;  %v1451_v24 = vunpack.c.l.bf16 %v1455_v16 }
 0x260   : > { %1076 = vadd.xlane.f32.xlu0 %v1075_v25 }
 0x2d9   : > { %v1056_v26 = vpop.xlane.xlu1 %1055 }
 0x2da   : > { %v1078_v27 = vmul.f32 0.0625, %v1056_v26  ;;  %v1448_v26 = vunpack.c.h.bf16 %v1454_v2 }
 0x2dc   : > { %v1086_v28 = vadd.f32 1e-05, %v1078_v27 }
 0x2dd   : > { %v1062_v29 = vpop.xlane.xlu1 %1061  ;;  %v1059_v30 = vpop.xlane.xlu0 %1058 }
 0x2de   : > { %1652 = vrsqrt.f32 %v1086_v28  ;;  %v1080_v31 = vmul.f32 0.0625, %v1062_v29  ;;  %v1079_v32 = vmul.f32 0.0625, %v1059_v30 }
 0x2e0   : > { %v1088_v33 = vadd.f32 1e-05, %v1080_v31  ;;  %v1087_v34 = vadd.f32 1e-05, %v1079_v32 }
 0x2e1   : > { %v1068_v35 = vpop.xlane.xlu1 %1067  ;;  %v1065_v36 = vpop.xlane.xlu0 %1064 }
 0x2e2   : > { %1654 = vrsqrt.f32 %v1088_v33  ;;  %v1082_v37 = vmul.f32 0.0625, %v1068_v35  ;;  %v1081_v38 = vmul.f32 0.0625, %v1065_v36  ;;  %v1452_v33 = vunpack.c.h.bf16 %v1455_v16 }
 0x2e3   : > { %1656 = vrsqrt.f32 %v1087_v34 }
 0x2e4   : > { %v1090_v39 = vadd.f32 1e-05, %v1082_v37  ;;  %v1089_v40 = vadd.f32 1e-05, %v1081_v38 }
 0x2e5   : > { %v1074_v41 = vpop.xlane.xlu1 %1073  ;;  %v1071_v42 = vpop.xlane.xlu0 %1070 }
 0x2e6   : > { %1658 = vrsqrt.f32 %v1090_v39  ;;  %v1084_v43 = vmul.f32 0.0625, %v1074_v41  ;;  %v1083_v44 = vmul.f32 0.0625, %v1071_v42 }
 0x2e7   : > { %1660 = vrsqrt.f32 %v1089_v40 }
 0x2e8   : > { %v1092_v45 = vadd.f32 1e-05, %v1084_v43  ;;  %v1091_v46 = vadd.f32 1e-05, %v1083_v44 }
 0x2e9   : > { %v1077_v48 = vpop.xlane.xlu0 %1076 }
 0x2ea   : > { %1662 = vrsqrt.f32 %v1092_v45  ;;  %v1085_v49 = vmul.f32 0.0625, %v1077_v48 }
 0x2eb   : > { %v1653_v50 = vpop.eup %1652  ;;  %1664 = vrsqrt.f32 %v1091_v46 }
 0x2ec   : > { %v1102_v53 = vmul.f32 %v1653_v50, %v1939_v52  ;;  %v1093_v54 = vadd.f32 1e-05, %v1085_v49 }
 0x2ee   : > { %v1110_v56 = vmax.f32 %v1102_v53, 0.0  ;;  %1666 = vrsqrt.f32 %v1093_v54 }
 0x2ef   : > { %v1655_v57 = vpop.eup %1654 }
 0x2f0   : > { %v1657_v60 = vpop.eup %1656  ;;  %v1134_v61 = vadd.f32 %v1439_v51, %v1110_v56  ;;  %v1104_v63 = vmul.f32 %v1655_v57, %v1945_v59 }
 0x2f1   : > { %v1103_v1 = vmul.f32 %v1657_v60, %v1943_v58 }
 0x2f2   : > { %v1429_v5 = vpack.c.bf16 %v1134_v61, %v1134_v61  ;;  %v1112_v6 = vmax.f32 %v1104_v63, 0.0 }
 0x2f3   : > { %v1659_v52 = vpop.eup %1658  ;;  %v1111_v7 = vmax.f32 %v1103_v1, 0.0 }
 0x2f4   : > { %v1661_v8 = vpop.eup %1660  ;;  %1175 = vst.msk [vmem:[%s1840_s30] sm:$0xf] %vm1174_vm2, %v1429_v5  ;;  %v1136_v9 = vadd.f32 %v1443_v62, %v1112_v6  ;;  %v1106_v11 = vmul.f32 %v1659_v52, %v1952_v3 }
 0x2f5   : > { %v1135_v59 = vadd.f32 %v1440_v0, %v1111_v7  ;;  %v1105_v15 = vmul.f32 %v1661_v8, %v1954_v4 }
 0x2f6   : > { %v1431_v58 = vpack.c.bf16 %v1136_v9, %v1136_v9  ;;  %v1114_v17 = vmax.f32 %v1106_v11, 0.0 }
 0x2f7   : > { %v1663_v18 = vpop.eup %1662  ;;  %v1430_v19 = vpack.c.bf16 %v1135_v59, %v1135_v59  ;;  %v1113_v20 = vmax.f32 %v1105_v15, 0.0 }
 0x2f8   : > { %v1665_v22 = vpop.eup %1664  ;;  %1177 = vst.msk [vmem:[%s1840_s30 + $0x8] sm:$0xf] %vm1174_vm2, %v1431_v58  ;;  %v1138_v23 = vadd.f32 %v1447_v10, %v1114_v17  ;;  %v1108_v25 = vmul.f32 %v1663_v18, %v1962_v13 }
 0x2f9   : > { %1176 = vst.msk [vmem:[%s1840_s30 + $0x4] sm:$0xf] %vm1174_vm2, %v1430_v19  ;;  %v1137_v3 = vadd.f32 %v1444_v12, %v1113_v20  ;;  %v1107_v4 = vmul.f32 %v1665_v22, %v1964_v14 }
 0x2fa   : > { %v1433_v27 = vpack.c.bf16 %v1138_v23, %v1138_v23  ;;  %v1116_v28 = vmax.f32 %v1108_v25, 0.0 }
 0x2fb   : > { %v1667_v29 = vpop.eup %1666  ;;  %v1432_v30 = vpack.c.bf16 %v1137_v3, %v1137_v3  ;;  %v1115_v31 = vmax.f32 %v1107_v4, 0.0 }
 0x2fc   : > { %1179 = vst.msk [vmem:[%s1840_s30 + $0x10] sm:$0xf] %vm1174_vm2, %v1433_v27  ;;  %v1140_v32 = vadd.f32 %v1451_v24, %v1116_v28  ;;  %v1109_v13 = vmul.f32 %v1667_v29, %v1972_v21 }
 0x2fd   : > { %1178 = vst.msk [vmem:[%s1840_s30 + $0xc] sm:$0xf] %vm1174_vm2, %v1432_v30  ;;  %v1139_v34 = vadd.f32 %v1448_v26, %v1115_v31 }
 0x2fe   : > { %v1435_v35 = vpack.c.bf16 %v1140_v32, %v1140_v32  ;;  %v1117_v36 = vmax.f32 %v1109_v13, 0.0 }
 0x2ff   : > { %v1434_v37 = vpack.c.bf16 %v1139_v34, %v1139_v34 }
 0x300   : > { %1181 = vst.msk [vmem:[%s1840_s30 + $0x18] sm:$0xf] %vm1174_vm2, %v1435_v35  ;;  %v1141_v14 = vadd.f32 %v1452_v33, %v1117_v36 }
 0x301   : > { %1180 = vst.msk [vmem:[%s1840_s30 + $0x14] sm:$0xf] %vm1174_vm2, %v1434_v37 }
 0x302   : > { %v1436_v38 = vpack.c.bf16 %v1141_v14, %v1141_v14 }
 0x304   : > { %1182 = vst.msk [vmem:[%s1840_s30 + $0x1c] sm:$0xf] %vm1174_vm2, %v1436_v38 }
 0x305 PF: > { %s14_s21 = sadd.s32 1, %s1722_s21   ;;  %s2033_s15 = smov %s1702_s16 }
 0x306   : > { %p11_p0 = scmp.ge.s32.totalorder %s14_s21, 6   ;;  %s2034_s16 = smov %s1800_s26 }
 0x307   : > { %s2035_s17 = smov %s1714_s19  ;;  %s2036_s18 = smov %s1718_s20 }
 0x308   : > { %s2037_s19 = smov %s2040_s22  ;;  %s2038_s20 = smov %s2044_s23 }
 0x309   :  { %13 = sbr.rel (!%p11_p0) target bundleno = 4 (0x4), region = 111 }

// kernel: pona_forward.53
= control target key start
LH: loop header
LB: loop body
LE: loop exit
PB: predicated region body
PF: predicated region fallthrough
CT: control target
= control target key end

     0   :  { %s1325_s12 = smov 0   ;;  %s1327_s13 = smov 0   ;;  %s1495_s0 = inlined_call_operand.vmem [shape: bf16[32,1024], index: 0, kind: input, shape index: {}]   ;;  %s1496_s1 = inlined_call_operand.vmem [shape: bf16[2,1024,16], index: 1, kind: input, shape index: {}]   ;;  %s1497_s2 = inlined_call_operand.vmem [shape: f32[32,1], index: 2, kind: input, shape index: {}]   ;;  %s1498_s3 = inlined_call_operand.vmem [shape: bf16[2,32,16], index: 3, kind: output, shape index: {}]  }
   0x1   :  { %s1329_s14 = smov 0   ;;  %s1331_s15 = smov 0  }
   0x2   :  { %s1333_s16 = smov 0   ;;  %s1335_s17 = smov 0  }
   0x3   :  { %s1337_s18 = smov 0  }
   0x4 LB: > { %s28_s19 = sadd.s32 1, %s1293_s16  ;;  %s39_s20 = sadd.s32 1, %s1297_s17  ;;  %s1301_s18 = sphi %s1337_s18, %s13_s18   ;;  %s1297_s17 = sphi %s1335_s17, %s1504_s17   ;;  %s1293_s16 = sphi %s1333_s16, %s1503_s16   ;;  %s1289_s15 = sphi %s1331_s15, %s1502_s15   ;;  %s1285_s14 = sphi %s1329_s14, %s1501_s14   ;;  %s1281_s13 = sphi %s1327_s13, %s1500_s13   ;;  %s1277_s12 = sphi %s1325_s12, %s1499_s12  }
   0x5   : > { %p29_p0 = scmp.ge.s32.totalorder %s28_s19, 2  ;;  %s48_s21 = sadd.s32 1, %s1281_s13 }
   0x6   : > { %p55_p1 = scmp.ne.s32.totalorder %s1281_s13, %s1277_s12  ;;  %p56_p2 = scmp.eq.s32.totalorder %s1301_s18, 0 }
   0x7   : > { %s1506_s19 = smov (%p29_p0, %s28_s19), 0  ;;  %s1508_s20 = smov (!%p29_p0, %s39_s20), %s1297_s17 }
   0x8   : > { %s44_s22 = ssub.s32 %s1293_s16, %s1506_s19  ;;  %p57_p3 = por %p56_p2, %p55_p1 }
   0x9   : > { %p41_p4 = scmp.ge.s32.totalorder %s1508_s20, 2  ;;  %p46_p5 = scmp.eq.s32.totalorder %s44_s22, 0 }
   0xa   : > { %p1014_p6 = scmp.ge.s32.totalorder %s1301_s18, 4 }
   0xb   : > { %s1510_s20 = smov (%p41_p4, %s1508_s20), 0 }
   0xc   : > { %s1374_s23 = scalar_select %p46_p5, %s1281_s13, %s48_s21  }
   0xd   : > { %176 = sbr.rel (%p1014_p6) target bundleno = 26 (0x1a), region = 20 }
  0x12   : > { %179 = sbr.rel (!%p57_p3) target bundleno = 26 (0x1a), region = 24  ;;  %s181_s24 = sand.u32 (%p57_p3), 1, %s1281_s13  }
  0x13   : > { %s1073_s25 = sshll.u32 (%p57_p3), %s1293_s16, 4  ;;  %s1015_s26 = sshll.u32 (%p57_p3), %s181_s24, 6 }
  0x14   : > { %s189_s29 = scalar_lea.vmem (%p57_p3), %s1495_s0, %s1073_s25  ;;  %s183_s30 = scalar_lea.vmem (%p57_p3), [#allocation3], %s1015_s26 }
  0x15   : > { %v202_v0 = vld [vmem:[%s189_s29] sm:$0xff] (%p57_p3)  ;;  %v204_v1 = vld [vmem:[%s189_s29 + $0x8] sm:$0xff] (%p57_p3) }
  0x16   : > { %v206_v2 = vld [vmem:[%s189_s29 + $0x20] sm:$0xff] (%p57_p3)  ;;  %203 = vst [vmem:[%s183_s30] sm:$0xff] (%p57_p3), %v202_v0  ;;  %205 = vst [vmem:[%s183_s30 + $0x8] sm:$0xff] (%p57_p3), %v204_v1  ;;  %v208_v3 = vld [vmem:[%s189_s29 + $0x28] sm:$0xff] (%p57_p3) }
  0x17   : > { %207 = vst [vmem:[%s183_s30 + $0x10] sm:$0xff] %v206_v2  ;;  %v210_v4 = vld [vmem:[%s189_s29 + $0x40] sm:$0xff]  ;;  %v212_v5 = vld [vmem:[%s189_s29 + $0x48] sm:$0xff]  ;;  %209 = vst [vmem:[%s183_s30 + $0x18] sm:$0xff] %v208_v3 }
  0x18   : > { %211 = vst [vmem:[%s183_s30 + $0x20] sm:$0xff] %v210_v4  ;;  %213 = vst [vmem:[%s183_s30 + $0x28] sm:$0xff] %v212_v5  ;;  %v214_v6 = vld [vmem:[%s189_s29 + $0x60] sm:$0xff]  ;;  %v216_v7 = vld [vmem:[%s189_s29 + $0x68] sm:$0xff] }
  0x19   : > { %215 = vst [vmem:[%s183_s30 + $0x30] sm:$0xff] %v214_v6  ;;  %217 = vst [vmem:[%s183_s30 + $0x38] sm:$0xff] %v216_v7 }
  0x1a PF: > { %p1018_p7 = scmp.ge.s32.totalorder %s1301_s18, 1  ;;  %p238_p8 = scmp.lt.s32.totalorder %s1301_s18, 5 }
  0x1c   : > { %p239_p9 = pnand %p1018_p7, %p238_p8 }
  0x1d   : > { %s245_s4 = sand.u32 (!%p239_p9), 1, %s1277_s12   ;;  %s1020_s5 = sshll.u32 (!%p239_p9), %s1285_s14, 6 }
  0x1e   : > { %242 = sbr.rel (%p239_p9) target bundleno = 740 (0x2e4), region = 51  ;;  %s1019_s6 = sshll.u32 (!%p239_p9), %s245_s4, 6 }
  0x1f   : > { %p295_p10 = scmp.lt.s32.totalorder (!%p239_p9), %s1289_s15, 1  ;;  %p297_p11 = scmp.lt.s32.totalorder (!%p239_p9), %s1020_s5, 127 }
  0x20   : > { %s1398_s12 = scalar_lea.vmem (!%p239_p9), [#allocation3], %s1019_s6  ;;  %p1025_p12 = scmp.ne.s32.totalorder (!%p239_p9), %s1285_s14, 0 }
  0x23   : > { %s1512_s15 = smov (!%p295_p10, %s1289_s15), 1  ;;  %s1514_s5 = smov (!%p297_p11, %s1020_s5), 127 }
  0x24   : > { %s1021_s7 = sshll.u32 %s1512_s15, 7  ;;  %s1074_s8 = sshll.u32 %s1512_s15, 4 }
  0x25   : > { %s303_s9 = sadd.s32 %s1021_s7, %s1514_s5  ;;  %s1391_s21 = scalar_lea.vmem %s1498_s3, %s1074_s8 }
  0x26   : > { %s1022_s22 = sshll.u32 %s303_s9, 2  ;;  %330 = sbr.rel (%p1025_p12) target bundleno = 46 (0x2e), region = 59 }
  0x27   : > { %s1396_s26 = scalar_lea.vmem %s1496_s1, %s1022_s22 }
  0x2b   : > { %vm331_vm0 = vcmask 130048   ;;  %v1303_v8 = vmov 0.0  }
  0x2c   : > { %332 = vst.msk [vmem:[#allocation2] sm:$0xff] %vm331_vm0, %v1303_v8  ;;  %333 = vst.msk [vmem:[#allocation2 + $0x8] sm:$0xff] %vm331_vm0, %v1303_v8 }
  0x2d   : > { %334 = vst.msk [vmem:[#allocation2 + $0x10] sm:$0xff] %vm331_vm0, %v1303_v8  ;;  %335 = vst.msk [vmem:[#allocation2 + $0x18] sm:$0xff] %vm331_vm0, %v1303_v8 }
  0x2e PF: > { %v1193_v9 = vld [vmem:[%s1396_s26 + $0x78] sm:$0xff]   ;;  %v1197_v13 = vld [vmem:[%s1396_s26 + $0x70] sm:$0xff]   ;;  %v1201_v17 = vld [vmem:[%s1396_s26 + $0x68] sm:$0xff]   ;;  %vm746_vm1 = vcmask 130048   ;;  %p1066_p13 = scmp.ne.s32.totalorder %s1285_s14, 1 }
  0x2f   : > { %v1194_v10 = vld [vmem:[%s1396_s26 + $0xf8] sm:$0xff]   ;;  %1079 = vmatprep.subr.bf16.mxu0 %v1193_v9  ;;  %v1198_v14 = vld [vmem:[%s1396_s26 + $0xf0] sm:$0xff]   ;;  %v1202_v18 = vld [vmem:[%s1396_s26 + $0xe8] sm:$0xff]  }
  0x30   : > { %v1195_v11 = vld [vmem:[%s1396_s26 + $0x38] sm:$0xff]   ;;  %1107 = vmatprep.subr.bf16.mxu1 %v1194_v10  ;;  %v1199_v15 = vld [vmem:[%s1396_s26 + $0x30] sm:$0xff]   ;;  %v1203_v19 = vld [vmem:[%s1396_s26 + $0x28] sm:$0xff]  }
  0x31   : > { %v1196_v12 = vld [vmem:[%s1396_s26 + $0xb8] sm:$0xff]   ;;  %1080 = vmatpush3.bf16.msra.mxu0 %v1195_v11  ;;  %v1200_v16 = vld [vmem:[%s1396_s26 + $0xb0] sm:$0xff]   ;;  %v1204_v20 = vld [vmem:[%s1396_s26 + $0xa8] sm:$0xff]  }
  0x32   : > { %1108 = vmatpush3.bf16.msra.mxu1 %v1196_v12  ;;  %1081 = vmatprep.subr.bf16.mxu0 %v1197_v13  ;;  %v1205_v21 = vld [vmem:[%s1396_s26 + $0x60] sm:$0xff]   ;;  %v1209_v25 = vld [vmem:[%s1396_s26 + $0x58] sm:$0xff]   ;;  %v1213_v29 = vld [vmem:[%s1396_s26 + $0x50] sm:$0xff]  }
  0x33   : > { %1109 = vmatprep.subr.bf16.mxu1 %v1198_v14  ;;  %v1206_v22 = vld [vmem:[%s1396_s26 + $0xe0] sm:$0xff]   ;;  %v1210_v26 = vld [vmem:[%s1396_s26 + $0xd8] sm:$0xff]   ;;  %v1214_v30 = vld [vmem:[%s1396_s26 + $0xd0] sm:$0xff]  }
  0x34   : > { %v1207_v23 = vld [vmem:[%s1396_s26 + $0x20] sm:$0xff]   ;;  %v1211_v27 = vld [vmem:[%s1396_s26 + $0x18] sm:$0xff]   ;;  %v1215_v31 = vld [vmem:[%s1396_s26 + $0x10] sm:$0xff]  }
  0x35   : > { %1082 = vmatpush3.bf16.msra.mxu0 %v1199_v15  ;;  %v1208_v24 = vld [vmem:[%s1396_s26 + $0xa0] sm:$0xff]   ;;  %v1212_v28 = vld [vmem:[%s1396_s26 + $0x98] sm:$0xff]   ;;  %v1216_v32 = vld [vmem:[%s1396_s26 + $0x90] sm:$0xff]  }
  0x36   : > { %1110 = vmatpush3.bf16.msra.mxu1 %v1200_v16  ;;  %1083 = vmatprep.subr.bf16.mxu0 %v1201_v17  ;;  %v1217_v33 = vld [vmem:[%s1396_s26 + $0x48] sm:$0xff]   ;;  %v1221_v37 = vld [vmem:[%s1396_s26 + $0x40] sm:$0xff]   ;;  %v338_v10 = vld [vmem:[#allocation2 + $0x10] sm:$0xff] }
  0x37   : > { %1111 = vmatprep.subr.bf16.mxu1 %v1202_v18  ;;  %v1218_v34 = vld [vmem:[%s1396_s26 + $0xc8] sm:$0xff]   ;;  %v1222_v38 = vld [vmem:[%s1396_s26 + $0xc0] sm:$0xff]   ;;  %v339_v18 = vld [vmem:[#allocation2 + $0x18] sm:$0xff] }
  0x38   : > { %v1219_v35 = vld [vmem:[%s1396_s26 + $0x8] sm:$0xff]   ;;  %v1223_v39 = vld [vmem:[%s1396_s26] sm:$0xff]  }
  0x39   : > { %1084 = vmatpush3.bf16.msra.mxu0 %v1203_v19  ;;  %v1220_v36 = vld [vmem:[%s1396_s26 + $0x88] sm:$0xff]   ;;  %v1224_v40 = vld [vmem:[%s1396_s26 + $0x80] sm:$0xff]  }
  0x3a   : > { %1112 = vmatpush3.bf16.msra.mxu1 %v1204_v20  ;;  %1085 = vmatprep.subr.bf16.mxu0 %v1205_v21  ;;  %v1225_v41 = vld [vmem:[%s1398_s12] ss:$16 sps:$4 sm:$0xff]   ;;  %v1227_v42 = vld [vmem:[%s1398_s12 + $0x4] ss:$16 sps:$4 sm:$0xff]   ;;  %v1228_v43 = vld [vmem:[%s1398_s12 + $0x8] ss:$16 sps:$4 sm:$0xff]  }
  0x3b   : > { %1113 = vmatprep.subr.bf16.mxu1 %v1206_v22  ;;  %v1230_v44 = vld [vmem:[%s1398_s12 + $0xc] ss:$16 sps:$4 sm:$0xff]   ;;  %676 = vmatprep.mubr.bf16.mxu0 %v1227_v42  ;;  %v1231_v45 = vld [vmem:[%s1398_s12 + $0x24] ss:$16 sps:$4 sm:$0xff]   ;;  %v1235_v47 = vld [vmem:[%s1398_s12 + $0x20] ss:$16 sps:$4 sm:$0xff]  }
  0x3c   : > { %725 = vmatprep.mubr.bf16.mxu1 %v1230_v44  ;;  %v1233_v46 = vld [vmem:[%s1398_s12 + $0x2c] ss:$16 sps:$4 sm:$0xff]   ;;  %v1236_v48 = vld [vmem:[%s1398_s12 + $0x28] ss:$16 sps:$4 sm:$0xff]   ;;  %v336_v56 = vld [vmem:[#allocation2] sm:$0xff] }
  0x3d   : > { %1086 = vmatpush3.bf16.msra.mxu0 %v1207_v23  ;;  %v337_v1 = vld [vmem:[#allocation2 + $0x8] sm:$0xff] }
  0x3e   : > { %1114 = vmatpush3.bf16.msra.mxu1 %v1208_v24  ;;  %1087 = vmatprep.subr.bf16.mxu0 %v1209_v25 }
  0x3f   : > { %1115 = vmatprep.subr.bf16.mxu1 %v1210_v26 }
  0x41   : > { %1088 = vmatpush3.bf16.msra.mxu0 %v1211_v27 }
  0x42   : > { %1116 = vmatpush3.bf16.msra.mxu1 %v1212_v28  ;;  %1089 = vmatprep.subr.bf16.mxu0 %v1213_v29 }
  0x43   : > { %1117 = vmatprep.subr.bf16.mxu1 %v1214_v30 }
  0x45   : > { %1090 = vmatpush3.bf16.msra.mxu0 %v1215_v31 }
  0x46   : > { %1118 = vmatpush3.bf16.msra.mxu1 %v1216_v32  ;;  %1091 = vmatprep.subr.bf16.mxu0 %v1217_v33 }
  0x47   : > { %1119 = vmatprep.subr.bf16.mxu1 %v1218_v34 }
  0x49   : > { %1092 = vmatpush3.bf16.msra.mxu0 %v1219_v35 }
  0x4a   : > { %1120 = vmatpush3.bf16.msra.mxu1 %v1220_v36  ;;  %1093 = vmatprep.subr.bf16.mxu0 %v1221_v37 }
  0x4b   : > { %1121 = vmatprep.subr.bf16.mxu1 %v1222_v38 }
  0x4d   : > { %1094 = vmatpush3.bf16.msra.mxu0 %v1223_v39 }
  0x4e   : > { %1122 = vmatpush3.bf16.msra.mxu1 %v1224_v40 }
  0x50   : > { %677 = vmatmul.mubr.bf16.vlgmr.msra.gmra.mxu0 %v1225_v41 }
  0x51   : > { %726 = vmatmul.mubr.bf16.vlgmr.msra.gmra.mxu1 %v1228_v43  ;;  %684 = vmatprep.mubr.bf16.mxu0 %v1231_v45 }
  0x52   : > { %733 = vmatprep.mubr.bf16.mxu1 %v1233_v46 }
  0x58   : > { %685 = vmatmul.mubr.bf16.gmra.mxu0 %v1235_v47 }
  0x59   : > { %734 = vmatmul.mubr.bf16.gmra.mxu1 %v1236_v48 }
 0x110   : > { %v1095_v49 = vpop.f32.mrf.mxu0 }
 0x111   : > { %v1123_v50 = vpop.f32.mrf.mxu1 }
 0x112   : > { %v1096_v51 = vpop.f32.mrf.mxu0 }
 0x113   : > { %v1097_v52 = vadd.f32 %v1096_v51, %v1095_v49  ;;  %v1124_v53 = vpop.f32.mrf.mxu1 }
 0x114   : > { %v1125_v54 = vadd.f32 %v1124_v53, %v1123_v50  ;;  %v1098_v55 = vpop.f32.mrf.mxu0 }
 0x115   : > { %v1126_v57 = vpop.f32.mrf.mxu1 }
 0x116   : > { %v728_v58 = vadd.f32 %v1125_v54, %v1097_v52  ;;  %v1099_v59 = vpop.f32.mrf.mxu0 }
 0x117   : > { %v1100_v60 = vadd.f32 %v1099_v59, %v1098_v55  ;;  %v1127_v61 = vpop.f32.mrf.mxu1 }
 0x118   : > { %v742_v62 = vadd.f32 %v728_v58, %v336_v56  ;;  %v1128_v63 = vadd.f32 %v1127_v61, %v1126_v57  ;;  %v1101_v0 = vpop.f32.mrf.mxu0 }
 0x119   : > { %v1129_v2 = vpop.f32.mrf.mxu1 }
 0x11a   : > { %747 = vst.msk [vmem:[#allocation2] sm:$0xff] %vm746_vm1, %v742_v62  ;;  %v731_v3 = vadd.f32 %v1128_v63, %v1100_v60  ;;  %v1102_v4 = vpop.f32.mrf.mxu0 }
 0x11b   : > { %v1103_v5 = vadd.f32 %v1102_v4, %v1101_v0  ;;  %v1130_v6 = vpop.f32.mrf.mxu1 }
 0x11c   : > { %v743_v7 = vadd.f32 %v731_v3, %v337_v1  ;;  %v1131_v8 = vadd.f32 %v1130_v6, %v1129_v2  ;;  %v1104_v9 = vpop.f32.mrf.mxu0 }
 0x11d   : > { %v1132_v11 = vpop.f32.mrf.mxu1 }
 0x11e   : > { %748 = vst.msk [vmem:[#allocation2 + $0x8] sm:$0xff] %vm746_vm1, %v743_v7  ;;  %v736_v12 = vadd.f32 %v1131_v8, %v1103_v5  ;;  %v1105_v13 = vpop.f32.mrf.mxu0 }
 0x11f   : > { %v1106_v14 = vadd.f32 %v1105_v13, %v1104_v9  ;;  %v1133_v15 = vpop.f32.mrf.mxu1 }
 0x120   : > { %v744_v16 = vadd.f32 %v736_v12, %v338_v10  ;;  %v1134_v17 = vadd.f32 %v1133_v15, %v1132_v11 }
 0x122   : > { %749 = vst.msk [vmem:[#allocation2 + $0x10] sm:$0xff] %vm746_vm1, %v744_v16  ;;  %v739_v19 = vadd.f32 %v1134_v17, %v1106_v14  ;;  %754 = sbr.rel (%p1066_p13) target bundleno = 740 (0x2e4), region = 63 }
 0x124   : > { %v745_v20 = vadd.f32 %v739_v19, %v339_v18 }
 0x126   : > { %750 = vst.msk [vmem:[#allocation2 + $0x18] sm:$0xff] %vm746_vm1, %v745_v20 }
 0x127   : > { %v761_v21 = vld [vmem:[%s1497_s2 + $0x10] sm:$0xff]  ;;  %v759_v22 = vld [vmem:[%s1497_s2] sm:$0xff]  ;;  %v1304_v23 = vmov 0   ;;  %v762_v24 = vld [vmem:[%s1497_s2 + $0x18] sm:$0xff]  ;;  %vm860_vm2 = vcmask 125952  }
 0x128   : > { %1238 = vset.pattern.permute.xlu1 %v1304_v23  ;;  %1237 = vset.pattern.permute.xlu0 %v1304_v23  ;;  %v760_v25 = vld [vmem:[%s1497_s2 + $0x8] sm:$0xff]  ;;  %v755_v27 = vld [vmem:[#allocation2] sm:$0xff] }
 0x129   : > { %775 = vperm.xlu1 %1238, %v761_v21   ;;  %765 = vperm.xlu0 %1237, %v759_v22   ;;  %v757_v26 = vld [vmem:[#allocation2 + $0x10] sm:$0xff]  ;;  %v756_v32 = vld [vmem:[#allocation2 + $0x8] sm:$0xff] }
 0x12d   : > { %780 = vperm.xlu1 %1238, %v762_v24   ;;  %770 = vperm.xlu0 %1237, %v760_v25   ;;  %v758_v35 = vld [vmem:[#allocation2 + $0x18] sm:$0xff] }
 0x1a4   : > { %v776_v28 = vpop.permute.xlu1 %775  ;;  %v766_v29 = vpop.permute.xlu0 %765 }
 0x1a5   : > { %v785_v30 = vadd.f32 %v776_v28, %v757_v26  ;;  %v783_v31 = vadd.f32 %v766_v29, %v755_v27 }
 0x1a7   : > { %v787_v33 = vsel %vm746_vm1, %v783_v31, 0.0  ;;  %v793_v38 = vsel %vm746_vm1, %v785_v30, 0.0 }
 0x1a8   : > { %v781_v34 = vpop.permute.xlu1 %780  ;;  %v771_v36 = vpop.permute.xlu0 %770  ;;  %788 = vadd.xlane.f32.xlu0 %v787_v33 }
 0x1a9   : > { %v784_v37 = vadd.f32 %v771_v36, %v756_v32  ;;  %v786_v39 = vadd.f32 %v781_v34, %v758_v35 }
 0x1ab   : > { %v790_v40 = vsel %vm746_vm1, %v784_v37, 0.0  ;;  %v796_v41 = vsel %vm746_vm1, %v786_v39, 0.0 }
 0x1ac   : > { %791 = vadd.xlane.f32.xlu1 %v790_v40  ;;  %794 = vadd.xlane.f32.xlu0 %v793_v38 }
 0x1b0   : > { %797 = vadd.xlane.f32.xlu0 %v796_v41 }
 0x231   : > { %v789_v42 = vpop.xlane.xlu0 %788 }
 0x232   : > { %v800_v43 = vmul.f32 0.0625, %v789_v42 }
 0x234   : > { %v804_v44 = vsub.f32 %v783_v31, %v800_v43 }
 0x235   : > { %v792_v45 = vpop.xlane.xlu1 %791  ;;  %v795_v46 = vpop.xlane.xlu0 %794 }
 0x236   : > { %v801_v47 = vmul.f32 0.0625, %v792_v45  ;;  %v802_v48 = vmul.f32 0.0625, %v795_v46  ;;  %v808_v49 = vmul.f32 %v804_v44, %v804_v44 }
 0x238   : > { %v805_v50 = vsub.f32 %v784_v37, %v801_v47  ;;  %v806_v51 = vsub.f32 %v785_v30, %v802_v48  ;;  %v812_v52 = vsel %vm746_vm1, %v808_v49, 0.0 }
 0x239   : > { %813 = vadd.xlane.f32.xlu1 %v812_v52  ;;  %v798_v53 = vpop.xlane.xlu0 %797 }
 0x23a   : > { %v803_v54 = vmul.f32 0.0625, %v798_v53  ;;  %v809_v55 = vmul.f32 %v805_v50, %v805_v50  ;;  %v810_v56 = vmul.f32 %v806_v51, %v806_v51 }
 0x23c   : > { %v807_v57 = vsub.f32 %v786_v39, %v803_v54  ;;  %v815_v58 = vsel %vm746_vm1, %v809_v55, 0.0  ;;  %v818_v59 = vsel %vm746_vm1, %v810_v56, 0.0 }
 0x23d   : > { %816 = vadd.xlane.f32.xlu0 %v815_v58  ;;  %819 = vadd.xlane.f32.xlu1 %v818_v59 }
 0x23e   : > { %v811_v60 = vmul.f32 %v807_v57, %v807_v57 }
 0x240   : > { %v821_v61 = vsel %vm746_vm1, %v811_v60, 0.0 }
 0x241   : > { %822 = vadd.xlane.f32.xlu0 %v821_v61 }
 0x2c2   : > { %v814_v62 = vpop.xlane.xlu1 %813 }
 0x2c3   : > { %v824_v63 = vmul.f32 0.0625, %v814_v62 }
 0x2c5   : > { %v828_v0 = vadd.f32 1e-05, %v824_v63 }
 0x2c6   : > { %v820_v1 = vpop.xlane.xlu1 %819  ;;  %v817_v2 = vpop.xlane.xlu0 %816 }
 0x2c7   : > { %1239 = vrsqrt.f32 %v828_v0  ;;  %v826_v3 = vmul.f32 0.0625, %v820_v1  ;;  %v825_v4 = vmul.f32 0.0625, %v817_v2 }
 0x2c9   : > { %v830_v5 = vadd.f32 1e-05, %v826_v3  ;;  %v829_v6 = vadd.f32 1e-05, %v825_v4 }
 0x2ca   : > { %v823_v7 = vpop.xlane.xlu0 %822 }
 0x2cb   : > { %1241 = vrsqrt.f32 %v830_v5  ;;  %v827_v8 = vmul.f32 0.0625, %v823_v7 }
 0x2cc   : > { %1243 = vrsqrt.f32 %v829_v6 }
 0x2cd   : > { %v831_v9 = vadd.f32 1e-05, %v827_v8 }
 0x2cf   : > { %1245 = vrsqrt.f32 %v831_v9 }
 0x2d4   : > { %v1240_v10 = vpop.eup %1239 }
 0x2d5   : > { %v836_v11 = vmul.f32 %v1240_v10, %v804_v44 }
 0x2d7   : > { %v840_v12 = vmax.f32 %v836_v11, 0.0 }
 0x2d8   : > { %v1242_v13 = vpop.eup %1241 }
 0x2d9   : > { %v1244_v14 = vpop.eup %1243  ;;  %v1075_v15 = vpack.c.bf16 %v840_v12, %v840_v12  ;;  %v838_v16 = vmul.f32 %v1242_v13, %v806_v51 }
 0x2da   : > { %v837_v17 = vmul.f32 %v1244_v14, %v805_v50 }
 0x2db   : > { %861 = vst.msk [vmem:[%s1391_s21] sm:$0xf] %vm860_vm2, %v1075_v15  ;;  %v842_v18 = vmax.f32 %v838_v16, 0.0 }
 0x2dc   : > { %v1246_v19 = vpop.eup %1245  ;;  %v841_v20 = vmax.f32 %v837_v17, 0.0 }
 0x2dd   : > { %v1077_v21 = vpack.c.bf16 %v842_v18, %v842_v18  ;;  %v839_v22 = vmul.f32 %v1246_v19, %v807_v57 }
 0x2de   : > { %v1076_v23 = vpack.c.bf16 %v841_v20, %v841_v20 }
 0x2df   : > { %863 = vst.msk [vmem:[%s1391_s21 + $0x8] sm:$0xf] %vm860_vm2, %v1077_v21  ;;  %v843_v24 = vmax.f32 %v839_v22, 0.0 }
 0x2e0   : > { %862 = vst.msk [vmem:[%s1391_s21 + $0x4] sm:$0xf] %vm860_vm2, %v1076_v23 }
 0x2e1   : > { %v1078_v25 = vpack.c.bf16 %v843_v24, %v843_v24 }
 0x2e3   : > { %864 = vst.msk [vmem:[%s1391_s21 + $0xc] sm:$0xf] %vm860_vm2, %v1078_v25 }
 0x2e4 PF: > { %s13_s18 = sadd.s32 1, %s1301_s18   ;;  %s1499_s12 = smov %s1281_s13 }
 0x2e5   : > { %p10_p0 = scmp.ge.s32.totalorder %s13_s18, 6   ;;  %s1500_s13 = smov %s1374_s23 }
 0x2e6   : > { %s1501_s14 = smov %s1293_s16  ;;  %s1502_s15 = smov %s1297_s17 }
 0x2e7   : > { %s1503_s16 = smov %s1506_s19  ;;  %s1504_s17 = smov %s1510_s20 }
 0x2e8   :  { %12 = sbr.rel (!%p10_p0) target bundleno = 4 (0x4), region = 104 }

// kernel: pona_forward.54
= control target key start
LH: loop header
LB: loop body
LE: loop exit
PB: predicated region body
PF: predicated region fallthrough
CT: control target
= control target key end

     0   :  { %s1351_s25 = smov 0   ;;  %s1353_s26 = smov 0   ;;  %s1449_s0 = inlined_call_operand.vmem [shape: bf16[2,32,16], index: 0, kind: input, shape index: {}, may-alias: {0,1}]   ;;  %s1450_s1 = inlined_call_operand.vmem [shape: bf16[2,32,16], index: 1, kind: input, shape index: {}, may-alias: {0,1}]   ;;  %s1451_s2 = inlined_call_operand.vmem [shape: bf16[2,32,16], index: 2, kind: input, shape index: {}, may-alias: {2,3}]   ;;  %s1452_s3 = inlined_call_operand.vmem [shape: bf16[2,32,16], index: 3, kind: input, shape index: {}, may-alias: {2,3}]   ;;  %s1453_s4 = inlined_call_operand.vmem [shape: bf16[4,32], index: 4, kind: input, shape index: {}]   ;;  %s1454_s5 = inlined_call_operand.vmem [shape: f32[4,1], index: 5, kind: input, shape index: {}, may-alias: {5,7}]   ;;  %s1455_s6 = inlined_call_operand.vmem [shape: bf16[4,32], index: 6, kind: input, shape index: {}]   ;;  %s1456_s7 = inlined_call_operand.vmem [shape: f32[4,1], index: 7, kind: input, shape index: {}, may-alias: {5,7}]   ;;  %s1457_s8 = inlined_call_operand.vmem [shape: bf16[32,32], index: 8, kind: input, shape index: {}]   ;;  %s1458_s9 = inlined_call_operand.vmem [shape: f32[32,1], index: 9, kind: input, shape index: {}]   ;;  %s1459_s10 = inlined_call_operand.<no memory space> [shape: f32[1,1], index: 10, kind: input, shape index: {}]   ;;  %s1460_s12 = inlined_call_operand.vmem [shape: bf16[2,32,16], index: 12, kind: output, shape index: {}]   ;;  %s1461_s11 = inlined_call_operand.<no memory space> [shape: f32[1,1], index: 11, kind: input, shape index: {}]  }
   0x1   :  { %v17_v0 = vstv %s1459_s10  ;;  %v19_v1 = vstv %s1461_s11  ;;  %s1355_s27 = smov 0  }
   0x2   :  { %18 = vst [vmem:[#allocation2] sm:$0x1] %v17_v0  ;;  %20 = vst [vmem:[#allocation3] sm:$0x1] %v19_v1 }
   0x3 LB: > { %s38_s10 = sadd.s32 1, %s1271_s26  ;;  %p1104_p0 = scmp.ge.s32.totalorder %s1275_s27, 1  ;;  %s1275_s27 = sphi %s1355_s27, %s26_s27   ;;  %s1271_s26 = sphi %s1353_s26, %s1463_s26   ;;  %s1267_s25 = sphi %s1351_s25, %s1462_s25  }
   0x4   : > { %p40_p1 = scmp.ge.s32.totalorder %s38_s10, 2  ;;  %p420_p2 = scmp.lt.s32.totalorder %s1275_s27, 3 }
   0x6   : > { %s1465_s10 = smov (%p40_p1, %s38_s10), 0  ;;  %p421_p3 = pnand %p1104_p0, %p420_p2 }
   0x7   : > { %p486_p4 = scmp.lt.s32.totalorder (!%p421_p3), %s1267_s25, 1 }
   0x8   : > { %424 = sbr.rel (%p421_p3) target bundleno = 1045 (0x415), region = 68 }
   0xd   : > { %v1277_v2 = vmov 0.0   ;;  %v526_v3 = vld [vmem:[%s1454_s5] sm:$0xf]  ;;  %s1467_s25 = smov (!%p486_p4, %s1267_s25), 1  ;;  %vm1278_vm0 = vmmov 0   ;;  %v1279_v4 = vmov 0  }
   0xe   : > { %1171 = vmatprep.subr.bf16.mxu0 %v1277_v2  ;;  %1179 = vmatprep.subr.bf16.mxu1 %v1277_v2  ;;  %s1374_s29 = sshll.u32 %s1467_s25, 4  ;;  %v593_v5 = vld [vmem:[%s1456_s7] sm:$0xf]  ;;  %vm544_vm1 = vcmask 261120   ;;  %v1244_v15 = vld [vmem:[%s1457_s8 + $0x8] sm:$0xff]   ;;  %vm785_vm2 = vcmask 1041408  }
   0xf   : > { %1175 = vmatprep.mubr.msk.bf16.mxu0 %vm1278_vm0, %v1277_v2  ;;  %1183 = vmatprep.mubr.msk.bf16.mxu1 %vm1278_vm0, %v1277_v2  ;;  %s493_s14 = scalar_lea.vmem %s1449_s0, %s1374_s29  ;;  %s498_s17 = scalar_lea.vmem %s1450_s1, %s1374_s29  ;;  %v521_v10 = vld [vmem:[%s1453_s4] sm:$0x3]  ;;  %vm781_vm3 = vcmask 31744   ;;  %vm830_vm4 = vcmask 130048   ;;  %v664_v39 = vld [vmem:[%s1458_s9 + $0x10] sm:$0xff]  ;;  %v663_v40 = vld [vmem:[%s1458_s9 + $0x8] sm:$0xff] }
  0x10   : > { %1235 = vset.pattern.permute.xlu0 %v1279_v4  ;;  %v1237_v6 = vld [vmem:[%s493_s14 + $0x8] sm:$0xff]   ;;  %v1239_v8 = vld [vmem:[%s493_s14] sm:$0xff]   ;;  %s503_s11 = scalar_lea.vmem %s1451_s2, %s1374_s29  ;;  %v665_v60 = vld [vmem:[%s1458_s9 + $0x18] sm:$0xff]  ;;  %s511_s25 = scalar_lea.vmem %s1452_s3, %s1374_s29  ;;  %vm970_vm5 = vcmask 125952  }
  0x11   : > { %529 = vperm.xlu0 %1235, %v526_v3   ;;  %v1238_v7 = vld [vmem:[%s498_s17 + $0x8] sm:$0xff]   ;;  %1172 = vmatpush3.bf16.msra.mxu0 %v1237_v6  ;;  %v1240_v9 = vld [vmem:[%s498_s17] sm:$0xff]   ;;  %s519_s30 = scalar_lea.vmem %s1460_s12, %s1374_s29 }
  0x12   : > { %1180 = vmatpush3.bf16.msra.mxu1 %v1238_v7  ;;  %1173 = vmatprep.subr.bf16.mxu0 %v1277_v2  ;;  %v588_v11 = vld [vmem:[%s1455_s6] sm:$0x3]  ;;  %v1241_v13 = vld [vmem:[%s503_s11 + $0x8] sm:$0xff]  }
  0x13   : > { %1181 = vmatprep.subr.bf16.mxu1 %v1277_v2  ;;  %v1243_v12 = vld [vmem:[%s1457_s8] sm:$0xff]  }
  0x14   : > { %v1242_v14 = vld [vmem:[%s503_s11] sm:$0xff]  }
  0x15   : > { %596 = vperm.xlu0 %1235, %v593_v5   ;;  %1174 = vmatpush3.bf16.msra.mxu0 %v1239_v8  ;;  %v662_v38 = vld [vmem:[%s1458_s9] sm:$0xff] }
  0x16   : > { %1182 = vmatpush3.bf16.msra.mxu1 %v1240_v9  ;;  %1187 = vmatprep.subr.bf16.mxu0 %v1241_v13  ;;  %v1130_v61 = vld [vmem:[#allocation2] ss:$0 sm:$0xff]  ;;  %v1131_v62 = vld [vmem:[#allocation3] ss:$0 sm:$0xff] }
  0x17   : > { %1195 = vmatprep.subr.bf16.mxu1 %v1277_v2 }
  0x18   : > { %1176 = vmatmul.mubr.msk.bf16.vlgmr.msra.gmra.mxu0 %vm544_vm1, %v521_v10 }
  0x19   : > { %1184 = vmatmul.mubr.msk.bf16.vlgmr.msra.gmra.mxu1 %vm544_vm1, %v588_v11  ;;  %1191 = vmatprep.mubr.msk.bf16.mxu0 %vm544_vm1, %v1243_v12 }
  0x1a   : > { %1197 = vmatprep.mubr.msk.bf16.mxu1 %vm1278_vm0, %v1277_v2  ;;  %1188 = vmatpush3.bf16.msra.mxu0 %v1241_v13  ;;  %v1155_v13 = vld [vmem:[%s511_s25 + $0x8] sm:$0xff]  }
  0x1b   : > { %1189 = vmatprep.subr.bf16.mxu0 %v1242_v14 }
  0x1e   : > { %1190 = vmatpush3.bf16.msra.mxu0 %v1242_v14  ;;  %v1148_v14 = vld [vmem:[%s511_s25] sm:$0xff]  }
  0x21   : > { %1192 = vmatmul.mubr.msk.bf16.vlgmr.msra.gmra.mxu0 %vm544_vm1, %v1244_v15  ;;  %v1153_v15 = vunpack.c.l.bf16 %v1155_v13 }
  0x8c   : > { %v530_v16 = vpop.permute.xlu0 %529 }
  0x90   : > { %v597_v17 = vpop.permute.xlu0 %596 }
  0xd8   : > { %v582_v18 = vpop.f32.mrf.mxu0 }
  0xd9   : > { %v648_v19 = vpop.f32.mrf.mxu1  ;;  %v583_v20 = vadd.f32 %v582_v18, %v530_v16 }
  0xda   : > { %v649_v21 = vadd.f32 %v648_v19, %v597_v17  ;;  %v1177_v22 = vpop.f32.mrf.mxu0  ;;  %v1149_v17 = vunpack.c.l.bf16 %v1148_v14  ;;  %v1154_v19 = vunpack.c.h.bf16 %v1155_v13 }
  0xdb   : > { %v763_v23 = vpack.c.bf16 %v583_v20, %v583_v20  ;;  %v1185_v24 = vpop.f32.mrf.mxu1 }
  0xdc   : > { %v764_v25 = vpack.c.bf16 %v649_v21, %v649_v21  ;;  %v585_v26 = vpop.f32.mrf.mxu0 }
  0xdd   : > { %765 = vxpose.xlu1.c.b16.start.end [1/1] (short) (narrow) %v763_v23, 16  ;;  %v651_v27 = vpop.f32.mrf.mxu1  ;;  %v1150_v23 = vunpack.c.h.bf16 %v1148_v14 }
  0xde   : > { %v787_v28 = vsel %vm785_vm2, %v764_v25, 0  ;;  %v1178_v29 = vpop.f32.mrf.mxu0 }
  0xdf   : > { %1196 = vmatpush3.bf16.msra.mxu1 %v787_v28  ;;  %v1186_v30 = vpop.f32.mrf.mxu1 }
  0xe1   : > { %1236 = vset.pattern.permute.xlu1 %v1279_v4  ;;  %v1193_v41 = vpop.f32.mrf.mxu0 }
  0xe3   : > { %v748_v44 = vpop.f32.mrf.mxu0 }
  0xe5   : > { %v1194_v48 = vpop.f32.mrf.mxu0 }
  0xe7   : > { %v751_v51 = vpop.f32.mrf.mxu0 }
 0x13f   : > { %v773_v31 = vpop.trf.xlu1 }
 0x140   : > { %1198 = vmatmul.mubr.msk.bf16.vlgmr.msra.gmra.mxu1 %vm781_vm3, %v773_v31 }
 0x200   : > { %v823_v32 = vpop.f32.mrf.mxu1 }
 0x201   : > { %v831_v33 = vsel %vm830_vm4, %v823_v32, -inf }
 0x202   : > { %832 = vmax.xlane.f32.xlu1 %v831_v33  ;;  %v1199_v34 = vpop.f32.mrf.mxu1 }
 0x204   : > { %v826_v35 = vpop.f32.mrf.mxu1 }
 0x205   : > { %v834_v36 = vsel %vm830_vm4, %v826_v35, -inf }
 0x206   : > { %835 = vmax.xlane.f32.xlu0 %v834_v36  ;;  %v1200_v37 = vpop.f32.mrf.mxu1 }
 0x213   : > { %668 = vperm.xlu1 %1236, %v662_v38  }
 0x217   : > { %678 = vperm.xlu1 %1236, %v664_v39  }
 0x21c   : > { %673 = vperm.xlu0 %1235, %v663_v40  }
 0x28b   : > { %v833_v42 = vpop.xlane.xlu1 %832 }
 0x28c   : > { %v837_v43 = vsub.f32 %v823_v32, %v833_v42 }
 0x28e   : > { %v839_v45 = vmul.f32 1.442695, %v837_v43 }
 0x28f   : > { %v836_v46 = vpop.xlane.xlu0 %835  ;;  %v669_v50 = vpop.permute.xlu1 %668 }
 0x290   : > { %1245 = vpow2.f32 %v839_v45  ;;  %v838_v47 = vsub.f32 %v826_v35, %v836_v46  ;;  %v749_v52 = vadd.f32 %v748_v44, %v669_v50 }
 0x292   : > { %v841_v49 = vmul.f32 1.442695, %v838_v47 }
 0x293   : > { %v679_v63 = vpop.permute.xlu1 %678 }
 0x294   : > { %1247 = vpow2.f32 %v841_v49  ;;  %v757_v10 = vadd.f32 %v1193_v41, %v679_v63 }
 0x297   : > { %v674_v53 = vpop.permute.xlu0 %673 }
 0x298   : > { %v752_v54 = vadd.f32 %v751_v51, %v674_v53 }
 0x29a   : > { %v853_v55 = vpack.c.bf16 %v752_v54, %v749_v52 }
 0x29c   : > { %1203 = vmatprep.mubr.msk.bf16.mxu0 %vm830_vm4, %v853_v55 }
 0x29d   : > { %v1246_v56 = vpop.eup %1245 }
 0x29e   : > { %v843_v57 = vsel %vm830_vm4, %v1246_v56, 0.0 }
 0x29f   : > { %844 = vadd.xlane.f32.xlu1 %v843_v57 }
 0x2a1   : > { %v1248_v58 = vpop.eup %1247 }
 0x2a2   : > { %v846_v59 = vsel %vm830_vm4, %v1248_v58, 0.0 }
 0x2a3   : > { %847 = vadd.xlane.f32.xlu1 %v846_v59 }
 0x2b4   : > { %683 = vperm.xlu1 %1236, %v665_v60  }
 0x2b8   : > { %921 = vperm.xlu1 %1236, %v1130_v61  }
 0x2bc   : > { %943 = vperm.xlu1 %1236, %v1131_v62  }
 0x328   : > { %v845_v0 = vpop.xlane.xlu1 %844 }
 0x329   : > { %1249 = vrcp.f32 %v845_v0 }
 0x32c   : > { %v848_v1 = vpop.xlane.xlu1 %847 }
 0x32d   : > { %1251 = vrcp.f32 %v848_v1 }
 0x330   : > { %v684_v7 = vpop.permute.xlu1 %683 }
 0x331   : > { %v760_v9 = vadd.f32 %v1194_v48, %v684_v7 }
 0x333   : > { %v854_v11 = vpack.c.bf16 %v760_v9, %v757_v10 }
 0x334   : > { %v922_v12 = vpop.permute.xlu1 %921 }
 0x336   : > { %v1250_v2 = vpop.eup %1249 }
 0x337   : > { %v851_v4 = vmul.f32 %v1250_v2, %v1246_v56 }
 0x338   : > { %v944_v16 = vpop.permute.xlu1 %943 }
 0x339   : > { %v948_v20 = vmul.f32 %v1153_v15, %v944_v16  ;;  %v946_v24 = vmul.f32 %v1149_v17, %v944_v16  ;;  %v949_v28 = vmul.f32 %v1154_v19, %v944_v16  ;;  %v947_v33 = vmul.f32 %v1150_v23, %v944_v16 }
 0x33a   : > { %v1252_v3 = vpop.eup %1251 }
 0x33b   : > { %v852_v5 = vmul.f32 %v1252_v3, %v1248_v58 }
 0x33d   : > { %v855_v6 = vpack.c.bf16 %v852_v5, %v851_v4 }
 0x33f   : > { %1207 = vmatprep.subr.msk.bf16.mxu0 %vm830_vm4, %v855_v6  ;;  %v863_v8 = vsel %vm830_vm4, %v855_v6, 0 }
 0x340   : > { %1202 = vmatpush3.bf16.xpose.msra.mxu0 %v863_v8 }
 0x347   : > { %1204 = vmatmul.mubr.msk.bf16.vlgmr.msra.gmra.mxu0 %vm830_vm4, %v854_v11 }
 0x407   : > { %v1205_v18 = vpop.f32.mrf.mxu0 }
 0x408   : > { %v926_v21 = vmul.f32 %v1205_v18, %v922_v12 }
 0x409   : > { %v899_v22 = vpop.f32.mrf.mxu0 }
 0x40a   : > { %v952_v25 = vadd.f32 %v948_v20, %v926_v21  ;;  %v924_v26 = vmul.f32 %v922_v12, %v899_v22 }
 0x40b   : > { %v1206_v27 = vpop.f32.mrf.mxu0 }
 0x40c   : > { %v1145_v29 = vpack.c.bf16 %v952_v25, %v952_v25  ;;  %v950_v30 = vadd.f32 %v946_v24, %v924_v26  ;;  %v927_v31 = vmul.f32 %v1206_v27, %v922_v12 }
 0x40d   : > { %v902_v32 = vpop.f32.mrf.mxu0 }
 0x40e   : > { %973 = vst.msk [vmem:[%s519_s30 + $0x8] sm:$0xf] %vm970_vm5, %v1145_v29  ;;  %v1143_v34 = vpack.c.bf16 %v950_v30, %v950_v30  ;;  %v953_v35 = vadd.f32 %v949_v28, %v927_v31  ;;  %v925_v36 = vmul.f32 %v922_v12, %v902_v32 }
 0x410   : > { %971 = vst.msk [vmem:[%s519_s30] sm:$0xf] %vm970_vm5, %v1143_v34  ;;  %v1146_v37 = vpack.c.bf16 %v953_v35, %v953_v35  ;;  %v951_v38 = vadd.f32 %v947_v33, %v925_v36 }
 0x412   : > { %974 = vst.msk [vmem:[%s519_s30 + $0xc] sm:$0xf] %vm970_vm5, %v1146_v37  ;;  %v1144_v39 = vpack.c.bf16 %v951_v38, %v951_v38 }
 0x414   : > { %972 = vst.msk [vmem:[%s519_s30 + $0x4] sm:$0xf] %vm970_vm5, %v1144_v39 }
 0x415 PF: > { %s26_s27 = sadd.s32 1, %s1275_s27   ;;  %s1462_s25 = smov %s1271_s26 }
 0x416   : > { %p23_p5 = scmp.ge.s32.totalorder %s26_s27, 4   ;;  %s1463_s26 = smov %s1465_s10 }
 0x418   :  { %25 = sbr.rel (!%p23_p5) target bundleno = 3 (0x3), region = 107 }

// kernel: pona_forward.75
= control target key start
LH: loop header
LB: loop body
LE: loop exit
PB: predicated region body
PF: predicated region fallthrough
CT: control target
= control target key end

     0   :  { %v401_v1 = vmov 0.0   ;;  %vm402_vm0 = vmmov 0   ;;  %v403_v3 = vmov 0   ;;  %vm186_vm1 = vcmask 261120   ;;  %s496_s1 = inlined_call_operand.vmem [shape: bf16[288,128], index: 1, kind: input, shape index: {}]   ;;  %s497_s0 = inlined_call_operand.vmem [shape: bf16[16,288], index: 0, kind: input, shape index: {}]   ;;  %s498_s2 = inlined_call_operand.vmem [shape: f32[16,1], index: 2, kind: input, shape index: {}]   ;;  %s499_s3 = inlined_call_operand.vmem [shape: bf16[16,128], index: 3, kind: output, shape index: {}]  }
   0x1   :  { %v379_v0 = vld [vmem:[%s496_s1 + $0x78] sm:$0xff]   ;;  %367 = vmatprep.subr.bf16.mxu1 %v401_v1  ;;  %371 = vmatprep.mubr.msk.bf16.mxu1 %vm402_vm0, %v401_v1  ;;  %v381_v4 = vld [vmem:[%s496_s1 + $0x70] sm:$0xff]   ;;  %v383_v6 = vld [vmem:[%s496_s1 + $0x68] sm:$0xff]  }
   0x2   :  { %v380_v2 = vld [vmem:[%s496_s1 + $0x38] sm:$0xff]   ;;  %378 = vset.pattern.permute.xlu0 %v403_v3  ;;  %342 = vmatprep.subr.bf16.mxu0 %v379_v0  ;;  %v382_v5 = vld [vmem:[%s496_s1 + $0x30] sm:$0xff]   ;;  %v384_v7 = vld [vmem:[%s496_s1 + $0x28] sm:$0xff]  }
   0x3   :  { %343 = vmatpush3.bf16.msra.mxu0 %v380_v2  ;;  %v385_v8 = vld [vmem:[%s496_s1 + $0x60] sm:$0xff]   ;;  %v387_v10 = vld [vmem:[%s496_s1 + $0x58] sm:$0xff]   ;;  %v391_v11 = vld [vmem:[%s496_s1 + $0x88] sm:$0xff]  }
   0x4   :  { %344 = vmatprep.subr.bf16.mxu0 %v381_v4  ;;  %v386_v9 = vld [vmem:[%s496_s1 + $0x20] sm:$0xff]   ;;  %v388_v12 = vld [vmem:[%s496_s1 + $0x18] sm:$0xff]   ;;  %368 = vmatpush3.bf16.msra.mxu1 %v391_v11  ;;  %v389_v14 = vld [vmem:[%s496_s1 + $0x50] sm:$0xff]  }
   0x5   :  { %369 = vmatprep.subr.bf16.mxu1 %v401_v1  ;;  %v394_v13 = vld [vmem:[%s496_s1 + $0x80] sm:$0xff]   ;;  %v397_v15 = vld [vmem:[%s497_s0 + $0x8] ss:$12 sps:$4 sm:$0xff]  }
   0x6   :  { %v390_v16 = vld [vmem:[%s496_s1 + $0x10] sm:$0xff]   ;;  %v392_v17 = vld [vmem:[%s496_s1 + $0x48] sm:$0xff]   ;;  %v281_v19 = vld [vmem:[%s498_s2] sm:$0xff] }
   0x7   :  { %345 = vmatpush3.bf16.msra.mxu0 %v382_v5  ;;  %v400_v18 = vld [vmem:[%s497_s0 + $0x4] ss:$12 sps:$4 sm:$0xff]   ;;  %285 = vperm.xlu0 %378, %v281_v19   ;;  %v282_v20 = vld [vmem:[%s498_s2 + $0x8] sm:$0xff] }
   0x8   :  { %346 = vmatprep.subr.bf16.mxu0 %v383_v6  ;;  %370 = vmatpush3.bf16.msra.mxu1 %v394_v13  ;;  %v393_v21 = vld [vmem:[%s496_s1 + $0x8] sm:$0xff]   ;;  %v395_v22 = vld [vmem:[%s496_s1 + $0x40] sm:$0xff]  }
   0x9   :  { %222 = vmatprep.mubr.bf16.mxu0 %v400_v18  ;;  %v396_v23 = vld [vmem:[%s496_s1] sm:$0xff]  }
   0xa   :  { %v398_v24 = vld [vmem:[%s497_s0] ss:$12 sps:$4 sm:$0xff]  }
   0xb   :  { %347 = vmatpush3.bf16.msra.mxu0 %v384_v7  ;;  %372 = vmatmul.mubr.msk.bf16.vlgmr.msra.gmra.mxu1 %vm186_vm1, %v397_v15 }
   0xc   :  { %348 = vmatprep.subr.bf16.mxu0 %v385_v8  ;;  %290 = vperm.xlu0 %378, %v282_v20  }
   0xf   :  { %349 = vmatpush3.bf16.msra.mxu0 %v386_v9 }
  0x10   :  { %350 = vmatprep.subr.bf16.mxu0 %v387_v10 }
  0x13   :  { %351 = vmatpush3.bf16.msra.mxu0 %v388_v12 }
  0x14   :  { %352 = vmatprep.subr.bf16.mxu0 %v389_v14 }
  0x17   :  { %353 = vmatpush3.bf16.msra.mxu0 %v390_v16 }
  0x18   :  { %354 = vmatprep.subr.bf16.mxu0 %v392_v17 }
  0x1b   :  { %355 = vmatpush3.bf16.msra.mxu0 %v393_v21 }
  0x1c   :  { %356 = vmatprep.subr.bf16.mxu0 %v395_v22 }
  0x1f   :  { %357 = vmatpush3.bf16.msra.mxu0 %v396_v23 }
  0x22   :  { %223 = vmatmul.mubr.bf16.vlgmr.msra.gmra.mxu0 %v398_v24 }
  0x82   :  { %v286_v32 = vpop.permute.xlu0 %285 }
  0x87   :  { %v291_v39 = vpop.permute.xlu0 %290 }
  0xcb   :  { %v265_v25 = vpop.f32.mrf.mxu1 }
  0xcd   :  { %v373_v26 = vpop.f32.mrf.mxu1 }
  0xcf   :  { %v268_v27 = vpop.f32.mrf.mxu1 }
  0xd1   :  { %v374_v28 = vpop.f32.mrf.mxu1 }
  0xe2   :  { %v358_v29 = vpop.f32.mrf.mxu0 }
  0xe4   :  { %v359_v30 = vpop.f32.mrf.mxu0 }
  0xe5   :  { %v360_v31 = vadd.f32 %v359_v30, %v358_v29 }
  0xe6   :  { %v361_v33 = vpop.f32.mrf.mxu0 }
  0xe7   :  { %v266_v34 = vadd.f32 %v360_v31, %v265_v25 }
  0xe8   :  { %v362_v35 = vpop.f32.mrf.mxu0 }
  0xe9   :  { %v363_v36 = vadd.f32 %v362_v35, %v361_v33  ;;  %v293_v37 = vadd.f32 %v286_v32, %v266_v34 }
  0xeb   :  { %v269_v38 = vadd.f32 %v363_v36, %v268_v27  ;;  %v295_v41 = vmax.f32 %v293_v37, 0.0 }
  0xed   :  { %v294_v40 = vadd.f32 %v291_v39, %v269_v38 }
  0xef   :  { %v296_v42 = vmax.f32 %v294_v40, 0.0 }
  0xf1   :  { %v340_v43 = vpack.c.bf16 %v296_v42, %v295_v41 }
  0xf3   :  { %341 = vst [vmem:[%s499_s3] sm:$0xff] %v340_v43  }

// kernel: pona_forward.76
= control target key start
LH: loop header
LB: loop body
LE: loop exit
PB: predicated region body
PF: predicated region fallthrough
CT: control target
= control target key end

     0   :  { %s862_s12 = smov 0   ;;  %s864_s13 = smov 0   ;;  %s973_s0 = inlined_call_operand.vmem [shape: bf16[8,144], index: 0, kind: input, shape index: {}]   ;;  %s974_s1 = inlined_call_operand.vmem [shape: bf16[144,512], index: 1, kind: input, shape index: {}]   ;;  %s975_s2 = inlined_call_operand.vmem [shape: f32[8,1], index: 2, kind: input, shape index: {}]   ;;  %s976_s3 = inlined_call_operand.vmem [shape: bf16[8,512], index: 3, kind: output, shape index: {}]  }
   0x1   :  { %s866_s14 = smov 0   ;;  %s868_s15 = smov 0  }
   0x2   :  { %s870_s16 = smov 0  }
   0x3 LB: > { %s28_s17 = sadd.s32 1, %s835_s15  ;;  %p76_p1 = scmp.ne.s32.totalorder %s827_s13, %s823_s12  ;;  %s839_s16 = sphi %s870_s16, %s13_s16   ;;  %s835_s15 = sphi %s868_s15, %s980_s15   ;;  %s831_s14 = sphi %s866_s14, %s979_s14   ;;  %s827_s13 = sphi %s864_s13, %s978_s13   ;;  %s823_s12 = sphi %s862_s12, %s977_s12  }
   0x4   : > { %p30_p0 = scmp.ge.s32.totalorder %s28_s17, 2  ;;  %p77_p2 = scmp.eq.s32.totalorder %s839_s16, 0 }
   0x5   : > { %s69_s19 = sadd.s32 1, %s827_s13  ;;  %p696_p5 = scmp.ge.s32.totalorder %s839_s16, 2 }
   0x6   : > { %s982_s17 = smov (%p30_p0, %s28_s17), 0  ;;  %p78_p3 = por %p77_p2, %p76_p1 }
   0x7   : > { %s65_s18 = ssub.s32 %s835_s15, %s982_s17  ;;  %176 = sbr.rel (%p696_p5) target bundleno = 25 (0x19), region = 24 }
   0x8   : > { %p67_p4 = scmp.eq.s32.totalorder %s65_s18, 0 }
   0xa   : > { %s897_s20 = scalar_select %p67_p4, %s827_s13, %s69_s19  }
   0xc   : > { %179 = sbr.rel (!%p78_p3) target bundleno = 25 (0x19), region = 28  ;;  %s181_s21 = sand.u32 (%p78_p3), 1, %s827_s13  }
   0xd   : > { %s726_s22 = sshll.u32 (%p78_p3), %s835_s15, 3  ;;  %s728_s23 = smul.u32 (%p78_p3), 144, %s181_s21 }
   0xe   : > { %s905_s26 = scalar_lea.vmem (%p78_p3), %s974_s1, %s726_s22 }
   0xf   : > { %v252_v0 = vld [vmem:[%s905_s26] sm:$0xff] (%p78_p3)  ;;  %v254_v1 = vld [vmem:[%s905_s26 + $0x10] sm:$0xff] (%p78_p3)  ;;  %s183_s27 = scalar_lea.vmem (%p78_p3), [#allocation3], %s728_s23 }
  0x10   : > { %v256_v2 = vld [vmem:[%s905_s26 + $0x20] sm:$0xff] (%p78_p3)  ;;  %v258_v3 = vld [vmem:[%s905_s26 + $0x30] sm:$0xff] (%p78_p3)  ;;  %253 = vst [vmem:[%s183_s27] sm:$0xff] (%p78_p3), %v252_v0  ;;  %255 = vst [vmem:[%s183_s27 + $0x8] sm:$0xff] (%p78_p3), %v254_v1 }
  0x11   : > { %v260_v4 = vld [vmem:[%s905_s26 + $0x40] sm:$0xff]  ;;  %v262_v5 = vld [vmem:[%s905_s26 + $0x50] sm:$0xff]  ;;  %257 = vst [vmem:[%s183_s27 + $0x10] sm:$0xff] %v256_v2  ;;  %259 = vst [vmem:[%s183_s27 + $0x18] sm:$0xff] %v258_v3 }
  0x12   : > { %261 = vst [vmem:[%s183_s27 + $0x20] sm:$0xff] %v260_v4  ;;  %263 = vst [vmem:[%s183_s27 + $0x28] sm:$0xff] %v262_v5  ;;  %v264_v6 = vld [vmem:[%s905_s26 + $0x60] sm:$0xff]  ;;  %v266_v7 = vld [vmem:[%s905_s26 + $0x70] sm:$0xff] }
  0x13   : > { %v268_v8 = vld [vmem:[%s905_s26 + $0x80] sm:$0xff]  ;;  %265 = vst [vmem:[%s183_s27 + $0x30] sm:$0xff] %v264_v6  ;;  %267 = vst [vmem:[%s183_s27 + $0x38] sm:$0xff] %v266_v7  ;;  %v270_v9 = vld [vmem:[%s905_s26 + $0x90] sm:$0xff] }
  0x14   : > { %269 = vst [vmem:[%s183_s27 + $0x40] sm:$0xff] %v268_v8  ;;  %v272_v10 = vld [vmem:[%s905_s26 + $0xa0] sm:$0xff]  ;;  %v274_v11 = vld [vmem:[%s905_s26 + $0xb0] sm:$0xff]  ;;  %271 = vst [vmem:[%s183_s27 + $0x48] sm:$0xff] %v270_v9 }
  0x15   : > { %273 = vst [vmem:[%s183_s27 + $0x50] sm:$0xff] %v272_v10  ;;  %275 = vst [vmem:[%s183_s27 + $0x58] sm:$0xff] %v274_v11  ;;  %v276_v12 = vld [vmem:[%s905_s26 + $0xc0] sm:$0xff]  ;;  %v278_v13 = vld [vmem:[%s905_s26 + $0xd0] sm:$0xff] }
  0x16   : > { %v280_v14 = vld [vmem:[%s905_s26 + $0xe0] sm:$0xff]  ;;  %277 = vst [vmem:[%s183_s27 + $0x60] sm:$0xff] %v276_v12  ;;  %279 = vst [vmem:[%s183_s27 + $0x68] sm:$0xff] %v278_v13  ;;  %v282_v15 = vld [vmem:[%s905_s26 + $0xf0] sm:$0xff] }
  0x17   : > { %281 = vst [vmem:[%s183_s27 + $0x70] sm:$0xff] %v280_v14  ;;  %v284_v16 = vld [vmem:[%s905_s26 + $0x100] sm:$0xff]  ;;  %v286_v17 = vld [vmem:[%s905_s26 + $0x110] sm:$0xff]  ;;  %283 = vst [vmem:[%s183_s27 + $0x78] sm:$0xff] %v282_v15 }
  0x18   : > { %285 = vst [vmem:[%s183_s27 + $0x80] sm:$0xff] %v284_v16  ;;  %287 = vst [vmem:[%s183_s27 + $0x88] sm:$0xff] %v286_v17 }
  0x19 PF: > { %p699_p6 = scmp.ge.s32.totalorder %s839_s16, 1  ;;  %p292_p7 = scmp.lt.s32.totalorder %s839_s16, 3 }
  0x1b   : > { %p293_p8 = pnand %p699_p6, %p292_p7 }
  0x1c   : > { %s299_s28 = sand.u32 (!%p293_p8), 1, %s823_s12   ;;  %s700_s8 = sshll.u32 (!%p293_p8), %s831_s14, 1 }
  0x1d   : > { %296 = sbr.rel (%p293_p8) target bundleno = 275 (0x113), region = 66  ;;  %p358_p9 = scmp.lt.s32.totalorder (!%p293_p8), %s700_s8, 3 }
  0x1e   : > { %s729_s6 = smul.u32 (!%p293_p8), 144, %s299_s28 }
  0x20   : > { %s934_s7 = scalar_lea.vmem (!%p293_p8), [#allocation3], %s729_s6 }
  0x22   : > { %v374_v18 = vld [vmem:[%s973_s0] sm:$0xff]  ;;  %vm489_vm0 = vcmask 130048   ;;  %v841_v21 = vmov 0   ;;  %s984_s8 = smov (!%p358_p9, %s700_s8), 3 }
  0x23   : > { %v543_v19 = vld [vmem:[%s975_s2] sm:$0xff]  ;;  %v703_v20 = vcombine.high %v374_v18, %v374_v18  ;;  %771 = vset.pattern.permute.xlu0 %v841_v21  ;;  %v702_v40 = vcombine.low %v374_v18, %v374_v18  ;;  %s701_s9 = sshll.u32 %s984_s8, 2 }
  0x24   : > { %546 = vperm.xlu0 %771, %v543_v19   ;;  %v772_v22 = vld [vmem:[%s934_s7 + $0x74] ss:$8 sps:$4 sm:$0xff]   ;;  %v774_v23 = vld [vmem:[%s934_s7 + $0x70] ss:$8 sps:$4 sm:$0xff]   ;;  %v775_v24 = vld [vmem:[%s934_s7 + $0x64] ss:$8 sps:$4 sm:$0xff]   ;;  %s363_s12 = scalar_lea.vmem %s976_s3, %s701_s9 }
  0x25   : > { %722 = vmatprep.mubr.msk.bf16.mxu0 %vm489_vm0, %v703_v20  ;;  %493 = vmatprep.subr.bf16.mxu0 %v772_v22  ;;  %v777_v25 = vld [vmem:[%s934_s7 + $0x60] ss:$8 sps:$4 sm:$0xff]   ;;  %v778_v26 = vld [vmem:[%s934_s7 + $0x54] ss:$8 sps:$4 sm:$0xff]   ;;  %v780_v27 = vld [vmem:[%s934_s7 + $0x50] ss:$8 sps:$4 sm:$0xff]  }
  0x26   : > { %494 = vmatpush1.bf16.msra.mxu0 %v774_v23  ;;  %v781_v28 = vld [vmem:[%s934_s7 + $0x44] ss:$8 sps:$4 sm:$0xff]   ;;  %v783_v29 = vld [vmem:[%s934_s7 + $0x40] ss:$8 sps:$4 sm:$0xff]   ;;  %v784_v30 = vld [vmem:[%s934_s7 + $0x34] ss:$8 sps:$4 sm:$0xff]  }
  0x27   : > { %495 = vmatprep.subr.bf16.mxu0 %v775_v24  ;;  %v786_v31 = vld [vmem:[%s934_s7 + $0x30] ss:$8 sps:$4 sm:$0xff]   ;;  %v787_v32 = vld [vmem:[%s934_s7 + $0x24] ss:$8 sps:$4 sm:$0xff]   ;;  %v789_v33 = vld [vmem:[%s934_s7 + $0x20] ss:$8 sps:$4 sm:$0xff]  }
  0x28   : > { %v790_v34 = vld [vmem:[%s934_s7 + $0x14] ss:$8 sps:$4 sm:$0xff]   ;;  %v792_v35 = vld [vmem:[%s934_s7 + $0x10] ss:$8 sps:$4 sm:$0xff]   ;;  %v793_v36 = vld [vmem:[%s934_s7 + $0x4] ss:$8 sps:$4 sm:$0xff]  }
  0x29   : > { %v795_v37 = vld [vmem:[%s934_s7] ss:$8 sps:$4 sm:$0xff]   ;;  %v796_v38 = vld [vmem:[%s934_s7 + $0x84] ss:$8 sps:$4 sm:$0xff]  }
  0x2a   : > { %496 = vmatpush1.bf16.msra.mxu0 %v777_v25  ;;  %v798_v39 = vld [vmem:[%s934_s7 + $0x80] ss:$8 sps:$4 sm:$0xff]  }
  0x2b   : > { %497 = vmatprep.subr.bf16.mxu0 %v778_v26 }
  0x2e   : > { %498 = vmatpush1.bf16.msra.mxu0 %v780_v27 }
  0x2f   : > { %499 = vmatprep.subr.bf16.mxu0 %v781_v28 }
  0x32   : > { %500 = vmatpush1.bf16.msra.mxu0 %v783_v29 }
  0x33   : > { %501 = vmatprep.subr.bf16.mxu0 %v784_v30 }
  0x36   : > { %502 = vmatpush1.bf16.msra.mxu0 %v786_v31 }
  0x37   : > { %503 = vmatprep.subr.bf16.mxu0 %v787_v32 }
  0x3a   : > { %504 = vmatpush1.bf16.msra.mxu0 %v789_v33 }
  0x3b   : > { %505 = vmatprep.subr.bf16.mxu0 %v790_v34 }
  0x3e   : > { %506 = vmatpush1.bf16.msra.mxu0 %v792_v35 }
  0x3f   : > { %507 = vmatprep.subr.bf16.mxu0 %v793_v36 }
  0x42   : > { %508 = vmatpush1.bf16.msra.mxu0 %v795_v37 }
  0x43   : > { %523 = vmatprep.subr.bf16.mxu0 %v796_v38 }
  0x46   : > { %524 = vmatpush2.bf16.msra.mxu0 %v798_v39 }
  0x49   : > { %526 = vmatmul.mubr.bf16.vlgmr.msra.gmra.mxu0 %v702_v40 }
  0x9f   : > { %v547_v41 = vpop.permute.xlu0 %546 }
 0x109   : > { %v527_v42 = vpop.f32.mrf.mxu0 }
 0x10a   : > { %v549_v43 = vadd.f32 %v547_v41, %v527_v42 }
 0x10b   : > { %v529_v44 = vpop.f32.mrf.mxu0 }
 0x10c   : > { %v550_v45 = vadd.f32 %v547_v41, %v529_v44  ;;  %v551_v47 = vmax.f32 %v549_v43, 0.0 }
 0x10d   : > { %v531_v46 = vpop.f32.mrf.mxu0 }
 0x10e   : > { %v552_v48 = vmax.f32 %v550_v45, 0.0 }
 0x10f   : > { %v532_v49 = vpop.f32.mrf.mxu0 }
 0x110   : > { %v727_v50 = vpack.c.bf16 %v552_v48, %v551_v47 }
 0x112   : > { %561 = vst [vmem:[%s363_s12] sm:$0xff] %v727_v50 }
 0x113 PF: > { %s13_s16 = sadd.s32 1, %s839_s16   ;;  %s977_s12 = smov %s827_s13 }
 0x114   : > { %p10_p10 = scmp.ge.s32.totalorder %s13_s16, 4   ;;  %s978_s13 = smov %s897_s20 }
 0x115   : > { %s979_s14 = smov %s835_s15  ;;  %s980_s15 = smov %s982_s17 }
 0x116   :  { %12 = sbr.rel (!%p10_p10) target bundleno = 3 (0x3), region = 119 }

// kernel: pona_forward.77
= control target key start
LH: loop header
LB: loop body
LE: loop exit
PB: predicated region body
PF: predicated region fallthrough
CT: control target
= control target key end

     0   :  { %s1314_s12 = smov 0   ;;  %s1316_s13 = smov 0   ;;  %s1552_s0 = inlined_call_operand.vmem [shape: bf16[3,392], index: 0, kind: input, shape index: {}]   ;;  %s1553_s1 = inlined_call_operand.vmem [shape: bf16[392,512], index: 1, kind: input, shape index: {}]   ;;  %s1554_s2 = inlined_call_operand.vmem [shape: f32[3,1], index: 2, kind: input, shape index: {}]   ;;  %s1555_s3 = inlined_call_operand.vmem [shape: f32[3,512], index: 3, kind: output, shape index: {}]  }
   0x1   :  { %s1318_s14 = smov 0   ;;  %s1320_s15 = smov 0  }
   0x2   :  { %s1322_s16 = smov 0  }
   0x3 LB: > { %s28_s17 = sadd.s32 1, %s1284_s15  ;;  %p76_p1 = scmp.ne.s32.totalorder %s1276_s13, %s1272_s12  ;;  %s1288_s16 = sphi %s1322_s16, %s13_s16   ;;  %s1284_s15 = sphi %s1320_s15, %s1559_s15   ;;  %s1280_s14 = sphi %s1318_s14, %s1558_s14   ;;  %s1276_s13 = sphi %s1316_s13, %s1557_s13   ;;  %s1272_s12 = sphi %s1314_s12, %s1556_s12  }
   0x4   : > { %p30_p0 = scmp.ge.s32.totalorder %s28_s17, 2  ;;  %p77_p2 = scmp.eq.s32.totalorder %s1288_s16, 0 }
   0x5   : > { %s69_s19 = sadd.s32 1, %s1276_s13  ;;  %p1065_p5 = scmp.ge.s32.totalorder %s1288_s16, 2 }
   0x6   : > { %s1561_s17 = smov (%p30_p0, %s28_s17), 0  ;;  %p78_p3 = por %p77_p2, %p76_p1 }
   0x7   : > { %s65_s18 = ssub.s32 %s1284_s15, %s1561_s17  ;;  %176 = sbr.rel (%p1065_p5) target bundleno = 41 (0x29), region = 24 }
   0x8   : > { %p67_p4 = scmp.eq.s32.totalorder %s65_s18, 0 }
   0xa   : > { %s1349_s20 = scalar_select %p67_p4, %s1276_s13, %s69_s19  }
   0xc   : > { %179 = sbr.rel (!%p78_p3) target bundleno = 41 (0x29), region = 28  ;;  %s181_s21 = sand.u32 (%p78_p3), 1, %s1276_s13  }
   0xd   : > { %s1125_s22 = sshll.u32 (%p78_p3), %s1284_s15, 3  ;;  %s1126_s23 = smul.u32 (%p78_p3), 392, %s181_s21 }
   0xe   : > { %s1357_s26 = scalar_lea.vmem (%p78_p3), %s1553_s1, %s1125_s22 }
   0xf   : > { %v314_v0 = vld [vmem:[%s1357_s26] sm:$0xff] (%p78_p3)  ;;  %v316_v1 = vld [vmem:[%s1357_s26 + $0x10] sm:$0xff] (%p78_p3)  ;;  %s1365_s27 = scalar_lea.vmem (%p78_p3), [#allocation3], %s1126_s23 }
  0x10   : > { %v318_v2 = vld [vmem:[%s1357_s26 + $0x20] sm:$0xff] (%p78_p3)  ;;  %v320_v3 = vld [vmem:[%s1357_s26 + $0x30] sm:$0xff] (%p78_p3)  ;;  %315 = vst [vmem:[%s1365_s27] sm:$0xff] (%p78_p3), %v314_v0  ;;  %317 = vst [vmem:[%s1365_s27 + $0x8] sm:$0xff] (%p78_p3), %v316_v1 }
  0x11   : > { %v322_v4 = vld [vmem:[%s1357_s26 + $0x40] sm:$0xff]  ;;  %v324_v5 = vld [vmem:[%s1357_s26 + $0x50] sm:$0xff]  ;;  %319 = vst [vmem:[%s1365_s27 + $0x10] sm:$0xff] %v318_v2  ;;  %321 = vst [vmem:[%s1365_s27 + $0x18] sm:$0xff] %v320_v3 }
  0x12   : > { %323 = vst [vmem:[%s1365_s27 + $0x20] sm:$0xff] %v322_v4  ;;  %325 = vst [vmem:[%s1365_s27 + $0x28] sm:$0xff] %v324_v5  ;;  %v326_v6 = vld [vmem:[%s1357_s26 + $0x60] sm:$0xff]  ;;  %v328_v7 = vld [vmem:[%s1357_s26 + $0x70] sm:$0xff] }
  0x13   : > { %v330_v8 = vld [vmem:[%s1357_s26 + $0x80] sm:$0xff]  ;;  %327 = vst [vmem:[%s1365_s27 + $0x30] sm:$0xff] %v326_v6  ;;  %329 = vst [vmem:[%s1365_s27 + $0x38] sm:$0xff] %v328_v7  ;;  %v332_v9 = vld [vmem:[%s1357_s26 + $0x90] sm:$0xff] }
  0x14   : > { %331 = vst [vmem:[%s1365_s27 + $0x40] sm:$0xff] %v330_v8  ;;  %v334_v10 = vld [vmem:[%s1357_s26 + $0xa0] sm:$0xff]  ;;  %v336_v11 = vld [vmem:[%s1357_s26 + $0xb0] sm:$0xff]  ;;  %333 = vst [vmem:[%s1365_s27 + $0x48] sm:$0xff] %v332_v9 }
  0x15   : > { %335 = vst [vmem:[%s1365_s27 + $0x50] sm:$0xff] %v334_v10  ;;  %337 = vst [vmem:[%s1365_s27 + $0x58] sm:$0xff] %v336_v11  ;;  %v338_v12 = vld [vmem:[%s1357_s26 + $0xc0] sm:$0xff]  ;;  %v340_v13 = vld [vmem:[%s1357_s26 + $0xd0] sm:$0xff] }
  0x16   : > { %v342_v14 = vld [vmem:[%s1357_s26 + $0xe0] sm:$0xff]  ;;  %339 = vst [vmem:[%s1365_s27 + $0x60] sm:$0xff] %v338_v12  ;;  %341 = vst [vmem:[%s1365_s27 + $0x68] sm:$0xff] %v340_v13  ;;  %v344_v15 = vld [vmem:[%s1357_s26 + $0xf0] sm:$0xff] }
  0x17   : > { %343 = vst [vmem:[%s1365_s27 + $0x70] sm:$0xff] %v342_v14  ;;  %v346_v16 = vld [vmem:[%s1357_s26 + $0x100] sm:$0xff]  ;;  %v348_v17 = vld [vmem:[%s1357_s26 + $0x110] sm:$0xff]  ;;  %345 = vst [vmem:[%s1365_s27 + $0x78] sm:$0xff] %v344_v15 }
  0x18   : > { %347 = vst [vmem:[%s1365_s27 + $0x80] sm:$0xff] %v346_v16  ;;  %349 = vst [vmem:[%s1365_s27 + $0x88] sm:$0xff] %v348_v17  ;;  %v350_v18 = vld [vmem:[%s1357_s26 + $0x120] sm:$0xff]  ;;  %v352_v19 = vld [vmem:[%s1357_s26 + $0x130] sm:$0xff] }
  0x19   : > { %v354_v20 = vld [vmem:[%s1357_s26 + $0x140] sm:$0xff]  ;;  %351 = vst [vmem:[%s1365_s27 + $0x90] sm:$0xff] %v350_v18  ;;  %353 = vst [vmem:[%s1365_s27 + $0x98] sm:$0xff] %v352_v19  ;;  %v356_v21 = vld [vmem:[%s1357_s26 + $0x150] sm:$0xff] }
  0x1a   : > { %355 = vst [vmem:[%s1365_s27 + $0xa0] sm:$0xff] %v354_v20  ;;  %v358_v22 = vld [vmem:[%s1357_s26 + $0x160] sm:$0xff]  ;;  %v360_v23 = vld [vmem:[%s1357_s26 + $0x170] sm:$0xff]  ;;  %357 = vst [vmem:[%s1365_s27 + $0xa8] sm:$0xff] %v356_v21 }
  0x1b   : > { %359 = vst [vmem:[%s1365_s27 + $0xb0] sm:$0xff] %v358_v22  ;;  %361 = vst [vmem:[%s1365_s27 + $0xb8] sm:$0xff] %v360_v23  ;;  %v362_v24 = vld [vmem:[%s1357_s26 + $0x180] sm:$0xff]  ;;  %v364_v25 = vld [vmem:[%s1357_s26 + $0x190] sm:$0xff] }
  0x1c   : > { %v366_v26 = vld [vmem:[%s1357_s26 + $0x1a0] sm:$0xff]  ;;  %363 = vst [vmem:[%s1365_s27 + $0xc0] sm:$0xff] %v362_v24  ;;  %365 = vst [vmem:[%s1365_s27 + $0xc8] sm:$0xff] %v364_v25  ;;  %v368_v27 = vld [vmem:[%s1357_s26 + $0x1b0] sm:$0xff] }
  0x1d   : > { %367 = vst [vmem:[%s1365_s27 + $0xd0] sm:$0xff] %v366_v26  ;;  %v370_v28 = vld [vmem:[%s1357_s26 + $0x1c0] sm:$0xff]  ;;  %v372_v29 = vld [vmem:[%s1357_s26 + $0x1d0] sm:$0xff]  ;;  %369 = vst [vmem:[%s1365_s27 + $0xd8] sm:$0xff] %v368_v27 }
  0x1e   : > { %371 = vst [vmem:[%s1365_s27 + $0xe0] sm:$0xff] %v370_v28  ;;  %373 = vst [vmem:[%s1365_s27 + $0xe8] sm:$0xff] %v372_v29  ;;  %v374_v30 = vld [vmem:[%s1357_s26 + $0x1e0] sm:$0xff]  ;;  %v376_v31 = vld [vmem:[%s1357_s26 + $0x1f0] sm:$0xff] }
  0x1f   : > { %v378_v32 = vld [vmem:[%s1357_s26 + $0x200] sm:$0xff]  ;;  %375 = vst [vmem:[%s1365_s27 + $0xf0] sm:$0xff] %v374_v30  ;;  %377 = vst [vmem:[%s1365_s27 + $0xf8] sm:$0xff] %v376_v31  ;;  %v380_v33 = vld [vmem:[%s1357_s26 + $0x210] sm:$0xff] }
  0x20   : > { %379 = vst [vmem:[%s1365_s27 + $0x100] sm:$0xff] %v378_v32  ;;  %v382_v34 = vld [vmem:[%s1357_s26 + $0x220] sm:$0xff]  ;;  %v384_v35 = vld [vmem:[%s1357_s26 + $0x230] sm:$0xff]  ;;  %381 = vst [vmem:[%s1365_s27 + $0x108] sm:$0xff] %v380_v33 }
  0x21   : > { %383 = vst [vmem:[%s1365_s27 + $0x110] sm:$0xff] %v382_v34  ;;  %385 = vst [vmem:[%s1365_s27 + $0x118] sm:$0xff] %v384_v35  ;;  %v386_v36 = vld [vmem:[%s1357_s26 + $0x240] sm:$0xff]  ;;  %v388_v37 = vld [vmem:[%s1357_s26 + $0x250] sm:$0xff] }
  0x22   : > { %v390_v38 = vld [vmem:[%s1357_s26 + $0x260] sm:$0xff]  ;;  %387 = vst [vmem:[%s1365_s27 + $0x120] sm:$0xff] %v386_v36  ;;  %389 = vst [vmem:[%s1365_s27 + $0x128] sm:$0xff] %v388_v37  ;;  %v392_v39 = vld [vmem:[%s1357_s26 + $0x270] sm:$0xff] }
  0x23   : > { %391 = vst [vmem:[%s1365_s27 + $0x130] sm:$0xff] %v390_v38  ;;  %v394_v40 = vld [vmem:[%s1357_s26 + $0x280] sm:$0xff]  ;;  %v396_v41 = vld [vmem:[%s1357_s26 + $0x290] sm:$0xff]  ;;  %393 = vst [vmem:[%s1365_s27 + $0x138] sm:$0xff] %v392_v39 }
  0x24   : > { %395 = vst [vmem:[%s1365_s27 + $0x140] sm:$0xff] %v394_v40  ;;  %397 = vst [vmem:[%s1365_s27 + $0x148] sm:$0xff] %v396_v41  ;;  %v398_v42 = vld [vmem:[%s1357_s26 + $0x2a0] sm:$0xff]  ;;  %v400_v43 = vld [vmem:[%s1357_s26 + $0x2b0] sm:$0xff] }
  0x25   : > { %v402_v44 = vld [vmem:[%s1357_s26 + $0x2c0] sm:$0xff]  ;;  %399 = vst [vmem:[%s1365_s27 + $0x150] sm:$0xff] %v398_v42  ;;  %401 = vst [vmem:[%s1365_s27 + $0x158] sm:$0xff] %v400_v43  ;;  %v404_v45 = vld [vmem:[%s1357_s26 + $0x2d0] sm:$0xff] }
  0x26   : > { %403 = vst [vmem:[%s1365_s27 + $0x160] sm:$0xff] %v402_v44  ;;  %v406_v46 = vld [vmem:[%s1357_s26 + $0x2e0] sm:$0xff]  ;;  %v408_v47 = vld [vmem:[%s1357_s26 + $0x2f0] sm:$0xff]  ;;  %405 = vst [vmem:[%s1365_s27 + $0x168] sm:$0xff] %v404_v45 }
  0x27   : > { %407 = vst [vmem:[%s1365_s27 + $0x170] sm:$0xff] %v406_v46  ;;  %409 = vst [vmem:[%s1365_s27 + $0x178] sm:$0xff] %v408_v47  ;;  %v410_v48 = vld [vmem:[%s1357_s26 + $0x300] sm:$0xff] }
  0x28   : > { %411 = vst [vmem:[%s1365_s27 + $0x180] sm:$0xff] %v410_v48 }
  0x29 PF: > { %p1068_p6 = scmp.ge.s32.totalorder %s1288_s16, 1  ;;  %p416_p7 = scmp.lt.s32.totalorder %s1288_s16, 3 }
  0x2b   : > { %p417_p8 = pnand %p1068_p6, %p416_p7 }
  0x2c   : > { %s423_s28 = sand.u32 (!%p417_p8), 1, %s1272_s12   ;;  %s1069_s8 = sshll.u32 (!%p417_p8), %s1280_s14, 1 }
  0x2d   : > { %420 = sbr.rel (%p417_p8) target bundleno = 343 (0x157), region = 66  ;;  %p482_p9 = scmp.lt.s32.totalorder (!%p417_p8), %s1069_s8, 3 }
  0x2e   : > { %s1127_s4 = smul.u32 (!%p417_p8), 392, %s423_s28 }
  0x30   : > { %s1470_s7 = scalar_lea.vmem (!%p417_p8), [#allocation3], %s1127_s4 }
  0x32   : > { %v496_v49 = vld [vmem:[%s1552_s0] sm:$0xff]  ;;  %v551_v50 = vlaneseq  ;;  %v1290_v51 = vmov 1983009808   ;;  %v1291_v55 = vmov 0   ;;  %v1176_v61 = vld [vmem:[%s1470_s7 + $0x64] ss:$8 sps:$4 sm:$0xff]  }
  0x33   : > { %v549_v52 = vunpack.c.l.s4 %v1290_v51  ;;  %v915_v53 = vld [vmem:[%s1554_s2] sm:$0x7]  ;;  %1172 = vset.pattern.permute.xlu0 %v1291_v55  ;;  %v547_v56 = vcombine.high %v496_v49, %v496_v49  ;;  %v1173_v58 = vld [vmem:[%s1470_s7 + $0x74] ss:$8 sps:$4 sm:$0xff]   ;;  %v1178_v62 = vld [vmem:[%s1470_s7 + $0x60] ss:$8 sps:$4 sm:$0xff]  }
  0x34   : > { %v1468_v54 = vshrl.u32 %v551_v50, 7  ;;  %918 = vperm.xlu0 %1172, %v915_v53   ;;  %v1175_v59 = vld [vmem:[%s1470_s7 + $0x70] ss:$8 sps:$4 sm:$0xff]   ;;  %823 = vmatprep.subr.bf16.mxu0 %v1173_v58  ;;  %v1179_v1 = vld [vmem:[%s1470_s7 + $0x54] ss:$8 sps:$4 sm:$0xff]   ;;  %vm812_vm0 = vcmask 64512  }
  0x35   : > { %v550_v57 = vunpack.c.0.s8 %v549_v52  ;;  %824 = vmatpush1.bf16.msra.mxu0 %v1175_v59  ;;  %v1181_v4 = vld [vmem:[%s1470_s7 + $0x50] ss:$8 sps:$4 sm:$0xff]   ;;  %v1182_v5 = vld [vmem:[%s1470_s7 + $0x44] ss:$8 sps:$4 sm:$0xff]   ;;  %v1191_v6 = vld [vmem:[%s1470_s7 + $0x174] ss:$8 sps:$4 sm:$0xff]  }
  0x36   : > { %825 = vmatprep.subr.bf16.mxu0 %v1176_v61  ;;  %v1193_v7 = vld [vmem:[%s1470_s7 + $0x170] ss:$8 sps:$4 sm:$0xff]   ;;  %v1184_v8 = vld [vmem:[%s1470_s7 + $0x40] ss:$8 sps:$4 sm:$0xff]   ;;  %864 = vmatprep.subr.bf16.mxu1 %v1191_v6  ;;  %v1197_v9 = vld [vmem:[%s1470_s7 + $0x164] ss:$8 sps:$4 sm:$0xff]  }
  0x37   : > { %v553_v60 = vsub.s32 %v550_v57, %v1468_v54  ;;  %865 = vmatpush1.bf16.msra.mxu1 %v1193_v7  ;;  %v1199_v10 = vld [vmem:[%s1470_s7 + $0x160] ss:$8 sps:$4 sm:$0xff]   ;;  %v1185_v11 = vld [vmem:[%s1470_s7 + $0x34] ss:$8 sps:$4 sm:$0xff]   ;;  %v1187_v12 = vld [vmem:[%s1470_s7 + $0x30] ss:$8 sps:$4 sm:$0xff]  }
  0x38   : > { %866 = vmatprep.subr.bf16.mxu1 %v1197_v9  ;;  %v1203_v13 = vld [vmem:[%s1470_s7 + $0x154] ss:$8 sps:$4 sm:$0xff]   ;;  %v1188_v14 = vld [vmem:[%s1470_s7 + $0x24] ss:$8 sps:$4 sm:$0xff]   ;;  %v1205_v15 = vld [vmem:[%s1470_s7 + $0x150] ss:$8 sps:$4 sm:$0xff]  }
  0x39   : > { %v1477_v63 = vrot.slane %v547_v56, %v553_v60  ;;  %v1479_v0 = vrot.slane %v496_v49, %v553_v60  ;;  %826 = vmatpush1.bf16.msra.mxu0 %v1178_v62  ;;  %v1209_v16 = vld [vmem:[%s1470_s7 + $0x144] ss:$8 sps:$4 sm:$0xff]   ;;  %v1190_v17 = vld [vmem:[%s1470_s7 + $0x20] ss:$8 sps:$4 sm:$0xff]   ;;  %v1194_v18 = vld [vmem:[%s1470_s7 + $0x14] ss:$8 sps:$4 sm:$0xff]  }
  0x3a   : > { %827 = vmatprep.subr.bf16.mxu0 %v1179_v1  ;;  %v1211_v19 = vld [vmem:[%s1470_s7 + $0x140] ss:$8 sps:$4 sm:$0xff]   ;;  %v1215_v20 = vld [vmem:[%s1470_s7 + $0x134] ss:$8 sps:$4 sm:$0xff]   ;;  %v1196_v21 = vld [vmem:[%s1470_s7 + $0x10] ss:$8 sps:$4 sm:$0xff]  }
  0x3b   : > { %v563_v2 = vcombine.high %v1477_v63, %v1477_v63  ;;  %v562_v3 = vcombine.high %v1479_v0, %v1479_v0  ;;  %867 = vmatpush1.bf16.msra.mxu1 %v1199_v10  ;;  %v1200_v22 = vld [vmem:[%s1470_s7 + $0x4] ss:$8 sps:$4 sm:$0xff]   ;;  %v1217_v23 = vld [vmem:[%s1470_s7 + $0x130] ss:$8 sps:$4 sm:$0xff]   ;;  %v1202_v25 = vld [vmem:[%s1470_s7] ss:$8 sps:$4 sm:$0xff]  }
  0x3c   : > { %868 = vmatprep.subr.bf16.mxu1 %v1203_v13  ;;  %v1221_v24 = vld [vmem:[%s1470_s7 + $0x124] ss:$8 sps:$4 sm:$0xff]   ;;  %v1206_v26 = vld [vmem:[%s1470_s7 + $0xf4] ss:$8 sps:$4 sm:$0xff]   ;;  %v1223_v27 = vld [vmem:[%s1470_s7 + $0x120] ss:$8 sps:$4 sm:$0xff]  }
  0x3d   : > { %1122 = vmatprep.mubr.msk.bf16.mxu1 %vm812_vm0, %v563_v2  ;;  %855 = vmatprep.mubr.bf16.mxu0 %v562_v3  ;;  %v1227_v28 = vld [vmem:[%s1470_s7 + $0x114] ss:$8 sps:$4 sm:$0xff]   ;;  %v1208_v29 = vld [vmem:[%s1470_s7 + $0xf0] ss:$8 sps:$4 sm:$0xff]   ;;  %v1212_v31 = vld [vmem:[%s1470_s7 + $0xe4] ss:$8 sps:$4 sm:$0xff]  }
  0x3e   : > { %828 = vmatpush1.bf16.msra.mxu0 %v1181_v4  ;;  %v1229_v30 = vld [vmem:[%s1470_s7 + $0x110] ss:$8 sps:$4 sm:$0xff]   ;;  %v1233_v32 = vld [vmem:[%s1470_s7 + $0x104] ss:$8 sps:$4 sm:$0xff]   ;;  %v1214_v34 = vld [vmem:[%s1470_s7 + $0xe0] ss:$8 sps:$4 sm:$0xff]  }
  0x3f   : > { %829 = vmatprep.subr.bf16.mxu0 %v1182_v5  ;;  %869 = vmatpush1.bf16.msra.mxu1 %v1205_v15  ;;  %v545_v33 = vld [vmem:[%s1470_s7 + $0x180] sm:$0xff]  ;;  %v1218_v36 = vld [vmem:[%s1470_s7 + $0xd4] ss:$8 sps:$4 sm:$0xff]   ;;  %vm816_vm1 = vcmask 1043456   ;;  %v1220_v39 = vld [vmem:[%s1470_s7 + $0xd0] ss:$8 sps:$4 sm:$0xff]  }
  0x40   : > { %870 = vmatprep.subr.bf16.mxu1 %v1209_v16  ;;  %v1235_v35 = vld [vmem:[%s1470_s7 + $0x100] ss:$8 sps:$4 sm:$0xff]   ;;  %v1120_v37 = vcombine.high %v545_v33, %v545_v33  ;;  %v1119_v38 = vcombine.low %v545_v33, %v545_v33  ;;  %v1224_v40 = vld [vmem:[%s1470_s7 + $0xc4] ss:$8 sps:$4 sm:$0xff]   ;;  %v1230_v43 = vld [vmem:[%s1470_s7 + $0xb4] ss:$8 sps:$4 sm:$0xff]  }
  0x41   : > { %v1226_v42 = vld [vmem:[%s1470_s7 + $0xc0] ss:$8 sps:$4 sm:$0xff]   ;;  %v1232_v44 = vld [vmem:[%s1470_s7 + $0xb0] ss:$8 sps:$4 sm:$0xff]   ;;  %v1236_v45 = vld [vmem:[%s1470_s7 + $0xa4] ss:$8 sps:$4 sm:$0xff]  }
  0x42   : > { %830 = vmatpush1.bf16.msra.mxu0 %v1184_v8  ;;  %v818_v41 = vsel %vm816_vm1, %v1119_v38, 0  ;;  %v1238_v46 = vld [vmem:[%s1470_s7 + $0xa0] ss:$8 sps:$4 sm:$0xff]   ;;  %v1241_v47 = vld [vmem:[%s1470_s7 + $0x94] ss:$8 sps:$4 sm:$0xff]   ;;  %v1292_v51 = vmov 0.0  }
  0x43   : > { %831 = vmatprep.subr.bf16.mxu0 %v1185_v11  ;;  %871 = vmatpush1.bf16.msra.mxu1 %v1211_v19  ;;  %v1243_v48 = vld [vmem:[%s1470_s7 + $0x90] ss:$8 sps:$4 sm:$0xff]   ;;  %v1245_v49 = vld [vmem:[%s1470_s7 + $0x84] ss:$8 sps:$4 sm:$0xff]   ;;  %v1247_v50 = vld [vmem:[%s1470_s7 + $0x80] ss:$8 sps:$4 sm:$0xff]  }
  0x44   : > { %872 = vmatprep.subr.bf16.mxu1 %v1215_v20  ;;  %494 = vst [vmem:[#allocation2] sm:$0x77] %v1292_v51  ;;  %v1293_v58 = vmov 839922192   ;;  %s1563_s8 = smov (!%p482_p9, %s1069_s8), 3 }
  0x45   : > { %v921_v59 = vunpack.c.l.s4 %v1293_v58  ;;  %s1070_s9 = sshll.u32 %s1563_s8, 2 }
  0x46   : > { %832 = vmatpush1.bf16.msra.mxu0 %v1187_v12  ;;  %s487_s12 = scalar_lea.vmem %s1555_s3, %s1070_s9 }
  0x47   : > { %833 = vmatprep.subr.bf16.mxu0 %v1188_v14  ;;  %873 = vmatpush1.bf16.msra.mxu1 %v1217_v23  ;;  %v922_v3 = vunpack.c.0.s8 %v921_v59 }
  0x48   : > { %874 = vmatprep.subr.bf16.mxu1 %v1221_v24 }
  0x4a   : > { %834 = vmatpush1.bf16.msra.mxu0 %v1190_v17 }
  0x4b   : > { %835 = vmatprep.subr.bf16.mxu0 %v1194_v18  ;;  %875 = vmatpush1.bf16.msra.mxu1 %v1223_v27 }
  0x4c   : > { %876 = vmatprep.subr.bf16.mxu1 %v1227_v28 }
  0x4e   : > { %836 = vmatpush1.bf16.msra.mxu0 %v1196_v21 }
  0x4f   : > { %837 = vmatprep.subr.bf16.mxu0 %v1200_v22  ;;  %877 = vmatpush1.bf16.msra.mxu1 %v1229_v30 }
  0x50   : > { %878 = vmatprep.subr.bf16.mxu1 %v1233_v32 }
  0x52   : > { %838 = vmatpush1.bf16.msra.mxu0 %v1202_v25 }
  0x53   : > { %839 = vmatprep.subr.bf16.mxu0 %v1206_v26  ;;  %879 = vmatpush1.bf16.msra.mxu1 %v1235_v35 }
  0x54   : > { %1121 = vmatprep.subr.msk.bf16.mxu1 %vm816_vm1, %v1120_v37 }
  0x56   : > { %840 = vmatpush2.bf16.msra.mxu0 %v1208_v29 }
  0x57   : > { %841 = vmatprep.subr.bf16.mxu0 %v1212_v31  ;;  %895 = vmatpush2.bf16.msra.mxu1 %v818_v41 }
  0x5a   : > { %842 = vmatpush2.bf16.msra.mxu0 %v1214_v34  ;;  %897 = vmatmul.mubr.bf16.vlgmr.msra.gmra.mxu1 %v1477_v63  ;;  %v495_v63 = vld [vmem:[#allocation2] sm:$0x77] }
  0x5b   : > { %843 = vmatprep.subr.bf16.mxu0 %v1218_v36 }
  0x5e   : > { %844 = vmatpush2.bf16.msra.mxu0 %v1220_v39 }
  0x5f   : > { %845 = vmatprep.subr.bf16.mxu0 %v1224_v40 }
  0x62   : > { %846 = vmatpush2.bf16.msra.mxu0 %v1226_v42 }
  0x63   : > { %847 = vmatprep.subr.bf16.mxu0 %v1230_v43 }
  0x66   : > { %848 = vmatpush2.bf16.msra.mxu0 %v1232_v44 }
  0x67   : > { %849 = vmatprep.subr.bf16.mxu0 %v1236_v45 }
  0x6a   : > { %850 = vmatpush2.bf16.msra.mxu0 %v1238_v46 }
  0x6b   : > { %851 = vmatprep.subr.bf16.mxu0 %v1241_v47 }
  0x6e   : > { %852 = vmatpush2.bf16.msra.mxu0 %v1243_v48 }
  0x6f   : > { %853 = vmatprep.subr.bf16.mxu0 %v1245_v49 }
  0x72   : > { %854 = vmatpush2.bf16.msra.mxu0 %v1247_v50 }
  0x75   : > { %856 = vmatmul.mubr.bf16.vlgmr.msra.gmra.mxu0 %v1479_v0  ;;  %v925_v0 = vsub.s32 %v922_v3, %v1468_v54 }
  0xaf   : > { %v919_v6 = vpop.permute.xlu0 %918 }
  0xb0   : > { %v926_v7 = vrot.slane %v919_v6, %v925_v0 }
 0x11a   : > { %v898_v52 = vpop.f32.mrf.mxu1 }
 0x11c   : > { %v900_v53 = vpop.f32.mrf.mxu1 }
 0x11e   : > { %v902_v55 = vpop.f32.mrf.mxu1 }
 0x120   : > { %v903_v56 = vpop.f32.mrf.mxu1 }
 0x135   : > { %v857_v57 = vpop.f32.mrf.mxu0 }
 0x136   : > { %v899_v61 = vadd.f32 %v898_v52, %v857_v57 }
 0x137   : > { %v859_v60 = vpop.f32.mrf.mxu0 }
 0x138   : > { %v901_v62 = vadd.f32 %v900_v53, %v859_v60 }
 0x139   : > { %v861_v1 = vpop.f32.mrf.mxu0 }
 0x13a   : > { %v907_v2 = vcombine.low %v899_v61, %v901_v62 }
 0x13b   : > { %v862_v4 = vpop.f32.mrf.mxu0 }
 0x13c   : > { %v909_v5 = vadd.f32 %v907_v2, %v495_v63 }
 0x13e   : > { %910 = vst [vmem:[#allocation2] sm:$0x77] %v909_v5 }
 0x145   : > { %v914_v8 = vld [vmem:[#allocation2] sm:$0x77] }
 0x146   : > { %v928_v9 = vadd.f32 %v926_v7, %v914_v8 }
 0x148   : > { %1248 = vtanh.f32 %v928_v9 }
 0x155   : > { %v1249_v10 = vpop.eup %1248 }
 0x156   : > { %930 = vst [vmem:[%s487_s12] sm:$0x77] %v1249_v10 }
 0x157 PF: > { %s13_s16 = sadd.s32 1, %s1288_s16   ;;  %s1556_s12 = smov %s1276_s13 }
 0x158   : > { %p10_p10 = scmp.ge.s32.totalorder %s13_s16, 4   ;;  %s1557_s13 = smov %s1349_s20 }
 0x159   : > { %s1558_s14 = smov %s1284_s15  ;;  %s1559_s15 = smov %s1561_s17 }
 0x15a   :  { %12 = sbr.rel (!%p10_p10) target bundleno = 3 (0x3), region = 119 }

</bundles_post_ra>
